<compile_context>
chip_gen: v7x
topology: tpu7x:2x2x1
jax: 0.10.0
libtpu: 0.0.40
codegen_flags: <defaults>
</compile_context>

<pallas_src>
import jax
import jax.numpy as jnp
from jax.experimental import pallas as pl
from jax.experimental.pallas import tpu as pltpu

SEQ_OUT = 41          # F.interpolate(size=41)
D_MODEL = 256
N_HEAD = 8
HEAD_DIM = D_MODEL // N_HEAD
DIM_FF = 512
LSTM_H = 64
LN_EPS = 1e-5
D1_OUT = 128          # dense1 output features

_CP = pltpu.CompilerParams(dimension_semantics=("parallel",),
                           vmem_limit_bytes=32 * 1024 * 1024)


def _sigmoid(x):
    # logistic via tanh: lands on the EUP slot instead of a VALU divide.
    return 0.5 * (jnp.tanh(0.5 * x) + 1.0)


def _layernorm(x, w, b):
    mu = jnp.mean(x, axis=-1, keepdims=True)
    var = jnp.mean((x - mu) ** 2, axis=-1, keepdims=True)
    return (x - mu) * jax.lax.rsqrt(var + LN_EPS) * w + b


# --------------------------------------------------------------------------
# Linear interpolation (F.interpolate mode='linear', align_corners=False)
# expressed as a (41, T_in) matrix; applied as a matmul inside the kernel.
# --------------------------------------------------------------------------
def make_interp_matrix(t_in, t_out):
    scale = t_in / t_out
    i = jnp.arange(t_out, dtype=jnp.float32)
    src = jnp.clip((i + 0.5) * scale - 0.5, 0.0, float(t_in - 1))
    i0 = jnp.floor(src).astype(jnp.int32)
    i1 = jnp.minimum(i0 + 1, t_in - 1)
    w1 = src - i0.astype(jnp.float32)
    w0 = 1.0 - w1
    rows = jnp.arange(t_out)
    m = jnp.zeros((t_out, t_in), jnp.float32)
    m = m.at[rows, i0].add(w0)
    m = m.at[rows, i1].add(w1)
    return m


# --------------------------------------------------------------------------
# Fused kernel: LSTM + interpolation + embedding proj + attention + head chain
# (one batch element per grid step)
# --------------------------------------------------------------------------
def lm2ome_kernel(mw_ref, me_ref, x2_ref, emb_ref,
                  wih_ref, lb_ref, whh_ref,
                  lin_w_ref, lin_b_ref,
                  in_w_ref, in_b_ref, ow_ref, ob_ref,
                  n1w_ref, n1b_ref, f1w_ref, f1b_ref, f2w_ref, f2b_ref,
                  n2w_ref, n2b_ref,
                  d1w_ref, d1b_ref, d2w_ref, d2b_ref, mo_w_ref, mo_b_ref,
                  preds_ref, d1_out_ref, attw_ref,
                  xpf_ref, xpb_ref, hf_ref, hb_ref):
    L, D, H, HD, LH = SEQ_OUT, D_MODEL, N_HEAD, HEAD_DIM, LSTM_H
    T = hf_ref.shape[0]

    # ----------------- bidirectional LSTM (this batch element) -----------------
    x_f = x2_ref[0, 0].astype(jnp.float32)          # (T, 128)  original order
    x_b = x2_ref[0, 1].astype(jnp.float32)          # (T, 128)  time-reversed
    # Hoisted input projections, gate order (i,f,o,g); b_ih+b_hh folded.
    xpf_ref[...] = (jnp.dot(x_f, wih_ref[0], preferred_element_type=jnp.float32)
                    + lb_ref[0])                    # (T, 256) fwd gates @ time t
    xpb_ref[...] = (jnp.dot(x_b, wih_ref[1], preferred_element_type=jnp.float32)
                    + lb_ref[1])                    # (T, 256) bwd gates @ time T-1-t

    whh = whh_ref[...]                              # (2, 64, 256)
    h0 = jnp.zeros((2, 1, LH), jnp.float32)
    c0 = jnp.zeros((2, 1, LH), jnp.float32)

    def lstm_step(t, carry):
        h, c = carry
        gx = jnp.stack([xpf_ref[pl.ds(t, 1), :],
                        xpb_ref[pl.ds(t, 1), :]], axis=0)          # (2, 1, 256)
        rec = jax.lax.dot_general(h, whh, (((2,), (1,)), ((0,), (0,))),
                                  preferred_element_type=jnp.float32)
        gates = gx + rec                                           # (2, 1, 256)
        sg = _sigmoid(gates[..., 0:3 * LH])     # i | f | o in one 192-lane block
        i_g = sg[..., 0:LH]
        f_g = sg[..., LH:2 * LH]
        o_g = sg[..., 2 * LH:3 * LH]
        g_g = jnp.tanh(gates[..., 3 * LH:4 * LH])
        c_new = f_g * c + i_g * g_g
        h_new = o_g * jnp.tanh(c_new)
        hf_ref[pl.ds(t, 1), :] = h_new[0]
        hb_ref[pl.ds(T - 1 - t, 1), :] = h_new[1]
        return h_new, c_new

    jax.lax.fori_loop(0, T, lstm_step, (h0, c0), unroll=T <= 32)

    lstm_feat = jnp.concatenate([hf_ref[...], hb_ref[...]], axis=-1)    # (T, 128)

    # ----------------- interpolate to 41 steps -----------------
    w2v_i = jnp.dot(mw_ref[...], lstm_feat,
                    preferred_element_type=jnp.float32)                 # (41, 128)

    # Linear(512->128) + ReLU on the embedding, then interpolate.
    emb = emb_ref[0].astype(jnp.bfloat16)
    emb_p = jnp.maximum(
        jnp.dot(emb, lin_w_ref[...], preferred_element_type=jnp.float32)
        + lin_b_ref[...], 0.0)                                          # (Te, 128)
    emb_i = jnp.dot(me_ref[...], emb_p,
                    preferred_element_type=jnp.float32)                 # (41, 128)

    src = jnp.concatenate([w2v_i, emb_i], axis=-1)                      # (41, 256)

    # ----------------- 8-head self-attention -----------------
    qkv = (jnp.dot(src.astype(jnp.bfloat16), in_w_ref[...],
                   preferred_element_type=jnp.float32) + in_b_ref[...]) # (41, 768)
    q = qkv[:, 0:D] * (1.0 / (HD ** 0.5))
    k = qkv[:, D:2 * D]
    v = qkv[:, 2 * D:3 * D]

    def split_heads(t):                       # (41, 256) -> (8, 41, 32)
        return jnp.stack([t[:, h * HD:(h + 1) * HD] for h in range(H)], axis=0)

    qh, kh, vh = split_heads(q), split_heads(k), split_heads(v)
    s = jax.lax.dot_general(qh, kh, (((2,), (2,)), ((0,), (0,))),
                            preferred_element_type=jnp.float32)         # (8, 41, 41)
    s = s - jnp.max(s, axis=-1, keepdims=True)
    e = jnp.exp(s)
    prob = e * pl.reciprocal(jnp.sum(e, axis=-1, keepdims=True), approx=True)
    attw_ref[0] = jnp.mean(prob, axis=0)                                # (41, 41)
    oh = jax.lax.dot_general(prob, vh, (((2,), (1,)), ((0,), (0,))),
                             preferred_element_type=jnp.float32)        # (8, 41, 32)
    # Head concat fused into the out-projection: batch over heads, then sum.
    attn = jnp.sum(
        jax.lax.dot_general(oh, ow_ref[...], (((2,), (1,)), ((0,), (0,))),
                            preferred_element_type=jnp.float32),
        axis=0) + ob_ref[...]                                           # (41, 256)

    # ----------------- residual + LN, FFN, residual + LN -----------------
    x = _layernorm(src + attn, n1w_ref[...], n1b_ref[...])
    ff = jnp.maximum(
        jnp.dot(x.astype(jnp.bfloat16), f1w_ref[...],
                preferred_element_type=jnp.float32) + f1b_ref[...], 0.0)
    ff = (jnp.dot(ff.astype(jnp.bfloat16), f2w_ref[...],
                  preferred_element_type=jnp.float32) + f2b_ref[...])
    x = _layernorm(x + ff, n2w_ref[...], n2b_ref[...])                  # (41, 256)

    # ----------------- dense1: flatten(41*256) -> 128, one wide matmul ---------
    # d1w_ref is (256, 41*128) with column block l holding dense1.W[l]; the
    # flatten contraction is the sum of the 41 diagonal (1,128) blocks of y.
    y = jnp.dot(x.astype(jnp.bfloat16), d1w_ref[...],
                preferred_element_type=jnp.float32)                     # (41, 41*128)
    parts = [y[l:l + 1, l * D1_OUT:(l + 1) * D1_OUT] for l in range(L)]
    d1 = jnp.maximum(
        jnp.sum(jnp.concatenate(parts, axis=0), axis=0, keepdims=True)
        + d1b_ref[...], 0.0)                                            # (1, 128)
    d1_out_ref[0] = d1

    d2 = jnp.maximum(
        jnp.dot(d1, d2w_ref[...], preferred_element_type=jnp.float32)
        + d2b_ref[...], 0.0)                                            # (1, 20)
    logit = (jnp.dot(d2, mo_w_ref[...], preferred_element_type=jnp.float32)
             + mo_b_ref[...])                                           # (1, 1)
    preds_ref[0] = _sigmoid(logit)


# --------------------------------------------------------------------------
# Wrapper: all layout prep (interp matrices, gate reorder, weight re-layouts,
# bf16 casts, time-reversed input) happens here, outside the kernel.
# --------------------------------------------------------------------------
def _const_spec(shape):
    nd = len(shape)
    return pl.BlockSpec(shape, lambda b, nd=nd: (0,) * nd)


def _per_b_spec(shape):
    nd = len(shape)
    return pl.BlockSpec(shape, lambda b, nd=nd: (b,) + (0,) * (nd - 1))


def _reorder_gates(w):
    # last dim = 4H blocks in PyTorch order (i, f, g, o) -> kernel order (i, f, o, g)
    H = LSTM_H
    return jnp.concatenate([w[..., 0:2 * H], w[..., 3 * H:4 * H],
                            w[..., 2 * H:3 * H]], axis=-1)


def lm_2ome_forward(p, w2v, embedding):
    B, T, _ = w2v.shape
    Te = embedding.shape[1]
    L, D = SEQ_OUT, D_MODEL

    m_w = make_interp_matrix(T, L)
    m_e = make_interp_matrix(Te, L)
    x2 = jnp.stack([w2v, jnp.flip(w2v, axis=1)], axis=1)          # (B, 2, T, 128)

    G = 4 * LSTM_H
    wih = p['lstm_wih']
    wih2 = jnp.stack([_reorder_gates(wih[:, 0:G]),
                      _reorder_gates(wih[:, G:2 * G])], axis=0)   # (2, 128, 256)
    whh2 = _reorder_gates(p['lstm_whh'])                          # (2, 64, 256)
    lb = p['lstm_b']
    lb2 = jnp.stack([_reorder_gates(lb[:, 0:G]),
                     _reorder_gates(lb[:, G:2 * G])], axis=0)     # (2, 1, 256)

    bf16 = jnp.bfloat16
    lin_w = p['lin_w'].astype(bf16)
    in_w = p['attn_in_w'].astype(bf16)
    ow3 = p['attn_out_w'].reshape(N_HEAD, HEAD_DIM, D)            # (8, 32, 256)
    f1w = p['ff_w1'].astype(bf16)
    f2w = p['ff_w2'].astype(bf16)
    # dense1 weight (41, 256, 128) -> (256, 41*128): column block l = W[l]
    d1w = jnp.transpose(p['d1_w'], (1, 0, 2)).reshape(D, L * D1_OUT).astype(bf16)

    c = _const_spec
    pb = _per_b_spec

    preds, d1, attw = pl.pallas_call(
        lm2ome_kernel,
        out_shape=(jax.ShapeDtypeStruct((B, 1, 1), jnp.float32),
                   jax.ShapeDtypeStruct((B, 1, D1_OUT), jnp.float32),
                   jax.ShapeDtypeStruct((B, L, L), jnp.float32)),
        grid=(B,),
        in_specs=[c((L, T)), c((L, Te)),
                  pb((1, 2, T, 128)), pb((1, Te, 512)),
                  c((2, 128, G)), c((2, 1, G)), c((2, LSTM_H, G)),
                  c((512, 128)), c((1, 128)),
                  c((D, 3 * D)), c((1, 3 * D)),
                  c((N_HEAD, HEAD_DIM, D)), c((1, D)),
                  c((1, D)), c((1, D)),
                  c((D, DIM_FF)), c((1, DIM_FF)),
                  c((DIM_FF, D)), c((1, D)),
                  c((1, D)), c((1, D)),
                  c((D, L * D1_OUT)), c((1, D1_OUT)),
                  c((D1_OUT, 20)), c((1, 20)),
                  c((20, 1)), c((1, 1))],
        out_specs=(pb((1, 1, 1)), pb((1, 1, D1_OUT)), pb((1, L, L))),
        scratch_shapes=[pltpu.VMEM((T, G), jnp.float32),
                        pltpu.VMEM((T, G), jnp.float32),
                        pltpu.VMEM((T, LSTM_H), jnp.float32),
                        pltpu.VMEM((T, LSTM_H), jnp.float32)],
        compiler_params=_CP,
    )(m_w, m_e, x2, embedding,
      wih2, lb2, whh2,
      lin_w, p['lin_b'],
      in_w, p['attn_in_b'], ow3, p['attn_out_b'],
      p['norm1_w'], p['norm1_b'], f1w, p['ff_b1'], f2w, p['ff_b2'],
      p['norm2_w'], p['norm2_b'],
      d1w, p['d1_b'], p['d2_w'], p['d2_b'],
      p['main_w'], p['main_b'])
    return preds.reshape(B), d1.reshape(B, D1_OUT), attw


def init_params(key):
    ks = iter(jax.random.split(key, 24))

    def w(shape, scale=0.05):
        return scale * jax.random.normal(next(ks), shape, dtype=jnp.float32)

    H = LSTM_H
    return {
        # Bidirectional LSTM, PyTorch gate order (i, f, g, o):
        #   lstm_wih (128, 512) = [fwd 4*64 | bwd 4*64]
        #   lstm_whh (2, 64, 256) stacked over direction
        #   lstm_b   (1, 512)    = b_ih + b_hh folded
        'lstm_wih': w((128, 8 * H)),
        'lstm_whh': w((2, H, 4 * H)),
        'lstm_b': w((1, 8 * H)),
        # lin: Linear(512, 128)
        'lin_w': w((512, 128)), 'lin_b': w((1, 128)),
        # MultiheadAttention(256, 8): packed in-projection [q | k | v] + out proj
        'attn_in_w': w((D_MODEL, 3 * D_MODEL)), 'attn_in_b': w((1, 3 * D_MODEL)),
        'attn_out_w': w((D_MODEL, D_MODEL)), 'attn_out_b': w((1, D_MODEL)),
        'norm1_w': jnp.ones((1, D_MODEL), jnp.float32),
        'norm1_b': jnp.zeros((1, D_MODEL), jnp.float32),
        'ff_w1': w((D_MODEL, DIM_FF)), 'ff_b1': w((1, DIM_FF)),
        'ff_w2': w((DIM_FF, D_MODEL)), 'ff_b2': w((1, D_MODEL)),
        'norm2_w': jnp.ones((1, D_MODEL), jnp.float32),
        'norm2_b': jnp.zeros((1, D_MODEL), jnp.float32),
        # dense heads; d1_w is Linear(10496,128)'s weight.T viewed as (41,256,128)
        'd1_w': w((SEQ_OUT, D_MODEL, D1_OUT), 0.01), 'd1_b': w((1, D1_OUT)),
        'd2_w': w((D1_OUT, 20)), 'd2_b': w((1, 20)),
        'main_w': w((20, 1)), 'main_b': w((1, 1)),
    }


if __name__ == "__main__":
    key = jax.random.PRNGKey(0)
    kp, kw, ke = jax.random.split(key, 3)
    params = init_params(kp)

    B, T_w2v, T_emb = 2, 8, 8
    w2v = jax.random.normal(kw, (B, T_w2v, 128), jnp.float32)
    embedding = jax.random.normal(ke, (B, T_emb, 512), jnp.float32)

    fwd = jax.jit(lm_2ome_forward)
    preds, dense1_out, att_weights = fwd(params, w2v, embedding)
    jax.block_until_ready((preds, dense1_out, att_weights))

    assert preds.shape == (B,)
    assert dense1_out.shape == (B, D1_OUT)
    assert att_weights.shape == (B, SEQ_OUT, SEQ_OUT)
    print("KERNEL_OK")
</pallas_src>

<mosaic_0001>
module attributes {stable_mosaic.version = 11 : i64} {
  func.func @lm2ome_kernel(%arg0: i32, %arg1: memref<41x8xf32, #tpu.memory_space<vmem>>, %arg2: memref<41x8xf32, #tpu.memory_space<vmem>>, %arg3: memref<1x2x8x128xf32, #tpu.memory_space<vmem>>, %arg4: memref<1x8x512xf32, #tpu.memory_space<vmem>>, %arg5: memref<2x128x256xf32, #tpu.memory_space<vmem>>, %arg6: memref<2x1x256xf32, #tpu.memory_space<vmem>>, %arg7: memref<2x64x256xf32, #tpu.memory_space<vmem>>, %arg8: memref<512x128xbf16, #tpu.memory_space<vmem>>, %arg9: memref<1x128xf32, #tpu.memory_space<vmem>>, %arg10: memref<256x768xbf16, #tpu.memory_space<vmem>>, %arg11: memref<1x768xf32, #tpu.memory_space<vmem>>, %arg12: memref<8x32x256xf32, #tpu.memory_space<vmem>>, %arg13: memref<1x256xf32, #tpu.memory_space<vmem>>, %arg14: memref<1x256xf32, #tpu.memory_space<vmem>>, %arg15: memref<1x256xf32, #tpu.memory_space<vmem>>, %arg16: memref<256x512xbf16, #tpu.memory_space<vmem>>, %arg17: memref<1x512xf32, #tpu.memory_space<vmem>>, %arg18: memref<512x256xbf16, #tpu.memory_space<vmem>>, %arg19: memref<1x256xf32, #tpu.memory_space<vmem>>, %arg20: memref<1x256xf32, #tpu.memory_space<vmem>>, %arg21: memref<1x256xf32, #tpu.memory_space<vmem>>, %arg22: memref<256x5248xbf16, #tpu.memory_space<vmem>>, %arg23: memref<1x128xf32, #tpu.memory_space<vmem>>, %arg24: memref<128x20xf32, #tpu.memory_space<vmem>>, %arg25: memref<1x20xf32, #tpu.memory_space<vmem>>, %arg26: memref<20x1xf32, #tpu.memory_space<vmem>>, %arg27: memref<1x1xf32, #tpu.memory_space<vmem>>, %arg28: memref<1x1x1xf32, #tpu.memory_space<vmem>>, %arg29: memref<1x1x128xf32, #tpu.memory_space<vmem>>, %arg30: memref<1x41x41xf32, #tpu.memory_space<vmem>>, %arg31: memref<8x256xf32, #tpu.memory_space<vmem>>, %arg32: memref<8x256xf32, #tpu.memory_space<vmem>>, %arg33: memref<8x64xf32, #tpu.memory_space<vmem>>, %arg34: memref<8x64xf32, #tpu.memory_space<vmem>>) attributes {dimension_semantics = [#tpu.dimension_semantics<parallel>], iteration_bounds = array<i64: 2>, scalar_prefetch = 0 : i64, scratch_operands = 4 : i64, tpu.core_type = #tpu.core_type<tc>, window_params = [{pipeline_mode = #tpu.pipeline_mode<synchronous>, transform_indices = @transform_0, window_bounds = array<i64: 41, 8>}, {pipeline_mode = #tpu.pipeline_mode<synchronous>, transform_indices = @transform_1, window_bounds = array<i64: 41, 8>}, {transform_indices = @transform_2, window_bounds = array<i64: 1, 2, 8, 128>}, {transform_indices = @transform_3, window_bounds = array<i64: 1, 8, 512>}, {pipeline_mode = #tpu.pipeline_mode<synchronous>, transform_indices = @transform_4, window_bounds = array<i64: 2, 128, 256>}, {pipeline_mode = #tpu.pipeline_mode<synchronous>, transform_indices = @transform_5, window_bounds = array<i64: 2, 1, 256>}, {pipeline_mode = #tpu.pipeline_mode<synchronous>, transform_indices = @transform_6, window_bounds = array<i64: 2, 64, 256>}, {pipeline_mode = #tpu.pipeline_mode<synchronous>, transform_indices = @transform_7, window_bounds = array<i64: 512, 128>}, {pipeline_mode = #tpu.pipeline_mode<synchronous>, transform_indices = @transform_8, window_bounds = array<i64: 1, 128>}, {pipeline_mode = #tpu.pipeline_mode<synchronous>, transform_indices = @transform_9, window_bounds = array<i64: 256, 768>}, {pipeline_mode = #tpu.pipeline_mode<synchronous>, transform_indices = @transform_10, window_bounds = array<i64: 1, 768>}, {pipeline_mode = #tpu.pipeline_mode<synchronous>, transform_indices = @transform_11, window_bounds = array<i64: 8, 32, 256>}, {pipeline_mode = #tpu.pipeline_mode<synchronous>, transform_indices = @transform_12, window_bounds = array<i64: 1, 256>}, {pipeline_mode = #tpu.pipeline_mode<synchronous>, transform_indices = @transform_13, window_bounds = array<i64: 1, 256>}, {pipeline_mode = #tpu.pipeline_mode<synchronous>, transform_indices = @transform_14, window_bounds = array<i64: 1, 256>}, {pipeline_mode = #tpu.pipeline_mode<synchronous>, transform_indices = @transform_15, window_bounds = array<i64: 256, 512>}, {pipeline_mode = #tpu.pipeline_mode<synchronous>, transform_indices = @transform_16, window_bounds = array<i64: 1, 512>}, {pipeline_mode = #tpu.pipeline_mode<synchronous>, transform_indices = @transform_17, window_bounds = array<i64: 512, 256>}, {pipeline_mode = #tpu.pipeline_mode<synchronous>, transform_indices = @transform_18, window_bounds = array<i64: 1, 256>}, {pipeline_mode = #tpu.pipeline_mode<synchronous>, transform_indices = @transform_19, window_bounds = array<i64: 1, 256>}, {pipeline_mode = #tpu.pipeline_mode<synchronous>, transform_indices = @transform_20, window_bounds = array<i64: 1, 256>}, {pipeline_mode = #tpu.pipeline_mode<synchronous>, transform_indices = @transform_21, window_bounds = array<i64: 256, 5248>}, {pipeline_mode = #tpu.pipeline_mode<synchronous>, transform_indices = @transform_22, window_bounds = array<i64: 1, 128>}, {pipeline_mode = #tpu.pipeline_mode<synchronous>, transform_indices = @transform_23, window_bounds = array<i64: 128, 20>}, {pipeline_mode = #tpu.pipeline_mode<synchronous>, transform_indices = @transform_24, window_bounds = array<i64: 1, 20>}, {pipeline_mode = #tpu.pipeline_mode<synchronous>, transform_indices = @transform_25, window_bounds = array<i64: 20, 1>}, {pipeline_mode = #tpu.pipeline_mode<synchronous>, transform_indices = @transform_26, window_bounds = array<i64: 1, 1>}, {transform_indices = @transform_27, window_bounds = array<i64: 1, 1, 1>}, {transform_indices = @transform_28, window_bounds = array<i64: 1, 1, 128>}, {transform_indices = @transform_29, window_bounds = array<i64: 1, 41, 41>}]} {
    %c0 = arith.constant 0 : index
    %c0_0 = arith.constant 0 : index
    %c0_1 = arith.constant 0 : index
    %c0_2 = arith.constant 0 : index
    %0 = vector.load %arg3[%c0, %c0_0, %c0_1, %c0_2] : memref<1x2x8x128xf32, #tpu.memory_space<vmem>>, vector<1x1x8x128xf32>
    %1 = vector.shape_cast %0 : vector<1x1x8x128xf32> to vector<8x128xf32>
    %c0_3 = arith.constant 0 : index
    %c1 = arith.constant 1 : index
    %c0_4 = arith.constant 0 : index
    %c0_5 = arith.constant 0 : index
    %2 = vector.load %arg3[%c0_3, %c1, %c0_4, %c0_5] : memref<1x2x8x128xf32, #tpu.memory_space<vmem>>, vector<1x1x8x128xf32>
    %3 = vector.shape_cast %2 : vector<1x1x8x128xf32> to vector<8x128xf32>
    %c0_6 = arith.constant 0 : index
    %c0_7 = arith.constant 0 : index
    %c0_8 = arith.constant 0 : index
    %4 = vector.load %arg5[%c0_6, %c0_7, %c0_8] : memref<2x128x256xf32, #tpu.memory_space<vmem>>, vector<1x128x256xf32>
    %5 = vector.shape_cast %4 : vector<1x128x256xf32> to vector<128x256xf32>
    %cst = arith.constant dense<0.000000e+00> : vector<8x256xf32>
    %6 = tpu.matmul %1, %5, %cst {dimension_numbers = #tpu.dot_dimension_numbers<[1], [0], [0], [1], [0, 0, 1, 1], [], []>} : vector<8x128xf32>, vector<128x256xf32>, vector<8x256xf32> -> vector<8x256xf32>
    %c0_9 = arith.constant 0 : index
    %c0_10 = arith.constant 0 : index
    %c0_11 = arith.constant 0 : index
    %7 = vector.load %arg6[%c0_9, %c0_10, %c0_11] : memref<2x1x256xf32, #tpu.memory_space<vmem>>, vector<1x1x256xf32>
    %8 = vector.shape_cast %7 : vector<1x1x256xf32> to vector<1x256xf32>
    %9 = vector.broadcast %8 : vector<1x256xf32> to vector<8x256xf32>
    %10 = arith.addf %6, %9 : vector<8x256xf32>
    %c0_12 = arith.constant 0 : index
    %c0_13 = arith.constant 0 : index
    %11 = vector.load %arg31[%c0_12, %c0_13] : memref<8x256xf32, #tpu.memory_space<vmem>>, vector<8x256xf32>
    tpu.vector_store %arg31[%c0_12, %c0_13], %10 {strides = array<i32>} : memref<8x256xf32, #tpu.memory_space<vmem>>, vector<8x256xf32>,
    %c1_14 = arith.constant 1 : index
    %c0_15 = arith.constant 0 : index
    %c0_16 = arith.constant 0 : index
    %12 = vector.load %arg5[%c1_14, %c0_15, %c0_16] : memref<2x128x256xf32, #tpu.memory_space<vmem>>, vector<1x128x256xf32>
    %13 = vector.shape_cast %12 : vector<1x128x256xf32> to vector<128x256xf32>
    %cst_17 = arith.constant dense<0.000000e+00> : vector<8x256xf32>
    %14 = tpu.matmul %3, %13, %cst_17 {dimension_numbers = #tpu.dot_dimension_numbers<[1], [0], [0], [1], [0, 0, 1, 1], [], []>} : vector<8x128xf32>, vector<128x256xf32>, vector<8x256xf32> -> vector<8x256xf32>
    %c1_18 = arith.constant 1 : index
    %c0_19 = arith.constant 0 : index
    %c0_20 = arith.constant 0 : index
    %15 = vector.load %arg6[%c1_18, %c0_19, %c0_20] : memref<2x1x256xf32, #tpu.memory_space<vmem>>, vector<1x1x256xf32>
    %16 = vector.shape_cast %15 : vector<1x1x256xf32> to vector<1x256xf32>
    %17 = vector.broadcast %16 : vector<1x256xf32> to vector<8x256xf32>
    %18 = arith.addf %14, %17 : vector<8x256xf32>
    %c0_21 = arith.constant 0 : index
    %c0_22 = arith.constant 0 : index
    %19 = vector.load %arg32[%c0_21, %c0_22] : memref<8x256xf32, #tpu.memory_space<vmem>>, vector<8x256xf32>
    tpu.vector_store %arg32[%c0_21, %c0_22], %18 {strides = array<i32>} : memref<8x256xf32, #tpu.memory_space<vmem>>, vector<8x256xf32>,
    %c0_23 = arith.constant 0 : index
    %c0_24 = arith.constant 0 : index
    %c0_25 = arith.constant 0 : index
    %20 = vector.load %arg7[%c0_23, %c0_24, %c0_25] : memref<2x64x256xf32, #tpu.memory_space<vmem>>, vector<2x64x256xf32>
    %cst_26 = arith.constant 0.000000e+00 : f32
    %21 = vector.broadcast %cst_26 : f32 to vector<2x1x64xf32>
    %cst_27 = arith.constant 0.000000e+00 : f32
    %22 = vector.broadcast %cst_27 : f32 to vector<2x1x64xf32>
    %c0_i32 = arith.constant 0 : i32
    %23 = arith.index_cast %c0_i32 : i32 to index
    %c0_28 = arith.constant 0 : index
    %24 = vector.load %arg31[%23, %c0_28] : memref<8x256xf32, #tpu.memory_space<vmem>>, vector<1x256xf32>
    %25 = arith.index_cast %c0_i32 : i32 to index
    %c0_29 = arith.constant 0 : index
    %26 = vector.load %arg32[%25, %c0_29] : memref<8x256xf32, #tpu.memory_space<vmem>>, vector<1x256xf32>
    %27 = vector.shape_cast %24 : vector<1x256xf32> to vector<1x1x256xf32>
    %28 = vector.shape_cast %26 : vector<1x256xf32> to vector<1x1x256xf32>
    %29 = tpu.concatenate %27, %28 in 0 : vector<1x1x256xf32>, vector<1x1x256xf32> -> vector<2x1x256xf32>
    %cst_30 = arith.constant dense<0.000000e+00> : vector<2x1x256xf32>
    %30 = tpu.matmul %21, %20, %cst_30 {dimension_numbers = #tpu.dot_dimension_numbers<[2], [1], [1], [2], [0, 0, 0, 1, 1, 2], [0], [0]>} : vector<2x1x64xf32>, vector<2x64x256xf32>, vector<2x1x256xf32> -> vector<2x1x256xf32>
    %31 = arith.addf %29, %30 : vector<2x1x256xf32>
    %32 = vector.extract_strided_slice %31 {offsets = [0, 0, 0], sizes = [2, 1, 192], strides = [1, 1, 1]} : vector<2x1x256xf32> to vector<2x1x192xf32>
    %cst_31 = arith.constant 5.000000e-01 : f32
    %33 = vector.broadcast %cst_31 : f32 to vector<2x1x192xf32>
    %34 = arith.mulf %33, %32 : vector<2x1x192xf32>
    %35 = math.tanh %34 : vector<2x1x192xf32>
    %cst_32 = arith.constant 1.000000e+00 : f32
    %36 = vector.broadcast %cst_32 : f32 to vector<2x1x192xf32>
    %37 = arith.addf %35, %36 : vector<2x1x192xf32>
    %cst_33 = arith.constant 5.000000e-01 : f32
    %38 = vector.broadcast %cst_33 : f32 to vector<2x1x192xf32>
    %39 = arith.mulf %38, %37 : vector<2x1x192xf32>
    %40 = vector.extract_strided_slice %39 {offsets = [0, 0, 0], sizes = [2, 1, 64], strides = [1, 1, 1]} : vector<2x1x192xf32> to vector<2x1x64xf32>
    %41 = vector.extract_strided_slice %39 {offsets = [0, 0, 64], sizes = [2, 1, 64], strides = [1, 1, 1]} : vector<2x1x192xf32> to vector<2x1x64xf32>
    %42 = vector.extract_strided_slice %39 {offsets = [0, 0, 128], sizes = [2, 1, 64], strides = [1, 1, 1]} : vector<2x1x192xf32> to vector<2x1x64xf32>
    %43 = vector.extract_strided_slice %31 {offsets = [0, 0, 192], sizes = [2, 1, 64], strides = [1, 1, 1]} : vector<2x1x256xf32> to vector<2x1x64xf32>
    %44 = math.tanh %43 : vector<2x1x64xf32>
    %45 = arith.mulf %41, %22 : vector<2x1x64xf32>
    %46 = arith.mulf %40, %44 : vector<2x1x64xf32>
    %47 = arith.addf %45, %46 : vector<2x1x64xf32>
    %48 = math.tanh %47 : vector<2x1x64xf32>
    %49 = arith.mulf %42, %48 : vector<2x1x64xf32>
    %50 = vector.extract_strided_slice %49 {offsets = [0, 0, 0], sizes = [1, 1, 64], strides = [1, 1, 1]} : vector<2x1x64xf32> to vector<1x1x64xf32>
    %51 = vector.shape_cast %50 : vector<1x1x64xf32> to vector<1x64xf32>
    %52 = arith.index_cast %c0_i32 : i32 to index
    %c0_34 = arith.constant 0 : index
    %53 = vector.load %arg33[%52, %c0_34] : memref<8x64xf32, #tpu.memory_space<vmem>>, vector<1x64xf32>
    tpu.vector_store %arg33[%52, %c0_34], %51 {strides = array<i32>} : memref<8x64xf32, #tpu.memory_space<vmem>>, vector<1x64xf32>,
    %54 = vector.extract_strided_slice %49 {offsets = [1, 0, 0], sizes = [1, 1, 64], strides = [1, 1, 1]} : vector<2x1x64xf32> to vector<1x1x64xf32>
    %55 = vector.shape_cast %54 : vector<1x1x64xf32> to vector<1x64xf32>
    %c7_i32 = arith.constant 7 : i32
    %56 = arith.subi %c7_i32, %c0_i32 : i32
    %57 = arith.index_cast %56 : i32 to index
    %c0_35 = arith.constant 0 : index
    %58 = vector.load %arg34[%57, %c0_35] : memref<8x64xf32, #tpu.memory_space<vmem>>, vector<1x64xf32>
    tpu.vector_store %arg34[%57, %c0_35], %55 {strides = array<i32>} : memref<8x64xf32, #tpu.memory_space<vmem>>, vector<1x64xf32>,
    %c1_i32 = arith.constant 1 : i32
    %59 = arith.index_cast %c1_i32 : i32 to index
    %c0_36 = arith.constant 0 : index
    %60 = vector.load %arg31[%59, %c0_36] : memref<8x256xf32, #tpu.memory_space<vmem>>, vector<1x256xf32>
    %61 = arith.index_cast %c1_i32 : i32 to index
    %c0_37 = arith.constant 0 : index
    %62 = vector.load %arg32[%61, %c0_37] : memref<8x256xf32, #tpu.memory_space<vmem>>, vector<1x256xf32>
    %63 = vector.shape_cast %60 : vector<1x256xf32> to vector<1x1x256xf32>
    %64 = vector.shape_cast %62 : vector<1x256xf32> to vector<1x1x256xf32>
    %65 = tpu.concatenate %63, %64 in 0 : vector<1x1x256xf32>, vector<1x1x256xf32> -> vector<2x1x256xf32>
    %cst_38 = arith.constant dense<0.000000e+00> : vector<2x1x256xf32>
    %66 = tpu.matmul %49, %20, %cst_38 {dimension_numbers = #tpu.dot_dimension_numbers<[2], [1], [1], [2], [0, 0, 0, 1, 1, 2], [0], [0]>} : vector<2x1x64xf32>, vector<2x64x256xf32>, vector<2x1x256xf32> -> vector<2x1x256xf32>
    %67 = arith.addf %65, %66 : vector<2x1x256xf32>
    %68 = vector.extract_strided_slice %67 {offsets = [0, 0, 0], sizes = [2, 1, 192], strides = [1, 1, 1]} : vector<2x1x256xf32> to vector<2x1x192xf32>
    %cst_39 = arith.constant 5.000000e-01 : f32
    %69 = vector.broadcast %cst_39 : f32 to vector<2x1x192xf32>
    %70 = arith.mulf %69, %68 : vector<2x1x192xf32>
    %71 = math.tanh %70 : vector<2x1x192xf32>
    %cst_40 = arith.constant 1.000000e+00 : f32
    %72 = vector.broadcast %cst_40 : f32 to vector<2x1x192xf32>
    %73 = arith.addf %71, %72 : vector<2x1x192xf32>
    %cst_41 = arith.constant 5.000000e-01 : f32
    %74 = vector.broadcast %cst_41 : f32 to vector<2x1x192xf32>
    %75 = arith.mulf %74, %73 : vector<2x1x192xf32>
    %76 = vector.extract_strided_slice %75 {offsets = [0, 0, 0], sizes = [2, 1, 64], strides = [1, 1, 1]} : vector<2x1x192xf32> to vector<2x1x64xf32>
    %77 = vector.extract_strided_slice %75 {offsets = [0, 0, 64], sizes = [2, 1, 64], strides = [1, 1, 1]} : vector<2x1x192xf32> to vector<2x1x64xf32>
    %78 = vector.extract_strided_slice %75 {offsets = [0, 0, 128], sizes = [2, 1, 64], strides = [1, 1, 1]} : vector<2x1x192xf32> to vector<2x1x64xf32>
    %79 = vector.extract_strided_slice %67 {offsets = [0, 0, 192], sizes = [2, 1, 64], strides = [1, 1, 1]} : vector<2x1x256xf32> to vector<2x1x64xf32>
    %80 = math.tanh %79 : vector<2x1x64xf32>
    %81 = arith.mulf %77, %47 : vector<2x1x64xf32>
    %82 = arith.mulf %76, %80 : vector<2x1x64xf32>
    %83 = arith.addf %81, %82 : vector<2x1x64xf32>
    %84 = math.tanh %83 : vector<2x1x64xf32>
    %85 = arith.mulf %78, %84 : vector<2x1x64xf32>
    %86 = vector.extract_strided_slice %85 {offsets = [0, 0, 0], sizes = [1, 1, 64], strides = [1, 1, 1]} : vector<2x1x64xf32> to vector<1x1x64xf32>
    %87 = vector.shape_cast %86 : vector<1x1x64xf32> to vector<1x64xf32>
    %88 = arith.index_cast %c1_i32 : i32 to index
    %c0_42 = arith.constant 0 : index
    %89 = vector.load %arg33[%88, %c0_42] : memref<8x64xf32, #tpu.memory_space<vmem>>, vector<1x64xf32>
    tpu.vector_store %arg33[%88, %c0_42], %87 {strides = array<i32>} : memref<8x64xf32, #tpu.memory_space<vmem>>, vector<1x64xf32>,
    %90 = vector.extract_strided_slice %85 {offsets = [1, 0, 0], sizes = [1, 1, 64], strides = [1, 1, 1]} : vector<2x1x64xf32> to vector<1x1x64xf32>
    %91 = vector.shape_cast %90 : vector<1x1x64xf32> to vector<1x64xf32>
    %c7_i32_43 = arith.constant 7 : i32
    %92 = arith.subi %c7_i32_43, %c1_i32 : i32
    %93 = arith.index_cast %92 : i32 to index
    %c0_44 = arith.constant 0 : index
    %94 = vector.load %arg34[%93, %c0_44] : memref<8x64xf32, #tpu.memory_space<vmem>>, vector<1x64xf32>
    tpu.vector_store %arg34[%93, %c0_44], %91 {strides = array<i32>} : memref<8x64xf32, #tpu.memory_space<vmem>>, vector<1x64xf32>,
    %c2_i32 = arith.constant 2 : i32
    %95 = arith.index_cast %c2_i32 : i32 to index
    %c0_45 = arith.constant 0 : index
    %96 = vector.load %arg31[%95, %c0_45] : memref<8x256xf32, #tpu.memory_space<vmem>>, vector<1x256xf32>
    %97 = arith.index_cast %c2_i32 : i32 to index
    %c0_46 = arith.constant 0 : index
    %98 = vector.load %arg32[%97, %c0_46] : memref<8x256xf32, #tpu.memory_space<vmem>>, vector<1x256xf32>
    %99 = vector.shape_cast %96 : vector<1x256xf32> to vector<1x1x256xf32>
    %100 = vector.shape_cast %98 : vector<1x256xf32> to vector<1x1x256xf32>
    %101 = tpu.concatenate %99, %100 in 0 : vector<1x1x256xf32>, vector<1x1x256xf32> -> vector<2x1x256xf32>
    %cst_47 = arith.constant dense<0.000000e+00> : vector<2x1x256xf32>
    %102 = tpu.matmul %85, %20, %cst_47 {dimension_numbers = #tpu.dot_dimension_numbers<[2], [1], [1], [2], [0, 0, 0, 1, 1, 2], [0], [0]>} : vector<2x1x64xf32>, vector<2x64x256xf32>, vector<2x1x256xf32> -> vector<2x1x256xf32>
    %103 = arith.addf %101, %102 : vector<2x1x256xf32>
    %104 = vector.extract_strided_slice %103 {offsets = [0, 0, 0], sizes = [2, 1, 192], strides = [1, 1, 1]} : vector<2x1x256xf32> to vector<2x1x192xf32>
    %cst_48 = arith.constant 5.000000e-01 : f32
    %105 = vector.broadcast %cst_48 : f32 to vector<2x1x192xf32>
    %106 = arith.mulf %105, %104 : vector<2x1x192xf32>
    %107 = math.tanh %106 : vector<2x1x192xf32>
    %cst_49 = arith.constant 1.000000e+00 : f32
    %108 = vector.broadcast %cst_49 : f32 to vector<2x1x192xf32>
    %109 = arith.addf %107, %108 : vector<2x1x192xf32>
    %cst_50 = arith.constant 5.000000e-01 : f32
    %110 = vector.broadcast %cst_50 : f32 to vector<2x1x192xf32>
    %111 = arith.mulf %110, %109 : vector<2x1x192xf32>
    %112 = vector.extract_strided_slice %111 {offsets = [0, 0, 0], sizes = [2, 1, 64], strides = [1, 1, 1]} : vector<2x1x192xf32> to vector<2x1x64xf32>
    %113 = vector.extract_strided_slice %111 {offsets = [0, 0, 64], sizes = [2, 1, 64], strides = [1, 1, 1]} : vector<2x1x192xf32> to vector<2x1x64xf32>
    %114 = vector.extract_strided_slice %111 {offsets = [0, 0, 128], sizes = [2, 1, 64], strides = [1, 1, 1]} : vector<2x1x192xf32> to vector<2x1x64xf32>
    %115 = vector.extract_strided_slice %103 {offsets = [0, 0, 192], sizes = [2, 1, 64], strides = [1, 1, 1]} : vector<2x1x256xf32> to vector<2x1x64xf32>
    %116 = math.tanh %115 : vector<2x1x64xf32>
    %117 = arith.mulf %113, %83 : vector<2x1x64xf32>
    %118 = arith.mulf %112, %116 : vector<2x1x64xf32>
    %119 = arith.addf %117, %118 : vector<2x1x64xf32>
    %120 = math.tanh %119 : vector<2x1x64xf32>
    %121 = arith.mulf %114, %120 : vector<2x1x64xf32>
    %122 = vector.extract_strided_slice %121 {offsets = [0, 0, 0], sizes = [1, 1, 64], strides = [1, 1, 1]} : vector<2x1x64xf32> to vector<1x1x64xf32>
    %123 = vector.shape_cast %122 : vector<1x1x64xf32> to vector<1x64xf32>
    %124 = arith.index_cast %c2_i32 : i32 to index
    %c0_51 = arith.constant 0 : index
    %125 = vector.load %arg33[%124, %c0_51] : memref<8x64xf32, #tpu.memory_space<vmem>>, vector<1x64xf32>
    tpu.vector_store %arg33[%124, %c0_51], %123 {strides = array<i32>} : memref<8x64xf32, #tpu.memory_space<vmem>>, vector<1x64xf32>,
    %126 = vector.extract_strided_slice %121 {offsets = [1, 0, 0], sizes = [1, 1, 64], strides = [1, 1, 1]} : vector<2x1x64xf32> to vector<1x1x64xf32>
    %127 = vector.shape_cast %126 : vector<1x1x64xf32> to vector<1x64xf32>
    %c7_i32_52 = arith.constant 7 : i32
    %128 = arith.subi %c7_i32_52, %c2_i32 : i32
    %129 = arith.index_cast %128 : i32 to index
    %c0_53 = arith.constant 0 : index
    %130 = vector.load %arg34[%129, %c0_53] : memref<8x64xf32, #tpu.memory_space<vmem>>, vector<1x64xf32>
    tpu.vector_store %arg34[%129, %c0_53], %127 {strides = array<i32>} : memref<8x64xf32, #tpu.memory_space<vmem>>, vector<1x64xf32>,
    %c3_i32 = arith.constant 3 : i32
    %131 = arith.index_cast %c3_i32 : i32 to index
    %c0_54 = arith.constant 0 : index
    %132 = vector.load %arg31[%131, %c0_54] : memref<8x256xf32, #tpu.memory_space<vmem>>, vector<1x256xf32>
    %133 = arith.index_cast %c3_i32 : i32 to index
    %c0_55 = arith.constant 0 : index
    %134 = vector.load %arg32[%133, %c0_55] : memref<8x256xf32, #tpu.memory_space<vmem>>, vector<1x256xf32>
    %135 = vector.shape_cast %132 : vector<1x256xf32> to vector<1x1x256xf32>
    %136 = vector.shape_cast %134 : vector<1x256xf32> to vector<1x1x256xf32>
    %137 = tpu.concatenate %135, %136 in 0 : vector<1x1x256xf32>, vector<1x1x256xf32> -> vector<2x1x256xf32>
    %cst_56 = arith.constant dense<0.000000e+00> : vector<2x1x256xf32>
    %138 = tpu.matmul %121, %20, %cst_56 {dimension_numbers = #tpu.dot_dimension_numbers<[2], [1], [1], [2], [0, 0, 0, 1, 1, 2], [0], [0]>} : vector<2x1x64xf32>, vector<2x64x256xf32>, vector<2x1x256xf32> -> vector<2x1x256xf32>
    %139 = arith.addf %137, %138 : vector<2x1x256xf32>
    %140 = vector.extract_strided_slice %139 {offsets = [0, 0, 0], sizes = [2, 1, 192], strides = [1, 1, 1]} : vector<2x1x256xf32> to vector<2x1x192xf32>
    %cst_57 = arith.constant 5.000000e-01 : f32
    %141 = vector.broadcast %cst_57 : f32 to vector<2x1x192xf32>
    %142 = arith.mulf %141, %140 : vector<2x1x192xf32>
    %143 = math.tanh %142 : vector<2x1x192xf32>
    %cst_58 = arith.constant 1.000000e+00 : f32
    %144 = vector.broadcast %cst_58 : f32 to vector<2x1x192xf32>
    %145 = arith.addf %143, %144 : vector<2x1x192xf32>
    %cst_59 = arith.constant 5.000000e-01 : f32
    %146 = vector.broadcast %cst_59 : f32 to vector<2x1x192xf32>
    %147 = arith.mulf %146, %145 : vector<2x1x192xf32>
    %148 = vector.extract_strided_slice %147 {offsets = [0, 0, 0], sizes = [2, 1, 64], strides = [1, 1, 1]} : vector<2x1x192xf32> to vector<2x1x64xf32>
    %149 = vector.extract_strided_slice %147 {offsets = [0, 0, 64], sizes = [2, 1, 64], strides = [1, 1, 1]} : vector<2x1x192xf32> to vector<2x1x64xf32>
    %150 = vector.extract_strided_slice %147 {offsets = [0, 0, 128], sizes = [2, 1, 64], strides = [1, 1, 1]} : vector<2x1x192xf32> to vector<2x1x64xf32>
    %151 = vector.extract_strided_slice %139 {offsets = [0, 0, 192], sizes = [2, 1, 64], strides = [1, 1, 1]} : vector<2x1x256xf32> to vector<2x1x64xf32>
    %152 = math.tanh %151 : vector<2x1x64xf32>
    %153 = arith.mulf %149, %119 : vector<2x1x64xf32>
    %154 = arith.mulf %148, %152 : vector<2x1x64xf32>
    %155 = arith.addf %153, %154 : vector<2x1x64xf32>
    %156 = math.tanh %155 : vector<2x1x64xf32>
    %157 = arith.mulf %150, %156 : vector<2x1x64xf32>
    %158 = vector.extract_strided_slice %157 {offsets = [0, 0, 0], sizes = [1, 1, 64], strides = [1, 1, 1]} : vector<2x1x64xf32> to vector<1x1x64xf32>
    %159 = vector.shape_cast %158 : vector<1x1x64xf32> to vector<1x64xf32>
    %160 = arith.index_cast %c3_i32 : i32 to index
    %c0_60 = arith.constant 0 : index
    %161 = vector.load %arg33[%160, %c0_60] : memref<8x64xf32, #tpu.memory_space<vmem>>, vector<1x64xf32>
    tpu.vector_store %arg33[%160, %c0_60], %159 {strides = array<i32>} : memref<8x64xf32, #tpu.memory_space<vmem>>, vector<1x64xf32>,
    %162 = vector.extract_strided_slice %157 {offsets = [1, 0, 0], sizes = [1, 1, 64], strides = [1, 1, 1]} : vector<2x1x64xf32> to vector<1x1x64xf32>
    %163 = vector.shape_cast %162 : vector<1x1x64xf32> to vector<1x64xf32>
    %c7_i32_61 = arith.constant 7 : i32
    %164 = arith.subi %c7_i32_61, %c3_i32 : i32
    %165 = arith.index_cast %164 : i32 to index
    %c0_62 = arith.constant 0 : index
    %166 = vector.load %arg34[%165, %c0_62] : memref<8x64xf32, #tpu.memory_space<vmem>>, vector<1x64xf32>
    tpu.vector_store %arg34[%165, %c0_62], %163 {strides = array<i32>} : memref<8x64xf32, #tpu.memory_space<vmem>>, vector<1x64xf32>,
    %c4_i32 = arith.constant 4 : i32
    %167 = arith.index_cast %c4_i32 : i32 to index
    %c0_63 = arith.constant 0 : index
    %168 = vector.load %arg31[%167, %c0_63] : memref<8x256xf32, #tpu.memory_space<vmem>>, vector<1x256xf32>
    %169 = arith.index_cast %c4_i32 : i32 to index
    %c0_64 = arith.constant 0 : index
    %170 = vector.load %arg32[%169, %c0_64] : memref<8x256xf32, #tpu.memory_space<vmem>>, vector<1x256xf32>
    %171 = vector.shape_cast %168 : vector<1x256xf32> to vector<1x1x256xf32>
    %172 = vector.shape_cast %170 : vector<1x256xf32> to vector<1x1x256xf32>
    %173 = tpu.concatenate %171, %172 in 0 : vector<1x1x256xf32>, vector<1x1x256xf32> -> vector<2x1x256xf32>
    %cst_65 = arith.constant dense<0.000000e+00> : vector<2x1x256xf32>
    %174 = tpu.matmul %157, %20, %cst_65 {dimension_numbers = #tpu.dot_dimension_numbers<[2], [1], [1], [2], [0, 0, 0, 1, 1, 2], [0], [0]>} : vector<2x1x64xf32>, vector<2x64x256xf32>, vector<2x1x256xf32> -> vector<2x1x256xf32>
    %175 = arith.addf %173, %174 : vector<2x1x256xf32>
    %176 = vector.extract_strided_slice %175 {offsets = [0, 0, 0], sizes = [2, 1, 192], strides = [1, 1, 1]} : vector<2x1x256xf32> to vector<2x1x192xf32>
    %cst_66 = arith.constant 5.000000e-01 : f32
    %177 = vector.broadcast %cst_66 : f32 to vector<2x1x192xf32>
    %178 = arith.mulf %177, %176 : vector<2x1x192xf32>
    %179 = math.tanh %178 : vector<2x1x192xf32>
    %cst_67 = arith.constant 1.000000e+00 : f32
    %180 = vector.broadcast %cst_67 : f32 to vector<2x1x192xf32>
    %181 = arith.addf %179, %180 : vector<2x1x192xf32>
    %cst_68 = arith.constant 5.000000e-01 : f32
    %182 = vector.broadcast %cst_68 : f32 to vector<2x1x192xf32>
    %183 = arith.mulf %182, %181 : vector<2x1x192xf32>
    %184 = vector.extract_strided_slice %183 {offsets = [0, 0, 0], sizes = [2, 1, 64], strides = [1, 1, 1]} : vector<2x1x192xf32> to vector<2x1x64xf32>
    %185 = vector.extract_strided_slice %183 {offsets = [0, 0, 64], sizes = [2, 1, 64], strides = [1, 1, 1]} : vector<2x1x192xf32> to vector<2x1x64xf32>
    %186 = vector.extract_strided_slice %183 {offsets = [0, 0, 128], sizes = [2, 1, 64], strides = [1, 1, 1]} : vector<2x1x192xf32> to vector<2x1x64xf32>
    %187 = vector.extract_strided_slice %175 {offsets = [0, 0, 192], sizes = [2, 1, 64], strides = [1, 1, 1]} : vector<2x1x256xf32> to vector<2x1x64xf32>
    %188 = math.tanh %187 : vector<2x1x64xf32>
    %189 = arith.mulf %185, %155 : vector<2x1x64xf32>
    %190 = arith.mulf %184, %188 : vector<2x1x64xf32>
    %191 = arith.addf %189, %190 : vector<2x1x64xf32>
    %192 = math.tanh %191 : vector<2x1x64xf32>
    %193 = arith.mulf %186, %192 : vector<2x1x64xf32>
    %194 = vector.extract_strided_slice %193 {offsets = [0, 0, 0], sizes = [1, 1, 64], strides = [1, 1, 1]} : vector<2x1x64xf32> to vector<1x1x64xf32>
    %195 = vector.shape_cast %194 : vector<1x1x64xf32> to vector<1x64xf32>
    %196 = arith.index_cast %c4_i32 : i32 to index
    %c0_69 = arith.constant 0 : index
    %197 = vector.load %arg33[%196, %c0_69] : memref<8x64xf32, #tpu.memory_space<vmem>>, vector<1x64xf32>
    tpu.vector_store %arg33[%196, %c0_69], %195 {strides = array<i32>} : memref<8x64xf32, #tpu.memory_space<vmem>>, vector<1x64xf32>,
    %198 = vector.extract_strided_slice %193 {offsets = [1, 0, 0], sizes = [1, 1, 64], strides = [1, 1, 1]} : vector<2x1x64xf32> to vector<1x1x64xf32>
    %199 = vector.shape_cast %198 : vector<1x1x64xf32> to vector<1x64xf32>
    %c7_i32_70 = arith.constant 7 : i32
    %200 = arith.subi %c7_i32_70, %c4_i32 : i32
    %201 = arith.index_cast %200 : i32 to index
    %c0_71 = arith.constant 0 : index
    %202 = vector.load %arg34[%201, %c0_71] : memref<8x64xf32, #tpu.memory_space<vmem>>, vector<1x64xf32>
    tpu.vector_store %arg34[%201, %c0_71], %199 {strides = array<i32>} : memref<8x64xf32, #tpu.memory_space<vmem>>, vector<1x64xf32>,
    %c5_i32 = arith.constant 5 : i32
    %203 = arith.index_cast %c5_i32 : i32 to index
    %c0_72 = arith.constant 0 : index
    %204 = vector.load %arg31[%203, %c0_72] : memref<8x256xf32, #tpu.memory_space<vmem>>, vector<1x256xf32>
    %205 = arith.index_cast %c5_i32 : i32 to index
    %c0_73 = arith.constant 0 : index
    %206 = vector.load %arg32[%205, %c0_73] : memref<8x256xf32, #tpu.memory_space<vmem>>, vector<1x256xf32>
    %207 = vector.shape_cast %204 : vector<1x256xf32> to vector<1x1x256xf32>
    %208 = vector.shape_cast %206 : vector<1x256xf32> to vector<1x1x256xf32>
    %209 = tpu.concatenate %207, %208 in 0 : vector<1x1x256xf32>, vector<1x1x256xf32> -> vector<2x1x256xf32>
    %cst_74 = arith.constant dense<0.000000e+00> : vector<2x1x256xf32>
    %210 = tpu.matmul %193, %20, %cst_74 {dimension_numbers = #tpu.dot_dimension_numbers<[2], [1], [1], [2], [0, 0, 0, 1, 1, 2], [0], [0]>} : vector<2x1x64xf32>, vector<2x64x256xf32>, vector<2x1x256xf32> -> vector<2x1x256xf32>
    %211 = arith.addf %209, %210 : vector<2x1x256xf32>
    %212 = vector.extract_strided_slice %211 {offsets = [0, 0, 0], sizes = [2, 1, 192], strides = [1, 1, 1]} : vector<2x1x256xf32> to vector<2x1x192xf32>
    %cst_75 = arith.constant 5.000000e-01 : f32
    %213 = vector.broadcast %cst_75 : f32 to vector<2x1x192xf32>
    %214 = arith.mulf %213, %212 : vector<2x1x192xf32>
    %215 = math.tanh %214 : vector<2x1x192xf32>
    %cst_76 = arith.constant 1.000000e+00 : f32
    %216 = vector.broadcast %cst_76 : f32 to vector<2x1x192xf32>
    %217 = arith.addf %215, %216 : vector<2x1x192xf32>
    %cst_77 = arith.constant 5.000000e-01 : f32
    %218 = vector.broadcast %cst_77 : f32 to vector<2x1x192xf32>
    %219 = arith.mulf %218, %217 : vector<2x1x192xf32>
    %220 = vector.extract_strided_slice %219 {offsets = [0, 0, 0], sizes = [2, 1, 64], strides = [1, 1, 1]} : vector<2x1x192xf32> to vector<2x1x64xf32>
    %221 = vector.extract_strided_slice %219 {offsets = [0, 0, 64], sizes = [2, 1, 64], strides = [1, 1, 1]} : vector<2x1x192xf32> to vector<2x1x64xf32>
    %222 = vector.extract_strided_slice %219 {offsets = [0, 0, 128], sizes = [2, 1, 64], strides = [1, 1, 1]} : vector<2x1x192xf32> to vector<2x1x64xf32>
    %223 = vector.extract_strided_slice %211 {offsets = [0, 0, 192], sizes = [2, 1, 64], strides = [1, 1, 1]} : vector<2x1x256xf32> to vector<2x1x64xf32>
    %224 = math.tanh %223 : vector<2x1x64xf32>
    %225 = arith.mulf %221, %191 : vector<2x1x64xf32>
    %226 = arith.mulf %220, %224 : vector<2x1x64xf32>
    %227 = arith.addf %225, %226 : vector<2x1x64xf32>
    %228 = math.tanh %227 : vector<2x1x64xf32>
    %229 = arith.mulf %222, %228 : vector<2x1x64xf32>
    %230 = vector.extract_strided_slice %229 {offsets = [0, 0, 0], sizes = [1, 1, 64], strides = [1, 1, 1]} : vector<2x1x64xf32> to vector<1x1x64xf32>
    %231 = vector.shape_cast %230 : vector<1x1x64xf32> to vector<1x64xf32>
    %232 = arith.index_cast %c5_i32 : i32 to index
    %c0_78 = arith.constant 0 : index
    %233 = vector.load %arg33[%232, %c0_78] : memref<8x64xf32, #tpu.memory_space<vmem>>, vector<1x64xf32>
    tpu.vector_store %arg33[%232, %c0_78], %231 {strides = array<i32>} : memref<8x64xf32, #tpu.memory_space<vmem>>, vector<1x64xf32>,
    %234 = vector.extract_strided_slice %229 {offsets = [1, 0, 0], sizes = [1, 1, 64], strides = [1, 1, 1]} : vector<2x1x64xf32> to vector<1x1x64xf32>
    %235 = vector.shape_cast %234 : vector<1x1x64xf32> to vector<1x64xf32>
    %c7_i32_79 = arith.constant 7 : i32
    %236 = arith.subi %c7_i32_79, %c5_i32 : i32
    %237 = arith.index_cast %236 : i32 to index
    %c0_80 = arith.constant 0 : index
    %238 = vector.load %arg34[%237, %c0_80] : memref<8x64xf32, #tpu.memory_space<vmem>>, vector<1x64xf32>
    tpu.vector_store %arg34[%237, %c0_80], %235 {strides = array<i32>} : memref<8x64xf32, #tpu.memory_space<vmem>>, vector<1x64xf32>,
    %c6_i32 = arith.constant 6 : i32
    %239 = arith.index_cast %c6_i32 : i32 to index
    %c0_81 = arith.constant 0 : index
    %240 = vector.load %arg31[%239, %c0_81] : memref<8x256xf32, #tpu.memory_space<vmem>>, vector<1x256xf32>
    %241 = arith.index_cast %c6_i32 : i32 to index
    %c0_82 = arith.constant 0 : index
    %242 = vector.load %arg32[%241, %c0_82] : memref<8x256xf32, #tpu.memory_space<vmem>>, vector<1x256xf32>
    %243 = vector.shape_cast %240 : vector<1x256xf32> to vector<1x1x256xf32>
    %244 = vector.shape_cast %242 : vector<1x256xf32> to vector<1x1x256xf32>
    %245 = tpu.concatenate %243, %244 in 0 : vector<1x1x256xf32>, vector<1x1x256xf32> -> vector<2x1x256xf32>
    %cst_83 = arith.constant dense<0.000000e+00> : vector<2x1x256xf32>
    %246 = tpu.matmul %229, %20, %cst_83 {dimension_numbers = #tpu.dot_dimension_numbers<[2], [1], [1], [2], [0, 0, 0, 1, 1, 2], [0], [0]>} : vector<2x1x64xf32>, vector<2x64x256xf32>, vector<2x1x256xf32> -> vector<2x1x256xf32>
    %247 = arith.addf %245, %246 : vector<2x1x256xf32>
    %248 = vector.extract_strided_slice %247 {offsets = [0, 0, 0], sizes = [2, 1, 192], strides = [1, 1, 1]} : vector<2x1x256xf32> to vector<2x1x192xf32>
    %cst_84 = arith.constant 5.000000e-01 : f32
    %249 = vector.broadcast %cst_84 : f32 to vector<2x1x192xf32>
    %250 = arith.mulf %249, %248 : vector<2x1x192xf32>
    %251 = math.tanh %250 : vector<2x1x192xf32>
    %cst_85 = arith.constant 1.000000e+00 : f32
    %252 = vector.broadcast %cst_85 : f32 to vector<2x1x192xf32>
    %253 = arith.addf %251, %252 : vector<2x1x192xf32>
    %cst_86 = arith.constant 5.000000e-01 : f32
    %254 = vector.broadcast %cst_86 : f32 to vector<2x1x192xf32>
    %255 = arith.mulf %254, %253 : vector<2x1x192xf32>
    %256 = vector.extract_strided_slice %255 {offsets = [0, 0, 0], sizes = [2, 1, 64], strides = [1, 1, 1]} : vector<2x1x192xf32> to vector<2x1x64xf32>
    %257 = vector.extract_strided_slice %255 {offsets = [0, 0, 64], sizes = [2, 1, 64], strides = [1, 1, 1]} : vector<2x1x192xf32> to vector<2x1x64xf32>
    %258 = vector.extract_strided_slice %255 {offsets = [0, 0, 128], sizes = [2, 1, 64], strides = [1, 1, 1]} : vector<2x1x192xf32> to vector<2x1x64xf32>
    %259 = vector.extract_strided_slice %247 {offsets = [0, 0, 192], sizes = [2, 1, 64], strides = [1, 1, 1]} : vector<2x1x256xf32> to vector<2x1x64xf32>
    %260 = math.tanh %259 : vector<2x1x64xf32>
    %261 = arith.mulf %257, %227 : vector<2x1x64xf32>
    %262 = arith.mulf %256, %260 : vector<2x1x64xf32>
    %263 = arith.addf %261, %262 : vector<2x1x64xf32>
    %264 = math.tanh %263 : vector<2x1x64xf32>
    %265 = arith.mulf %258, %264 : vector<2x1x64xf32>
    %266 = vector.extract_strided_slice %265 {offsets = [0, 0, 0], sizes = [1, 1, 64], strides = [1, 1, 1]} : vector<2x1x64xf32> to vector<1x1x64xf32>
    %267 = vector.shape_cast %266 : vector<1x1x64xf32> to vector<1x64xf32>
    %268 = arith.index_cast %c6_i32 : i32 to index
    %c0_87 = arith.constant 0 : index
    %269 = vector.load %arg33[%268, %c0_87] : memref<8x64xf32, #tpu.memory_space<vmem>>, vector<1x64xf32>
    tpu.vector_store %arg33[%268, %c0_87], %267 {strides = array<i32>} : memref<8x64xf32, #tpu.memory_space<vmem>>, vector<1x64xf32>,
    %270 = vector.extract_strided_slice %265 {offsets = [1, 0, 0], sizes = [1, 1, 64], strides = [1, 1, 1]} : vector<2x1x64xf32> to vector<1x1x64xf32>
    %271 = vector.shape_cast %270 : vector<1x1x64xf32> to vector<1x64xf32>
    %c7_i32_88 = arith.constant 7 : i32
    %272 = arith.subi %c7_i32_88, %c6_i32 : i32
    %273 = arith.index_cast %272 : i32 to index
    %c0_89 = arith.constant 0 : index
    %274 = vector.load %arg34[%273, %c0_89] : memref<8x64xf32, #tpu.memory_space<vmem>>, vector<1x64xf32>
    tpu.vector_store %arg34[%273, %c0_89], %271 {strides = array<i32>} : memref<8x64xf32, #tpu.memory_space<vmem>>, vector<1x64xf32>,
    %c7_i32_90 = arith.constant 7 : i32
    %275 = arith.index_cast %c7_i32_90 : i32 to index
    %c0_91 = arith.constant 0 : index
    %276 = vector.load %arg31[%275, %c0_91] : memref<8x256xf32, #tpu.memory_space<vmem>>, vector<1x256xf32>
    %277 = arith.index_cast %c7_i32_90 : i32 to index
    %c0_92 = arith.constant 0 : index
    %278 = vector.load %arg32[%277, %c0_92] : memref<8x256xf32, #tpu.memory_space<vmem>>, vector<1x256xf32>
    %279 = vector.shape_cast %276 : vector<1x256xf32> to vector<1x1x256xf32>
    %280 = vector.shape_cast %278 : vector<1x256xf32> to vector<1x1x256xf32>
    %281 = tpu.concatenate %279, %280 in 0 : vector<1x1x256xf32>, vector<1x1x256xf32> -> vector<2x1x256xf32>
    %cst_93 = arith.constant dense<0.000000e+00> : vector<2x1x256xf32>
    %282 = tpu.matmul %265, %20, %cst_93 {dimension_numbers = #tpu.dot_dimension_numbers<[2], [1], [1], [2], [0, 0, 0, 1, 1, 2], [0], [0]>} : vector<2x1x64xf32>, vector<2x64x256xf32>, vector<2x1x256xf32> -> vector<2x1x256xf32>
    %283 = arith.addf %281, %282 : vector<2x1x256xf32>
    %284 = vector.extract_strided_slice %283 {offsets = [0, 0, 0], sizes = [2, 1, 192], strides = [1, 1, 1]} : vector<2x1x256xf32> to vector<2x1x192xf32>
    %cst_94 = arith.constant 5.000000e-01 : f32
    %285 = vector.broadcast %cst_94 : f32 to vector<2x1x192xf32>
    %286 = arith.mulf %285, %284 : vector<2x1x192xf32>
    %287 = math.tanh %286 : vector<2x1x192xf32>
    %cst_95 = arith.constant 1.000000e+00 : f32
    %288 = vector.broadcast %cst_95 : f32 to vector<2x1x192xf32>
    %289 = arith.addf %287, %288 : vector<2x1x192xf32>
    %cst_96 = arith.constant 5.000000e-01 : f32
    %290 = vector.broadcast %cst_96 : f32 to vector<2x1x192xf32>
    %291 = arith.mulf %290, %289 : vector<2x1x192xf32>
    %292 = vector.extract_strided_slice %291 {offsets = [0, 0, 0], sizes = [2, 1, 64], strides = [1, 1, 1]} : vector<2x1x192xf32> to vector<2x1x64xf32>
    %293 = vector.extract_strided_slice %291 {offsets = [0, 0, 64], sizes = [2, 1, 64], strides = [1, 1, 1]} : vector<2x1x192xf32> to vector<2x1x64xf32>
    %294 = vector.extract_strided_slice %291 {offsets = [0, 0, 128], sizes = [2, 1, 64], strides = [1, 1, 1]} : vector<2x1x192xf32> to vector<2x1x64xf32>
    %295 = vector.extract_strided_slice %283 {offsets = [0, 0, 192], sizes = [2, 1, 64], strides = [1, 1, 1]} : vector<2x1x256xf32> to vector<2x1x64xf32>
    %296 = math.tanh %295 : vector<2x1x64xf32>
    %297 = arith.mulf %293, %263 : vector<2x1x64xf32>
    %298 = arith.mulf %292, %296 : vector<2x1x64xf32>
    %299 = arith.addf %297, %298 : vector<2x1x64xf32>
    %300 = math.tanh %299 : vector<2x1x64xf32>
    %301 = arith.mulf %294, %300 : vector<2x1x64xf32>
    %302 = vector.extract_strided_slice %301 {offsets = [0, 0, 0], sizes = [1, 1, 64], strides = [1, 1, 1]} : vector<2x1x64xf32> to vector<1x1x64xf32>
    %303 = vector.shape_cast %302 : vector<1x1x64xf32> to vector<1x64xf32>
    %304 = arith.index_cast %c7_i32_90 : i32 to index
    %c0_97 = arith.constant 0 : index
    %305 = vector.load %arg33[%304, %c0_97] : memref<8x64xf32, #tpu.memory_space<vmem>>, vector<1x64xf32>
    tpu.vector_store %arg33[%304, %c0_97], %303 {strides = array<i32>} : memref<8x64xf32, #tpu.memory_space<vmem>>, vector<1x64xf32>,
    %306 = vector.extract_strided_slice %301 {offsets = [1, 0, 0], sizes = [1, 1, 64], strides = [1, 1, 1]} : vector<2x1x64xf32> to vector<1x1x64xf32>
    %307 = vector.shape_cast %306 : vector<1x1x64xf32> to vector<1x64xf32>
    %c7_i32_98 = arith.constant 7 : i32
    %308 = arith.subi %c7_i32_98, %c7_i32_90 : i32
    %309 = arith.index_cast %308 : i32 to index
    %c0_99 = arith.constant 0 : index
    %310 = vector.load %arg34[%309, %c0_99] : memref<8x64xf32, #tpu.memory_space<vmem>>, vector<1x64xf32>
    tpu.vector_store %arg34[%309, %c0_99], %307 {strides = array<i32>} : memref<8x64xf32, #tpu.memory_space<vmem>>, vector<1x64xf32>,
    %c8_i32 = arith.constant 8 : i32
    %c0_100 = arith.constant 0 : index
    %c0_101 = arith.constant 0 : index
    %311 = vector.load %arg33[%c0_100, %c0_101] : memref<8x64xf32, #tpu.memory_space<vmem>>, vector<8x64xf32>
    %c0_102 = arith.constant 0 : index
    %c0_103 = arith.constant 0 : index
    %312 = vector.load %arg34[%c0_102, %c0_103] : memref<8x64xf32, #tpu.memory_space<vmem>>, vector<8x64xf32>
    %313 = tpu.concatenate %311, %312 in 1 : vector<8x64xf32>, vector<8x64xf32> -> vector<8x128xf32>
    %c0_104 = arith.constant 0 : index
    %c0_105 = arith.constant 0 : index
    %314 = vector.load %arg1[%c0_104, %c0_105] : memref<41x8xf32, #tpu.memory_space<vmem>>, vector<41x8xf32>
    %cst_106 = arith.constant dense<0.000000e+00> : vector<41x128xf32>
    %315 = tpu.matmul %314, %313, %cst_106 {dimension_numbers = #tpu.dot_dimension_numbers<[1], [0], [0], [1], [0, 0, 1, 1], [], []>} : vector<41x8xf32>, vector<8x128xf32>, vector<41x128xf32> -> vector<41x128xf32>
    %c0_107 = arith.constant 0 : index
    %c0_108 = arith.constant 0 : index
    %c0_109 = arith.constant 0 : index
    %316 = vector.load %arg4[%c0_107, %c0_108, %c0_109] : memref<1x8x512xf32, #tpu.memory_space<vmem>>, vector<1x8x512xf32>
    %317 = vector.shape_cast %316 : vector<1x8x512xf32> to vector<8x512xf32>
    %318 = arith.truncf %317 : vector<8x512xf32> to vector<8x512xbf16>
    %c0_110 = arith.constant 0 : index
    %c0_111 = arith.constant 0 : index
    %319 = vector.load %arg8[%c0_110, %c0_111] : memref<512x128xbf16, #tpu.memory_space<vmem>>, vector<512x128xbf16>
    %cst_112 = arith.constant dense<0.000000e+00> : vector<8x128xf32>
    %320 = tpu.matmul %318, %319, %cst_112 {dimension_numbers = #tpu.dot_dimension_numbers<[1], [0], [0], [1], [0, 0, 1, 1], [], []>} : vector<8x512xbf16>, vector<512x128xbf16>, vector<8x128xf32> -> vector<8x128xf32>
    %c0_113 = arith.constant 0 : index
    %c0_114 = arith.constant 0 : index
    %321 = vector.load %arg9[%c0_113, %c0_114] : memref<1x128xf32, #tpu.memory_space<vmem>>, vector<1x128xf32>
    %322 = vector.broadcast %321 : vector<1x128xf32> to vector<8x128xf32>
    %323 = arith.addf %320, %322 : vector<8x128xf32>
    %cst_115 = arith.constant 0.000000e+00 : f32
    %324 = vector.broadcast %cst_115 : f32 to vector<8x128xf32>
    %325 = arith.maximumf %323, %324 : vector<8x128xf32>
    %c0_116 = arith.constant 0 : index
    %c0_117 = arith.constant 0 : index
    %326 = vector.load %arg2[%c0_116, %c0_117] : memref<41x8xf32, #tpu.memory_space<vmem>>, vector<41x8xf32>
    %cst_118 = arith.constant dense<0.000000e+00> : vector<41x128xf32>
    %327 = tpu.matmul %326, %325, %cst_118 {dimension_numbers = #tpu.dot_dimension_numbers<[1], [0], [0], [1], [0, 0, 1, 1], [], []>} : vector<41x8xf32>, vector<8x128xf32>, vector<41x128xf32> -> vector<41x128xf32>
    %328 = tpu.concatenate %315, %327 in 1 : vector<41x128xf32>, vector<41x128xf32> -> vector<41x256xf32>
    %329 = arith.truncf %328 : vector<41x256xf32> to vector<41x256xbf16>
    %c0_119 = arith.constant 0 : index
    %c0_120 = arith.constant 0 : index
    %330 = vector.load %arg10[%c0_119, %c0_120] : memref<256x768xbf16, #tpu.memory_space<vmem>>, vector<256x768xbf16>
    %cst_121 = arith.constant dense<0.000000e+00> : vector<41x768xf32>
    %331 = tpu.matmul %329, %330, %cst_121 {dimension_numbers = #tpu.dot_dimension_numbers<[1], [0], [0], [1], [0, 0, 1, 1], [], []>} : vector<41x256xbf16>, vector<256x768xbf16>, vector<41x768xf32> -> vector<41x768xf32>
    %c0_122 = arith.constant 0 : index
    %c0_123 = arith.constant 0 : index
    %332 = vector.load %arg11[%c0_122, %c0_123] : memref<1x768xf32, #tpu.memory_space<vmem>>, vector<1x768xf32>
    %333 = vector.broadcast %332 : vector<1x768xf32> to vector<41x768xf32>
    %334 = arith.addf %331, %333 : vector<41x768xf32>
    %335 = vector.extract_strided_slice %334 {offsets = [0, 0], sizes = [41, 256], strides = [1, 1]} : vector<41x768xf32> to vector<41x256xf32>
    %cst_124 = arith.constant 0.176776692 : f32
    %336 = vector.broadcast %cst_124 : f32 to vector<41x256xf32>
    %337 = arith.mulf %335, %336 : vector<41x256xf32>
    %338 = vector.extract_strided_slice %334 {offsets = [0, 256], sizes = [41, 256], strides = [1, 1]} : vector<41x768xf32> to vector<41x256xf32>
    %339 = vector.extract_strided_slice %334 {offsets = [0, 512], sizes = [41, 256], strides = [1, 1]} : vector<41x768xf32> to vector<41x256xf32>
    %340 = vector.extract_strided_slice %337 {offsets = [0, 0], sizes = [41, 32], strides = [1, 1]} : vector<41x256xf32> to vector<41x32xf32>
    %341 = vector.extract_strided_slice %337 {offsets = [0, 32], sizes = [41, 32], strides = [1, 1]} : vector<41x256xf32> to vector<41x32xf32>
    %342 = vector.extract_strided_slice %337 {offsets = [0, 64], sizes = [41, 32], strides = [1, 1]} : vector<41x256xf32> to vector<41x32xf32>
    %343 = vector.extract_strided_slice %337 {offsets = [0, 96], sizes = [41, 32], strides = [1, 1]} : vector<41x256xf32> to vector<41x32xf32>
    %344 = vector.extract_strided_slice %337 {offsets = [0, 128], sizes = [41, 32], strides = [1, 1]} : vector<41x256xf32> to vector<41x32xf32>
    %345 = vector.extract_strided_slice %337 {offsets = [0, 160], sizes = [41, 32], strides = [1, 1]} : vector<41x256xf32> to vector<41x32xf32>
    %346 = vector.extract_strided_slice %337 {offsets = [0, 192], sizes = [41, 32], strides = [1, 1]} : vector<41x256xf32> to vector<41x32xf32>
    %347 = vector.extract_strided_slice %337 {offsets = [0, 224], sizes = [41, 32], strides = [1, 1]} : vector<41x256xf32> to vector<41x32xf32>
    %348 = vector.shape_cast %340 : vector<41x32xf32> to vector<1x41x32xf32>
    %349 = vector.shape_cast %341 : vector<41x32xf32> to vector<1x41x32xf32>
    %350 = vector.shape_cast %342 : vector<41x32xf32> to vector<1x41x32xf32>
    %351 = vector.shape_cast %343 : vector<41x32xf32> to vector<1x41x32xf32>
    %352 = vector.shape_cast %344 : vector<41x32xf32> to vector<1x41x32xf32>
    %353 = vector.shape_cast %345 : vector<41x32xf32> to vector<1x41x32xf32>
    %354 = vector.shape_cast %346 : vector<41x32xf32> to vector<1x41x32xf32>
    %355 = vector.shape_cast %347 : vector<41x32xf32> to vector<1x41x32xf32>
    %356 = tpu.concatenate %348, %349, %350, %351, %352, %353, %354, %355 in 0 : vector<1x41x32xf32>, vector<1x41x32xf32>, vector<1x41x32xf32>, vector<1x41x32xf32>, vector<1x41x32xf32>, vector<1x41x32xf32>, vector<1x41x32xf32>, vector<1x41x32xf32> -> vector<8x41x32xf32>
    %357 = vector.extract_strided_slice %338 {offsets = [0, 0], sizes = [41, 32], strides = [1, 1]} : vector<41x256xf32> to vector<41x32xf32>
    %358 = vector.extract_strided_slice %338 {offsets = [0, 32], sizes = [41, 32], strides = [1, 1]} : vector<41x256xf32> to vector<41x32xf32>
    %359 = vector.extract_strided_slice %338 {offsets = [0, 64], sizes = [41, 32], strides = [1, 1]} : vector<41x256xf32> to vector<41x32xf32>
    %360 = vector.extract_strided_slice %338 {offsets = [0, 96], sizes = [41, 32], strides = [1, 1]} : vector<41x256xf32> to vector<41x32xf32>
    %361 = vector.extract_strided_slice %338 {offsets = [0, 128], sizes = [41, 32], strides = [1, 1]} : vector<41x256xf32> to vector<41x32xf32>
    %362 = vector.extract_strided_slice %338 {offsets = [0, 160], sizes = [41, 32], strides = [1, 1]} : vector<41x256xf32> to vector<41x32xf32>
    %363 = vector.extract_strided_slice %338 {offsets = [0, 192], sizes = [41, 32], strides = [1, 1]} : vector<41x256xf32> to vector<41x32xf32>
    %364 = vector.extract_strided_slice %338 {offsets = [0, 224], sizes = [41, 32], strides = [1, 1]} : vector<41x256xf32> to vector<41x32xf32>
    %365 = vector.shape_cast %357 : vector<41x32xf32> to vector<1x41x32xf32>
    %366 = vector.shape_cast %358 : vector<41x32xf32> to vector<1x41x32xf32>
    %367 = vector.shape_cast %359 : vector<41x32xf32> to vector<1x41x32xf32>
    %368 = vector.shape_cast %360 : vector<41x32xf32> to vector<1x41x32xf32>
    %369 = vector.shape_cast %361 : vector<41x32xf32> to vector<1x41x32xf32>
    %370 = vector.shape_cast %362 : vector<41x32xf32> to vector<1x41x32xf32>
    %371 = vector.shape_cast %363 : vector<41x32xf32> to vector<1x41x32xf32>
    %372 = vector.shape_cast %364 : vector<41x32xf32> to vector<1x41x32xf32>
    %373 = tpu.concatenate %365, %366, %367, %368, %369, %370, %371, %372 in 0 : vector<1x41x32xf32>, vector<1x41x32xf32>, vector<1x41x32xf32>, vector<1x41x32xf32>, vector<1x41x32xf32>, vector<1x41x32xf32>, vector<1x41x32xf32>, vector<1x41x32xf32> -> vector<8x41x32xf32>
    %374 = vector.extract_strided_slice %339 {offsets = [0, 0], sizes = [41, 32], strides = [1, 1]} : vector<41x256xf32> to vector<41x32xf32>
    %375 = vector.extract_strided_slice %339 {offsets = [0, 32], sizes = [41, 32], strides = [1, 1]} : vector<41x256xf32> to vector<41x32xf32>
    %376 = vector.extract_strided_slice %339 {offsets = [0, 64], sizes = [41, 32], strides = [1, 1]} : vector<41x256xf32> to vector<41x32xf32>
    %377 = vector.extract_strided_slice %339 {offsets = [0, 96], sizes = [41, 32], strides = [1, 1]} : vector<41x256xf32> to vector<41x32xf32>
    %378 = vector.extract_strided_slice %339 {offsets = [0, 128], sizes = [41, 32], strides = [1, 1]} : vector<41x256xf32> to vector<41x32xf32>
    %379 = vector.extract_strided_slice %339 {offsets = [0, 160], sizes = [41, 32], strides = [1, 1]} : vector<41x256xf32> to vector<41x32xf32>
    %380 = vector.extract_strided_slice %339 {offsets = [0, 192], sizes = [41, 32], strides = [1, 1]} : vector<41x256xf32> to vector<41x32xf32>
    %381 = vector.extract_strided_slice %339 {offsets = [0, 224], sizes = [41, 32], strides = [1, 1]} : vector<41x256xf32> to vector<41x32xf32>
    %382 = vector.shape_cast %374 : vector<41x32xf32> to vector<1x41x32xf32>
    %383 = vector.shape_cast %375 : vector<41x32xf32> to vector<1x41x32xf32>
    %384 = vector.shape_cast %376 : vector<41x32xf32> to vector<1x41x32xf32>
    %385 = vector.shape_cast %377 : vector<41x32xf32> to vector<1x41x32xf32>
    %386 = vector.shape_cast %378 : vector<41x32xf32> to vector<1x41x32xf32>
    %387 = vector.shape_cast %379 : vector<41x32xf32> to vector<1x41x32xf32>
    %388 = vector.shape_cast %380 : vector<41x32xf32> to vector<1x41x32xf32>
    %389 = vector.shape_cast %381 : vector<41x32xf32> to vector<1x41x32xf32>
    %390 = tpu.concatenate %382, %383, %384, %385, %386, %387, %388, %389 in 0 : vector<1x41x32xf32>, vector<1x41x32xf32>, vector<1x41x32xf32>, vector<1x41x32xf32>, vector<1x41x32xf32>, vector<1x41x32xf32>, vector<1x41x32xf32>, vector<1x41x32xf32> -> vector<8x41x32xf32>
    %cst_125 = arith.constant dense<0.000000e+00> : vector<8x41x41xf32>
    %391 = tpu.matmul %356, %373, %cst_125 {dimension_numbers = #tpu.dot_dimension_numbers<[2], [2], [1], [1], [0, 0, 0, 1, 1, 1], [0], [0]>} : vector<8x41x32xf32>, vector<8x41x32xf32>, vector<8x41x41xf32> -> vector<8x41x41xf32>
    %cst_126 = arith.constant dense<0xFF800000> : vector<8x41xf32>
    %392 = vector.multi_reduction <maximumf>, %391, %cst_126 [2] : vector<8x41x41xf32> to vector<8x41xf32>
    %393 = vector.shape_cast %392 : vector<8x41xf32> to vector<8x41x1xf32>
    %394 = vector.broadcast %393 : vector<8x41x1xf32> to vector<8x41x41xf32>
    %395 = arith.subf %391, %394 : vector<8x41x41xf32>
    %396 = math.exp %395 : vector<8x41x41xf32>
    %cst_127 = arith.constant dense<0.000000e+00> : vector<8x41xf32>
    %397 = vector.multi_reduction <add>, %396, %cst_127 [2] : vector<8x41x41xf32> to vector<8x41xf32>
    %398 = vector.shape_cast %397 : vector<8x41xf32> to vector<8x41x1xf32>
    %399 = tpu.reciprocal %398 {approx = true} : vector<8x41x1xf32> -> vector<8x41x1xf32>
    %400 = vector.broadcast %399 : vector<8x41x1xf32> to vector<8x41x41xf32>
    %401 = arith.mulf %396, %400 : vector<8x41x41xf32>
    %cst_128 = arith.constant dense<0.000000e+00> : vector<41x41xf32>
    %402 = vector.multi_reduction <add>, %401, %cst_128 [0] : vector<8x41x41xf32> to vector<41x41xf32>
    %cst_129 = arith.constant 8.000000e+00 : f32
    %403 = vector.broadcast %cst_129 : f32 to vector<41x41xf32>
    %404 = arith.divf %402, %403 : vector<41x41xf32>
    %c0_130 = arith.constant 0 : index
    %c0_131 = arith.constant 0 : index
    %c0_132 = arith.constant 0 : index
    %405 = vector.load %arg30[%c0_130, %c0_131, %c0_132] : memref<1x41x41xf32, #tpu.memory_space<vmem>>, vector<1x41x41xf32>
    %406 = vector.shape_cast %405 : vector<1x41x41xf32> to vector<41x41xf32>
    %407 = vector.shape_cast %404 : vector<41x41xf32> to vector<1x41x41xf32>
    tpu.vector_store %arg30[%c0_130, %c0_131, %c0_132], %407 {strides = array<i32>} : memref<1x41x41xf32, #tpu.memory_space<vmem>>, vector<1x41x41xf32>,
    %cst_133 = arith.constant dense<0.000000e+00> : vector<8x41x32xf32>
    %408 = tpu.matmul %401, %390, %cst_133 {dimension_numbers = #tpu.dot_dimension_numbers<[2], [1], [1], [2], [0, 0, 0, 1, 1, 2], [0], [0]>} : vector<8x41x41xf32>, vector<8x41x32xf32>, vector<8x41x32xf32> -> vector<8x41x32xf32>
    %c0_134 = arith.constant 0 : index
    %c0_135 = arith.constant 0 : index
    %c0_136 = arith.constant 0 : index
    %409 = vector.load %arg12[%c0_134, %c0_135, %c0_136] : memref<8x32x256xf32, #tpu.memory_space<vmem>>, vector<8x32x256xf32>
    %cst_137 = arith.constant dense<0.000000e+00> : vector<8x41x256xf32>
    %410 = tpu.matmul %408, %409, %cst_137 {dimension_numbers = #tpu.dot_dimension_numbers<[2], [1], [1], [2], [0, 0, 0, 1, 1, 2], [0], [0]>} : vector<8x41x32xf32>, vector<8x32x256xf32>, vector<8x41x256xf32> -> vector<8x41x256xf32>
    %cst_138 = arith.constant dense<0.000000e+00> : vector<41x256xf32>
    %411 = vector.multi_reduction <add>, %410, %cst_138 [0] : vector<8x41x256xf32> to vector<41x256xf32>
    %c0_139 = arith.constant 0 : index
    %c0_140 = arith.constant 0 : index
    %412 = vector.load %arg13[%c0_139, %c0_140] : memref<1x256xf32, #tpu.memory_space<vmem>>, vector<1x256xf32>
    %413 = vector.broadcast %412 : vector<1x256xf32> to vector<41x256xf32>
    %414 = arith.addf %411, %413 : vector<41x256xf32>
    %415 = arith.addf %328, %414 : vector<41x256xf32>
    %c0_141 = arith.constant 0 : index
    %c0_142 = arith.constant 0 : index
    %416 = vector.load %arg14[%c0_141, %c0_142] : memref<1x256xf32, #tpu.memory_space<vmem>>, vector<1x256xf32>
    %c0_143 = arith.constant 0 : index
    %c0_144 = arith.constant 0 : index
    %417 = vector.load %arg15[%c0_143, %c0_144] : memref<1x256xf32, #tpu.memory_space<vmem>>, vector<1x256xf32>
    %cst_145 = arith.constant dense<0.000000e+00> : vector<41xf32>
    %418 = vector.multi_reduction <add>, %415, %cst_145 [1] : vector<41x256xf32> to vector<41xf32>
    %419 = vector.shape_cast %418 : vector<41xf32> to vector<41x1xf32>
    %cst_146 = arith.constant 2.560000e+02 : f32
    %420 = vector.broadcast %cst_146 : f32 to vector<41x1xf32>
    %421 = arith.divf %419, %420 : vector<41x1xf32>
    %422 = vector.broadcast %421 : vector<41x1xf32> to vector<41x256xf32>
    %423 = arith.subf %415, %422 : vector<41x256xf32>
    %424 = arith.mulf %423, %423 : vector<41x256xf32>
    %cst_147 = arith.constant dense<0.000000e+00> : vector<41xf32>
    %425 = vector.multi_reduction <add>, %424, %cst_147 [1] : vector<41x256xf32> to vector<41xf32>
    %426 = vector.shape_cast %425 : vector<41xf32> to vector<41x1xf32>
    %cst_148 = arith.constant 2.560000e+02 : f32
    %427 = vector.broadcast %cst_148 : f32 to vector<41x1xf32>
    %428 = arith.divf %426, %427 : vector<41x1xf32>
    %429 = vector.broadcast %421 : vector<41x1xf32> to vector<41x256xf32>
    %430 = arith.subf %415, %429 : vector<41x256xf32>
    %cst_149 = arith.constant 9.99999974E-6 : f32
    %431 = vector.broadcast %cst_149 : f32 to vector<41x1xf32>
    %432 = arith.addf %428, %431 : vector<41x1xf32>
    %433 = math.rsqrt %432 : vector<41x1xf32>
    %434 = vector.broadcast %433 : vector<41x1xf32> to vector<41x256xf32>
    %435 = arith.mulf %430, %434 : vector<41x256xf32>
    %436 = vector.broadcast %416 : vector<1x256xf32> to vector<41x256xf32>
    %437 = arith.mulf %435, %436 : vector<41x256xf32>
    %438 = vector.broadcast %417 : vector<1x256xf32> to vector<41x256xf32>
    %439 = arith.addf %437, %438 : vector<41x256xf32>
    %440 = arith.truncf %439 : vector<41x256xf32> to vector<41x256xbf16>
    %c0_150 = arith.constant 0 : index
    %c0_151 = arith.constant 0 : index
    %441 = vector.load %arg16[%c0_150, %c0_151] : memref<256x512xbf16, #tpu.memory_space<vmem>>, vector<256x512xbf16>
    %cst_152 = arith.constant dense<0.000000e+00> : vector<41x512xf32>
    %442 = tpu.matmul %440, %441, %cst_152 {dimension_numbers = #tpu.dot_dimension_numbers<[1], [0], [0], [1], [0, 0, 1, 1], [], []>} : vector<41x256xbf16>, vector<256x512xbf16>, vector<41x512xf32> -> vector<41x512xf32>
    %c0_153 = arith.constant 0 : index
    %c0_154 = arith.constant 0 : index
    %443 = vector.load %arg17[%c0_153, %c0_154] : memref<1x512xf32, #tpu.memory_space<vmem>>, vector<1x512xf32>
    %444 = vector.broadcast %443 : vector<1x512xf32> to vector<41x512xf32>
    %445 = arith.addf %442, %444 : vector<41x512xf32>
    %cst_155 = arith.constant 0.000000e+00 : f32
    %446 = vector.broadcast %cst_155 : f32 to vector<41x512xf32>
    %447 = arith.maximumf %445, %446 : vector<41x512xf32>
    %448 = arith.truncf %447 : vector<41x512xf32> to vector<41x512xbf16>
    %c0_156 = arith.constant 0 : index
    %c0_157 = arith.constant 0 : index
    %449 = vector.load %arg18[%c0_156, %c0_157] : memref<512x256xbf16, #tpu.memory_space<vmem>>, vector<512x256xbf16>
    %cst_158 = arith.constant dense<0.000000e+00> : vector<41x256xf32>
    %450 = tpu.matmul %448, %449, %cst_158 {dimension_numbers = #tpu.dot_dimension_numbers<[1], [0], [0], [1], [0, 0, 1, 1], [], []>} : vector<41x512xbf16>, vector<512x256xbf16>, vector<41x256xf32> -> vector<41x256xf32>
    %c0_159 = arith.constant 0 : index
    %c0_160 = arith.constant 0 : index
    %451 = vector.load %arg19[%c0_159, %c0_160] : memref<1x256xf32, #tpu.memory_space<vmem>>, vector<1x256xf32>
    %452 = vector.broadcast %451 : vector<1x256xf32> to vector<41x256xf32>
    %453 = arith.addf %450, %452 : vector<41x256xf32>
    %454 = arith.addf %439, %453 : vector<41x256xf32>
    %c0_161 = arith.constant 0 : index
    %c0_162 = arith.constant 0 : index
    %455 = vector.load %arg20[%c0_161, %c0_162] : memref<1x256xf32, #tpu.memory_space<vmem>>, vector<1x256xf32>
    %c0_163 = arith.constant 0 : index
    %c0_164 = arith.constant 0 : index
    %456 = vector.load %arg21[%c0_163, %c0_164] : memref<1x256xf32, #tpu.memory_space<vmem>>, vector<1x256xf32>
    %cst_165 = arith.constant dense<0.000000e+00> : vector<41xf32>
    %457 = vector.multi_reduction <add>, %454, %cst_165 [1] : vector<41x256xf32> to vector<41xf32>
    %458 = vector.shape_cast %457 : vector<41xf32> to vector<41x1xf32>
    %cst_166 = arith.constant 2.560000e+02 : f32
    %459 = vector.broadcast %cst_166 : f32 to vector<41x1xf32>
    %460 = arith.divf %458, %459 : vector<41x1xf32>
    %461 = vector.broadcast %460 : vector<41x1xf32> to vector<41x256xf32>
    %462 = arith.subf %454, %461 : vector<41x256xf32>
    %463 = arith.mulf %462, %462 : vector<41x256xf32>
    %cst_167 = arith.constant dense<0.000000e+00> : vector<41xf32>
    %464 = vector.multi_reduction <add>, %463, %cst_167 [1] : vector<41x256xf32> to vector<41xf32>
    %465 = vector.shape_cast %464 : vector<41xf32> to vector<41x1xf32>
    %cst_168 = arith.constant 2.560000e+02 : f32
    %466 = vector.broadcast %cst_168 : f32 to vector<41x1xf32>
    %467 = arith.divf %465, %466 : vector<41x1xf32>
    %468 = vector.broadcast %460 : vector<41x1xf32> to vector<41x256xf32>
    %469 = arith.subf %454, %468 : vector<41x256xf32>
    %cst_169 = arith.constant 9.99999974E-6 : f32
    %470 = vector.broadcast %cst_169 : f32 to vector<41x1xf32>
    %471 = arith.addf %467, %470 : vector<41x1xf32>
    %472 = math.rsqrt %471 : vector<41x1xf32>
    %473 = vector.broadcast %472 : vector<41x1xf32> to vector<41x256xf32>
    %474 = arith.mulf %469, %473 : vector<41x256xf32>
    %475 = vector.broadcast %455 : vector<1x256xf32> to vector<41x256xf32>
    %476 = arith.mulf %474, %475 : vector<41x256xf32>
    %477 = vector.broadcast %456 : vector<1x256xf32> to vector<41x256xf32>
    %478 = arith.addf %476, %477 : vector<41x256xf32>
    %479 = arith.truncf %478 : vector<41x256xf32> to vector<41x256xbf16>
    %c0_170 = arith.constant 0 : index
    %c0_171 = arith.constant 0 : index
    %480 = vector.load %arg22[%c0_170, %c0_171] : memref<256x5248xbf16, #tpu.memory_space<vmem>>, vector<256x5248xbf16>
    %cst_172 = arith.constant dense<0.000000e+00> : vector<41x5248xf32>
    %481 = tpu.matmul %479, %480, %cst_172 {dimension_numbers = #tpu.dot_dimension_numbers<[1], [0], [0], [1], [0, 0, 1, 1], [], []>} : vector<41x256xbf16>, vector<256x5248xbf16>, vector<41x5248xf32> -> vector<41x5248xf32>
    %482 = vector.extract_strided_slice %481 {offsets = [0, 0], sizes = [1, 128], strides = [1, 1]} : vector<41x5248xf32> to vector<1x128xf32>
    %483 = vector.extract_strided_slice %481 {offsets = [1, 128], sizes = [1, 128], strides = [1, 1]} : vector<41x5248xf32> to vector<1x128xf32>
    %484 = vector.extract_strided_slice %481 {offsets = [2, 256], sizes = [1, 128], strides = [1, 1]} : vector<41x5248xf32> to vector<1x128xf32>
    %485 = vector.extract_strided_slice %481 {offsets = [3, 384], sizes = [1, 128], strides = [1, 1]} : vector<41x5248xf32> to vector<1x128xf32>
    %486 = vector.extract_strided_slice %481 {offsets = [4, 512], sizes = [1, 128], strides = [1, 1]} : vector<41x5248xf32> to vector<1x128xf32>
    %487 = vector.extract_strided_slice %481 {offsets = [5, 640], sizes = [1, 128], strides = [1, 1]} : vector<41x5248xf32> to vector<1x128xf32>
    %488 = vector.extract_strided_slice %481 {offsets = [6, 768], sizes = [1, 128], strides = [1, 1]} : vector<41x5248xf32> to vector<1x128xf32>
    %489 = vector.extract_strided_slice %481 {offsets = [7, 896], sizes = [1, 128], strides = [1, 1]} : vector<41x5248xf32> to vector<1x128xf32>
    %490 = vector.extract_strided_slice %481 {offsets = [8, 1024], sizes = [1, 128], strides = [1, 1]} : vector<41x5248xf32> to vector<1x128xf32>
    %491 = vector.extract_strided_slice %481 {offsets = [9, 1152], sizes = [1, 128], strides = [1, 1]} : vector<41x5248xf32> to vector<1x128xf32>
    %492 = vector.extract_strided_slice %481 {offsets = [10, 1280], sizes = [1, 128], strides = [1, 1]} : vector<41x5248xf32> to vector<1x128xf32>
    %493 = vector.extract_strided_slice %481 {offsets = [11, 1408], sizes = [1, 128], strides = [1, 1]} : vector<41x5248xf32> to vector<1x128xf32>
    %494 = vector.extract_strided_slice %481 {offsets = [12, 1536], sizes = [1, 128], strides = [1, 1]} : vector<41x5248xf32> to vector<1x128xf32>
    %495 = vector.extract_strided_slice %481 {offsets = [13, 1664], sizes = [1, 128], strides = [1, 1]} : vector<41x5248xf32> to vector<1x128xf32>
    %496 = vector.extract_strided_slice %481 {offsets = [14, 1792], sizes = [1, 128], strides = [1, 1]} : vector<41x5248xf32> to vector<1x128xf32>
    %497 = vector.extract_strided_slice %481 {offsets = [15, 1920], sizes = [1, 128], strides = [1, 1]} : vector<41x5248xf32> to vector<1x128xf32>
    %498 = vector.extract_strided_slice %481 {offsets = [16, 2048], sizes = [1, 128], strides = [1, 1]} : vector<41x5248xf32> to vector<1x128xf32>
    %499 = vector.extract_strided_slice %481 {offsets = [17, 2176], sizes = [1, 128], strides = [1, 1]} : vector<41x5248xf32> to vector<1x128xf32>
    %500 = vector.extract_strided_slice %481 {offsets = [18, 2304], sizes = [1, 128], strides = [1, 1]} : vector<41x5248xf32> to vector<1x128xf32>
    %501 = vector.extract_strided_slice %481 {offsets = [19, 2432], sizes = [1, 128], strides = [1, 1]} : vector<41x5248xf32> to vector<1x128xf32>
    %502 = vector.extract_strided_slice %481 {offsets = [20, 2560], sizes = [1, 128], strides = [1, 1]} : vector<41x5248xf32> to vector<1x128xf32>
    %503 = vector.extract_strided_slice %481 {offsets = [21, 2688], sizes = [1, 128], strides = [1, 1]} : vector<41x5248xf32> to vector<1x128xf32>
    %504 = vector.extract_strided_slice %481 {offsets = [22, 2816], sizes = [1, 128], strides = [1, 1]} : vector<41x5248xf32> to vector<1x128xf32>
    %505 = vector.extract_strided_slice %481 {offsets = [23, 2944], sizes = [1, 128], strides = [1, 1]} : vector<41x5248xf32> to vector<1x128xf32>
    %506 = vector.extract_strided_slice %481 {offsets = [24, 3072], sizes = [1, 128], strides = [1, 1]} : vector<41x5248xf32> to vector<1x128xf32>
    %507 = vector.extract_strided_slice %481 {offsets = [25, 3200], sizes = [1, 128], strides = [1, 1]} : vector<41x5248xf32> to vector<1x128xf32>
    %508 = vector.extract_strided_slice %481 {offsets = [26, 3328], sizes = [1, 128], strides = [1, 1]} : vector<41x5248xf32> to vector<1x128xf32>
    %509 = vector.extract_strided_slice %481 {offsets = [27, 3456], sizes = [1, 128], strides = [1, 1]} : vector<41x5248xf32> to vector<1x128xf32>
    %510 = vector.extract_strided_slice %481 {offsets = [28, 3584], sizes = [1, 128], strides = [1, 1]} : vector<41x5248xf32> to vector<1x128xf32>
    %511 = vector.extract_strided_slice %481 {offsets = [29, 3712], sizes = [1, 128], strides = [1, 1]} : vector<41x5248xf32> to vector<1x128xf32>
    %512 = vector.extract_strided_slice %481 {offsets = [30, 3840], sizes = [1, 128], strides = [1, 1]} : vector<41x5248xf32> to vector<1x128xf32>
    %513 = vector.extract_strided_slice %481 {offsets = [31, 3968], sizes = [1, 128], strides = [1, 1]} : vector<41x5248xf32> to vector<1x128xf32>
    %514 = vector.extract_strided_slice %481 {offsets = [32, 4096], sizes = [1, 128], strides = [1, 1]} : vector<41x5248xf32> to vector<1x128xf32>
    %515 = vector.extract_strided_slice %481 {offsets = [33, 4224], sizes = [1, 128], strides = [1, 1]} : vector<41x5248xf32> to vector<1x128xf32>
    %516 = vector.extract_strided_slice %481 {offsets = [34, 4352], sizes = [1, 128], strides = [1, 1]} : vector<41x5248xf32> to vector<1x128xf32>
    %517 = vector.extract_strided_slice %481 {offsets = [35, 4480], sizes = [1, 128], strides = [1, 1]} : vector<41x5248xf32> to vector<1x128xf32>
    %518 = vector.extract_strided_slice %481 {offsets = [36, 4608], sizes = [1, 128], strides = [1, 1]} : vector<41x5248xf32> to vector<1x128xf32>
    %519 = vector.extract_strided_slice %481 {offsets = [37, 4736], sizes = [1, 128], strides = [1, 1]} : vector<41x5248xf32> to vector<1x128xf32>
    %520 = vector.extract_strided_slice %481 {offsets = [38, 4864], sizes = [1, 128], strides = [1, 1]} : vector<41x5248xf32> to vector<1x128xf32>
    %521 = vector.extract_strided_slice %481 {offsets = [39, 4992], sizes = [1, 128], strides = [1, 1]} : vector<41x5248xf32> to vector<1x128xf32>
    %522 = vector.extract_strided_slice %481 {offsets = [40, 5120], sizes = [1, 128], strides = [1, 1]} : vector<41x5248xf32> to vector<1x128xf32>
    %523 = tpu.concatenate %482, %483, %484, %485, %486, %487, %488, %489, %490, %491, %492, %493, %494, %495, %496, %497 in 0 : vector<1x128xf32>, vector<1x128xf32>, vector<1x128xf32>, vector<1x128xf32>, vector<1x128xf32>, vector<1x128xf32>, vector<1x128xf32>, vector<1x128xf32>, vector<1x128xf32>, vector<1x128xf32>, vector<1x128xf32>, vector<1x128xf32>, vector<1x128xf32>, vector<1x128xf32>, vector<1x128xf32>, vector<1x128xf32> -> vector<16x128xf32>
    %524 = tpu.concatenate %498, %499, %500, %501, %502, %503, %504, %505, %506, %507, %508, %509, %510, %511, %512, %513 in 0 : vector<1x128xf32>, vector<1x128xf32>, vector<1x128xf32>, vector<1x128xf32>, vector<1x128xf32>, vector<1x128xf32>, vector<1x128xf32>, vector<1x128xf32>, vector<1x128xf32>, vector<1x128xf32>, vector<1x128xf32>, vector<1x128xf32>, vector<1x128xf32>, vector<1x128xf32>, vector<1x128xf32>, vector<1x128xf32> -> vector<16x128xf32>
    %525 = tpu.concatenate %514, %515, %516, %517, %518, %519, %520, %521, %522 in 0 : vector<1x128xf32>, vector<1x128xf32>, vector<1x128xf32>, vector<1x128xf32>, vector<1x128xf32>, vector<1x128xf32>, vector<1x128xf32>, vector<1x128xf32>, vector<1x128xf32> -> vector<9x128xf32>
    %526 = tpu.concatenate %523, %524, %525 in 0 : vector<16x128xf32>, vector<16x128xf32>, vector<9x128xf32> -> vector<41x128xf32>
    %cst_173 = arith.constant dense<0.000000e+00> : vector<128xf32>
    %527 = vector.multi_reduction <add>, %526, %cst_173 [0] : vector<41x128xf32> to vector<128xf32>
    %528 = vector.shape_cast %527 : vector<128xf32> to vector<1x128xf32>
    %c0_174 = arith.constant 0 : index
    %c0_175 = arith.constant 0 : index
    %529 = vector.load %arg23[%c0_174, %c0_175] : memref<1x128xf32, #tpu.memory_space<vmem>>, vector<1x128xf32>
    %530 = arith.addf %528, %529 : vector<1x128xf32>
    %cst_176 = arith.constant 0.000000e+00 : f32
    %531 = vector.broadcast %cst_176 : f32 to vector<1x128xf32>
    %532 = arith.maximumf %530, %531 : vector<1x128xf32>
    %c0_177 = arith.constant 0 : index
    %c0_178 = arith.constant 0 : index
    %c0_179 = arith.constant 0 : index
    %533 = vector.load %arg29[%c0_177, %c0_178, %c0_179] : memref<1x1x128xf32, #tpu.memory_space<vmem>>, vector<1x1x128xf32>
    %534 = vector.shape_cast %533 : vector<1x1x128xf32> to vector<1x128xf32>
    %535 = vector.shape_cast %532 : vector<1x128xf32> to vector<1x1x128xf32>
    tpu.vector_store %arg29[%c0_177, %c0_178, %c0_179], %535 {strides = array<i32>} : memref<1x1x128xf32, #tpu.memory_space<vmem>>, vector<1x1x128xf32>,
    %c0_180 = arith.constant 0 : index
    %c0_181 = arith.constant 0 : index
    %536 = vector.load %arg24[%c0_180, %c0_181] : memref<128x20xf32, #tpu.memory_space<vmem>>, vector<128x20xf32>
    %cst_182 = arith.constant dense<0.000000e+00> : vector<1x20xf32>
    %537 = tpu.matmul %532, %536, %cst_182 {dimension_numbers = #tpu.dot_dimension_numbers<[1], [0], [0], [1], [0, 0, 1, 1], [], []>} : vector<1x128xf32>, vector<128x20xf32>, vector<1x20xf32> -> vector<1x20xf32>
    %c0_183 = arith.constant 0 : index
    %c0_184 = arith.constant 0 : index
    %538 = vector.load %arg25[%c0_183, %c0_184] : memref<1x20xf32, #tpu.memory_space<vmem>>, vector<1x20xf32>
    %539 = arith.addf %537, %538 : vector<1x20xf32>
    %cst_185 = arith.constant 0.000000e+00 : f32
    %540 = vector.broadcast %cst_185 : f32 to vector<1x20xf32>
    %541 = arith.maximumf %539, %540 : vector<1x20xf32>
    %c0_186 = arith.constant 0 : index
    %c0_187 = arith.constant 0 : index
    %542 = vector.load %arg26[%c0_186, %c0_187] : memref<20x1xf32, #tpu.memory_space<vmem>>, vector<20x1xf32>
    %cst_188 = arith.constant dense<0.000000e+00> : vector<1x1xf32>
    %543 = tpu.matmul %541, %542, %cst_188 {dimension_numbers = #tpu.dot_dimension_numbers<[1], [0], [0], [1], [0, 0, 1, 1], [], []>} : vector<1x20xf32>, vector<20x1xf32>, vector<1x1xf32> -> vector<1x1xf32>
    %c0_189 = arith.constant 0 : index
    %c0_190 = arith.constant 0 : index
    %544 = vector.load %arg27[%c0_189, %c0_190] : memref<1x1xf32, #tpu.memory_space<vmem>>, vector<1x1xf32>
    %545 = arith.addf %543, %544 : vector<1x1xf32>
    %cst_191 = arith.constant 5.000000e-01 : f32
    %546 = vector.broadcast %cst_191 : f32 to vector<1x1xf32>
    %547 = arith.mulf %546, %545 : vector<1x1xf32>
    %548 = math.tanh %547 : vector<1x1xf32>
    %cst_192 = arith.constant 1.000000e+00 : f32
    %549 = vector.broadcast %cst_192 : f32 to vector<1x1xf32>
    %550 = arith.addf %548, %549 : vector<1x1xf32>
    %cst_193 = arith.constant 5.000000e-01 : f32
    %551 = vector.broadcast %cst_193 : f32 to vector<1x1xf32>
    %552 = arith.mulf %551, %550 : vector<1x1xf32>
    %c0_194 = arith.constant 0 : index
    %c0_195 = arith.constant 0 : index
    %c0_196 = arith.constant 0 : index
    %553 = vector.load %arg28[%c0_194, %c0_195, %c0_196] : memref<1x1x1xf32, #tpu.memory_space<vmem>>, vector<1x1x1xf32>
    %554 = vector.shape_cast %553 : vector<1x1x1xf32> to vector<1x1xf32>
    %555 = vector.shape_cast %552 : vector<1x1xf32> to vector<1x1x1xf32>
    tpu.vector_store %arg28[%c0_194, %c0_195, %c0_196], %555 {strides = array<i32>} : memref<1x1x1xf32, #tpu.memory_space<vmem>>, vector<1x1x1xf32>,
    return
  }
  func.func @transform_0(%arg0: i32) -> (i32, i32) {
    %c0_i32 = arith.constant 0 : i32
    %c0_i32_0 = arith.constant 0 : i32
    %c0_i32_1 = arith.constant 0 : i32
    return %c0_i32, %c0_i32_0 : i32, i32
  }
  func.func @transform_1(%arg0: i32) -> (i32, i32) {
    %c0_i32 = arith.constant 0 : i32
    %c0_i32_0 = arith.constant 0 : i32
    %c0_i32_1 = arith.constant 0 : i32
    return %c0_i32, %c0_i32_0 : i32, i32
  }
  func.func @transform_2(%arg0: i32) -> (i32, i32, i32, i32) {
    %c0_i32 = arith.constant 0 : i32
    %c0_i32_0 = arith.constant 0 : i32
    %c0_i32_1 = arith.constant 0 : i32
    %c0_i32_2 = arith.constant 0 : i32
    return %arg0, %c0_i32, %c0_i32_0, %c0_i32_1 : i32, i32, i32, i32
  }
  func.func @transform_3(%arg0: i32) -> (i32, i32, i32) {
    %c0_i32 = arith.constant 0 : i32
    %c0_i32_0 = arith.constant 0 : i32
    %c0_i32_1 = arith.constant 0 : i32
    return %arg0, %c0_i32, %c0_i32_0 : i32, i32, i32
  }
  func.func @transform_4(%arg0: i32) -> (i32, i32, i32) {
    %c0_i32 = arith.constant 0 : i32
    %c0_i32_0 = arith.constant 0 : i32
    %c0_i32_1 = arith.constant 0 : i32
    %c0_i32_2 = arith.constant 0 : i32
    return %c0_i32, %c0_i32_0, %c0_i32_1 : i32, i32, i32
  }
  func.func @transform_5(%arg0: i32) -> (i32, i32, i32) {
    %c0_i32 = arith.constant 0 : i32
    %c0_i32_0 = arith.constant 0 : i32
    %c0_i32_1 = arith.constant 0 : i32
    %c0_i32_2 = arith.constant 0 : i32
    return %c0_i32, %c0_i32_0, %c0_i32_1 : i32, i32, i32
  }
  func.func @transform_6(%arg0: i32) -> (i32, i32, i32) {
    %c0_i32 = arith.constant 0 : i32
    %c0_i32_0 = arith.constant 0 : i32
    %c0_i32_1 = arith.constant 0 : i32
    %c0_i32_2 = arith.constant 0 : i32
    return %c0_i32, %c0_i32_0, %c0_i32_1 : i32, i32, i32
  }
  func.func @transform_7(%arg0: i32) -> (i32, i32) {
    %c0_i32 = arith.constant 0 : i32
    %c0_i32_0 = arith.constant 0 : i32
    %c0_i32_1 = arith.constant 0 : i32
    return %c0_i32, %c0_i32_0 : i32, i32
  }
  func.func @transform_8(%arg0: i32) -> (i32, i32) {
    %c0_i32 = arith.constant 0 : i32
    %c0_i32_0 = arith.constant 0 : i32
    %c0_i32_1 = arith.constant 0 : i32
    return %c0_i32, %c0_i32_0 : i32, i32
  }
  func.func @transform_9(%arg0: i32) -> (i32, i32) {
    %c0_i32 = arith.constant 0 : i32
    %c0_i32_0 = arith.constant 0 : i32
    %c0_i32_1 = arith.constant 0 : i32
    return %c0_i32, %c0_i32_0 : i32, i32
  }
  func.func @transform_10(%arg0: i32) -> (i32, i32) {
    %c0_i32 = arith.constant 0 : i32
    %c0_i32_0 = arith.constant 0 : i32
    %c0_i32_1 = arith.constant 0 : i32
    return %c0_i32, %c0_i32_0 : i32, i32
  }
  func.func @transform_11(%arg0: i32) -> (i32, i32, i32) {
    %c0_i32 = arith.constant 0 : i32
    %c0_i32_0 = arith.constant 0 : i32
    %c0_i32_1 = arith.constant 0 : i32
    %c0_i32_2 = arith.constant 0 : i32
    return %c0_i32, %c0_i32_0, %c0_i32_1 : i32, i32, i32
  }
  func.func @transform_12(%arg0: i32) -> (i32, i32) {
    %c0_i32 = arith.constant 0 : i32
    %c0_i32_0 = arith.constant 0 : i32
    %c0_i32_1 = arith.constant 0 : i32
    return %c0_i32, %c0_i32_0 : i32, i32
  }
  func.func @transform_13(%arg0: i32) -> (i32, i32) {
    %c0_i32 = arith.constant 0 : i32
    %c0_i32_0 = arith.constant 0 : i32
    %c0_i32_1 = arith.constant 0 : i32
    return %c0_i32, %c0_i32_0 : i32, i32
  }
  func.func @transform_14(%arg0: i32) -> (i32, i32) {
    %c0_i32 = arith.constant 0 : i32
    %c0_i32_0 = arith.constant 0 : i32
    %c0_i32_1 = arith.constant 0 : i32
    return %c0_i32, %c0_i32_0 : i32, i32
  }
  func.func @transform_15(%arg0: i32) -> (i32, i32) {
    %c0_i32 = arith.constant 0 : i32
    %c0_i32_0 = arith.constant 0 : i32
    %c0_i32_1 = arith.constant 0 : i32
    return %c0_i32, %c0_i32_0 : i32, i32
  }
  func.func @transform_16(%arg0: i32) -> (i32, i32) {
    %c0_i32 = arith.constant 0 : i32
    %c0_i32_0 = arith.constant 0 : i32
    %c0_i32_1 = arith.constant 0 : i32
    return %c0_i32, %c0_i32_0 : i32, i32
  }
  func.func @transform_17(%arg0: i32) -> (i32, i32) {
    %c0_i32 = arith.constant 0 : i32
    %c0_i32_0 = arith.constant 0 : i32
    %c0_i32_1 = arith.constant 0 : i32
    return %c0_i32, %c0_i32_0 : i32, i32
  }
  func.func @transform_18(%arg0: i32) -> (i32, i32) {
    %c0_i32 = arith.constant 0 : i32
    %c0_i32_0 = arith.constant 0 : i32
    %c0_i32_1 = arith.constant 0 : i32
    return %c0_i32, %c0_i32_0 : i32, i32
  }
  func.func @transform_19(%arg0: i32) -> (i32, i32) {
    %c0_i32 = arith.constant 0 : i32
    %c0_i32_0 = arith.constant 0 : i32
    %c0_i32_1 = arith.constant 0 : i32
    return %c0_i32, %c0_i32_0 : i32, i32
  }
  func.func @transform_20(%arg0: i32) -> (i32, i32) {
    %c0_i32 = arith.constant 0 : i32
    %c0_i32_0 = arith.constant 0 : i32
    %c0_i32_1 = arith.constant 0 : i32
    return %c0_i32, %c0_i32_0 : i32, i32
  }
  func.func @transform_21(%arg0: i32) -> (i32, i32) {
    %c0_i32 = arith.constant 0 : i32
    %c0_i32_0 = arith.constant 0 : i32
    %c0_i32_1 = arith.constant 0 : i32
    return %c0_i32, %c0_i32_0 : i32, i32
  }
  func.func @transform_22(%arg0: i32) -> (i32, i32) {
    %c0_i32 = arith.constant 0 : i32
    %c0_i32_0 = arith.constant 0 : i32
    %c0_i32_1 = arith.constant 0 : i32
    return %c0_i32, %c0_i32_0 : i32, i32
  }
  func.func @transform_23(%arg0: i32) -> (i32, i32) {
    %c0_i32 = arith.constant 0 : i32
    %c0_i32_0 = arith.constant 0 : i32
    %c0_i32_1 = arith.constant 0 : i32
    return %c0_i32, %c0_i32_0 : i32, i32
  }
  func.func @transform_24(%arg0: i32) -> (i32, i32) {
    %c0_i32 = arith.constant 0 : i32
    %c0_i32_0 = arith.constant 0 : i32
    %c0_i32_1 = arith.constant 0 : i32
    return %c0_i32, %c0_i32_0 : i32, i32
  }
  func.func @transform_25(%arg0: i32) -> (i32, i32) {
    %c0_i32 = arith.constant 0 : i32
    %c0_i32_0 = arith.constant 0 : i32
    %c0_i32_1 = arith.constant 0 : i32
    return %c0_i32, %c0_i32_0 : i32, i32
  }
  func.func @transform_26(%arg0: i32) -> (i32, i32) {
    %c0_i32 = arith.constant 0 : i32
    %c0_i32_0 = arith.constant 0 : i32
    %c0_i32_1 = arith.constant 0 : i32
    return %c0_i32, %c0_i32_0 : i32, i32
  }
  func.func @transform_27(%arg0: i32) -> (i32, i32, i32) {
    %c0_i32 = arith.constant 0 : i32
    %c0_i32_0 = arith.constant 0 : i32
    %c0_i32_1 = arith.constant 0 : i32
    return %arg0, %c0_i32, %c0_i32_0 : i32, i32, i32
  }
  func.func @transform_28(%arg0: i32) -> (i32, i32, i32) {
    %c0_i32 = arith.constant 0 : i32
    %c0_i32_0 = arith.constant 0 : i32
    %c0_i32_1 = arith.constant 0 : i32
    return %arg0, %c0_i32, %c0_i32_0 : i32, i32, i32
  }
  func.func @transform_29(%arg0: i32) -> (i32, i32, i32) {
    %c0_i32 = arith.constant 0 : i32
    %c0_i32_0 = arith.constant 0 : i32
    %c0_i32_1 = arith.constant 0 : i32
    return %arg0, %c0_i32, %c0_i32_0 : i32, i32, i32
  }
}

</mosaic_0001>

<bundles_post_ra>
// kernel: lm_2ome_forward.1
= control target key start
LH: loop header
LB: loop body
LE: loop exit
PB: predicated region body
PF: predicated region fallthrough
CT: control target
= control target key end

     0   :  { %s20044_s6 = smov 1   ;;  %s20045_s10 = smov 2   ;;  %s23892_s0 = inlined_call_operand.smem [shape: u32[30], index: -1, kind: input, shape index: {}] }
   0x1   :  { %s20090_s5 = sld [smem:[%s23892_s0]]   ;;  %s20046_s14 = smov 3  }
   0x2   :  { %s20095_s9 = sld [smem:[%s23892_s0 + %s20044_s6]]   ;;  %s20047_s18 = smov 4  }
   0x3   :  { %s20100_s13 = sld [smem:[%s23892_s0 + %s20045_s10]]   ;;  %s20048_s22 = smov 5  }
   0x4   :  { %s20105_s17 = sld [smem:[%s23892_s0 + %s20046_s14]]   ;;  %s20049_s26 = smov 6  }
   0x5   :  { %s20110_s21 = sld [smem:[%s23892_s0 + %s20047_s18]]   ;;  %s20050_s30 = smov 7  }
   0x6   :  { %s20115_s25 = sld [smem:[%s23892_s0 + %s20048_s22]]   ;;  %s20051_s4 = smov 8  }
   0x7   :  { %23948 = sst [smem:[#allocation10_spill]] %s20090_s5  ;;  %s20052_s10 = smov 9  }
   0x8   :  { %23949 = sst [smem:[#allocation11_spill]] %s20095_s9  ;;  %s20053_s15 = smov 10  }
   0x9   :  { %23950 = sst [smem:[#allocation12_spill]] %s20100_s13  ;;  %s20054_s20 = smov 11  }
   0xa   :  { %23951 = sst [smem:[#allocation13_spill]] %s20105_s17  ;;  %s20056_s1 = smov 13  }
   0xb   :  { %s20120_s29 = sld [smem:[%s23892_s0 + %s20049_s26]]   ;;  %s20055_s26 = smov 12  }
   0xc   :  { %s20125_s3 = sld [smem:[%s23892_s0 + %s20050_s30]]   ;;  %s20057_s7 = smov 14  }
   0xd   :  { %s20130_s8 = sld [smem:[%s23892_s0 + %s20051_s4]]   ;;  %s20059_s22 = smov 16  }
   0xe   :  { %s20135_s14 = sld [smem:[%s23892_s0 + %s20052_s10]]   ;;  %s20060_s28 = smov 17  }
   0xf   :  { %s20140_s19 = sld [smem:[%s23892_s0 + %s20053_s15]]   ;;  %s20058_s15 = smov 15  }
  0x10   :  { %s20145_s24 = sld [smem:[%s23892_s0 + %s20054_s20]]   ;;  %s20070_s16 = smov 27  }
  0x11   :  { %s20150_s30 = sld [smem:[%s23892_s0 + %s20055_s26]]   ;;  %s20071_s23 = smov 28  }
  0x12   :  { %23952 = sst [smem:[#allocation14_spill]] %s20125_s3 }
  0x13   :  { %23953 = sst [smem:[#allocation15_spill]] %s20130_s8 }
  0x14   :  { %23954 = sst [smem:[#allocation16_spill]] %s20135_s14 }
  0x15   :  { %s20155_s6 = sld [smem:[%s23892_s0 + %s20056_s1]]   ;;  %s20072_s1 = smov 29  }
  0x16   :  { %s20160_s12 = sld [smem:[%s23892_s0 + %s20057_s7]]   ;;  %s20061_s7 = smov 18  }
  0x17   :  { %s20165_s20 = sld [smem:[%s23892_s0 + %s20058_s15]]   ;;  %s20062_s15 = smov 19  }
  0x18   :  { %s20170_s27 = sld [smem:[%s23892_s0 + %s20059_s22]]   ;;  %s20063_s22 = smov 20  }
  0x19   :  { %s20175_s4 = sld [smem:[%s23892_s0 + %s20060_s28]]   ;;  %s20064_s28 = smov 21  }
  0x1b   :  { %23955 = sst [smem:[#allocation17_spill]] %s20155_s6 }
  0x1c   :  { %23956 = sst [smem:[#allocation18_spill]] %s20160_s12 }
  0x1d   :  { %s20180_s12 = sld [smem:[%s23892_s0 + %s20061_s7]]   ;;  %s20065_s7 = smov 22  }
  0x1e   :  { %23957 = sst [smem:[#allocation19_spill]] %s20170_s27 }
  0x1f   :  { %23958 = sst [smem:[#allocation20_spill]] %s20175_s4 }
  0x20   :  { %s20185_s6 = sld [smem:[%s23892_s0 + %s20062_s15]]   ;;  %s20066_s15 = smov 23  }
  0x21   :  { %s20190_s27 = sld [smem:[%s23892_s0 + %s20063_s22]]   ;;  %s20067_s22 = smov 24  }
  0x22   :  { %s20195_s4 = sld [smem:[%s23892_s0 + %s20064_s28]]   ;;  %s20068_s28 = smov 25  }
  0x23   :  { %23959 = sst [smem:[#allocation21_spill]] %s20180_s12 }
  0x24   :  { %s20200_s12 = sld [smem:[%s23892_s0 + %s20065_s7]]   ;;  %s20069_s7 = smov 26  }
  0x26   :  { %23960 = sst [smem:[#allocation22_spill]] %s20185_s6 }
  0x27   :  { %23961 = sst [smem:[#allocation23_spill]] %s20190_s27 }
  0x28   :  { %23962 = sst [smem:[#allocation24_spill]] %s20195_s4 }
  0x29   :  { %s20205_s6 = sld [smem:[%s23892_s0 + %s20066_s15]]  }
  0x2a   :  { %23963 = sst [smem:[#allocation25_spill]] %s20200_s12 }
  0x2b   :  { %s20210_s27 = sld [smem:[%s23892_s0 + %s20067_s22]]  }
  0x2c   :  { %s20215_s4 = sld [smem:[%s23892_s0 + %s20068_s28]]  }
  0x2d   :  { %s15403_s12 = sld [smem:[%s23892_s0 + %s20069_s7]]  }
  0x2f   :  { %23964 = sst [smem:[#allocation26_spill]] %s20205_s6 }
  0x30   :  { %s20223_s6 = sld [smem:[%s23892_s0 + %s20070_s16]]  }
  0x31   :  { %23965 = sst [smem:[#allocation27_spill]] %s20210_s27 }
  0x32   :  { %23966 = sst [smem:[#allocation28_spill]] %s20215_s4 }
  0x33   :  { %s20228_s27 = sld [smem:[%s23892_s0 + %s20071_s23]]   ;;  %v65_v0 = vstv %s15403_s12 }
  0x34   :  { %s20233_s4 = sld [smem:[%s23892_s0 + %s20072_s1]]   ;;  %66 = vst [vmem:[#allocation6] sm:$0x1] %v65_v0 }
  0x3a   :  { %23967 = sst [smem:[#allocation29_spill]] %s20233_s4 }
  0x3b   :  { %67 = vsyncpa [#allocation8], 0 }
  0x3c   :  { %69 = vsyncpa [#allocation8 + $0x1], 0  ;;  %s20235_s7 = smov 0   ;;  %s20237_s10 = smov 0  }
  0x3d   :  { %s20239_s11 = smov 0   ;;  %s20241_s16 = smov 0  }
  0x3e LB: > { %s23968_s14 = sld [smem:[#allocation16_spill]]  ;;  %s23969_s9 = sld [smem:[#allocation11_spill]]  ;;  %s20042_s16 = sphi %s20241_s16, %s24080_s16   ;;  %s20038_s11 = sphi %s20239_s11, %s24079_s11   ;;  %s20034_s10 = sphi %s20237_s10, %s24078_s10   ;;  %s20030_s7 = sphi %s20235_s7, %s24077_s7  }
  0x3f   : > { %s23970_s5 = sld [smem:[#allocation10_spill]]  ;;  %s23971_s3 = sld [smem:[#allocation14_spill]] }
  0x40   : > { %s20256_s0 = sadd.s32 4294967295, %s20042_s16   ;;  %s15408_s12 = sadd.s32 4294967294, %s20042_s16  }
  0x41   : > { %s20260_s15 = sadd.s32 1, %s20042_s16   ;;  %s685_s18 = sadd.s32 1, %s20038_s11 }
  0x42   : > { %s682_s23 = ssub.s32 %s20042_s16, %s20260_s15  ;;  %p695_p0 = scmp.ne.s32.totalorder %s20038_s11, %s20034_s10 }
  0x43   : > { %p683_p1 = scmp.eq.s32.totalorder %s682_s23, 0  ;;  %p696_p2 = scmp.eq.s32.totalorder %s20256_s0, 1 }
  0x44   : > { %p701_p3 = scmp.ne.s32.totalorder %s20034_s10, %s20030_s7  ;;  %p702_p4 = scmp.eq.s32.totalorder %s15408_s12, 1 }
  0x45   : > { %s20271_s22 = scalar_select %p683_p1, %s20038_s11, %s685_s18  }
  0x46   : > { %p20273_p5 = por %p696_p2, %p695_p0  ;;  %p20277_p6 = por %p702_p4, %p701_p3 }
  0x47   : > { %p15411_p7 = scmp.ge.s32.totalorder %s20042_s16, 1  ;;  %p837_p8 = scmp.lt.s32.totalorder %s20042_s16, 3 }
  0x49   : > { %p838_p9 = pnand %p15411_p7, %p837_p8 }
  0x4b   : > { %841 = sbr.rel (%p838_p9) target bundleno = 9531 (0x253b), region = 128 }
  0x52   : > { %v15419_v1 = vld [vmem:[%s20110_s21 + $0x108] sm:$0xff]  ;;  %v15421_v2 = vld [vmem:[%s20110_s21 + $0x118] sm:$0xff]  ;;  %v15418_v3 = vld [vmem:[%s20110_s21 + $0x100] sm:$0xff]  ;;  %v23899_v8 = vmov 0.0   ;;  %p925_p10 = scmp.lt.s32.totalorder %s20256_s0, 1  ;;  %s23974_s13 = sld [smem:[#allocation12_spill]] }
  0x53   : > { %v17336_v4 = vpack.c.bf16 %v15421_v2, %v15419_v1  ;;  %v15420_v5 = vld [vmem:[%s20110_s21 + $0x110] sm:$0xff]  ;;  %v948_v6 = vld [vmem:[%s20110_s21 + $0x8] sm:$0xff]  ;;  %v950_v7 = vld [vmem:[%s20110_s21 + $0x18] sm:$0xff]  ;;  %1174 = vmatprep.mubr.f32.mxu1 %v23899_v8  ;;  %1055 = vmatprep.mubr.f32.mxu0 %v23899_v8  ;;  %s20075_s18 = smov 64   ;;  %vm1453_vm0 = vcmask 516096   ;;  %vm1217_vm1 = vcmask 523264  }
  0x54   : > { %v17338_v9 = vpack.c.bf16 %v15420_v5, %v15418_v3  ;;  %v17304_v10 = vpack.c.bf16 %v950_v7, %v948_v6  ;;  %v15423_v11 = vld [vmem:[%s20110_s21 + $0x128] sm:$0xff]  ;;  %v15425_v12 = vld [vmem:[%s20110_s21 + $0x138] sm:$0xff]  ;;  %v947_v13 = vld [vmem:[%s20110_s21] sm:$0xff]  ;;  %s20341_s28 = scalar_select %p925_p10, %s20256_s0, 1  ;;  %vm3177_vm2 = vcmask 64512   ;;  %vm4859_vm3 = vcmask 261120  }
  0x55   : > { %17337 = vmatprep.subr.bf16.mxu1 %v17336_v4  ;;  %v17340_v14 = vpack.c.bf16 %v15425_v12, %v15423_v11  ;;  %v949_v15 = vld [vmem:[%s20110_s21 + $0x10] sm:$0xff]  ;;  %v15422_v16 = vld [vmem:[%s20110_s21 + $0x120] sm:$0xff]  ;;  %v952_v20 = vld [vmem:[%s20110_s21 + $0x28] sm:$0xff]  ;;  %s23978_s17 = sld [smem:[#allocation13_spill]]  ;;  %s23979_s8 = sld [smem:[#allocation15_spill]]  ;;  %vm6463_vm5 = vcmask 1040384  }
  0x56   : > { %v15424_v17 = vld [vmem:[%s20110_s21 + $0x130] sm:$0xff]  ;;  %17339 = vmatpush1.bf16.msra.mxu1 %v17338_v9  ;;  %17305 = vmatprep.subr.bf16.mxu0 %v17304_v10  ;;  %v17306_v18 = vpack.c.bf16 %v949_v15, %v947_v13  ;;  %v954_v21 = vld [vmem:[%s20110_s21 + $0x38] sm:$0xff]  ;;  %v15427_v22 = vld [vmem:[%s20110_s21 + $0x148] sm:$0xff]  ;;  %s16595_s2 = sshll.u32 %s20341_s28, 4  ;;  %s16596_s23 = sshll.u32 %s20341_s28, 5  ;;  %vm20078_vm6 = vmmov 1  }
  0x57   : > { %v17342_v19 = vpack.c.bf16 %v15424_v17, %v15422_v16  ;;  %17341 = vmatprep.subr.bf16.mxu1 %v17340_v14  ;;  %v17308_v23 = vpack.c.bf16 %v954_v21, %v952_v20  ;;  %v15429_v24 = vld [vmem:[%s20110_s21 + $0x158] sm:$0xff]  ;;  %v951_v25 = vld [vmem:[%s20110_s21 + $0x20] sm:$0xff]  ;;  %v953_v26 = vld [vmem:[%s20110_s21 + $0x30] sm:$0xff]  ;;  %vm5812_vm8 = vcmask 334848   ;;  %vm5828_vm9 = vcmask 327680   ;;  %s24046_s4 = sld [smem:[#allocation29_spill]] }
  0x58   : > { %17307 = vmatpush1.bf16.msra.mxu0 %v17306_v18  ;;  %v17344_v27 = vpack.c.bf16 %v15429_v24, %v15427_v22  ;;  %v17310_v28 = vpack.c.bf16 %v953_v26, %v951_v25  ;;  %v15426_v29 = vld [vmem:[%s20110_s21 + $0x140] sm:$0xff]  ;;  %v15428_v30 = vld [vmem:[%s20110_s21 + $0x150] sm:$0xff]  ;;  %v956_v31 = vld [vmem:[%s20110_s21 + $0x48] sm:$0xff]  ;;  %s929_s12 = scalar_lea.vmem %s23974_s13, %s16595_s2  ;;  %vm15010_vm10 = vcmask 1041408   ;;  %vm15012_vm11 = vcmask 1042432  }
  0x59   : > { %17309 = vmatprep.subr.bf16.mxu0 %v17308_v23  ;;  %v958_v32 = vld [vmem:[%s20110_s21 + $0x58] sm:$0xff]  ;;  %v15431_v33 = vld [vmem:[%s20110_s21 + $0x168] sm:$0xff]  ;;  %v17346_v35 = vpack.c.bf16 %v15428_v30, %v15426_v29  ;;  %v955_v37 = vld [vmem:[%s20110_s21 + $0x40] sm:$0xff]  ;;  %vm15014_vm12 = vcmask 1043456   ;;  %vm15016_vm13 = vcmask 1044480   ;;  %vm15018_vm14 = vcmask 1045504  }
  0x5a   : > { %v15433_v34 = vld [vmem:[%s20110_s21 + $0x178] sm:$0xff]  ;;  %17343 = vmatpush1.bf16.msra.mxu1 %v17342_v19  ;;  %v17312_v36 = vpack.c.bf16 %v958_v32, %v956_v31  ;;  %v957_v38 = vld [vmem:[%s20110_s21 + $0x50] sm:$0xff]  ;;  %v15430_v39 = vld [vmem:[%s20110_s21 + $0x160] sm:$0xff]  ;;  %vm15020_vm15 = vcmask 1046528  }
  0x5b   : > { %17345 = vmatprep.subr.bf16.mxu1 %v17344_v27  ;;  %v17348_v40 = vpack.c.bf16 %v15433_v34, %v15431_v33  ;;  %v15432_v41 = vld [vmem:[%s20110_s21 + $0x170] sm:$0xff]  ;;  %v960_v42 = vld [vmem:[%s20110_s21 + $0x68] sm:$0xff]  ;;  %v962_v43 = vld [vmem:[%s20110_s21 + $0x78] sm:$0xff]  ;;  %v17314_v44 = vpack.c.bf16 %v957_v38, %v955_v37  ;;  %s20763_s2 = scalar_lea.vmem %s23978_s17, %s16596_s23  ;;  %s20077_s23 = smov 32  }
  0x5c   : > { %17311 = vmatpush1.bf16.msra.mxu0 %v17310_v28  ;;  %v15435_v45 = vld [vmem:[%s20110_s21 + $0x188] sm:$0xff]  ;;  %v15437_v46 = vld [vmem:[%s20110_s21 + $0x198] sm:$0xff]  ;;  %v17316_v47 = vpack.c.bf16 %v962_v43, %v960_v42  ;;  %v959_v48 = vld [vmem:[%s20110_s21 + $0x60] sm:$0xff]  ;;  %v17350_v50 = vpack.c.bf16 %v15432_v41, %v15430_v39 }
  0x5d   : > { %17313 = vmatprep.subr.bf16.mxu0 %v17312_v36  ;;  %v961_v49 = vld [vmem:[%s20110_s21 + $0x70] sm:$0xff]  ;;  %v964_v51 = vld [vmem:[%s20110_s21 + $0x88] sm:$0xff]  ;;  %v966_v52 = vld [vmem:[%s20110_s21 + $0x98] sm:$0xff]  ;;  %v17352_v53 = vpack.c.bf16 %v15437_v46, %v15435_v45 }
  0x5e   : > { %17347 = vmatpush1.bf16.msra.mxu1 %v17346_v35  ;;  %v15434_v54 = vld [vmem:[%s20110_s21 + $0x180] sm:$0xff]  ;;  %v15436_v55 = vld [vmem:[%s20110_s21 + $0x190] sm:$0xff]  ;;  %v17318_v56 = vpack.c.bf16 %v961_v49, %v959_v48  ;;  %v15439_v57 = vld [vmem:[%s20110_s21 + $0x1a8] sm:$0xff]  ;;  %v17320_v59 = vpack.c.bf16 %v966_v52, %v964_v51 }
  0x5f   : > { %17349 = vmatprep.subr.bf16.mxu1 %v17348_v40  ;;  %v15441_v58 = vld [vmem:[%s20110_s21 + $0x1b8] sm:$0xff]  ;;  %v963_v60 = vld [vmem:[%s20110_s21 + $0x80] sm:$0xff]  ;;  %v965_v61 = vld [vmem:[%s20110_s21 + $0x90] sm:$0xff]  ;;  %v17354_v62 = vpack.c.bf16 %v15436_v55, %v15434_v54 }
  0x60   : > { %17315 = vmatpush1.bf16.msra.mxu0 %v17314_v44  ;;  %v968_v63 = vld [vmem:[%s20110_s21 + $0xa8] sm:$0xff]  ;;  %v970_v0 = vld [vmem:[%s20110_s21 + $0xb8] sm:$0xff]  ;;  %v17356_v1 = vpack.c.bf16 %v15441_v58, %v15439_v57  ;;  %v15438_v2 = vld [vmem:[%s20110_s21 + $0x1a0] sm:$0xff]  ;;  %v17322_v4 = vpack.c.bf16 %v965_v61, %v963_v60 }
  0x61   : > { %17317 = vmatprep.subr.bf16.mxu0 %v17316_v47  ;;  %v15440_v3 = vld [vmem:[%s20110_s21 + $0x1b0] sm:$0xff]  ;;  %v15443_v5 = vld [vmem:[%s20110_s21 + $0x1c8] sm:$0xff]  ;;  %v15445_v6 = vld [vmem:[%s20110_s21 + $0x1d8] sm:$0xff]  ;;  %v17324_v7 = vpack.c.bf16 %v970_v0, %v968_v63 }
  0x62   : > { %17351 = vmatpush1.bf16.msra.mxu1 %v17350_v50  ;;  %v967_v9 = vld [vmem:[%s20110_s21 + $0xa0] sm:$0xff]  ;;  %v969_v10 = vld [vmem:[%s20110_s21 + $0xb0] sm:$0xff]  ;;  %v17358_v11 = vpack.c.bf16 %v15440_v3, %v15438_v2  ;;  %v972_v12 = vld [vmem:[%s20110_s21 + $0xc8] sm:$0xff]  ;;  %v17360_v14 = vpack.c.bf16 %v15445_v6, %v15443_v5 }
  0x63   : > { %17353 = vmatprep.subr.bf16.mxu1 %v17352_v53  ;;  %v974_v13 = vld [vmem:[%s20110_s21 + $0xd8] sm:$0xff]  ;;  %v15442_v15 = vld [vmem:[%s20110_s21 + $0x1c0] sm:$0xff]  ;;  %v15444_v16 = vld [vmem:[%s20110_s21 + $0x1d0] sm:$0xff]  ;;  %v17326_v17 = vpack.c.bf16 %v969_v10, %v967_v9 }
  0x64   : > { %17319 = vmatpush1.bf16.msra.mxu0 %v17318_v56  ;;  %v15447_v18 = vld [vmem:[%s20110_s21 + $0x1e8] sm:$0xff]  ;;  %v15449_v19 = vld [vmem:[%s20110_s21 + $0x1f8] sm:$0xff]  ;;  %v17328_v20 = vpack.c.bf16 %v974_v13, %v972_v12  ;;  %v971_v21 = vld [vmem:[%s20110_s21 + $0xc0] sm:$0xff]  ;;  %v17362_v23 = vpack.c.bf16 %v15444_v16, %v15442_v15 }
  0x65   : > { %17321 = vmatprep.subr.bf16.mxu0 %v17320_v59  ;;  %v973_v22 = vld [vmem:[%s20110_s21 + $0xd0] sm:$0xff]  ;;  %v976_v24 = vld [vmem:[%s20110_s21 + $0xe8] sm:$0xff]  ;;  %v978_v25 = vld [vmem:[%s20110_s21 + $0xf8] sm:$0xff]  ;;  %v17364_v26 = vpack.c.bf16 %v15449_v19, %v15447_v18 }
  0x66   : > { %17355 = vmatpush1.bf16.msra.mxu1 %v17354_v62  ;;  %v15446_v27 = vld [vmem:[%s20110_s21 + $0x1e0] sm:$0xff]  ;;  %v15448_v28 = vld [vmem:[%s20110_s21 + $0x1f0] sm:$0xff]  ;;  %v17330_v29 = vpack.c.bf16 %v973_v22, %v971_v21  ;;  %v1200_v30 = vld [vmem:[%s20120_s29 + $0x88] sm:$0xff]  ;;  %v17332_v32 = vpack.c.bf16 %v978_v25, %v976_v24  ;;  %v981_v22 = vlaneseq }
  0x67   : > { %17357 = vmatprep.subr.bf16.mxu1 %v17356_v1  ;;  %v1202_v31 = vld [vmem:[%s20120_s29 + $0x98] sm:$0xff]  ;;  %v975_v33 = vld [vmem:[%s20110_s21 + $0xe0] sm:$0xff]  ;;  %v977_v34 = vld [vmem:[%s20110_s21 + $0xf0] sm:$0xff]  ;;  %v17366_v35 = vpack.c.bf16 %v15448_v28, %v15446_v27 }
  0x68   : > { %17323 = vmatpush1.bf16.msra.mxu0 %v17322_v4  ;;  %v1184_v36 = vld [vmem:[%s20120_s29 + $0x8] sm:$0xff]  ;;  %v1186_v37 = vld [vmem:[%s20120_s29 + $0x18] sm:$0xff]  ;;  %v20361_v38 = vpack.c.bf16 %v1202_v31, %v1200_v30  ;;  %v1199_v39 = vld [vmem:[%s20120_s29 + $0x80] sm:$0xff]  ;;  %v17334_v43 = vpack.c.bf16 %v977_v34, %v975_v33 }
  0x69   : > { %17325 = vmatprep.subr.bf16.mxu0 %v17324_v7  ;;  %v1201_v40 = vld [vmem:[%s20120_s29 + $0x90] sm:$0xff]  ;;  %v1204_v41 = vld [vmem:[%s20120_s29 + $0xa8] sm:$0xff]  ;;  %v1206_v44 = vld [vmem:[%s20120_s29 + $0xb8] sm:$0xff]  ;;  %v20369_v47 = vpack.c.bf16 %v1186_v37, %v1184_v36 }
  0x6a   : > { %17359 = vmatpush1.bf16.msra.mxu1 %v17358_v11  ;;  %v15417_v42 = vld [vmem:[%s929_s12 + $0x8] sm:$0xff]  ;;  %v1183_v45 = vld [vmem:[%s20120_s29] sm:$0xff]  ;;  %v1185_v46 = vld [vmem:[%s20120_s29 + $0x10] sm:$0xff]  ;;  %v20374_v51 = vpack.c.bf16 %v1201_v40, %v1199_v39  ;;  %v20380_v56 = vpack.c.bf16 %v1206_v44, %v1204_v41  ;;  %v20074_v41 = vmov 1966171168  }
  0x6b   : > { %17361 = vmatprep.subr.bf16.mxu1 %v17360_v14  ;;  %v1203_v48 = vld [vmem:[%s20120_s29 + $0xa0] sm:$0xff]  ;;  %v1205_v49 = vld [vmem:[%s20120_s29 + $0xb0] sm:$0xff]  ;;  %v1188_v50 = vld [vmem:[%s20120_s29 + $0x28] sm:$0xff]  ;;  %v20384_v59 = vpack.c.bf16 %v1185_v46, %v1183_v45 }
  0x6c   : > { %17327 = vmatpush1.bf16.msra.mxu0 %v17326_v17  ;;  %v944_v52 = vld [vmem:[%s929_s12] sm:$0xff]  ;;  %v1190_v53 = vld [vmem:[%s20120_s29 + $0x38] sm:$0xff]  ;;  %v1208_v54 = vld [vmem:[%s20120_s29 + $0xc8] sm:$0xff]  ;;  %v20394_v1 = vpack.c.bf16 %v1205_v49, %v1203_v48  ;;  %s20076_s12 = smov 96  }
  0x6d   : > { %17329 = vmatprep.subr.bf16.mxu0 %v17328_v20  ;;  %v1210_v55 = vld [vmem:[%s20120_s29 + $0xd8] sm:$0xff]  ;;  %v1187_v57 = vld [vmem:[%s20120_s29 + $0x20] sm:$0xff]  ;;  %v1189_v58 = vld [vmem:[%s20120_s29 + $0x30] sm:$0xff]  ;;  %v20389_v62 = vpack.c.bf16 %v1190_v53, %v1188_v50 }
  0x6e   : > { %17363 = vmatpush1.bf16.msra.mxu1 %v17362_v23  ;;  %v1192_v60 = vld [vmem:[%s20120_s29 + $0x48] sm:$0xff]  ;;  %v1194_v61 = vld [vmem:[%s20120_s29 + $0x58] sm:$0xff]  ;;  %v1207_v63 = vld [vmem:[%s20120_s29 + $0xc0] sm:$0xff]  ;;  %v20400_v4 = vpack.c.bf16 %v1210_v55, %v1208_v54  ;;  %v20405_v7 = vpack.c.bf16 %v1189_v58, %v1187_v57  ;;  %v20461_v23 = vshrl.u32 %v981_v22, 7 }
  0x6f   : > { %17365 = vmatprep.subr.bf16.mxu1 %v17364_v26  ;;  %v1209_v0 = vld [vmem:[%s20120_s29 + $0xd0] sm:$0xff]  ;;  %v1212_v2 = vld [vmem:[%s20120_s29 + $0xe8] sm:$0xff]  ;;  %v1214_v3 = vld [vmem:[%s20120_s29 + $0xf8] sm:$0xff]  ;;  %v20411_v11 = vpack.c.bf16 %v1194_v61, %v1192_v60 }
  0x70   : > { %17331 = vmatpush1.bf16.msra.mxu0 %v17330_v29  ;;  %v1191_v5 = vld [vmem:[%s20120_s29 + $0x40] sm:$0xff]  ;;  %v1193_v6 = vld [vmem:[%s20120_s29 + $0x50] sm:$0xff]  ;;  %v1196_v9 = vld [vmem:[%s20120_s29 + $0x68] sm:$0xff]  ;;  %v20416_v14 = vpack.c.bf16 %v1209_v0, %v1207_v63  ;;  %v20419_v15 = vpack.c.bf16 %v1214_v3, %v1212_v2  ;;  %23975 = vst [vmem:[#allocation30_spill] sm:$0xff] %v20461_v23  ;;  %v20465_v25 = vsub.s32 0, %v20461_v23  ;;  %v20468_v26 = vsub.s32 1, %v20461_v23 }
  0x71   : > { %17333 = vmatprep.subr.bf16.mxu0 %v17332_v32  ;;  %v1198_v10 = vld [vmem:[%s20120_s29 + $0x78] sm:$0xff]  ;;  %v1211_v12 = vld [vmem:[%s20120_s29 + $0xe0] sm:$0xff]  ;;  %v1213_v13 = vld [vmem:[%s20120_s29 + $0xf0] sm:$0xff]  ;;  %v20424_v18 = vpack.c.bf16 %v1193_v6, %v1191_v5 }
  0x72   : > { %17367 = vmatpush1.bf16.msra.mxu1 %v17366_v35  ;;  %v1195_v16 = vld [vmem:[%s20120_s29 + $0x60] sm:$0xff]  ;;  %v1197_v17 = vld [vmem:[%s20120_s29 + $0x70] sm:$0xff]  ;;  %v20427_v19 = vpack.c.bf16 %v1198_v10, %v1196_v9  ;;  %v20430_v20 = vpack.c.bf16 %v1213_v13, %v1211_v12  ;;  %23976 = vst [vmem:[#allocation31_spill] sm:$0xff] %v20465_v25  ;;  %23977 = vst [vmem:[#allocation32_spill] sm:$0xff] %v20468_v26 }
  0x73   : > { %17385 = vmatprep.subr.bf16.mxu1 %v20361_v38  ;;  %v20434_v21 = vpack.c.bf16 %v1197_v17, %v1195_v16  ;;  %v15450_v24 = vld [vmem:[%s20115_s25 + $0x2] sm:$0x3]  ;;  %v979_v27 = vld [vmem:[%s20115_s25] sm:$0x3]  ;;  %vm20993_vm4 = vmpackc.low %vm4859_vm3, %vm4859_vm3 }
  0x74   : > { %17335 = vmatpush1.bf16.msra.mxu0 %v17334_v43  ;;  %v1103_v28 = vrot.slane %v15450_v24, %v20465_v25  ;;  %v1107_v29 = vrot.slane %v15450_v24, %v20468_v26  ;;  %v984_v30 = vrot.slane %v979_v27, %v20465_v25  ;;  %v988_v32 = vrot.slane %v979_v27, %v20468_v26  ;;  %vm21327_vm7 = vmpackc.low %vm6463_vm5, %vm20078_vm6 }
  0x75   : > { %1175 = vmatmul.mubr.f32.vlgmr.msra.gmra.mrb[0].mxu1 %v15417_v42  ;;  %17369 = vmatprep.subr.bf16.mxu0 %v20369_v47  ;;  %v1369_v42 = vunpack.c.l.s4 %v20074_v41 }
  0x76   : > { %17387 = vmatpush1.bf16.msra.mxu1 %v20374_v51  ;;  %1356 = vmatprep.mubr.f32.mxu1 %v23899_v8 }
  0x77   : > { %17389 = vmatprep.subr.bf16.mxu1 %v20380_v56  ;;  %1056 = vmatmul.mubr.f32.vlgmr.msra.gmra.mrb[0].mxu0 %v944_v52  ;;  %v1370_v43 = vunpack.c.0.s8 %v1369_v42 }
  0x78   : > { %17371 = vmatpush1.bf16.msra.mxu0 %v20384_v59  ;;  %1285 = vmatprep.mubr.f32.mxu0 %v23899_v8 }
  0x79   : > { %17373 = vmatprep.subr.bf16.mxu0 %v20389_v62  ;;  %v20476_v44 = vsub.s32 %v1370_v43, %v20461_v23 }
  0x7a   : > { %17391 = vmatpush1.bf16.msra.mxu1 %v20394_v1 }
  0x7b   : > { %17393 = vmatprep.subr.bf16.mxu1 %v20400_v4 }
  0x7c   : > { %17375 = vmatpush1.bf16.msra.mxu0 %v20405_v7 }
  0x7d   : > { %17377 = vmatprep.subr.bf16.mxu0 %v20411_v11 }
  0x7e   : > { %17395 = vmatpush1.bf16.msra.mxu1 %v20416_v14 }
  0x7f   : > { %17397 = vmatprep.subr.bf16.mxu1 %v20419_v15 }
  0x80   : > { %17379 = vmatpush1.bf16.msra.mxu0 %v20424_v18 }
  0x81   : > { %17381 = vmatprep.subr.bf16.mxu0 %v20427_v19 }
  0x82   : > { %17399 = vmatpush1.bf16.msra.mxu1 %v20430_v20 }
  0x83   : > { %17417 = vmatprep.subr.bf16.mxu1 %v20361_v38 }
  0x84   : > { %17383 = vmatpush1.bf16.msra.mxu0 %v20434_v21 }
  0x85   : > { %1357 = vmatmul.mubr.f32.vlgmr.msra.gmra.mrb[2].mxu1 %v23899_v8  ;;  %17401 = vmatprep.subr.bf16.mxu0 %v20369_v47 }
  0x86   : > { %17419 = vmatpush1.bf16.msra.mxu1 %v20374_v51  ;;  %1601 = vmatprep.mubr.f32.mxu1 %v23899_v8 }
  0x87   : > { %1286 = vmatmul.mubr.f32.vlgmr.msra.gmra.mrb[2].mxu0 %v23899_v8  ;;  %17421 = vmatprep.subr.bf16.mxu1 %v20380_v56 }
  0x88   : > { %17403 = vmatpush1.bf16.msra.mxu0 %v20384_v59  ;;  %1527 = vmatprep.mubr.f32.mxu0 %v23899_v8 }
  0x89   : > { %17405 = vmatprep.subr.bf16.mxu0 %v20389_v62 }
  0x8a   : > { %17423 = vmatpush1.bf16.msra.mxu1 %v20394_v1 }
  0x8b   : > { %17425 = vmatprep.subr.bf16.mxu1 %v20400_v4 }
  0x8c   : > { %17407 = vmatpush1.bf16.msra.mxu0 %v20405_v7 }
  0x8d   : > { %17409 = vmatprep.subr.bf16.mxu0 %v20411_v11 }
  0x8e   : > { %17427 = vmatpush1.bf16.msra.mxu1 %v20416_v14 }
  0x8f   : > { %17429 = vmatprep.subr.bf16.mxu1 %v20419_v15 }
  0x90   : > { %17411 = vmatpush1.bf16.msra.mxu0 %v20424_v18 }
  0x91   : > { %17413 = vmatprep.subr.bf16.mxu0 %v20427_v19 }
  0x92   : > { %17431 = vmatpush1.bf16.msra.mxu1 %v20430_v20 }
  0x93   : > { %17449 = vmatprep.subr.bf16.mxu1 %v20361_v38 }
  0x94   : > { %17415 = vmatpush1.bf16.msra.mxu0 %v20434_v21 }
  0x95   : > { %17433 = vmatprep.subr.bf16.mxu0 %v20369_v47 }
 0x148   : > { %v1176_v31 = vpop.f32.mrb[0].mxu1 }
 0x149   : > { %v1177_v33 = vadd.f32 %v1176_v31, %v1103_v28  ;;  %v1178_v34 = vpop.f32.mrb[1].mxu1 }
 0x14a   : > { %v1179_v35 = vadd.f32 %v1178_v34, %v1107_v29  ;;  %v1057_v36 = vpop.f32.mrb[0].mxu0 }
 0x14b   : > { %1181 = vst [vmem:[#allocation3] sm:$0xff] %v1177_v33  ;;  %v1058_v37 = vadd.f32 %v1057_v36, %v984_v30  ;;  %v1059_v39 = vpop.f32.mrb[1].mxu0 }
 0x14c   : > { %1182 = vst [vmem:[#allocation3 + $0x8] sm:$0xff] %v1179_v35  ;;  %v1060_v40 = vadd.f32 %v1059_v39, %v988_v32 }
 0x14d   : > { %1062 = vst [vmem:[#allocation2] sm:$0xff] %v1058_v37 }
 0x14e   : > { %1063 = vst [vmem:[#allocation2 + $0x8] sm:$0xff] %v1060_v40 }
 0x153   : > { %v1216_v54 = vld [vmem:[#allocation3] ss:$8 sm:$0x3] }
 0x155   : > { %v1215_v55 = vld [vmem:[#allocation2] ss:$8 sm:$0x3] }
 0x158   : > { %v1358_v45 = vpop.f32.mrb[2].mxu1 }
 0x159   : > { %v1360_v46 = vpop.f32.mrb[3].mxu1 }
 0x15a   : > { %v1382_v48 = vcombine.low %v1358_v45, %v1360_v46  ;;  %v1287_v49 = vpop.f32.mrb[2].mxu0 }
 0x15b   : > { %v1289_v50 = vpop.f32.mrb[3].mxu0 }
 0x15c   : > { %v1389_v52 = vrot.slane %v1382_v48, %v20476_v44  ;;  %v1367_v53 = vcombine.low %v1287_v49, %v1289_v50 }
 0x15e   : > { %v1374_v57 = vrot.slane %v1367_v53, %v20476_v44  ;;  %v1396_v58 = vrot.slane %v1389_v52, %v20476_v44 }
 0x160   : > { %v1381_v60 = vrot.slane %v1374_v57, %v20476_v44  ;;  %v1400_v61 = vadd.f32 %v1396_v58, %v1216_v54  ;;  %v1459_v57 = vld [vmem:[#allocation3 + $0x1] ss:$8 sm:$0x3] }
 0x162   : > { %1413 = vrot.lane.b32.xlu0 %v1400_v61, %s20075_s18  ;;  %v1399_v63 = vadd.f32 %v1381_v60, %v1215_v55  ;;  %v1402_v0 = vmul.f32 0.5, %v1400_v61 }
 0x164   : > { %19666 = vtanh.f32 %v1402_v0  ;;  %v1401_v2 = vmul.f32 0.5, %v1399_v63 }
 0x166   : > { %1411 = vrot.lane.b32.xlu0 %v1399_v63, %s20075_s18  ;;  %19668 = vtanh.f32 %v1401_v2  ;;  %v1457_v63 = vld [vmem:[#allocation2 + $0x1] ss:$8 sm:$0x3] }
 0x16e   : > { %v19667_v9 = vpop.eup %19666 }
 0x16f   : > { %v1406_v12 = vadd.f32 1.0, %v19667_v9 }
 0x170   : > { %v19669_v13 = vpop.eup %19668 }
 0x171   : > { %v1408_v16 = vmul.f32 0.5, %v1406_v12  ;;  %v1405_v17 = vadd.f32 1.0, %v19669_v13 }
 0x173   : > { %v1407_v27 = vmul.f32 0.5, %v1405_v17  ;;  %v1422_v30 = vmul.f32 0.0, %v1408_v16  ;;  %v1440_v39 = vrot.slane %v1408_v16, 1 }
 0x175   : > { %v1421_v33 = vmul.f32 0.0, %v1407_v27  ;;  %v1439_v42 = vrot.slane %v1407_v27, 1 }
 0x1d4   : > { %v1414_v3 = vpop.permute.xlu0 %1413 }
 0x1d5   : > { %v1416_v5 = vrot.slane %v1414_v3, 1 }
 0x1d7   : > { %19670 = vtanh.f32 %v1416_v5 }
 0x1d8   : > { %v1412_v6 = vpop.permute.xlu0 %1411 }
 0x1d9   : > { %v1415_v10 = vrot.slane %v1412_v6, 1 }
 0x1db   : > { %19672 = vtanh.f32 %v1415_v10 }
 0x1e1   : > { %v19671_v22 = vpop.eup %19670 }
 0x1e2   : > { %v1424_v24 = vmul.f32 %v19671_v22, %v1408_v16 }
 0x1e4   : > { %1429 = vrot.lane.b32.xlu1 %v1424_v24, %s20075_s18 }
 0x1e5   : > { %v19673_v28 = vpop.eup %19672 }
 0x1e6   : > { %v1423_v29 = vmul.f32 %v19673_v28, %v1407_v27 }
 0x1e8   : > { %1427 = vrot.lane.b32.xlu1 %v1423_v29, %s20075_s18 }
 0x256   : > { %v1430_v31 = vpop.permute.xlu1 %1429 }
 0x257   : > { %v20486_v32 = vadd.f32 %v1430_v31, %v1422_v30 }
 0x259   : > { %19674 = vtanh.f32 %v20486_v32 }
 0x25a   : > { %v1428_v34 = vpop.permute.xlu1 %1427 }
 0x25b   : > { %v20489_v35 = vadd.f32 %v1428_v34, %v1421_v33 }
 0x25d   : > { %19676 = vtanh.f32 %v20489_v35 }
 0x263   : > { %v19675_v36 = vpop.eup %19674 }
 0x264   : > { %1447 = vrot.lane.b32.xlu0 %v19675_v36, %s20075_s18 }
 0x267   : > { %v19677_v37 = vpop.eup %19676 }
 0x268   : > { %1445 = vrot.lane.b32.xlu1 %v19677_v37, %s20075_s18 }
 0x2d6   : > { %v1448_v40 = vpop.permute.xlu0 %1447 }
 0x2d7   : > { %v1452_v41 = vmul.f32 %v1448_v40, %v1440_v39 }
 0x2d9   : > { %1455 = vst.msk [vmem:[#allocation5 + $0x7] sm:$0x1] %vm1453_vm0, %v1452_v41  ;;  %15452 = vmatmul.mubr.msk.f32.vlgmr.msra.gmra.mrb[4].mxu1 %vm1217_vm1, %v1452_v41 }
 0x2da   : > { %v1446_v43 = vpop.permute.xlu1 %1445  ;;  %17451 = vmatpush1.bf16.msra.mxu1 %v20374_v51  ;;  %1845 = vmatprep.mubr.f32.mxu1 %v23899_v8 }
 0x2db   : > { %v1451_v45 = vmul.f32 %v1446_v43, %v1439_v42  ;;  %17453 = vmatprep.subr.bf16.mxu1 %v20380_v56 }
 0x2dd   : > { %1454 = vst.msk [vmem:[#allocation4] sm:$0x1] %vm1453_vm0, %v1451_v45  ;;  %15451 = vmatmul.mubr.msk.f32.vlgmr.msra.gmra.mrb[4].mxu0 %vm1217_vm1, %v1451_v45 }
 0x2de   : > { %17435 = vmatpush1.bf16.msra.mxu0 %v20384_v59  ;;  %17455 = vmatpush1.bf16.msra.mxu1 %v20394_v1 }
 0x2df   : > { %17437 = vmatprep.subr.bf16.mxu0 %v20389_v62  ;;  %17457 = vmatprep.subr.bf16.mxu1 %v20400_v4 }
 0x2e0   : > { %1771 = vmatprep.mubr.f32.mxu0 %v23899_v8 }
 0x2e2   : > { %17439 = vmatpush1.bf16.msra.mxu0 %v20405_v7  ;;  %17459 = vmatpush1.bf16.msra.mxu1 %v20416_v14 }
 0x2e3   : > { %17441 = vmatprep.subr.bf16.mxu0 %v20411_v11  ;;  %17461 = vmatprep.subr.bf16.mxu1 %v20419_v15 }
 0x2e6   : > { %17463 = vmatpush1.bf16.msra.mxu1 %v20430_v20  ;;  %17443 = vmatpush1.bf16.msra.mxu0 %v20424_v18 }
 0x2e7   : > { %17445 = vmatprep.subr.bf16.mxu0 %v20427_v19  ;;  %17481 = vmatprep.subr.bf16.mxu1 %v20361_v38 }
 0x2ea   : > { %17447 = vmatpush1.bf16.msra.mxu0 %v20434_v21 }
 0x2eb   : > { %17465 = vmatprep.subr.bf16.mxu0 %v20369_v47 }
 0x3ac   : > { %v1603_v46 = vpop.f32.mrb[4].mxu1 }
 0x3ad   : > { %v1605_v48 = vpop.f32.mrb[5].mxu1 }
 0x3ae   : > { %v1627_v49 = vcombine.low %v1603_v46, %v1605_v48 }
 0x3b0   : > { %v1634_v50 = vrot.slane %v1627_v49, %v20476_v44  ;;  %v1529_v52 = vpop.f32.mrb[4].mxu0 }
 0x3b1   : > { %v1531_v53 = vpop.f32.mrb[5].mxu0 }
 0x3b2   : > { %v1641_v54 = vrot.slane %v1634_v50, %v20476_v44  ;;  %v1612_v55 = vcombine.low %v1529_v52, %v1531_v53 }
 0x3b4   : > { %v1619_v58 = vrot.slane %v1612_v55, %v20476_v44  ;;  %v1645_v60 = vadd.f32 %v1641_v54, %v1459_v57 }
 0x3b6   : > { %v1626_v61 = vrot.slane %v1619_v58, %v20476_v44  ;;  %1658 = vrot.lane.b32.xlu0 %v1645_v60, %s20075_s18  ;;  %v1647_v2 = vmul.f32 0.5, %v1645_v60  ;;  %v1703_v58 = vld [vmem:[#allocation3 + $0x2] ss:$8 sm:$0x3] }
 0x3b8   : > { %v1644_v0 = vadd.f32 %v1626_v61, %v1457_v63  ;;  %19678 = vtanh.f32 %v1647_v2 }
 0x3ba   : > { %1656 = vrot.lane.b32.xlu1 %v1644_v0, %s20075_s18  ;;  %v1646_v3 = vmul.f32 0.5, %v1644_v0  ;;  %v1701_v0 = vld [vmem:[#allocation2 + $0x2] ss:$8 sm:$0x3] }
 0x3bc   : > { %19680 = vtanh.f32 %v1646_v3 }
 0x3c2   : > { %v19679_v10 = vpop.eup %19678 }
 0x3c3   : > { %v1651_v13 = vadd.f32 1.0, %v19679_v10 }
 0x3c5   : > { %v1653_v17 = vmul.f32 0.5, %v1651_v13 }
 0x3c6   : > { %v19681_v16 = vpop.eup %19680 }
 0x3c7   : > { %v1650_v22 = vadd.f32 1.0, %v19681_v16  ;;  %v1667_v31 = vmul.f32 %v1653_v17, %v20486_v32  ;;  %v1685_v42 = vrot.slane %v1653_v17, 1 }
 0x3c9   : > { %v1652_v28 = vmul.f32 0.5, %v1650_v22 }
 0x3cb   : > { %v1666_v36 = vmul.f32 %v1652_v28, %v20489_v35  ;;  %v1684_v45 = vrot.slane %v1652_v28, 1 }
 0x428   : > { %v1659_v5 = vpop.permute.xlu0 %1658 }
 0x429   : > { %v1661_v6 = vrot.slane %v1659_v5, 1 }
 0x42b   : > { %19682 = vtanh.f32 %v1661_v6 }
 0x42c   : > { %v1657_v9 = vpop.permute.xlu1 %1656 }
 0x42d   : > { %v1660_v12 = vrot.slane %v1657_v9, 1 }
 0x42f   : > { %19684 = vtanh.f32 %v1660_v12 }
 0x435   : > { %v19683_v24 = vpop.eup %19682 }
 0x436   : > { %v1669_v27 = vmul.f32 %v19683_v24, %v1653_v17 }
 0x438   : > { %1674 = vrot.lane.b32.xlu0 %v1669_v27, %s20075_s18 }
 0x439   : > { %v19685_v29 = vpop.eup %19684 }
 0x43a   : > { %v1668_v30 = vmul.f32 %v19685_v29, %v1652_v28 }
 0x43c   : > { %1672 = vrot.lane.b32.xlu1 %v1668_v30, %s20075_s18 }
 0x4aa   : > { %v1675_v33 = vpop.permute.xlu0 %1674 }
 0x4ab   : > { %v20525_v34 = vadd.f32 %v1675_v33, %v1667_v31 }
 0x4ad   : > { %19686 = vtanh.f32 %v20525_v34 }
 0x4ae   : > { %v1673_v37 = vpop.permute.xlu1 %1672 }
 0x4af   : > { %v20529_v39 = vadd.f32 %v1673_v37, %v1666_v36 }
 0x4b1   : > { %19688 = vtanh.f32 %v20529_v39 }
 0x4b7   : > { %v19687_v40 = vpop.eup %19686 }
 0x4b8   : > { %1692 = vrot.lane.b32.xlu0 %v19687_v40, %s20075_s18 }
 0x4bb   : > { %v19689_v41 = vpop.eup %19688 }
 0x4bc   : > { %1690 = vrot.lane.b32.xlu1 %v19689_v41, %s20075_s18 }
 0x52a   : > { %v1693_v32 = vpop.permute.xlu0 %1692 }
 0x52b   : > { %v1697_v43 = vmul.f32 %v1693_v32, %v1685_v42 }
 0x52d   : > { %1699 = vst.msk [vmem:[#allocation5 + $0x6] sm:$0x1] %vm1453_vm0, %v1697_v43  ;;  %15454 = vmatmul.mubr.msk.f32.vlgmr.msra.gmra.mrb[6].mxu1 %vm1217_vm1, %v1697_v43 }
 0x52e   : > { %v1691_v35 = vpop.permute.xlu1 %1690  ;;  %17483 = vmatpush1.bf16.msra.mxu1 %v20374_v51  ;;  %2089 = vmatprep.mubr.f32.mxu1 %v23899_v8 }
 0x52f   : > { %v1696_v46 = vmul.f32 %v1691_v35, %v1684_v45  ;;  %17485 = vmatprep.subr.bf16.mxu1 %v20380_v56 }
 0x531   : > { %1698 = vst.msk [vmem:[#allocation4 + $0x1] sm:$0x1] %vm1453_vm0, %v1696_v46  ;;  %15453 = vmatmul.mubr.msk.f32.vlgmr.msra.gmra.mrb[6].mxu0 %vm1217_vm1, %v1696_v46 }
 0x532   : > { %17467 = vmatpush1.bf16.msra.mxu0 %v20384_v59  ;;  %17487 = vmatpush1.bf16.msra.mxu1 %v20394_v1 }
 0x533   : > { %17469 = vmatprep.subr.bf16.mxu0 %v20389_v62  ;;  %17489 = vmatprep.subr.bf16.mxu1 %v20400_v4 }
 0x534   : > { %2015 = vmatprep.mubr.f32.mxu0 %v23899_v8 }
 0x536   : > { %17471 = vmatpush1.bf16.msra.mxu0 %v20405_v7  ;;  %17491 = vmatpush1.bf16.msra.mxu1 %v20416_v14 }
 0x537   : > { %17473 = vmatprep.subr.bf16.mxu0 %v20411_v11  ;;  %17493 = vmatprep.subr.bf16.mxu1 %v20419_v15 }
 0x53a   : > { %17495 = vmatpush1.bf16.msra.mxu1 %v20430_v20  ;;  %17475 = vmatpush1.bf16.msra.mxu0 %v20424_v18 }
 0x53b   : > { %17477 = vmatprep.subr.bf16.mxu0 %v20427_v19  ;;  %17513 = vmatprep.subr.bf16.mxu1 %v20361_v38 }
 0x53e   : > { %17479 = vmatpush1.bf16.msra.mxu0 %v20434_v21 }
 0x53f   : > { %17497 = vmatprep.subr.bf16.mxu0 %v20369_v47 }
 0x600   : > { %v1847_v48 = vpop.f32.mrb[6].mxu1 }
 0x601   : > { %v1849_v49 = vpop.f32.mrb[7].mxu1 }
 0x602   : > { %v1871_v50 = vcombine.low %v1847_v48, %v1849_v49 }
 0x604   : > { %v1878_v52 = vrot.slane %v1871_v50, %v20476_v44  ;;  %v1773_v53 = vpop.f32.mrb[6].mxu0 }
 0x605   : > { %v1775_v54 = vpop.f32.mrb[7].mxu0 }
 0x606   : > { %v1885_v55 = vrot.slane %v1878_v52, %v20476_v44  ;;  %v1856_v57 = vcombine.low %v1773_v53, %v1775_v54 }
 0x608   : > { %v1863_v60 = vrot.slane %v1856_v57, %v20476_v44  ;;  %v1889_v61 = vadd.f32 %v1885_v55, %v1703_v58 }
 0x60a   : > { %v1870_v63 = vrot.slane %v1863_v60, %v20476_v44  ;;  %1902 = vrot.lane.b32.xlu0 %v1889_v61, %s20075_s18  ;;  %v1891_v3 = vmul.f32 0.5, %v1889_v61  ;;  %v1947_v60 = vld [vmem:[#allocation3 + $0x3] ss:$8 sm:$0x3] }
 0x60c   : > { %v1888_v2 = vadd.f32 %v1870_v63, %v1701_v0  ;;  %19690 = vtanh.f32 %v1891_v3 }
 0x60e   : > { %1900 = vrot.lane.b32.xlu1 %v1888_v2, %s20075_s18  ;;  %v1890_v5 = vmul.f32 0.5, %v1888_v2  ;;  %v1945_v2 = vld [vmem:[#allocation2 + $0x3] ss:$8 sm:$0x3] }
 0x610   : > { %19692 = vtanh.f32 %v1890_v5 }
 0x616   : > { %v19691_v12 = vpop.eup %19690 }
 0x617   : > { %v1895_v16 = vadd.f32 1.0, %v19691_v12 }
 0x619   : > { %v1897_v22 = vmul.f32 0.5, %v1895_v16 }
 0x61a   : > { %v19693_v17 = vpop.eup %19692 }
 0x61b   : > { %v1894_v24 = vadd.f32 1.0, %v19693_v17  ;;  %v1911_v33 = vmul.f32 %v1897_v22, %v20525_v34  ;;  %v1929_v45 = vrot.slane %v1897_v22, 1 }
 0x61d   : > { %v1896_v29 = vmul.f32 0.5, %v1894_v24 }
 0x61f   : > { %v1910_v40 = vmul.f32 %v1896_v29, %v20529_v39  ;;  %v1928_v46 = vrot.slane %v1896_v29, 1 }
 0x67c   : > { %v1903_v6 = vpop.permute.xlu0 %1902 }
 0x67d   : > { %v1905_v9 = vrot.slane %v1903_v6, 1 }
 0x67f   : > { %19694 = vtanh.f32 %v1905_v9 }
 0x680   : > { %v1901_v10 = vpop.permute.xlu1 %1900 }
 0x681   : > { %v1904_v13 = vrot.slane %v1901_v10, 1 }
 0x683   : > { %19696 = vtanh.f32 %v1904_v13 }
 0x689   : > { %v19695_v27 = vpop.eup %19694 }
 0x68a   : > { %v1913_v28 = vmul.f32 %v19695_v27, %v1897_v22 }
 0x68c   : > { %1918 = vrot.lane.b32.xlu0 %v1913_v28, %s20075_s18 }
 0x68d   : > { %v19697_v30 = vpop.eup %19696 }
 0x68e   : > { %v1912_v31 = vmul.f32 %v19697_v30, %v1896_v29 }
 0x690   : > { %1916 = vrot.lane.b32.xlu1 %v1912_v31, %s20075_s18 }
 0x6fe   : > { %v1919_v36 = vpop.permute.xlu0 %1918 }
 0x6ff   : > { %v20565_v37 = vadd.f32 %v1919_v36, %v1911_v33 }
 0x701   : > { %19698 = vtanh.f32 %v20565_v37 }
 0x702   : > { %v1917_v41 = vpop.permute.xlu1 %1916 }
 0x703   : > { %v20569_v42 = vadd.f32 %v1917_v41, %v1910_v40 }
 0x705   : > { %19700 = vtanh.f32 %v20569_v42 }
 0x70b   : > { %v19699_v32 = vpop.eup %19698 }
 0x70c   : > { %1936 = vrot.lane.b32.xlu0 %v19699_v32, %s20075_s18 }
 0x70f   : > { %v19701_v43 = vpop.eup %19700 }
 0x710   : > { %1934 = vrot.lane.b32.xlu1 %v19701_v43, %s20075_s18 }
 0x77e   : > { %v1937_v34 = vpop.permute.xlu0 %1936 }
 0x77f   : > { %v1941_v35 = vmul.f32 %v1937_v34, %v1929_v45 }
 0x781   : > { %1943 = vst.msk [vmem:[#allocation5 + $0x5] sm:$0x1] %vm1453_vm0, %v1941_v35  ;;  %15456 = vmatmul.mubr.msk.f32.vlgmr.msra.gmra.mrb[8].mxu1 %vm1217_vm1, %v1941_v35 }
 0x782   : > { %v1935_v39 = vpop.permute.xlu1 %1934  ;;  %17515 = vmatpush1.bf16.msra.mxu1 %v20374_v51  ;;  %2333 = vmatprep.mubr.f32.mxu1 %v23899_v8 }
 0x783   : > { %v1940_v48 = vmul.f32 %v1935_v39, %v1928_v46  ;;  %17517 = vmatprep.subr.bf16.mxu1 %v20380_v56 }
 0x785   : > { %1942 = vst.msk [vmem:[#allocation4 + $0x2] sm:$0x1] %vm1453_vm0, %v1940_v48  ;;  %15455 = vmatmul.mubr.msk.f32.vlgmr.msra.gmra.mrb[8].mxu0 %vm1217_vm1, %v1940_v48 }
 0x786   : > { %17499 = vmatpush1.bf16.msra.mxu0 %v20384_v59  ;;  %17519 = vmatpush1.bf16.msra.mxu1 %v20394_v1 }
 0x787   : > { %17501 = vmatprep.subr.bf16.mxu0 %v20389_v62  ;;  %17521 = vmatprep.subr.bf16.mxu1 %v20400_v4 }
 0x788   : > { %2259 = vmatprep.mubr.f32.mxu0 %v23899_v8 }
 0x78a   : > { %17503 = vmatpush1.bf16.msra.mxu0 %v20405_v7  ;;  %17523 = vmatpush1.bf16.msra.mxu1 %v20416_v14 }
 0x78b   : > { %17505 = vmatprep.subr.bf16.mxu0 %v20411_v11  ;;  %17525 = vmatprep.subr.bf16.mxu1 %v20419_v15 }
 0x78e   : > { %17527 = vmatpush1.bf16.msra.mxu1 %v20430_v20  ;;  %17507 = vmatpush1.bf16.msra.mxu0 %v20424_v18 }
 0x78f   : > { %17509 = vmatprep.subr.bf16.mxu0 %v20427_v19  ;;  %17545 = vmatprep.subr.bf16.mxu1 %v20361_v38 }
 0x792   : > { %17511 = vmatpush1.bf16.msra.mxu0 %v20434_v21 }
 0x793   : > { %17529 = vmatprep.subr.bf16.mxu0 %v20369_v47 }
 0x854   : > { %v2091_v49 = vpop.f32.mrb[8].mxu1 }
 0x855   : > { %v2093_v50 = vpop.f32.mrb[9].mxu1 }
 0x856   : > { %v2115_v52 = vcombine.low %v2091_v49, %v2093_v50 }
 0x858   : > { %v2122_v53 = vrot.slane %v2115_v52, %v20476_v44  ;;  %v2017_v54 = vpop.f32.mrb[8].mxu0 }
 0x859   : > { %v2019_v55 = vpop.f32.mrb[9].mxu0 }
 0x85a   : > { %v2129_v57 = vrot.slane %v2122_v53, %v20476_v44  ;;  %v2100_v58 = vcombine.low %v2017_v54, %v2019_v55 }
 0x85c   : > { %v2107_v61 = vrot.slane %v2100_v58, %v20476_v44  ;;  %v2133_v63 = vadd.f32 %v2129_v57, %v1947_v60 }
 0x85e   : > { %v2114_v0 = vrot.slane %v2107_v61, %v20476_v44  ;;  %2146 = vrot.lane.b32.xlu0 %v2133_v63, %s20075_s18  ;;  %v2135_v5 = vmul.f32 0.5, %v2133_v63  ;;  %v2191_v61 = vld [vmem:[#allocation3 + $0x4] ss:$8 sm:$0x3] }
 0x860   : > { %v2132_v3 = vadd.f32 %v2114_v0, %v1945_v2  ;;  %19702 = vtanh.f32 %v2135_v5 }
 0x862   : > { %2144 = vrot.lane.b32.xlu1 %v2132_v3, %s20075_s18  ;;  %v2134_v6 = vmul.f32 0.5, %v2132_v3  ;;  %v2189_v3 = vld [vmem:[#allocation2 + $0x4] ss:$8 sm:$0x3] }
 0x864   : > { %19704 = vtanh.f32 %v2134_v6 }
 0x86a   : > { %v19703_v13 = vpop.eup %19702 }
 0x86b   : > { %v2139_v17 = vadd.f32 1.0, %v19703_v13 }
 0x86d   : > { %v2141_v24 = vmul.f32 0.5, %v2139_v17 }
 0x86e   : > { %v19705_v22 = vpop.eup %19704 }
 0x86f   : > { %v2138_v27 = vadd.f32 1.0, %v19705_v22  ;;  %v2155_v36 = vmul.f32 %v2141_v24, %v20565_v37  ;;  %v2173_v46 = vrot.slane %v2141_v24, 1 }
 0x871   : > { %v2140_v30 = vmul.f32 0.5, %v2138_v27 }
 0x873   : > { %v2154_v32 = vmul.f32 %v2140_v30, %v20569_v42  ;;  %v2172_v48 = vrot.slane %v2140_v30, 1 }
 0x8d0   : > { %v2147_v9 = vpop.permute.xlu0 %2146 }
 0x8d1   : > { %v2149_v10 = vrot.slane %v2147_v9, 1 }
 0x8d3   : > { %19706 = vtanh.f32 %v2149_v10 }
 0x8d4   : > { %v2145_v12 = vpop.permute.xlu1 %2144 }
 0x8d5   : > { %v2148_v16 = vrot.slane %v2145_v12, 1 }
 0x8d7   : > { %19708 = vtanh.f32 %v2148_v16 }
 0x8dd   : > { %v19707_v28 = vpop.eup %19706 }
 0x8de   : > { %v2157_v29 = vmul.f32 %v19707_v28, %v2141_v24 }
 0x8e0   : > { %2162 = vrot.lane.b32.xlu0 %v2157_v29, %s20075_s18 }
 0x8e1   : > { %v19709_v31 = vpop.eup %19708 }
 0x8e2   : > { %v2156_v33 = vmul.f32 %v19709_v31, %v2140_v30 }
 0x8e4   : > { %2160 = vrot.lane.b32.xlu1 %v2156_v33, %s20075_s18 }
 0x952   : > { %v2163_v40 = vpop.permute.xlu0 %2162 }
 0x953   : > { %v20605_v41 = vadd.f32 %v2163_v40, %v2155_v36 }
 0x955   : > { %19710 = vtanh.f32 %v20605_v41 }
 0x956   : > { %v2161_v43 = vpop.permute.xlu1 %2160 }
 0x957   : > { %v20609_v45 = vadd.f32 %v2161_v43, %v2154_v32 }
 0x959   : > { %19712 = vtanh.f32 %v20609_v45 }
 0x95f   : > { %v19711_v34 = vpop.eup %19710 }
 0x960   : > { %2180 = vrot.lane.b32.xlu0 %v19711_v34, %s20075_s18 }
 0x963   : > { %v19713_v35 = vpop.eup %19712 }
 0x964   : > { %2178 = vrot.lane.b32.xlu1 %v19713_v35, %s20075_s18 }
 0x9d2   : > { %v2181_v37 = vpop.permute.xlu0 %2180 }
 0x9d3   : > { %v2185_v39 = vmul.f32 %v2181_v37, %v2173_v46 }
 0x9d5   : > { %2187 = vst.msk [vmem:[#allocation5 + $0x4] sm:$0x1] %vm1453_vm0, %v2185_v39  ;;  %15458 = vmatmul.mubr.msk.f32.vlgmr.msra.gmra.mrb[10].mxu1 %vm1217_vm1, %v2185_v39 }
 0x9d6   : > { %v2179_v42 = vpop.permute.xlu1 %2178  ;;  %17547 = vmatpush1.bf16.msra.mxu1 %v20374_v51  ;;  %2577 = vmatprep.mubr.f32.mxu1 %v23899_v8 }
 0x9d7   : > { %v2184_v49 = vmul.f32 %v2179_v42, %v2172_v48  ;;  %17549 = vmatprep.subr.bf16.mxu1 %v20380_v56 }
 0x9d9   : > { %2186 = vst.msk [vmem:[#allocation4 + $0x3] sm:$0x1] %vm1453_vm0, %v2184_v49  ;;  %15457 = vmatmul.mubr.msk.f32.vlgmr.msra.gmra.mrb[10].mxu0 %vm1217_vm1, %v2184_v49 }
 0x9da   : > { %17531 = vmatpush1.bf16.msra.mxu0 %v20384_v59  ;;  %17551 = vmatpush1.bf16.msra.mxu1 %v20394_v1 }
 0x9db   : > { %17533 = vmatprep.subr.bf16.mxu0 %v20389_v62  ;;  %17553 = vmatprep.subr.bf16.mxu1 %v20400_v4 }
 0x9dc   : > { %2503 = vmatprep.mubr.f32.mxu0 %v23899_v8 }
 0x9de   : > { %17535 = vmatpush1.bf16.msra.mxu0 %v20405_v7  ;;  %17555 = vmatpush1.bf16.msra.mxu1 %v20416_v14 }
 0x9df   : > { %17537 = vmatprep.subr.bf16.mxu0 %v20411_v11  ;;  %17557 = vmatprep.subr.bf16.mxu1 %v20419_v15 }
 0x9e2   : > { %17559 = vmatpush1.bf16.msra.mxu1 %v20430_v20  ;;  %17539 = vmatpush1.bf16.msra.mxu0 %v20424_v18 }
 0x9e3   : > { %17541 = vmatprep.subr.bf16.mxu0 %v20427_v19  ;;  %17577 = vmatprep.subr.bf16.mxu1 %v20361_v38 }
 0x9e6   : > { %17543 = vmatpush1.bf16.msra.mxu0 %v20434_v21 }
 0x9e7   : > { %17561 = vmatprep.subr.bf16.mxu0 %v20369_v47 }
 0xaa8   : > { %v2335_v50 = vpop.f32.mrb[10].mxu1 }
 0xaa9   : > { %v2337_v52 = vpop.f32.mrb[11].mxu1 }
 0xaaa   : > { %v2359_v53 = vcombine.low %v2335_v50, %v2337_v52 }
 0xaac   : > { %v2366_v54 = vrot.slane %v2359_v53, %v20476_v44  ;;  %v2261_v55 = vpop.f32.mrb[10].mxu0 }
 0xaad   : > { %v2263_v57 = vpop.f32.mrb[11].mxu0 }
 0xaae   : > { %v2373_v58 = vrot.slane %v2366_v54, %v20476_v44  ;;  %v2344_v60 = vcombine.low %v2261_v55, %v2263_v57 }
 0xab0   : > { %v2351_v63 = vrot.slane %v2344_v60, %v20476_v44  ;;  %v2377_v0 = vadd.f32 %v2373_v58, %v2191_v61 }
 0xab2   : > { %v2358_v2 = vrot.slane %v2351_v63, %v20476_v44  ;;  %2390 = vrot.lane.b32.xlu0 %v2377_v0, %s20075_s18  ;;  %v2379_v6 = vmul.f32 0.5, %v2377_v0  ;;  %v2435_v63 = vld [vmem:[#allocation3 + $0x5] ss:$8 sm:$0x3] }
 0xab4   : > { %v2376_v5 = vadd.f32 %v2358_v2, %v2189_v3  ;;  %19714 = vtanh.f32 %v2379_v6  ;;  %v2433_v3 = vld [vmem:[#allocation2 + $0x5] ss:$8 sm:$0x3] }
 0xab6   : > { %2388 = vrot.lane.b32.xlu1 %v2376_v5, %s20075_s18  ;;  %v2378_v9 = vmul.f32 0.5, %v2376_v5 }
 0xab8   : > { %19716 = vtanh.f32 %v2378_v9 }
 0xabe   : > { %v19715_v16 = vpop.eup %19714 }
 0xabf   : > { %v2383_v22 = vadd.f32 1.0, %v19715_v16 }
 0xac1   : > { %v2385_v27 = vmul.f32 0.5, %v2383_v22 }
 0xac2   : > { %v19717_v24 = vpop.eup %19716 }
 0xac3   : > { %v2382_v28 = vadd.f32 1.0, %v19717_v24  ;;  %v2399_v40 = vmul.f32 %v2385_v27, %v20605_v41  ;;  %v2417_v48 = vrot.slane %v2385_v27, 1 }
 0xac5   : > { %v2384_v31 = vmul.f32 0.5, %v2382_v28 }
 0xac7   : > { %v2398_v34 = vmul.f32 %v2384_v31, %v20609_v45  ;;  %v2416_v49 = vrot.slane %v2384_v31, 1 }
 0xb24   : > { %v2391_v10 = vpop.permute.xlu0 %2390 }
 0xb25   : > { %v2393_v12 = vrot.slane %v2391_v10, 1 }
 0xb27   : > { %19718 = vtanh.f32 %v2393_v12 }
 0xb28   : > { %v2389_v13 = vpop.permute.xlu1 %2388 }
 0xb29   : > { %v2392_v17 = vrot.slane %v2389_v13, 1 }
 0xb2b   : > { %19720 = vtanh.f32 %v2392_v17 }
 0xb31   : > { %v19719_v29 = vpop.eup %19718 }
 0xb32   : > { %v2401_v30 = vmul.f32 %v19719_v29, %v2385_v27 }
 0xb34   : > { %2406 = vrot.lane.b32.xlu0 %v2401_v30, %s20075_s18 }
 0xb35   : > { %v19721_v33 = vpop.eup %19720 }
 0xb36   : > { %v2400_v36 = vmul.f32 %v19721_v33, %v2384_v31 }
 0xb38   : > { %2404 = vrot.lane.b32.xlu1 %v2400_v36, %s20075_s18 }
 0xba6   : > { %v2407_v32 = vpop.permute.xlu0 %2406 }
 0xba7   : > { %v20645_v43 = vadd.f32 %v2407_v32, %v2399_v40 }
 0xba9   : > { %19722 = vtanh.f32 %v20645_v43 }
 0xbaa   : > { %v2405_v35 = vpop.permute.xlu1 %2404 }
 0xbab   : > { %v20649_v46 = vadd.f32 %v2405_v35, %v2398_v34 }
 0xbad   : > { %19724 = vtanh.f32 %v20649_v46 }
 0xbb3   : > { %v19723_v37 = vpop.eup %19722 }
 0xbb4   : > { %2424 = vrot.lane.b32.xlu0 %v19723_v37, %s20075_s18 }
 0xbb7   : > { %v19725_v39 = vpop.eup %19724 }
 0xbb8   : > { %2422 = vrot.lane.b32.xlu1 %v19725_v39, %s20075_s18 }
 0xc26   : > { %v2425_v41 = vpop.permute.xlu0 %2424 }
 0xc27   : > { %v2429_v42 = vmul.f32 %v2425_v41, %v2417_v48 }
 0xc29   : > { %2431 = vst.msk [vmem:[#allocation5 + $0x3] sm:$0x1] %vm1453_vm0, %v2429_v42  ;;  %15460 = vmatmul.mubr.msk.f32.vlgmr.msra.gmra.mrb[12].mxu1 %vm1217_vm1, %v2429_v42 }
 0xc2a   : > { %v2423_v45 = vpop.permute.xlu1 %2422  ;;  %17579 = vmatpush1.bf16.msra.mxu1 %v20374_v51  ;;  %2821 = vmatprep.mubr.f32.mxu1 %v23899_v8 }
 0xc2b   : > { %v2428_v50 = vmul.f32 %v2423_v45, %v2416_v49  ;;  %17581 = vmatprep.subr.bf16.mxu1 %v20380_v56 }
 0xc2d   : > { %2430 = vst.msk [vmem:[#allocation4 + $0x4] sm:$0x1] %vm1453_vm0, %v2428_v50  ;;  %15459 = vmatmul.mubr.msk.f32.vlgmr.msra.gmra.mrb[12].mxu0 %vm1217_vm1, %v2428_v50 }
 0xc2e   : > { %17563 = vmatpush1.bf16.msra.mxu0 %v20384_v59  ;;  %17583 = vmatpush1.bf16.msra.mxu1 %v20394_v1 }
 0xc2f   : > { %17565 = vmatprep.subr.bf16.mxu0 %v20389_v62  ;;  %17585 = vmatprep.subr.bf16.mxu1 %v20400_v4 }
 0xc30   : > { %2747 = vmatprep.mubr.f32.mxu0 %v23899_v8 }
 0xc32   : > { %17567 = vmatpush1.bf16.msra.mxu0 %v20405_v7  ;;  %17587 = vmatpush1.bf16.msra.mxu1 %v20416_v14 }
 0xc33   : > { %17569 = vmatprep.subr.bf16.mxu0 %v20411_v11  ;;  %17589 = vmatprep.subr.bf16.mxu1 %v20419_v15 }
 0xc36   : > { %17591 = vmatpush1.bf16.msra.mxu1 %v20430_v20  ;;  %17571 = vmatpush1.bf16.msra.mxu0 %v20424_v18 }
 0xc37   : > { %17573 = vmatprep.subr.bf16.mxu0 %v20427_v19  ;;  %17609 = vmatprep.subr.bf16.mxu1 %v20361_v38 }
 0xc3a   : > { %17575 = vmatpush1.bf16.msra.mxu0 %v20434_v21 }
 0xc3b   : > { %17593 = vmatprep.subr.bf16.mxu0 %v20369_v47 }
 0xcfc   : > { %v2579_v52 = vpop.f32.mrb[12].mxu1 }
 0xcfd   : > { %v2581_v53 = vpop.f32.mrb[13].mxu1 }
 0xcfe   : > { %v2603_v54 = vcombine.low %v2579_v52, %v2581_v53 }
 0xd00   : > { %v2610_v55 = vrot.slane %v2603_v54, %v20476_v44  ;;  %v2505_v57 = vpop.f32.mrb[12].mxu0 }
 0xd01   : > { %v2507_v58 = vpop.f32.mrb[13].mxu0 }
 0xd02   : > { %v2617_v60 = vrot.slane %v2610_v55, %v20476_v44  ;;  %v2588_v61 = vcombine.low %v2505_v57, %v2507_v58 }
 0xd04   : > { %v2595_v0 = vrot.slane %v2588_v61, %v20476_v44  ;;  %v2621_v2 = vadd.f32 %v2617_v60, %v2435_v63 }
 0xd06   : > { %v2602_v38 = vrot.slane %v2595_v0, %v20476_v44  ;;  %2634 = vrot.lane.b32.xlu0 %v2621_v2, %s20075_s18  ;;  %v2623_v5 = vmul.f32 0.5, %v2621_v2 }
 0xd08   : > { %v2620_v47 = vadd.f32 %v2602_v38, %v2433_v3  ;;  %19726 = vtanh.f32 %v2623_v5 }
 0xd0a   : > { %2632 = vrot.lane.b32.xlu1 %v2620_v47, %s20075_s18  ;;  %v2622_v6 = vmul.f32 0.5, %v2620_v47 }
 0xd0c   : > { %19728 = vtanh.f32 %v2622_v6 }
 0xd12   : > { %v19727_v13 = vpop.eup %19726 }
 0xd13   : > { %v2627_v17 = vadd.f32 1.0, %v19727_v13 }
 0xd15   : > { %v2629_v24 = vmul.f32 0.5, %v2627_v17 }
 0xd16   : > { %v19729_v22 = vpop.eup %19728 }
 0xd17   : > { %v2626_v27 = vadd.f32 1.0, %v19729_v22  ;;  %v2643_v36 = vmul.f32 %v2629_v24, %v20645_v43  ;;  %v2661_v41 = vrot.slane %v2629_v24, 1 }
 0xd19   : > { %v2628_v30 = vmul.f32 0.5, %v2626_v27 }
 0xd1b   : > { %v2642_v34 = vmul.f32 %v2628_v30, %v20649_v46  ;;  %v2660_v49 = vrot.slane %v2628_v30, 1 }
 0xd78   : > { %v2635_v9 = vpop.permute.xlu0 %2634 }
 0xd79   : > { %v2637_v10 = vrot.slane %v2635_v9, 1 }
 0xd7b   : > { %19730 = vtanh.f32 %v2637_v10 }
 0xd7c   : > { %v2633_v12 = vpop.permute.xlu1 %2632 }
 0xd7d   : > { %v2636_v16 = vrot.slane %v2633_v12, 1 }
 0xd7f   : > { %19732 = vtanh.f32 %v2636_v16 }
 0xd85   : > { %v19731_v28 = vpop.eup %19730 }
 0xd86   : > { %v2645_v29 = vmul.f32 %v19731_v28, %v2629_v24 }
 0xd88   : > { %2650 = vrot.lane.b32.xlu0 %v2645_v29, %s20075_s18 }
 0xd89   : > { %v19733_v31 = vpop.eup %19732 }
 0xd8a   : > { %v2644_v33 = vmul.f32 %v19733_v31, %v2628_v30 }
 0xd8c   : > { %2648 = vrot.lane.b32.xlu1 %v2644_v33, %s20075_s18 }
 0xdfa   : > { %v2651_v40 = vpop.permute.xlu0 %2650 }
 0xdfb   : > { %v20685_v32 = vadd.f32 %v2651_v40, %v2643_v36 }
 0xdfd   : > { %19734 = vtanh.f32 %v20685_v32 }
 0xdfe   : > { %v2649_v35 = vpop.permute.xlu1 %2648 }
 0xdff   : > { %v20689_v37 = vadd.f32 %v2649_v35, %v2642_v34 }
 0xe01   : > { %19736 = vtanh.f32 %v20689_v37 }
 0xe07   : > { %v19735_v39 = vpop.eup %19734 }
 0xe08   : > { %2668 = vrot.lane.b32.xlu0 %v19735_v39, %s20075_s18 }
 0xe0b   : > { %v19737_v48 = vpop.eup %19736 }
 0xe0c   : > { %2666 = vrot.lane.b32.xlu1 %v19737_v48, %s20075_s18  ;;  %v2923_v48 = vld [vmem:[#allocation3 + $0x7] ss:$8 sm:$0x3] }
 0xe7a   : > { %v2669_v43 = vpop.permute.xlu0 %2668 }
 0xe7b   : > { %v2673_v42 = vmul.f32 %v2669_v43, %v2661_v41 }
 0xe7d   : > { %2675 = vst.msk [vmem:[#allocation5 + $0x2] sm:$0x1] %vm1453_vm0, %v2673_v42  ;;  %15462 = vmatmul.mubr.msk.f32.vlgmr.msra.gmra.mrb[14].mxu1 %vm1217_vm1, %v2673_v42 }
 0xe7e   : > { %v2667_v46 = vpop.permute.xlu1 %2666  ;;  %17611 = vmatpush1.bf16.msra.mxu1 %v20374_v51  ;;  %3065 = vmatprep.mubr.f32.mxu1 %v23899_v8 }
 0xe7f   : > { %v2672_v45 = vmul.f32 %v2667_v46, %v2660_v49  ;;  %17613 = vmatprep.subr.bf16.mxu1 %v20380_v56  ;;  %v2921_v49 = vld [vmem:[#allocation2 + $0x7] ss:$8 sm:$0x3] }
 0xe81   : > { %2674 = vst.msk [vmem:[#allocation4 + $0x5] sm:$0x1] %vm1453_vm0, %v2672_v45  ;;  %15461 = vmatmul.mubr.msk.f32.vlgmr.msra.gmra.mrb[14].mxu0 %vm1217_vm1, %v2672_v45 }
 0xe82   : > { %17595 = vmatpush1.bf16.msra.mxu0 %v20384_v59  ;;  %17615 = vmatpush1.bf16.msra.mxu1 %v20394_v1 }
 0xe83   : > { %17597 = vmatprep.subr.bf16.mxu0 %v20389_v62  ;;  %17617 = vmatprep.subr.bf16.mxu1 %v20400_v4 }
 0xe84   : > { %2991 = vmatprep.mubr.f32.mxu0 %v23899_v8 }
 0xe86   : > { %17599 = vmatpush1.bf16.msra.mxu0 %v20405_v7  ;;  %17619 = vmatpush1.bf16.msra.mxu1 %v20416_v14  ;;  %v2679_v14 = vld [vmem:[#allocation3 + $0x6] ss:$8 sm:$0x3] }
 0xe87   : > { %17601 = vmatprep.subr.bf16.mxu0 %v20411_v11  ;;  %17621 = vmatprep.subr.bf16.mxu1 %v20419_v15 }
 0xe8a   : > { %17623 = vmatpush1.bf16.msra.mxu1 %v20430_v20  ;;  %17603 = vmatpush1.bf16.msra.mxu0 %v20424_v18 }
 0xe8b   : > { %17605 = vmatprep.subr.bf16.mxu0 %v20427_v19  ;;  %v2677_v19 = vld [vmem:[#allocation2 + $0x6] ss:$8 sm:$0x3] }
 0xe8e   : > { %17607 = vmatpush1.bf16.msra.mxu0 %v20434_v21 }
 0xf50   : > { %v2823_v51 = vpop.f32.mrb[14].mxu1 }
 0xf51   : > { %v2825_v56 = vpop.f32.mrb[15].mxu1 }
 0xf52   : > { %v2847_v59 = vcombine.low %v2823_v51, %v2825_v56 }
 0xf54   : > { %v2854_v62 = vrot.slane %v2847_v59, %v20476_v44  ;;  %v2749_v1 = vpop.f32.mrb[14].mxu0 }
 0xf55   : > { %v2751_v4 = vpop.f32.mrb[15].mxu0 }
 0xf56   : > { %v2861_v7 = vrot.slane %v2854_v62, %v20476_v44  ;;  %v2832_v11 = vcombine.low %v2749_v1, %v2751_v4 }
 0xf58   : > { %v2839_v15 = vrot.slane %v2832_v11, %v20476_v44  ;;  %v2865_v20 = vadd.f32 %v2861_v7, %v2679_v14 }
 0xf5a   : > { %v2846_v18 = vrot.slane %v2839_v15, %v20476_v44  ;;  %2878 = vrot.lane.b32.xlu0 %v2865_v20, %s20075_s18  ;;  %v2867_v50 = vmul.f32 0.5, %v2865_v20 }
 0xf5c   : > { %v2864_v21 = vadd.f32 %v2846_v18, %v2677_v19  ;;  %19738 = vtanh.f32 %v2867_v50 }
 0xf5e   : > { %2876 = vrot.lane.b32.xlu1 %v2864_v21, %s20075_s18  ;;  %v2866_v52 = vmul.f32 0.5, %v2864_v21 }
 0xf60   : > { %19740 = vtanh.f32 %v2866_v52 }
 0xf66   : > { %v19739_v57 = vpop.eup %19738 }
 0xf67   : > { %v2871_v60 = vadd.f32 1.0, %v19739_v57 }
 0xf69   : > { %v2873_v63 = vmul.f32 0.5, %v2871_v60  ;;  %v18323_v60 = vld [vmem:[%s23971_s3] sm:$0xff]  }
 0xf6a   : > { %v19741_v61 = vpop.eup %19740 }
 0xf6b   : > { %v2870_v0 = vadd.f32 1.0, %v19741_v61  ;;  %v2887_v6 = vmul.f32 %v2873_v63, %v20685_v32  ;;  %v2905_v24 = vrot.slane %v2873_v63, 1 }
 0xf6d   : > { %v2872_v3 = vmul.f32 0.5, %v2870_v0 }
 0xf6f   : > { %v2886_v12 = vmul.f32 %v2872_v3, %v20689_v37  ;;  %v2904_v29 = vrot.slane %v2872_v3, 1 }
 0xfcc   : > { %v2879_v53 = vpop.permute.xlu0 %2878 }
 0xfcd   : > { %v2881_v54 = vrot.slane %v2879_v53, 1 }
 0xfcf   : > { %19742 = vtanh.f32 %v2881_v54 }
 0xfd0   : > { %v2877_v55 = vpop.permute.xlu1 %2876 }
 0xfd1   : > { %v2880_v58 = vrot.slane %v2877_v55, 1 }
 0xfd3   : > { %19744 = vtanh.f32 %v2880_v58  ;;  %v18322_v58 = vld [vmem:[%s23971_s3 + $0x40] sm:$0xff]  }
 0xfd4   : > { %16604 = vmatprep.subr.bf16.mxu1 %v18322_v58 }
 0xfd9   : > { %v19743_v2 = vpop.eup %19742 }
 0xfda   : > { %v2889_v38 = vmul.f32 %v19743_v2, %v2873_v63 }
 0xfdc   : > { %2894 = vrot.lane.b32.xlu0 %v2889_v38, %s20075_s18  ;;  %v3171_v38 = vld [vmem:[%s23970_s5] sm:$0xff] }
 0xfdd   : > { %v19745_v47 = vpop.eup %19744 }
 0xfde   : > { %v2888_v5 = vmul.f32 %v19745_v47, %v2872_v3  ;;  %v18324_v3 = vld [vmem:[%s23971_s3 + $0x48] sm:$0xff]  }
 0xfe0   : > { %2892 = vrot.lane.b32.xlu1 %v2888_v5, %s20075_s18  ;;  %v18325_v5 = vld [vmem:[%s23971_s3 + $0x8] sm:$0xff]  }
0x104e   : > { %v2895_v9 = vpop.permute.xlu0 %2894 }
0x104f   : > { %v2899_v10 = vadd.f32 %v2895_v9, %v2887_v6  ;;  %v18328_v6 = vld [vmem:[%s23971_s3 + $0x50] sm:$0xff]  }
0x1051   : > { %19746 = vtanh.f32 %v2899_v10 }
0x1052   : > { %v2893_v13 = vpop.permute.xlu1 %2892 }
0x1053   : > { %v2898_v16 = vadd.f32 %v2893_v13, %v2886_v12 }
0x1055   : > { %19748 = vtanh.f32 %v2898_v16 }
0x105b   : > { %v19747_v17 = vpop.eup %19746 }
0x105c   : > { %2912 = vrot.lane.b32.xlu0 %v19747_v17, %s20075_s18  ;;  %v18333_v17 = vld [vmem:[%s23971_s3 + $0x18] sm:$0xff]  }
0x105f   : > { %v19749_v22 = vpop.eup %19748 }
0x1060   : > { %2910 = vrot.lane.b32.xlu1 %v19749_v22, %s20075_s18 }
0x10ce   : > { %v2913_v27 = vpop.permute.xlu0 %2912 }
0x10cf   : > { %v2917_v28 = vmul.f32 %v2913_v27, %v2905_v24  ;;  %v18336_v24 = vld [vmem:[%s23971_s3 + $0x60] sm:$0xff]  }
0x10d0   : > { %v18337_v27 = vld [vmem:[%s23971_s3 + $0x20] sm:$0xff]  }
0x10d1   : > { %2919 = vst.msk [vmem:[#allocation5 + $0x1] sm:$0x1] %vm1453_vm0, %v2917_v28  ;;  %15464 = vmatmul.mubr.msk.f32.vlgmr.msra.gmra.mrb[16].mxu1 %vm1217_vm1, %v2917_v28  ;;  %v18340_v28 = vld [vmem:[%s23971_s3 + $0x68] sm:$0xff]  }
0x10d2   : > { %v2911_v30 = vpop.permute.xlu1 %2910  ;;  %16605 = vmatpush3.bf16.msra.mxu1 %v18323_v60 }
0x10d3   : > { %v2916_v31 = vmul.f32 %v2911_v30, %v2904_v29  ;;  %16606 = vmatprep.subr.bf16.mxu1 %v18324_v3  ;;  %v18341_v29 = vld [vmem:[%s23971_s3 + $0x28] sm:$0xff]   ;;  %v18344_v30 = vld [vmem:[%s23971_s3 + $0x70] sm:$0xff]  }
0x10d4   : > { %v18360_v3 = vld [vmem:[%s23968_s14 + $0x30] ss:$24 sps:$4 sm:$0xff]  }
0x10d5   : > { %2918 = vst.msk [vmem:[#allocation4 + $0x6] sm:$0x1] %vm1453_vm0, %v2916_v31  ;;  %15463 = vmatmul.mubr.msk.f32.vlgmr.msra.gmra.mrb[16].mxu0 %vm1217_vm1, %v2916_v31  ;;  %v18345_v31 = vld [vmem:[%s23971_s3 + $0x30] sm:$0xff]  }
0x10d6   : > { %16904 = vmatprep.mubr.msk.f32.mxu0 %vm3177_vm2, %v3171_v38  ;;  %16607 = vmatpush3.bf16.msra.mxu1 %v18325_v5  ;;  %v18362_v38 = vld [vmem:[%s23968_s14 + $0x34] ss:$24 sps:$4 sm:$0xff]   ;;  %v18366_v5 = vld [vmem:[%s23968_s14 + $0x60] ss:$24 sps:$4 sm:$0xff]  }
0x10d7   : > { %16608 = vmatprep.subr.bf16.mxu1 %v18328_v6  ;;  %v18374_v6 = vld [vmem:[%s23968_s14 + $0x94] ss:$24 sps:$4 sm:$0xff]  }
0x11a4   : > { %v3067_v33 = vpop.f32.mrb[16].mxu1 }
0x11a5   : > { %v3069_v36 = vpop.f32.mrb[17].mxu1 }
0x11a6   : > { %v3091_v40 = vcombine.low %v3067_v33, %v3069_v36  ;;  %v18348_v33 = vld [vmem:[%s23971_s3 + $0x78] sm:$0xff]  }
0x11a7   : > { %v18349_v36 = vld [vmem:[%s23971_s3 + $0x38] sm:$0xff]  }
0x11a8   : > { %v3098_v32 = vrot.slane %v3091_v40, %v20476_v44  ;;  %v2993_v34 = vpop.f32.mrb[16].mxu0  ;;  %v3292_v40 = vld [vmem:[%s20763_s2 + $0x8] sm:$0xff] }
0x11a9   : > { %v2995_v35 = vpop.f32.mrb[17].mxu0 }
0x11aa   : > { %v3105_v37 = vrot.slane %v3098_v32, %v20476_v44  ;;  %v3076_v39 = vcombine.low %v2993_v34, %v2995_v35  ;;  %v3291_v32 = vld [vmem:[%s20763_s2] sm:$0xff]  ;;  %v3296_v34 = vpack.c.bf16 %v3292_v40, %v3292_v40  ;;  %v18422_v40 = vld [vmem:[%s23968_s14 + $0x214] ss:$24 sps:$4 sm:$0xff]  }
0x11ab   : > { %v3295_v35 = vpack.c.bf16 %v3291_v32, %v3291_v32  ;;  %v18420_v32 = vld [vmem:[%s23968_s14 + $0x210] ss:$24 sps:$4 sm:$0xff]  }
0x11ac   : > { %v3083_v41 = vrot.slane %v3076_v39, %v20476_v44  ;;  %v3109_v43 = vadd.f32 %v3105_v37, %v2923_v48  ;;  %3594 = vmatprep.mubr.bf16.mxu1 %v3296_v34  ;;  %v18326_v48 = vld [vmem:[%s23971_s3 + $0xc0] sm:$0xff]  }
0x11ad   : > { %v18428_v34 = vld [vmem:[%s23968_s14 + $0x244] ss:$24 sps:$4 sm:$0xff]  }
0x11ae   : > { %v3090_v42 = vrot.slane %v3083_v41, %v20476_v44  ;;  %3122 = vrot.lane.b32.xlu0 %v3109_v43, %s20075_s18  ;;  %v3111_v45 = vmul.f32 0.5, %v3109_v43  ;;  %v3172_v43 = vld [vmem:[%s23970_s5 + $0x8] sm:$0xff] }
0x11b0   : > { %v3108_v46 = vadd.f32 %v3090_v42, %v2921_v49  ;;  %19750 = vtanh.f32 %v3111_v45  ;;  %v18327_v42 = vld [vmem:[%s23971_s3 + $0x80] sm:$0xff]   ;;  %v18330_v49 = vld [vmem:[%s23971_s3 + $0xc8] sm:$0xff]  }
0x11b1   : > { %v18331_v45 = vld [vmem:[%s23971_s3 + $0x88] sm:$0xff]  }
0x11b2   : > { %3120 = vrot.lane.b32.xlu1 %v3108_v46, %s20075_s18  ;;  %v3110_v51 = vmul.f32 0.5, %v3108_v46  ;;  %v3173_v46 = vld [vmem:[%s23970_s5 + $0x10] sm:$0xff] }
0x11b4   : > { %19752 = vtanh.f32 %v3110_v51  ;;  %v3174_v51 = vld [vmem:[%s23970_s5 + $0x18] sm:$0xff] }
0x11ba   : > { %v19751_v1 = vpop.eup %19750 }
0x11bb   : > { %v3115_v7 = vadd.f32 1.0, %v19751_v1  ;;  %v18335_v1 = vld [vmem:[%s23971_s3 + $0x90] sm:$0xff]  }
0x11bd   : > { %v3117_v44 = vmul.f32 0.5, %v3115_v7 }
0x11be   : > { %v19753_v11 = vpop.eup %19752 }
0x11bf   : > { %v3114_v14 = vadd.f32 1.0, %v19753_v11  ;;  %v3131_v50 = vmul.f32 %v3117_v44, %v2899_v10  ;;  %v3149_v0 = vrot.slane %v3117_v44, 1  ;;  %v18329_v10 = vld [vmem:[%s23971_s3 + $0x10] sm:$0xff]   ;;  %v18338_v11 = vld [vmem:[%s23971_s3 + $0xd8] sm:$0xff]  }
0x11c0   : > { %16609 = vmatpush3.bf16.msra.mxu1 %v18329_v10  ;;  %v18380_v10 = vld [vmem:[%s23968_s14 + $0xc4] ss:$24 sps:$4 sm:$0xff]  }
0x11c1   : > { %v3116_v18 = vmul.f32 0.5, %v3114_v14  ;;  %v18342_v14 = vld [vmem:[%s23971_s3 + $0xe0] sm:$0xff]  }
0x11c3   : > { %v3130_v54 = vmul.f32 %v3116_v18, %v2898_v16  ;;  %v3148_v9 = vrot.slane %v3116_v18, 1  ;;  %v18332_v16 = vld [vmem:[%s23971_s3 + $0x58] sm:$0xff]  }
0x11c4   : > { %16610 = vmatprep.subr.bf16.mxu1 %v18332_v16  ;;  %v18384_v16 = vld [vmem:[%s23968_s14 + $0xf0] ss:$24 sps:$4 sm:$0xff]  }
0x11c5   : > { %16611 = vmatpush3.bf16.msra.mxu1 %v18333_v17  ;;  %v18392_v17 = vld [vmem:[%s23968_s14 + $0x124] ss:$24 sps:$4 sm:$0xff]  }
0x11c6   : > { %16612 = vmatprep.subr.bf16.mxu1 %v18336_v24  ;;  %v18398_v24 = vld [vmem:[%s23968_s14 + $0x154] ss:$24 sps:$4 sm:$0xff]  }
0x11c9   : > { %16613 = vmatpush3.bf16.msra.mxu1 %v18337_v27  ;;  %v18396_v27 = vld [vmem:[%s23968_s14 + $0x150] ss:$24 sps:$4 sm:$0xff]  }
0x11ca   : > { %16614 = vmatprep.subr.bf16.mxu1 %v18340_v28  ;;  %v18404_v28 = vld [vmem:[%s23968_s14 + $0x184] ss:$24 sps:$4 sm:$0xff]  }
0x11cd   : > { %16615 = vmatpush3.bf16.msra.mxu1 %v18341_v29  ;;  %v18402_v29 = vld [vmem:[%s23968_s14 + $0x180] ss:$24 sps:$4 sm:$0xff]  }
0x11ce   : > { %16616 = vmatprep.subr.bf16.mxu1 %v18344_v30  ;;  %v18410_v30 = vld [vmem:[%s23968_s14 + $0x1b4] ss:$24 sps:$4 sm:$0xff]  }
0x11d1   : > { %16617 = vmatpush3.bf16.msra.mxu1 %v18345_v31  ;;  %v18408_v31 = vld [vmem:[%s23968_s14 + $0x1b0] ss:$24 sps:$4 sm:$0xff]  }
0x11d2   : > { %16618 = vmatprep.subr.bf16.mxu1 %v18348_v33  ;;  %v18416_v33 = vld [vmem:[%s23968_s14 + $0x1e4] ss:$24 sps:$4 sm:$0xff]  }
0x11d5   : > { %16619 = vmatpush3.bf16.msra.mxu1 %v18349_v36  ;;  %v18414_v36 = vld [vmem:[%s23968_s14 + $0x1e0] ss:$24 sps:$4 sm:$0xff]  }
0x11d8   : > { %3595 = vmatmul.mubr.bf16.vlgmr.msra.gmra.mrb[20].mxu1 %v3295_v35  ;;  %v18426_v35 = vld [vmem:[%s23968_s14 + $0x240] ss:$24 sps:$4 sm:$0xff]  }
0x1220   : > { %v3123_v56 = vpop.permute.xlu0 %3122 }
0x1221   : > { %v3125_v59 = vrot.slane %v3123_v56, 1  ;;  %v18334_v56 = vld [vmem:[%s23971_s3 + $0xd0] sm:$0xff]  }
0x1223   : > { %19754 = vtanh.f32 %v3125_v59  ;;  %v3175_v59 = vld [vmem:[%s23970_s5 + $0x20] sm:$0xff] }
0x1224   : > { %v3121_v62 = vpop.permute.xlu1 %3120 }
0x1225   : > { %v3124_v4 = vrot.slane %v3121_v62, 1  ;;  %v3294_v62 = vld [vmem:[%s20763_s2 + $0x18] sm:$0xff] }
0x1226   : > { %v3298_v7 = vpack.c.bf16 %v3294_v62, %v3294_v62 }
0x1227   : > { %19756 = vtanh.f32 %v3124_v4  ;;  %v3176_v4 = vld [vmem:[%s23970_s5 + $0x28] sm:$0x1] }
0x122d   : > { %v19755_v15 = vpop.eup %19754 }
0x122e   : > { %v3133_v20 = vmul.f32 %v19755_v15, %v3117_v44  ;;  %v18339_v44 = vld [vmem:[%s23971_s3 + $0x98] sm:$0xff]   ;;  %v18343_v15 = vld [vmem:[%s23971_s3 + $0xa0] sm:$0xff]  }
0x1230   : > { %3138 = vrot.lane.b32.xlu0 %v3133_v20, %s20075_s18  ;;  %v18346_v20 = vld [vmem:[%s23971_s3 + $0xe8] sm:$0xff]  }
0x1231   : > { %v19757_v19 = vpop.eup %19756 }
0x1232   : > { %v3132_v21 = vmul.f32 %v19757_v19, %v3116_v18  ;;  %v18347_v18 = vld [vmem:[%s23971_s3 + $0xa8] sm:$0xff]   ;;  %v18350_v19 = vld [vmem:[%s23971_s3 + $0xf0] sm:$0xff]  }
0x1234   : > { %3136 = vrot.lane.b32.xlu1 %v3132_v21, %s20075_s18  ;;  %v18351_v21 = vld [vmem:[%s23971_s3 + $0xb0] sm:$0xff]  }
0x12a2   : > { %v3139_v52 = vpop.permute.xlu0 %3138 }
0x12a3   : > { %v3143_v53 = vadd.f32 %v3139_v52, %v3131_v50  ;;  %v18352_v50 = vld [vmem:[%s23971_s3 + $0xf8] sm:$0xff]  }
0x12a4   : > { %v18353_v52 = vld [vmem:[%s23971_s3 + $0xb8] sm:$0xff]   ;;  %s24076_s3 = sld [smem:[#allocation27_spill]] }
0x12a5   : > { %19758 = vtanh.f32 %v3143_v53  ;;  %v3293_v53 = vld [vmem:[%s20763_s2 + $0x10] sm:$0xff] }
0x12a6   : > { %v3137_v55 = vpop.permute.xlu1 %3136 }
0x12a7   : > { %v3142_v57 = vadd.f32 %v3137_v55, %v3130_v54  ;;  %v3297_v54 = vpack.c.bf16 %v3293_v53, %v3293_v53  ;;  %v18365_v53 = vld [vmem:[%s23968_s14 + $0x3c] ss:$24 sps:$4 sm:$0xff]  }
0x12a9   : > { %19760 = vtanh.f32 %v3142_v57 }
0x12ab   : > { %v16620_v55 = vpop.f32.mrb[20].mxu1 }
0x12ac   : > { %v16621_v57 = vpop.f32.mrb[21].mxu1 }
0x12ad   : > { %v20796_v58 = vadd.f32 %v16621_v57, %v16620_v55  ;;  %v16623_v60 = vpop.f32.mrb[22].mxu1  ;;  %v18363_v55 = vld [vmem:[%s23968_s14 + $0x38] ss:$24 sps:$4 sm:$0xff]   ;;  %v3647_v57 = vld [vmem:[%s23969_s9 + $0x20] sm:$0xff] }
0x12ae   : > { %v3648_v60 = vld [vmem:[%s23969_s9 + $0x28] sm:$0x1] }
0x12af   : > { %v19759_v61 = vpop.eup %19758 }
0x12b0   : > { %3156 = vrot.lane.b32.xlu0 %v19759_v61, %s20075_s18  ;;  %v16624_v61 = vpop.f32.mrb[23].mxu1 }
0x12b1   : > { %v18369_v61 = vld [vmem:[%s23968_s14 + $0x68] ss:$24 sps:$4 sm:$0xff]  }
0x12b3   : > { %v19761_v63 = vpop.eup %19760 }
0x12b4   : > { %3154 = vrot.lane.b32.xlu1 %v19761_v63, %s20075_s18  ;;  %v3643_v63 = vld [vmem:[%s23969_s9] sm:$0xff] }
0x12b5   : > { %16915 = vmatprep.mubr.msk.f32.mxu1 %vm3177_vm2, %v3643_v63  ;;  %v18377_v63 = vld [vmem:[%s23968_s14 + $0x9c] ss:$24 sps:$4 sm:$0xff]  }
0x1322   : > { %v3157_v2 = vpop.permute.xlu0 %3156 }
0x1323   : > { %v3161_v47 = vmul.f32 %v3157_v2, %v3149_v0  ;;  %v18354_v0 = vld [vmem:[%s23968_s14] ss:$24 sps:$4 sm:$0xff]   ;;  %v18356_v2 = vld [vmem:[%s23968_s14 + $0x4] ss:$24 sps:$4 sm:$0xff]  }
0x1325   : > { %3163 = vst.msk [vmem:[#allocation5] sm:$0x1] %vm1453_vm0, %v3161_v47  ;;  %v18368_v47 = vld [vmem:[%s23968_s14 + $0x64] ss:$24 sps:$4 sm:$0xff]  }
0x1326   : > { %v3155_v12 = vpop.permute.xlu1 %3154 }
0x1327   : > { %v3160_v13 = vmul.f32 %v3155_v12, %v3148_v9  ;;  %v18372_v9 = vld [vmem:[%s23968_s14 + $0x90] ss:$24 sps:$4 sm:$0xff]   ;;  %v18378_v12 = vld [vmem:[%s23968_s14 + $0xc0] ss:$24 sps:$4 sm:$0xff]  }
0x1329   : > { %3162 = vst.msk [vmem:[#allocation4 + $0x7] sm:$0x1] %vm1453_vm0, %v3160_v13  ;;  %v18386_v13 = vld [vmem:[%s23968_s14 + $0xf4] ss:$24 sps:$4 sm:$0xff]   ;;  %vm20080_vm0 = vmmov 0  }
0x132c   : > { %v3165_v22 = vld [vmem:[#allocation5] sm:$0xff] }
0x132d   : > { %3167 = vrot.lane.b32.xlu0 %v3165_v22, %s20075_s18  ;;  %v18390_v22 = vld [vmem:[%s23968_s14 + $0x120] ss:$24 sps:$4 sm:$0xff]  }
0x1330   : > { %v3164_v39 = vld [vmem:[#allocation4] sm:$0xff] }
0x139f   : > { %v3168_v37 = vpop.permute.xlu0 %3167 }
0x13a0   : > { %v3170_v41 = vsel %vm1217_vm1, %v3164_v39, %v3168_v37  ;;  %v18434_v37 = vld [vmem:[%s23968_s14 + $0x274] ss:$24 sps:$4 sm:$0xff]   ;;  %v18432_v39 = vld [vmem:[%s23968_s14 + $0x270] ss:$24 sps:$4 sm:$0xff]   ;;  %vm15158_vm1 = vcmask 162816  }
0x13a1   : > { %16902 = vmatprep.subr.mxu0 %v3170_v41 }
0x13a2   : > { %16903 = vmatpush3.msra.mxu0 %v3170_v41  ;;  %v18438_v41 = vld [vmem:[%s23968_s14 + $0x2a0] ss:$24 sps:$4 sm:$0xff]  }
0x13a3   : > { %16905 = vmatmul.mubr.msk.f32.vlgmr.msra.gmra.mrb[18].mxu0 %vm3177_vm2, %v3172_v43  ;;  %16626 = vmatprep.subr.bf16.mxu0 %v18326_v48  ;;  %v18440_v48 = vld [vmem:[%s23968_s14 + $0x2a4] ss:$24 sps:$4 sm:$0xff]  }
0x13a4   : > { %16627 = vmatpush3.bf16.msra.mxu0 %v18327_v42  ;;  %16907 = vmatprep.mubr.msk.f32.mxu0 %vm3177_vm2, %v3173_v46 }
0x13a5   : > { %16628 = vmatprep.subr.bf16.mxu0 %v18330_v49 }
0x13a7   : > { %16908 = vmatmul.mubr.msk.f32.gmra.mrb[20].mxu0 %vm3177_vm2, %v3174_v51 }
0x13a8   : > { %16629 = vmatpush3.bf16.msra.mxu0 %v18331_v45  ;;  %16910 = vmatprep.mubr.msk.f32.mxu0 %vm3177_vm2, %v3175_v59 }
0x13a9   : > { %16630 = vmatprep.subr.bf16.mxu0 %v18334_v56 }
0x13ab   : > { %16911 = vmatmul.mubr.msk.f32.gmra.mrb[22].mxu0 %vm3177_vm2, %v3176_v4 }
0x13ac   : > { %16631 = vmatpush3.bf16.msra.mxu0 %v18335_v1  ;;  %3634 = vmatprep.mubr.bf16.mxu0 %v3298_v7  ;;  %v15471_v1 = vld [vmem:[%s23979_s8] ss:$0 sm:$0xff] }
0x13ad   : > { %16632 = vmatprep.subr.bf16.mxu0 %v18338_v11  ;;  %v3597_v4 = vadd.f32 %v20796_v58, %v15471_v1  ;;  %v18371_v58 = vld [vmem:[%s23968_s14 + $0x6c] ss:$24 sps:$4 sm:$0xff]  }
0x13b0   : > { %16633 = vmatpush3.bf16.msra.mxu0 %v18339_v44 }
0x13b1   : > { %16634 = vmatprep.subr.bf16.mxu0 %v18342_v14 }
0x13b4   : > { %16635 = vmatpush3.bf16.msra.mxu0 %v18343_v15 }
0x13b5   : > { %16636 = vmatprep.subr.bf16.mxu0 %v18346_v20 }
0x13b8   : > { %16637 = vmatpush3.bf16.msra.mxu0 %v18347_v18 }
0x13b9   : > { %16638 = vmatprep.subr.bf16.mxu0 %v18350_v19  ;;  %v18359_v19 = vld [vmem:[%s23968_s14 + $0xc] ss:$24 sps:$4 sm:$0xff]  }
0x13bc   : > { %16639 = vmatpush3.bf16.msra.mxu0 %v18351_v21  ;;  %v3644_v21 = vld [vmem:[%s23969_s9 + $0x8] sm:$0xff] }
0x13bd   : > { %16640 = vmatprep.subr.bf16.mxu0 %v18352_v50  ;;  %v18357_v50 = vld [vmem:[%s23968_s14 + $0x8] ss:$24 sps:$4 sm:$0xff]  }
0x13c0   : > { %16641 = vmatpush3.bf16.msra.mxu0 %v18353_v52  ;;  %v3645_v52 = vld [vmem:[%s23969_s9 + $0x10] sm:$0xff] }
0x13c1   : > { %4376 = vmatprep.subr.bf16.mxu0 %v18356_v2  ;;  %v18383_v2 = vld [vmem:[%s23968_s14 + $0xcc] ss:$24 sps:$4 sm:$0xff]  }
0x13c3   : > { %3635 = vmatmul.mubr.bf16.vlgmr.msra.gmra.mrb[24].mxu0 %v3297_v54  ;;  %v3646_v54 = vld [vmem:[%s23969_s9 + $0x18] sm:$0xff] }
0x13c4   : > { %4377 = vmatpush1.bf16.msra.mxu0 %v18354_v0  ;;  %v18375_v0 = vld [vmem:[%s23968_s14 + $0x98] ss:$24 sps:$4 sm:$0xff]  }
0x13c5   : > { %4378 = vmatprep.subr.bf16.mxu0 %v18362_v38  ;;  %v18381_v38 = vld [vmem:[%s23968_s14 + $0xc8] ss:$24 sps:$4 sm:$0xff]  }
0x13c8   : > { %4379 = vmatpush1.bf16.msra.mxu0 %v18360_v3  ;;  %v18389_v3 = vld [vmem:[%s23968_s14 + $0xfc] ss:$24 sps:$4 sm:$0xff]  }
0x13c9   : > { %4380 = vmatprep.subr.bf16.mxu0 %v18368_v47  ;;  %v18387_v47 = vld [vmem:[%s23968_s14 + $0xf8] ss:$24 sps:$4 sm:$0xff]  }
0x13cc   : > { %4381 = vmatpush1.bf16.msra.mxu0 %v18366_v5  ;;  %v18395_v5 = vld [vmem:[%s23968_s14 + $0x12c] ss:$24 sps:$4 sm:$0xff]  }
0x13cd   : > { %4382 = vmatprep.subr.bf16.mxu0 %v18374_v6  ;;  %v18393_v6 = vld [vmem:[%s23968_s14 + $0x128] ss:$24 sps:$4 sm:$0xff]  }
0x13d0   : > { %4383 = vmatpush1.bf16.msra.mxu0 %v18372_v9  ;;  %v18401_v9 = vld [vmem:[%s23968_s14 + $0x15c] ss:$24 sps:$4 sm:$0xff]  }
0x13d1   : > { %4384 = vmatprep.subr.bf16.mxu0 %v18380_v10  ;;  %v18399_v10 = vld [vmem:[%s23968_s14 + $0x158] ss:$24 sps:$4 sm:$0xff]  }
0x13d4   : > { %4385 = vmatpush1.bf16.msra.mxu0 %v18378_v12  ;;  %v18407_v12 = vld [vmem:[%s23968_s14 + $0x18c] ss:$24 sps:$4 sm:$0xff]  }
0x13d5   : > { %4386 = vmatprep.subr.bf16.mxu0 %v18386_v13  ;;  %v18405_v13 = vld [vmem:[%s23968_s14 + $0x188] ss:$24 sps:$4 sm:$0xff]  }
0x13d8   : > { %4387 = vmatpush1.bf16.msra.mxu0 %v18384_v16  ;;  %v18413_v16 = vld [vmem:[%s23968_s14 + $0x1bc] ss:$24 sps:$4 sm:$0xff]  }
0x13d9   : > { %4388 = vmatprep.subr.bf16.mxu0 %v18392_v17  ;;  %v18411_v17 = vld [vmem:[%s23968_s14 + $0x1b8] ss:$24 sps:$4 sm:$0xff]  }
0x13dc   : > { %4389 = vmatpush1.bf16.msra.mxu0 %v18390_v22  ;;  %v18419_v22 = vld [vmem:[%s23968_s14 + $0x1ec] ss:$24 sps:$4 sm:$0xff]  }
0x13dd   : > { %4390 = vmatprep.subr.bf16.mxu0 %v18398_v24  ;;  %v18417_v24 = vld [vmem:[%s23968_s14 + $0x1e8] ss:$24 sps:$4 sm:$0xff]  }
0x13e0   : > { %4391 = vmatpush1.bf16.msra.mxu0 %v18396_v27  ;;  %v18425_v27 = vld [vmem:[%s23968_s14 + $0x21c] ss:$24 sps:$4 sm:$0xff]  }
0x13e1   : > { %4392 = vmatprep.subr.bf16.mxu0 %v18404_v28  ;;  %v18423_v28 = vld [vmem:[%s23968_s14 + $0x218] ss:$24 sps:$4 sm:$0xff]  }
0x13e4   : > { %4393 = vmatpush1.bf16.msra.mxu0 %v18402_v29  ;;  %v18431_v29 = vld [vmem:[%s23968_s14 + $0x24c] ss:$24 sps:$4 sm:$0xff]  }
0x13e5   : > { %4394 = vmatprep.subr.bf16.mxu0 %v18410_v30  ;;  %v18429_v30 = vld [vmem:[%s23968_s14 + $0x248] ss:$24 sps:$4 sm:$0xff]  }
0x13e8   : > { %4395 = vmatpush1.bf16.msra.mxu0 %v18408_v31  ;;  %v18437_v31 = vld [vmem:[%s23968_s14 + $0x27c] ss:$24 sps:$4 sm:$0xff]  }
0x13e9   : > { %4396 = vmatprep.subr.bf16.mxu0 %v18416_v33  ;;  %v18435_v33 = vld [vmem:[%s23968_s14 + $0x278] ss:$24 sps:$4 sm:$0xff]  }
0x13ec   : > { %4397 = vmatpush1.bf16.msra.mxu0 %v18414_v36  ;;  %v18443_v36 = vld [vmem:[%s23968_s14 + $0x2ac] ss:$24 sps:$4 sm:$0xff]  }
0x13ed   : > { %4398 = vmatprep.subr.bf16.mxu0 %v18422_v40  ;;  %v18441_v40 = vld [vmem:[%s23968_s14 + $0x2a8] ss:$24 sps:$4 sm:$0xff]  }
0x13f0   : > { %4399 = vmatpush1.bf16.msra.mxu0 %v18420_v32  ;;  %v18444_v32 = vld [vmem:[%s23968_s14 + $0x2d0] ss:$24 sps:$4 sm:$0xff]  }
0x13f1   : > { %4400 = vmatprep.subr.bf16.mxu0 %v18428_v34  ;;  %v18446_v34 = vld [vmem:[%s23968_s14 + $0x2d4] ss:$24 sps:$4 sm:$0xff]  }
0x13f4   : > { %4401 = vmatpush1.bf16.msra.mxu0 %v18426_v35  ;;  %v18447_v35 = vld [vmem:[%s23968_s14 + $0x2d8] ss:$24 sps:$4 sm:$0xff]  }
0x13f5   : > { %4402 = vmatprep.subr.bf16.mxu0 %v18434_v37  ;;  %v18449_v37 = vld [vmem:[%s23968_s14 + $0x2dc] ss:$24 sps:$4 sm:$0xff]  }
0x13f8   : > { %4403 = vmatpush1.bf16.msra.mxu0 %v18432_v39  ;;  %v18452_v39 = vld [vmem:[%s23968_s14 + $0x14] ss:$24 sps:$4 sm:$0xff]  }
0x13f9   : > { %4404 = vmatprep.subr.bf16.mxu0 %v18440_v48 }
0x13fc   : > { %4405 = vmatpush1.bf16.msra.mxu0 %v18438_v41 }
0x13fd   : > { %4406 = vmatprep.subr.bf16.mxu0 %v18446_v34 }
0x1400   : > { %4407 = vmatpush1.bf16.msra.mxu0 %v18444_v32 }
0x1401   : > { %4502 = vmatprep.subr.bf16.mxu0 %v18452_v39 }
0x1476   : > { %v20830_v43 = vpop.f32.mrb[18].mxu0 }
0x1477   : > { %23980 = vst [vmem:[#allocation33_spill] sm:$0xff] %v20830_v43  ;;  %v20832_v42 = vpop.f32.mrb[19].mxu0 }
0x1478   : > { %23981 = vst [vmem:[#allocation34_spill] sm:$0xff] %v20832_v42  ;;  %v20836_v49 = vpack.c.bf16 %v20830_v43, %v20832_v42 }
0x147a   : > { %v20838_v46 = vpop.f32.mrb[20].mxu0 }
0x147b   : > { %23982 = vst [vmem:[#allocation35_spill] sm:$0xff] %v20838_v46  ;;  %v20840_v45 = vpop.f32.mrb[21].mxu0 }
0x147c   : > { %23983 = vst [vmem:[#allocation36_spill] sm:$0xff] %v20840_v45  ;;  %v20844_v51 = vpack.c.bf16 %v20838_v46, %v20840_v45 }
0x147e   : > { %v20846_v56 = vpop.f32.mrb[22].mxu0 }
0x147f   : > { %23984 = vst [vmem:[#allocation37_spill] sm:$0xff] %v20846_v56  ;;  %v20848_v59 = vpop.f32.mrb[23].mxu0 }
0x1480   : > { %23985 = vst [vmem:[#allocation38_spill] sm:$0xff] %v20848_v59  ;;  %v20852_v62 = vpack.c.bf16 %v20846_v56, %v20848_v59 }
0x1496   : > { %v16642_v7 = vpop.f32.mrb[24].mxu0 }
0x1497   : > { %v16643_v11 = vpop.f32.mrb[25].mxu0 }
0x1498   : > { %v16644_v44 = vadd.f32 %v16643_v11, %v16642_v7  ;;  %v16645_v14 = vpop.f32.mrb[26].mxu0  ;;  %v18455_v7 = vld [vmem:[%s23968_s14 + $0x44] ss:$24 sps:$4 sm:$0xff]  }
0x1499   : > { %v16646_v15 = vpop.f32.mrb[27].mxu0  ;;  %v18453_v14 = vld [vmem:[%s23968_s14 + $0x40] ss:$24 sps:$4 sm:$0xff]  }
0x149a   : > { %v3637_v20 = vadd.f32 %v16644_v44, %v3597_v4  ;;  %v18450_v4 = vld [vmem:[%s23968_s14 + $0x10] ss:$24 sps:$4 sm:$0xff]  }
0x149c   : > { %v3642_v18 = vmax.f32 %v3637_v20, 0.0  ;;  %v18458_v20 = vld [vmem:[%s23968_s14 + $0x74] ss:$24 sps:$4 sm:$0xff]  }
0x149e   : > { %16913 = vmatprep.subr.mxu1 %v3642_v18 }
0x149f   : > { %16914 = vmatpush3.msra.mxu1 %v3642_v18 }
0x14a0   : > { %16916 = vmatmul.mubr.msk.f32.vlgmr.msra.gmra.mrb[18].mxu1 %vm3177_vm2, %v3644_v21  ;;  %4439 = vmatprep.subr.bf16.mxu1 %v18359_v19  ;;  %v18456_v21 = vld [vmem:[%s23968_s14 + $0x70] ss:$24 sps:$4 sm:$0xff]  }
0x14a1   : > { %16918 = vmatprep.mubr.msk.f32.mxu1 %vm3177_vm2, %v3645_v52  ;;  %4440 = vmatpush1.bf16.msra.mxu1 %v18357_v50  ;;  %v18461_v52 = vld [vmem:[%s23968_s14 + $0xa4] ss:$24 sps:$4 sm:$0xff]  }
0x14a2   : > { %4441 = vmatprep.subr.bf16.mxu1 %v18365_v53  ;;  %v18459_v53 = vld [vmem:[%s23968_s14 + $0xa0] ss:$24 sps:$4 sm:$0xff]  }
0x14a4   : > { %16919 = vmatmul.mubr.msk.f32.gmra.mrb[24].mxu1 %vm3177_vm2, %v3646_v54  ;;  %v18464_v54 = vld [vmem:[%s23968_s14 + $0xd4] ss:$24 sps:$4 sm:$0xff]  }
0x14a5   : > { %16921 = vmatprep.mubr.msk.f32.mxu1 %vm3177_vm2, %v3647_v57  ;;  %4442 = vmatpush1.bf16.msra.mxu1 %v18363_v55  ;;  %v18462_v55 = vld [vmem:[%s23968_s14 + $0xd0] ss:$24 sps:$4 sm:$0xff]   ;;  %v18467_v57 = vld [vmem:[%s23968_s14 + $0x104] ss:$24 sps:$4 sm:$0xff]  }
0x14a6   : > { %4443 = vmatprep.subr.bf16.mxu1 %v18371_v58  ;;  %v18465_v58 = vld [vmem:[%s23968_s14 + $0x100] ss:$24 sps:$4 sm:$0xff]  }
0x14a8   : > { %16922 = vmatmul.mubr.msk.f32.gmra.mrb[26].mxu1 %vm3177_vm2, %v3648_v60  ;;  %v18470_v60 = vld [vmem:[%s23968_s14 + $0x134] ss:$24 sps:$4 sm:$0xff]  }
0x14a9   : > { %4444 = vmatpush1.bf16.msra.mxu1 %v18369_v61  ;;  %v18468_v61 = vld [vmem:[%s23968_s14 + $0x130] ss:$24 sps:$4 sm:$0xff]  }
0x14aa   : > { %4445 = vmatprep.subr.bf16.mxu1 %v18377_v63  ;;  %v18473_v63 = vld [vmem:[%s23968_s14 + $0x164] ss:$24 sps:$4 sm:$0xff]  }
0x14ad   : > { %4446 = vmatpush1.bf16.msra.mxu1 %v18375_v0  ;;  %v18471_v0 = vld [vmem:[%s23968_s14 + $0x160] ss:$24 sps:$4 sm:$0xff]  }
0x14ae   : > { %4447 = vmatprep.subr.bf16.mxu1 %v18383_v2  ;;  %v18476_v2 = vld [vmem:[%s23968_s14 + $0x194] ss:$24 sps:$4 sm:$0xff]  }
0x14b1   : > { %4448 = vmatpush1.bf16.msra.mxu1 %v18381_v38  ;;  %v18474_v38 = vld [vmem:[%s23968_s14 + $0x190] ss:$24 sps:$4 sm:$0xff]  }
0x14b2   : > { %4449 = vmatprep.subr.bf16.mxu1 %v18389_v3  ;;  %v18479_v3 = vld [vmem:[%s23968_s14 + $0x1c4] ss:$24 sps:$4 sm:$0xff]  }
0x14b5   : > { %4450 = vmatpush1.bf16.msra.mxu1 %v18387_v47  ;;  %v18477_v47 = vld [vmem:[%s23968_s14 + $0x1c0] ss:$24 sps:$4 sm:$0xff]  }
0x14b6   : > { %4451 = vmatprep.subr.bf16.mxu1 %v18395_v5  ;;  %v18482_v5 = vld [vmem:[%s23968_s14 + $0x1f4] ss:$24 sps:$4 sm:$0xff]  }
0x14b9   : > { %4452 = vmatpush1.bf16.msra.mxu1 %v18393_v6  ;;  %v18480_v6 = vld [vmem:[%s23968_s14 + $0x1f0] ss:$24 sps:$4 sm:$0xff]  }
0x14ba   : > { %4453 = vmatprep.subr.bf16.mxu1 %v18401_v9  ;;  %v18485_v9 = vld [vmem:[%s23968_s14 + $0x224] ss:$24 sps:$4 sm:$0xff]  }
0x14bd   : > { %4454 = vmatpush1.bf16.msra.mxu1 %v18399_v10  ;;  %v18483_v10 = vld [vmem:[%s23968_s14 + $0x220] ss:$24 sps:$4 sm:$0xff]  }
0x14be   : > { %4455 = vmatprep.subr.bf16.mxu1 %v18407_v12  ;;  %v18488_v12 = vld [vmem:[%s23968_s14 + $0x254] ss:$24 sps:$4 sm:$0xff]  }
0x14c1   : > { %4456 = vmatpush1.bf16.msra.mxu1 %v18405_v13  ;;  %v18486_v13 = vld [vmem:[%s23968_s14 + $0x250] ss:$24 sps:$4 sm:$0xff]  }
0x14c2   : > { %4457 = vmatprep.subr.bf16.mxu1 %v18413_v16  ;;  %v18491_v16 = vld [vmem:[%s23968_s14 + $0x284] ss:$24 sps:$4 sm:$0xff]  }
0x14c5   : > { %4458 = vmatpush1.bf16.msra.mxu1 %v18411_v17  ;;  %v18489_v17 = vld [vmem:[%s23968_s14 + $0x280] ss:$24 sps:$4 sm:$0xff]  }
0x14c6   : > { %4459 = vmatprep.subr.bf16.mxu1 %v18419_v22  ;;  %v18494_v22 = vld [vmem:[%s23968_s14 + $0x2b4] ss:$24 sps:$4 sm:$0xff]  }
0x14c9   : > { %4460 = vmatpush1.bf16.msra.mxu1 %v18417_v24  ;;  %v18492_v24 = vld [vmem:[%s23968_s14 + $0x2b0] ss:$24 sps:$4 sm:$0xff]  }
0x14ca   : > { %4461 = vmatprep.subr.bf16.mxu1 %v18425_v27  ;;  %v18497_v27 = vld [vmem:[%s23968_s14 + $0x2e4] ss:$24 sps:$4 sm:$0xff]  }
0x14cd   : > { %4462 = vmatpush1.bf16.msra.mxu1 %v18423_v28  ;;  %v18495_v28 = vld [vmem:[%s23968_s14 + $0x2e0] ss:$24 sps:$4 sm:$0xff]  }
0x14ce   : > { %4463 = vmatprep.subr.bf16.mxu1 %v18431_v29  ;;  %v20970_v29 = vld [vmem:[%s20140_s19] sm:$0x3f] }
0x14d1   : > { %4464 = vmatpush1.bf16.msra.mxu1 %v18429_v30  ;;  %v23898_v30 = vsub.s32 2, %v20461_v23 }
0x14d2   : > { %4465 = vmatprep.subr.bf16.mxu1 %v18437_v31  ;;  %v23897_v31 = vsub.s32 3, %v20461_v23 }
0x14d5   : > { %4466 = vmatpush1.bf16.msra.mxu1 %v18435_v33  ;;  %v20976_v33 = vrot.slane %v20970_v29, %v20465_v25 }
0x14d6   : > { %4467 = vmatprep.subr.bf16.mxu1 %v18443_v36 }
0x14d9   : > { %4468 = vmatpush1.bf16.msra.mxu1 %v18441_v40 }
0x14da   : > { %4469 = vmatprep.subr.bf16.mxu1 %v18449_v37 }
0x14dd   : > { %4470 = vmatpush1.bf16.msra.mxu1 %v18447_v35 }
0x1573   : > { %v20901_v48 = vpop.f32.mrb[18].mxu1 }
0x1574   : > { %23986 = vst [vmem:[#allocation39_spill] sm:$0xff] %v20901_v48  ;;  %v20903_v41 = vpop.f32.mrb[19].mxu1 }
0x1575   : > { %23987 = vst [vmem:[#allocation40_spill] sm:$0xff] %v20903_v41  ;;  %v3763_v1 = vpack.c.bf16 %v20901_v48, %v20903_v41 }
0x1577   : > { %4408 = vmatprep.mubr.bf16.mxu0 %v3763_v1  ;;  %4471 = vmatprep.mubr.bf16.mxu1 %v3763_v1  ;;  %v20909_v11 = vpop.f32.mrb[24].mxu1 }
0x1578   : > { %23988 = vst [vmem:[#allocation41_spill] sm:$0xff] %v20909_v11  ;;  %4409 = vmatmul.mubr.bf16.vlgmr.msra.gmra.mrb[28].mxu0 %v20836_v49  ;;  %4472 = vmatmul.mubr.bf16.vlgmr.msra.gmra.mrb[28].mxu1 %v20836_v49  ;;  %v20913_v44 = vpop.f32.mrb[25].mxu1 }
0x1579   : > { %23989 = vst [vmem:[#allocation42_spill] sm:$0xff] %v20913_v44  ;;  %4503 = vmatpush1.bf16.msra.mxu0 %v18450_v4  ;;  %v20918_v15 = vpack.c.bf16 %v20909_v11, %v20913_v44 }
0x157a   : > { %4504 = vmatprep.subr.bf16.mxu0 %v18455_v7 }
0x157b   : > { %4418 = vmatprep.mubr.bf16.mxu0 %v20918_v15  ;;  %4481 = vmatprep.mubr.bf16.mxu1 %v20918_v15  ;;  %v20923_v18 = vpop.f32.mrb[26].mxu1 }
0x157c   : > { %23990 = vst [vmem:[#allocation43_spill] sm:$0xff] %v20923_v18  ;;  %v20925_v19 = vpop.f32.mrb[27].mxu1 }
0x157d   : > { %23991 = vst [vmem:[#allocation44_spill] sm:$0xff] %v20925_v19  ;;  %4505 = vmatpush1.bf16.msra.mxu0 %v18453_v14  ;;  %v20930_v50 = vpack.c.bf16 %v20923_v18, %v20925_v19 }
0x157e   : > { %4506 = vmatprep.subr.bf16.mxu0 %v18458_v20 }
0x1580   : > { %4419 = vmatmul.mubr.bf16.gmra.mrb[32].mxu0 %v20844_v51  ;;  %4482 = vmatmul.mubr.bf16.gmra.mrb[32].mxu1 %v20844_v51 }
0x1581   : > { %4507 = vmatpush1.bf16.msra.mxu0 %v18456_v21  ;;  %4428 = vmatprep.mubr.bf16.mxu0 %v20930_v50 }
0x1582   : > { %4508 = vmatprep.subr.bf16.mxu0 %v18461_v52  ;;  %4491 = vmatprep.mubr.bf16.mxu1 %v20930_v50 }
0x1585   : > { %4509 = vmatpush1.bf16.msra.mxu0 %v18459_v53 }
0x1586   : > { %4510 = vmatprep.subr.bf16.mxu0 %v18464_v54 }
0x1588   : > { %4429 = vmatmul.mubr.bf16.gmra.mrb[36].mxu0 %v20852_v62  ;;  %4492 = vmatmul.mubr.bf16.gmra.mrb[36].mxu1 %v20852_v62 }
0x1589   : > { %4511 = vmatpush1.bf16.msra.mxu0 %v18462_v55  ;;  %4534 = vmatprep.mubr.bf16.mxu0 %v3763_v1 }
0x158a   : > { %4512 = vmatprep.subr.bf16.mxu0 %v18467_v57 }
0x158d   : > { %4513 = vmatpush1.bf16.msra.mxu0 %v18465_v58 }
0x158e   : > { %4514 = vmatprep.subr.bf16.mxu0 %v18470_v60 }
0x1591   : > { %4515 = vmatpush1.bf16.msra.mxu0 %v18468_v61 }
0x1592   : > { %4516 = vmatprep.subr.bf16.mxu0 %v18473_v63 }
0x1595   : > { %4517 = vmatpush1.bf16.msra.mxu0 %v18471_v0 }
0x1596   : > { %4518 = vmatprep.subr.bf16.mxu0 %v18476_v2 }
0x1599   : > { %4519 = vmatpush1.bf16.msra.mxu0 %v18474_v38 }
0x159a   : > { %4520 = vmatprep.subr.bf16.mxu0 %v18479_v3 }
0x159d   : > { %4521 = vmatpush1.bf16.msra.mxu0 %v18477_v47 }
0x159e   : > { %4522 = vmatprep.subr.bf16.mxu0 %v18482_v5 }
0x15a1   : > { %4523 = vmatpush1.bf16.msra.mxu0 %v18480_v6 }
0x15a2   : > { %4524 = vmatprep.subr.bf16.mxu0 %v18485_v9 }
0x15a5   : > { %4525 = vmatpush1.bf16.msra.mxu0 %v18483_v10 }
0x15a6   : > { %4526 = vmatprep.subr.bf16.mxu0 %v18488_v12 }
0x15a9   : > { %4527 = vmatpush1.bf16.msra.mxu0 %v18486_v13 }
0x15aa   : > { %4528 = vmatprep.subr.bf16.mxu0 %v18491_v16 }
0x15ad   : > { %4529 = vmatpush1.bf16.msra.mxu0 %v18489_v17 }
0x15ae   : > { %4530 = vmatprep.subr.bf16.mxu0 %v18494_v22 }
0x15b1   : > { %4531 = vmatpush1.bf16.msra.mxu0 %v18492_v24 }
0x15b2   : > { %4532 = vmatprep.subr.bf16.mxu0 %v18497_v27 }
0x15b5   : > { %4533 = vmatpush1.bf16.msra.mxu0 %v18495_v28 }
0x15b8   : > { %4535 = vmatmul.mubr.bf16.vlgmr.msra.gmra.mrb[40].mxu0 %v20836_v49  ;;  %v3877_v49 = vrot.slane %v20970_v29, %v23898_v30 }
0x15b9   : > { %4544 = vmatprep.mubr.bf16.mxu0 %v20918_v15 }
0x15c0   : > { %4545 = vmatmul.mubr.bf16.gmra.mrb[44].mxu0 %v20844_v51 }
0x15c1   : > { %4554 = vmatprep.mubr.bf16.mxu0 %v20930_v50 }
0x15c8   : > { %4555 = vmatmul.mubr.bf16.gmra.mrb[48].mxu0 %v20852_v62  ;;  %v3881_v62 = vrot.slane %v20970_v29, %v23897_v31 }
0x164b   : > { %v4410_v36 = vpop.f32.mrb[28].mxu0  ;;  %v4473_v51 = vpop.f32.mrb[28].mxu1 }
0x164c   : > { %v4411_v40 = vadd.f32 %v4410_v36, %v20976_v33  ;;  %v20985_v32 = vpop.f32.mrb[29].mxu0  ;;  %v4475_v34 = vpop.f32.mrb[29].mxu1  ;;  %v4474_v1 = vadd.f32 %v4473_v51, %v3877_v49 }
0x164d   : > { %v4414_v35 = vpop.f32.mrb[30].mxu0  ;;  %v4477_v37 = vpop.f32.mrb[30].mxu1  ;;  %v4476_v15 = vadd.f32 %v4475_v34, %v3881_v62 }
0x164e   : > { %v20987_v39 = vmul.f32 0.17677669, %v4411_v40  ;;  %v4478_v4 = vadd.f32 %v4477_v37, %v3877_v49  ;;  %v20989_v7 = vpop.f32.mrb[31].mxu0  ;;  %v4479_v14 = vpop.f32.mrb[31].mxu1  ;;  %v4415_v13 = vadd.f32 %v4414_v35, %v20976_v33 }
0x164f   : > { %v4480_v20 = vadd.f32 %v4479_v14, %v3881_v62 }
0x1650   : > { %16936 = vmatprep.mubr.msk.f32.mxu1 %vm4859_vm3, %v20987_v39  ;;  %v20999_v50 = vpack.i.bf16 %v4478_v4, %v4474_v1  ;;  %v17624_v52 = vpack.c.bf16 %v4478_v4, %v4474_v1  ;;  %v4567_v37 = vmul.f32 0.17677669, %v4415_v13 }
0x1651   : > { %v21001_v53 = vpack.i.bf16 %v4480_v20, %v4476_v15  ;;  %v21007_v54 = vpack.c.bf16 %v4480_v20, %v4476_v15 }
0x1652   : > { %18143 = vrot.lane.b32.xlu1 %v20999_v50, %s20076_s12  ;;  %17626 = vmatprep.subr.msk.bf16.mxu1 %vm20993_vm4, %v17624_v52 }
0x1653   : > { %v4420_v55 = vpop.f32.mrb[32].mxu0  ;;  %v4483_v57 = vpop.f32.mrb[32].mxu1  ;;  %17629 = vmatpush3.bf16.xpose.msk.msra.mxu1 %vm20993_vm4, %v17624_v52 }
0x1654   : > { %v21011_v58 = vpop.f32.mrb[33].mxu0  ;;  %v4485_v60 = vpop.f32.mrb[33].mxu1  ;;  %v4484_v0 = vadd.f32 %v4483_v57, %v3877_v49  ;;  %v4421_v4 = vadd.f32 %v4420_v55, %v20976_v33 }
0x1655   : > { %v4424_v61 = vpop.f32.mrb[34].mxu0  ;;  %v4487_v63 = vpop.f32.mrb[34].mxu1  ;;  %v4486_v47 = vadd.f32 %v4485_v60, %v3881_v62 }
0x1656   : > { %v4488_v2 = vadd.f32 %v4487_v63, %v3877_v49  ;;  %v21013_v38 = vpop.f32.mrb[35].mxu0  ;;  %v4489_v3 = vpop.f32.mrb[35].mxu1  ;;  %v4569_v52 = vmul.f32 0.17677669, %v4421_v4 }
0x1657   : > { %v4490_v5 = vadd.f32 %v4489_v3, %v3881_v62 }
0x1658   : > { %v18147_v6 = vpack.i.bf16 %v4488_v2, %v4484_v0  ;;  %v17630_v9 = vpack.c.bf16 %v4488_v2, %v4484_v0  ;;  %v3873_v2 = vrot.slane %v20970_v29, %v20468_v26 }
0x1659   : > { %v21015_v10 = vpack.i.bf16 %v4490_v5, %v4486_v47  ;;  %v21020_v12 = vpack.c.bf16 %v4490_v5, %v4486_v47 }
0x165a   : > { %18148 = vrot.lane.b32.xlu0 %v18147_v6, %s20076_s12  ;;  %17632 = vmatprep.subr.msk.bf16.mxu1 %vm20993_vm4, %v17630_v9 }
0x165b   : > { %v4430_v16 = vpop.f32.mrb[36].mxu0  ;;  %v4493_v17 = vpop.f32.mrb[36].mxu1  ;;  %17635 = vmatpush3.bf16.xpose.msk.msra.mxu1 %vm20993_vm4, %v17630_v9 }
0x165c   : > { %v21025_v22 = vpop.f32.mrb[37].mxu0  ;;  %v4495_v24 = vpop.f32.mrb[37].mxu1  ;;  %v4494_v36 = vadd.f32 %v4493_v17, %v3877_v49  ;;  %v4431_v57 = vadd.f32 %v4430_v16, %v20976_v33  ;;  %v4413_v16 = vadd.f32 %v20985_v32, %v3873_v2 }
0x165d   : > { %v4434_v27 = vpop.f32.mrb[38].mxu0  ;;  %v4497_v28 = vpop.f32.mrb[38].mxu1  ;;  %v4496_v35 = vadd.f32 %v4495_v24, %v3881_v62 }
0x165e   : > { %v4498_v51 = vadd.f32 %v4497_v28, %v3877_v49  ;;  %18158 = vrot.lane.b32.xlu0 %v20999_v50, %s20075_s18  ;;  %v21029_v40 = vpop.f32.mrb[39].mxu0  ;;  %v4499_v34 = vpop.f32.mrb[39].mxu1  ;;  %v4435_v55 = vadd.f32 %v4434_v27, %v20976_v33  ;;  %v4573_v0 = vmul.f32 0.17677669, %v4431_v57 }
0x165f   : > { %v4500_v1 = vadd.f32 %v4499_v34, %v3881_v62  ;;  %v4425_v62 = vadd.f32 %v4424_v61, %v20976_v33  ;;  %v3884_v33 = vsub.s32 4, %v20461_v23  ;;  %v21095_v34 = vmul.f32 0.17677669, %v4413_v16 }
0x1660   : > { %v18152_v14 = vpack.i.bf16 %v4498_v51, %v4494_v36  ;;  %v17636_v15 = vpack.c.bf16 %v4498_v51, %v4494_v36  ;;  %v4575_v63 = vmul.f32 0.17677669, %v4435_v55 }
0x1661   : > { %v21032_v20 = vpack.i.bf16 %v4500_v1, %v4496_v35  ;;  %v21036_v49 = vpack.c.bf16 %v4500_v1, %v4496_v35  ;;  %v4571_v60 = vmul.f32 0.17677669, %v4425_v62  ;;  %v3885_v61 = vrot.slane %v20970_v29, %v3884_v33 }
0x1662   : > { %4585 = vrot.lane.b32.xlu0 %v4567_v37, %s20076_s12  ;;  %18153 = vrot.lane.b32.xlu1 %v18152_v14, %s20076_s12 }
0x1663   : > { %17638 = vmatprep.subr.msk.bf16.mxu1 %vm20993_vm4, %v17636_v15 }
0x1664   : > { %17641 = vmatpush3.bf16.xpose.msk.msra.mxu1 %vm20993_vm4, %v17636_v15  ;;  %v4427_v15 = vadd.f32 %v21013_v38, %v3873_v2  ;;  %v4433_v38 = vadd.f32 %v21025_v22, %v3873_v2 }
0x1666   : > { %4587 = vrot.lane.b32.xlu0 %v4569_v52, %s20076_s12  ;;  %4583 = vrot.lane.b32.xlu1 %v20987_v39, %s20076_s12  ;;  %v21127_v22 = vmul.f32 0.17677669, %v4433_v38 }
0x166a   : > { %18168 = vrot.lane.b32.xlu0 %v18152_v14, %s20075_s18  ;;  %18163 = vrot.lane.b32.xlu1 %v18147_v6, %s20075_s18 }
0x166b   : > { %16937 = vmatmul.mubr.msk.f32.vlgmr.msra.gmra.mrb[40].mxu1 %vm4859_vm3, %v4567_v37 }
0x166c   : > { %16939 = vmatprep.mubr.msk.f32.mxu1 %vm4859_vm3, %v4569_v52 }
0x166e   : > { %4589 = vrot.lane.b32.xlu1 %v4571_v60, %s20076_s12  ;;  %4593 = vrot.lane.b32.xlu0 %v4575_v63, %s20076_s12 }
0x166f   : > { %16940 = vmatmul.mubr.msk.f32.gmra.mrb[42].mxu1 %vm4859_vm3, %v4571_v60 }
0x1670   : > { %16942 = vmatprep.mubr.msk.f32.mxu1 %vm4859_vm3, %v4573_v0 }
0x1672   : > { %4595 = vrot.lane.b32.xlu0 %v20987_v39, %s20075_s18  ;;  %4591 = vrot.lane.b32.xlu1 %v4573_v0, %s20076_s12 }
0x1673   : > { %16943 = vmatmul.mubr.msk.f32.gmra.mrb[44].mxu1 %vm4859_vm3, %v4575_v63 }
0x1676   : > { %18178 = vrot.lane.b32.xlu0 %v18147_v6, %s20077_s23  ;;  %18173 = vrot.lane.b32.xlu1 %v20999_v50, %s20077_s23  ;;  %v3888_v50 = vsub.s32 5, %v20461_v23 }
0x1678   : > { %v3889_v3 = vrot.slane %v20970_v29, %v3888_v50  ;;  %v21119_v50 = vmul.f32 0.17677669, %v4427_v15 }
0x167a   : > { %4601 = vrot.lane.b32.xlu0 %v4571_v60, %s20075_s18  ;;  %4597 = vrot.lane.b32.xlu1 %v4567_v37, %s20075_s18 }
0x167e   : > { %4603 = vrot.lane.b32.xlu0 %v4573_v0, %s20075_s18  ;;  %4599 = vrot.lane.b32.xlu1 %v4569_v52, %s20075_s18 }
0x1682   : > { %4607 = vrot.lane.b32.xlu0 %v20987_v39, %s20077_s23  ;;  %18183 = vrot.lane.b32.xlu1 %v18152_v14, %s20077_s23  ;;  %v4417_v14 = vadd.f32 %v20989_v7, %v3873_v2  ;;  %v4423_v7 = vadd.f32 %v21011_v58, %v3873_v2 }
0x1684   : > { %v21117_v33 = vmul.f32 0.17677669, %v4417_v14  ;;  %v21125_v58 = vmul.f32 0.17677669, %v4423_v7 }
0x1686   : > { %4611 = vrot.lane.b32.xlu0 %v4569_v52, %s20077_s23  ;;  %4605 = vrot.lane.b32.xlu1 %v4575_v63, %s20075_s18 }
0x168a   : > { %4615 = vrot.lane.b32.xlu0 %v4573_v0, %s20077_s23  ;;  %4609 = vrot.lane.b32.xlu1 %v4567_v37, %s20077_s23 }
0x168b   : > { %v4536_v39 = vpop.f32.mrb[40].mxu0 }
0x168c   : > { %v4538_v47 = vpop.f32.mrb[41].mxu0  ;;  %v4537_v6 = vadd.f32 %v4536_v39, %v3885_v61 }
0x168d   : > { %v4540_v5 = vpop.f32.mrb[42].mxu0  ;;  %v4539_v17 = vadd.f32 %v4538_v47, %v3889_v3 }
0x168e   : > { %v4541_v9 = vadd.f32 %v4540_v5, %v3885_v61  ;;  %v4542_v13 = vpop.f32.mrb[43].mxu0  ;;  %18188 = vrot.lane.b32.xlu0 %v21001_v53, %s20076_s12  ;;  %4613 = vrot.lane.b32.xlu1 %v4571_v60, %s20077_s23 }
0x168f   : > { %v4543_v24 = vadd.f32 %v4542_v13, %v3889_v3 }
0x1690   : > { %v21084_v27 = vpack.i.bf16 %v4541_v9, %v4537_v6  ;;  %v21086_v28 = vpack.c.bf16 %v4541_v9, %v4537_v6 }
0x1691   : > { %v21088_v36 = vpack.i.bf16 %v4543_v24, %v4539_v17  ;;  %v21090_v29 = vpack.c.bf16 %v4543_v24, %v4539_v17 }
0x1692   : > { %18198 = vrot.lane.b32.xlu0 %v21032_v20, %s20076_s12  ;;  %4617 = vrot.lane.b32.xlu1 %v4575_v63, %s20077_s23 }
0x1693   : > { %v4546_v51 = vpop.f32.mrb[44].mxu0 }
0x1694   : > { %v4548_v37 = vpop.f32.mrb[45].mxu0  ;;  %v4547_v35 = vadd.f32 %v4546_v51, %v3885_v61 }
0x1695   : > { %v4550_v32 = vpop.f32.mrb[46].mxu0  ;;  %v4549_v52 = vadd.f32 %v4548_v37, %v3889_v3 }
0x1696   : > { %v4551_v1 = vadd.f32 %v4550_v32, %v3885_v61  ;;  %v4552_v4 = vpop.f32.mrb[47].mxu0  ;;  %4625 = vrot.lane.b32.xlu0 %v21095_v34, %s20076_s12  ;;  %18193 = vrot.lane.b32.xlu1 %v21015_v10, %s20076_s12 }
0x1697   : > { %v4553_v62 = vadd.f32 %v4552_v4, %v3889_v3 }
0x1698   : > { %v21103_v55 = vpack.i.bf16 %v4551_v1, %v4547_v35  ;;  %v21105_v57 = vpack.c.bf16 %v4551_v1, %v4547_v35 }
0x1699   : > { %v21107_v60 = vpack.i.bf16 %v4553_v62, %v4549_v52  ;;  %v21109_v63 = vpack.c.bf16 %v4553_v62, %v4549_v52 }
0x169a   : > { %18208 = vrot.lane.b32.xlu0 %v21015_v10, %s20075_s18  ;;  %18203 = vrot.lane.b32.xlu1 %v21001_v53, %s20075_s18 }
0x169b   : > { %23994 = vst [vmem:[#allocation45_spill] sm:$0xff] %v21107_v60  ;;  %23995 = vst [vmem:[#allocation46_spill] sm:$0xff] %v21109_v63  ;;  %v4556_v0 = vpop.f32.mrb[48].mxu0 }
0x169c   : > { %v4558_v39 = vpop.f32.mrb[49].mxu0  ;;  %v4557_v6 = vadd.f32 %v4556_v0, %v3885_v61 }
0x169d   : > { %v4559_v47 = vadd.f32 %v4558_v39, %v3889_v3  ;;  %v4560_v5 = vpop.f32.mrb[50].mxu0 }
0x169e   : > { %v4561_v9 = vadd.f32 %v4560_v5, %v3885_v61  ;;  %v4562_v13 = vpop.f32.mrb[51].mxu0  ;;  %4631 = vrot.lane.b32.xlu0 %v21119_v50, %s20076_s12  ;;  %4627 = vrot.lane.b32.xlu1 %v21117_v33, %s20076_s12  ;;  %v4437_v61 = vadd.f32 %v21029_v40, %v3873_v2 }
0x169f   : > { %v4563_v16 = vadd.f32 %v4562_v13, %v3889_v3 }
0x16a0   : > { %v18272_v17 = vpack.i.bf16 %v4561_v9, %v4557_v6  ;;  %v21129_v24 = vpack.c.bf16 %v4561_v9, %v4557_v6  ;;  %v21144_v3 = vmul.f32 0.17677669, %v4437_v61 }
0x16a1   : > { %v21131_v51 = vpack.i.bf16 %v4563_v16, %v4559_v47  ;;  %v21133_v37 = vpack.c.bf16 %v4563_v16, %v4559_v47 }
0x16a2   : > { %4633 = vrot.lane.b32.xlu0 %v21127_v22, %s20076_s12  ;;  %4629 = vrot.lane.b32.xlu1 %v21125_v58, %s20076_s12 }
0x16a3   : > { %23996 = vst [vmem:[#allocation47_spill] sm:$0xff] %v21133_v37 }
0x16a6   : > { %18218 = vrot.lane.b32.xlu0 %v21001_v53, %s20077_s23  ;;  %18213 = vrot.lane.b32.xlu1 %v21032_v20, %s20075_s18 }
0x16aa   : > { %4639 = vrot.lane.b32.xlu0 %v21117_v33, %s20075_s18  ;;  %4635 = vrot.lane.b32.xlu1 %v21144_v3, %s20076_s12 }
0x16ae   : > { %4641 = vrot.lane.b32.xlu0 %v21125_v58, %s20075_s18  ;;  %4637 = vrot.lane.b32.xlu1 %v21095_v34, %s20075_s18 }
0x16b2   : > { %18228 = vrot.lane.b32.xlu0 %v21032_v20, %s20077_s23  ;;  %18223 = vrot.lane.b32.xlu1 %v21015_v10, %s20077_s23 }
0x16b6   : > { %4647 = vrot.lane.b32.xlu0 %v21144_v3, %s20075_s18  ;;  %4643 = vrot.lane.b32.xlu1 %v21119_v50, %s20075_s18 }
0x16ba   : > { %4651 = vrot.lane.b32.xlu0 %v21117_v33, %s20077_s23  ;;  %4645 = vrot.lane.b32.xlu1 %v21127_v22, %s20075_s18 }
0x16be   : > { %4655 = vrot.lane.b32.xlu0 %v21119_v50, %s20077_s23  ;;  %4649 = vrot.lane.b32.xlu1 %v21095_v34, %s20077_s23 }
0x16c2   : > { %4659 = vrot.lane.b32.xlu0 %v21144_v3, %s20077_s23  ;;  %4653 = vrot.lane.b32.xlu1 %v21125_v58, %s20077_s23 }
0x16c4   : > { %v18144_v53 = vpop.permute.xlu1 %18143 }
0x16c5   : > { %v18146_v10 = vunpack.i.h.bf16 %v18144_v53  ;;  %v18145_v40 = vunpack.i.l.bf16 %v18144_v53 }
0x16c6   : > { %18233 = vrot.lane.b32.xlu0 %v21084_v27, %s20076_s12  ;;  %4657 = vrot.lane.b32.xlu1 %v21127_v22, %s20077_s23 }
0x16c7   : > { %v17642_v20 = vpack.c.bf16 %v18146_v10, %v18145_v40 }
0x16c9   : > { %17644 = vmatprep.subr.msk.bf16.mxu1 %vm20993_vm4, %v17642_v20 }
0x16ca   : > { %17647 = vmatpush3.bf16.xpose.msk.msra.mxu1 %vm20993_vm4, %v17642_v20  ;;  %18243 = vrot.lane.b32.xlu0 %v21084_v27, %s20077_s23 }
0x16cb   : > { %18238 = vrot.lane.b32.xlu1 %v21084_v27, %s20075_s18 }
0x16cc   : > { %v18149_v2 = vpop.permute.xlu0 %18148 }
0x16cd   : > { %v18151_v32 = vunpack.i.h.bf16 %v18149_v2  ;;  %v18150_v35 = vunpack.i.l.bf16 %v18149_v2 }
0x16ce   : > { %18268 = vrot.lane.b32.xlu0 %v21107_v60, %s20076_s12 }
0x16cf   : > { %v17648_v1 = vpack.c.bf16 %v18151_v32, %v18150_v35  ;;  %18248 = vrot.lane.b32.xlu1 %v21088_v36, %s20076_s12 }
0x16d0   : > { %v18159_v4 = vpop.permute.xlu0 %18158 }
0x16d1   : > { %17650 = vmatprep.subr.msk.bf16.mxu1 %vm20993_vm4, %v17648_v1  ;;  %v18161_v15 = vunpack.i.h.bf16 %v18159_v4  ;;  %v18160_v52 = vunpack.i.l.bf16 %v18159_v4 }
0x16d2   : > { %17653 = vmatpush3.bf16.xpose.msk.msra.mxu1 %vm20993_vm4, %v17648_v1  ;;  %18273 = vrot.lane.b32.xlu0 %v18272_v17, %s20076_s12 }
0x16d3   : > { %18253 = vrot.lane.b32.xlu1 %v21103_v55, %s20076_s12  ;;  %v17660_v47 = vpack.c.bf16 %v18161_v15, %v18160_v52 }
0x16d4   : > { %v4586_v27 = vpop.permute.xlu0 %4585  ;;  %v18154_v14 = vpop.permute.xlu1 %18153 }
0x16d5   : > { %v18156_v62 = vunpack.i.h.bf16 %v18154_v14  ;;  %v18155_v7 = vunpack.i.l.bf16 %v18154_v14 }
0x16d6   : > { %18278 = vrot.lane.b32.xlu0 %v18272_v17, %s20075_s18 }
0x16d7   : > { %v17654_v38 = vpack.c.bf16 %v18156_v62, %v18155_v7  ;;  %18258 = vrot.lane.b32.xlu1 %v21103_v55, %s20075_s18 }
0x16d8   : > { %v4588_v0 = vpop.permute.xlu0 %4587  ;;  %v4584_v39 = vpop.permute.xlu1 %4583 }
0x16d9   : > { %17656 = vmatprep.subr.msk.bf16.mxu1 %vm20993_vm4, %v17654_v38  ;;  %16957 = vmatprep.mubr.msk.f32.mxu1 %vm4859_vm3, %v4584_v39 }
0x16da   : > { %17659 = vmatpush3.bf16.xpose.msk.msra.mxu1 %vm20993_vm4, %v17654_v38  ;;  %18283 = vrot.lane.b32.xlu0 %v18272_v17, %s20077_s23 }
0x16db   : > { %18263 = vrot.lane.b32.xlu1 %v21103_v55, %s20077_s23  ;;  %17662 = vmatprep.subr.msk.bf16.mxu1 %vm20993_vm4, %v17660_v47 }
0x16dc   : > { %v18169_v5 = vpop.permute.xlu0 %18168  ;;  %v18164_v6 = vpop.permute.xlu1 %18163 }
0x16dd   : > { %v18166_v9 = vunpack.i.h.bf16 %v18164_v6  ;;  %v18165_v13 = vunpack.i.l.bf16 %v18164_v6  ;;  %v18171_v55 = vunpack.i.h.bf16 %v18169_v5  ;;  %v18170_v17 = vunpack.i.l.bf16 %v18169_v5 }
0x16df   : > { %v17666_v53 = vpack.c.bf16 %v18166_v9, %v18165_v13  ;;  %v17672_v20 = vpack.c.bf16 %v18171_v55, %v18170_v17 }
0x16e0   : > { %v4590_v16 = vpop.permute.xlu1 %4589  ;;  %v4594_v61 = vpop.permute.xlu0 %4593 }
0x16e1   : > { %16958 = vmatmul.mubr.msk.f32.vlgmr.msra.gmra.mrb[46].mxu1 %vm4859_vm3, %v4586_v27 }
0x16e2   : > { %16960 = vmatprep.mubr.msk.f32.mxu1 %vm4859_vm3, %v4588_v0  ;;  %17665 = vmatpush3.bf16.xpose.msk.msra.mxu1 %vm20993_vm4, %v17660_v47 }
0x16e3   : > { %17668 = vmatprep.subr.msk.bf16.mxu1 %vm20993_vm4, %v17666_v53 }
0x16e4   : > { %v4596_v10 = vpop.permute.xlu0 %4595  ;;  %v4592_v40 = vpop.permute.xlu1 %4591 }
0x16e5   : > { %16961 = vmatmul.mubr.msk.f32.gmra.mrb[48].mxu1 %vm4859_vm3, %v4590_v16 }
0x16e6   : > { %16963 = vmatprep.mubr.msk.f32.mxu1 %vm4859_vm3, %v4592_v40 }
0x16e8   : > { %v18179_v2 = vpop.permute.xlu0 %18178  ;;  %v18174_v32 = vpop.permute.xlu1 %18173 }
0x16e9   : > { %v18181_v35 = vunpack.i.h.bf16 %v18179_v2  ;;  %v18180_v1 = vunpack.i.l.bf16 %v18179_v2  ;;  %v18176_v4 = vunpack.i.h.bf16 %v18174_v32  ;;  %v18175_v27 = vunpack.i.l.bf16 %v18174_v32  ;;  %16964 = vmatmul.mubr.msk.f32.gmra.mrb[50].mxu1 %vm4859_vm3, %v4594_v61 }
0x16ea   : > { %17671 = vmatpush3.bf16.xpose.msk.msra.mxu1 %vm20993_vm4, %v17666_v53  ;;  %16978 = vmatprep.mubr.msk.f32.mxu1 %vm4859_vm3, %v4596_v10 }
0x16eb   : > { %v17678_v14 = vpack.c.bf16 %v18176_v4, %v18175_v27  ;;  %17674 = vmatprep.subr.msk.bf16.mxu1 %vm20993_vm4, %v17672_v20  ;;  %v17684_v62 = vpack.c.bf16 %v18181_v35, %v18180_v1 }
0x16ec   : > { %v4602_v15 = vpop.permute.xlu0 %4601  ;;  %v4598_v52 = vpop.permute.xlu1 %4597 }
0x16ed   : > { %17680 = vmatprep.subr.msk.bf16.mxu0 %vm20993_vm4, %v17678_v14 }
0x16ee   : > { %17683 = vmatpush3.bf16.xpose.msk.msra.mxu0 %vm20993_vm4, %v17678_v14 }
0x16ef   : > { %17686 = vmatprep.subr.msk.bf16.mxu0 %vm20993_vm4, %v17684_v62 }
0x16f0   : > { %v4604_v7 = vpop.permute.xlu0 %4603  ;;  %v4600_v38 = vpop.permute.xlu1 %4599 }
0x16f2   : > { %17677 = vmatpush3.bf16.xpose.msk.msra.mxu1 %vm20993_vm4, %v17672_v20 }
0x16f3   : > { %17698 = vmatprep.subr.msk.bf16.mxu1 %vm20993_vm4, %v21007_v54 }
0x16f4   : > { %v4608_v0 = vpop.permute.xlu0 %4607  ;;  %v18184_v39 = vpop.permute.xlu1 %18183 }
0x16f5   : > { %v18186_v47 = vunpack.i.h.bf16 %v18184_v39  ;;  %v18185_v5 = vunpack.i.l.bf16 %v18184_v39  ;;  %16999 = vmatprep.mubr.msk.f32.mxu0 %vm4859_vm3, %v4608_v0 }
0x16f6   : > { %17689 = vmatpush3.bf16.xpose.msk.msra.mxu0 %vm20993_vm4, %v17684_v62 }
0x16f7   : > { %v17690_v6 = vpack.c.bf16 %v18186_v47, %v18185_v5 }
0x16f8   : > { %v4612_v9 = vpop.permute.xlu0 %4611  ;;  %v4606_v13 = vpop.permute.xlu1 %4605 }
0x16f9   : > { %16979 = vmatmul.mubr.msk.f32.vlgmr.msra.gmra.mrb[52].mxu1 %vm4859_vm3, %v4598_v52  ;;  %17692 = vmatprep.subr.msk.bf16.mxu0 %vm20993_vm4, %v17690_v6 }
0x16fa   : > { %16981 = vmatprep.mubr.msk.f32.mxu1 %vm4859_vm3, %v4600_v38  ;;  %17701 = vmatpush3.bf16.xpose.msk.msra.mxu1 %vm20993_vm4, %v21007_v54 }
0x16fb   : > { %17704 = vmatprep.subr.msk.bf16.mxu1 %vm20993_vm4, %v21020_v12 }
0x16fc   : > { %v4616_v16 = vpop.permute.xlu0 %4615  ;;  %v4610_v61 = vpop.permute.xlu1 %4609 }
0x16fd   : > { %16982 = vmatmul.mubr.msk.f32.gmra.mrb[54].mxu1 %vm4859_vm3, %v4602_v15 }
0x16fe   : > { %16984 = vmatprep.mubr.msk.f32.mxu1 %vm4859_vm3, %v4604_v7  ;;  %17695 = vmatpush3.bf16.xpose.msk.msra.mxu0 %vm20993_vm4, %v17690_v6 }
0x1700   : > { %v18189_v53 = vpop.permute.xlu0 %18188  ;;  %v4614_v55 = vpop.permute.xlu1 %4613 }
0x1701   : > { %v18191_v17 = vunpack.i.h.bf16 %v18189_v53  ;;  %v18190_v10 = vunpack.i.l.bf16 %v18189_v53  ;;  %16985 = vmatmul.mubr.msk.f32.gmra.mrb[56].mxu1 %vm4859_vm3, %v4606_v13 }
0x1702   : > { %17707 = vmatpush3.bf16.xpose.msk.msra.mxu1 %vm20993_vm4, %v21020_v12  ;;  %17020 = vmatprep.mubr.msk.f32.mxu1 %vm4859_vm3, %v21095_v34 }
0x1703   : > { %v17714_v54 = vpack.c.bf16 %v18191_v17, %v18190_v10  ;;  %17710 = vmatprep.subr.msk.bf16.mxu1 %vm20993_vm4, %v21036_v49 }
0x1704   : > { %v18199_v40 = vpop.permute.xlu0 %18198  ;;  %v4618_v20 = vpop.permute.xlu1 %4617 }
0x1705   : > { %17000 = vmatmul.mubr.msk.f32.vlgmr.msra.gmra.mrb[52].mxu0 %vm4859_vm3, %v4610_v61  ;;  %17716 = vmatprep.subr.msk.bf16.mxu0 %vm20993_vm4, %v17714_v54  ;;  %v18201_v12 = vunpack.i.h.bf16 %v18199_v40  ;;  %v18200_v2 = vunpack.i.l.bf16 %v18199_v40 }
0x1706   : > { %17002 = vmatprep.mubr.msk.f32.mxu0 %vm4859_vm3, %v4612_v9  ;;  %17719 = vmatpush3.bf16.xpose.msk.msra.mxu0 %vm20993_vm4, %v17714_v54 }
0x1707   : > { %v17726_v27 = vpack.c.bf16 %v18201_v12, %v18200_v2 }
0x1708   : > { %v4626_v34 = vpop.permute.xlu0 %4625  ;;  %v18194_v32 = vpop.permute.xlu1 %18193 }
0x1709   : > { %v18196_v35 = vunpack.i.h.bf16 %v18194_v32  ;;  %v18195_v1 = vunpack.i.l.bf16 %v18194_v32  ;;  %17003 = vmatmul.mubr.msk.f32.gmra.mrb[54].mxu0 %vm4859_vm3, %v4614_v55 }
0x170a   : > { %17005 = vmatprep.mubr.msk.f32.mxu0 %vm4859_vm3, %v4616_v16  ;;  %17713 = vmatpush3.bf16.xpose.msk.msra.mxu1 %vm20993_vm4, %v21036_v49 }
0x170b   : > { %v17720_v4 = vpack.c.bf16 %v18196_v35, %v18195_v1 }
0x170c   : > { %v18209_v14 = vpop.permute.xlu0 %18208  ;;  %v18204_v15 = vpop.permute.xlu1 %18203 }
0x170d   : > { %v18211_v52 = vunpack.i.h.bf16 %v18209_v14  ;;  %v18210_v62 = vunpack.i.l.bf16 %v18209_v14  ;;  %v18206_v7 = vunpack.i.h.bf16 %v18204_v15  ;;  %v18205_v38 = vunpack.i.l.bf16 %v18204_v15  ;;  %17006 = vmatmul.mubr.msk.f32.gmra.mrb[56].mxu0 %vm4859_vm3, %v4618_v20  ;;  %17722 = vmatprep.subr.msk.bf16.mxu0 %vm20993_vm4, %v17720_v4 }
0x170e   : > { %17725 = vmatpush3.bf16.xpose.msk.msra.mxu0 %vm20993_vm4, %v17720_v4  ;;  %17041 = vmatprep.mubr.msk.f32.mxu0 %vm4859_vm3, %v4626_v34 }
0x170f   : > { %v17732_v0 = vpack.c.bf16 %v18206_v7, %v18205_v38  ;;  %17728 = vmatprep.subr.msk.bf16.mxu0 %vm20993_vm4, %v17726_v27  ;;  %v17738_v47 = vpack.c.bf16 %v18211_v52, %v18210_v62 }
0x1710   : > { %v4632_v49 = vpop.permute.xlu0 %4631  ;;  %v4628_v39 = vpop.permute.xlu1 %4627 }
0x1711   : > { %17021 = vmatmul.mubr.msk.f32.vlgmr.msra.gmra.mrb[58].mxu1 %vm4859_vm3, %v21117_v33  ;;  %17734 = vmatprep.subr.msk.bf16.mxu1 %vm20993_vm4, %v17732_v0 }
0x1712   : > { %17023 = vmatprep.mubr.msk.f32.mxu1 %vm4859_vm3, %v21125_v58  ;;  %17737 = vmatpush3.bf16.xpose.msk.msra.mxu1 %vm20993_vm4, %v17732_v0 }
0x1713   : > { %17740 = vmatprep.subr.msk.bf16.mxu1 %vm20993_vm4, %v17738_v47 }
0x1714   : > { %v4634_v5 = vpop.permute.xlu0 %4633  ;;  %v4630_v6 = vpop.permute.xlu1 %4629 }
0x1715   : > { %17024 = vmatmul.mubr.msk.f32.gmra.mrb[60].mxu1 %vm4859_vm3, %v21119_v50 }
0x1716   : > { %17026 = vmatprep.mubr.msk.f32.mxu1 %vm4859_vm3, %v21127_v22  ;;  %17731 = vmatpush3.bf16.xpose.msk.msra.mxu0 %vm20993_vm4, %v17726_v27 }
0x1718   : > { %v18219_v33 = vpop.permute.xlu0 %18218  ;;  %v18214_v9 = vpop.permute.xlu1 %18213 }
0x1719   : > { %v18221_v58 = vunpack.i.h.bf16 %v18219_v33  ;;  %v18220_v13 = vunpack.i.l.bf16 %v18219_v33  ;;  %v18216_v16 = vunpack.i.h.bf16 %v18214_v9  ;;  %v18215_v61 = vunpack.i.l.bf16 %v18214_v9  ;;  %17027 = vmatmul.mubr.msk.f32.gmra.mrb[62].mxu1 %vm4859_vm3, %v21144_v3 }
0x171a   : > { %17743 = vmatpush3.bf16.xpose.msk.msra.mxu1 %vm20993_vm4, %v17738_v47 }
0x171b   : > { %v17750_v53 = vpack.c.bf16 %v18221_v58, %v18220_v13  ;;  %v17744_v50 = vpack.c.bf16 %v18216_v16, %v18215_v61 }
0x171c   : > { %v4640_v55 = vpop.permute.xlu0 %4639  ;;  %v4636_v17 = vpop.permute.xlu1 %4635 }
0x171d   : > { %17042 = vmatmul.mubr.msk.f32.vlgmr.msra.gmra.mrb[58].mxu0 %vm4859_vm3, %v4628_v39  ;;  %17746 = vmatprep.subr.msk.bf16.mxu1 %vm20993_vm4, %v17744_v50 }
0x171e   : > { %17752 = vmatprep.subr.msk.bf16.mxu0 %vm20993_vm4, %v17750_v53  ;;  %17044 = vmatprep.mubr.msk.f32.mxu0 %vm4859_vm3, %v4630_v6 }
0x171f   : > { %17755 = vmatpush3.bf16.xpose.msk.msra.mxu0 %vm20993_vm4, %v17750_v53 }
0x1720   : > { %v4642_v22 = vpop.permute.xlu0 %4641  ;;  %v4638_v3 = vpop.permute.xlu1 %4637 }
0x1721   : > { %17045 = vmatmul.mubr.msk.f32.gmra.mrb[60].mxu0 %vm4859_vm3, %v4632_v49  ;;  %17062 = vmatprep.mubr.msk.f32.mxu1 %vm4859_vm3, %v4638_v3 }
0x1722   : > { %17047 = vmatprep.mubr.msk.f32.mxu0 %vm4859_vm3, %v4634_v5  ;;  %17749 = vmatpush3.bf16.xpose.msk.msra.mxu1 %vm20993_vm4, %v17744_v50 }
0x1723   : > { %17769 = vmatprep.subr.bf16.mxu1 %v21086_v28 }
0x1724   : > { %v18229_v10 = vpop.permute.xlu0 %18228  ;;  %v18224_v54 = vpop.permute.xlu1 %18223 }
0x1725   : > { %v18231_v40 = vunpack.i.h.bf16 %v18229_v10  ;;  %v18230_v20 = vunpack.i.l.bf16 %v18229_v10  ;;  %v18226_v12 = vunpack.i.h.bf16 %v18224_v54  ;;  %v18225_v2 = vunpack.i.l.bf16 %v18224_v54  ;;  %17048 = vmatmul.mubr.msk.f32.gmra.mrb[62].mxu0 %vm4859_vm3, %v4636_v17 }
0x1727   : > { %v17756_v34 = vpack.c.bf16 %v18226_v12, %v18225_v2  ;;  %v17762_v1 = vpack.c.bf16 %v18231_v40, %v18230_v20 }
0x1728   : > { %v4648_v32 = vpop.permute.xlu0 %4647  ;;  %v4644_v35 = vpop.permute.xlu1 %4643 }
0x1729   : > { %17063 = vmatmul.mubr.msk.f32.vlgmr.msra.gmra.mrb[64].mxu1 %vm4859_vm3, %v4640_v55  ;;  %17758 = vmatprep.subr.msk.bf16.mxu0 %vm20993_vm4, %v17756_v34 }
0x172a   : > { %17065 = vmatprep.mubr.msk.f32.mxu1 %vm4859_vm3, %v4642_v22  ;;  %17761 = vmatpush3.bf16.xpose.msk.msra.mxu0 %vm20993_vm4, %v17756_v34 }
0x172b   : > { %17771 = vmatpush3.bf16.msra.mxu1 %v21086_v28  ;;  %17764 = vmatprep.subr.msk.bf16.mxu0 %vm20993_vm4, %v17762_v1 }
0x172c   : > { %17773 = vmatprep.subr.bf16.mxu1 %v21105_v57  ;;  %v4652_v4 = vpop.permute.xlu0 %4651  ;;  %v4646_v27 = vpop.permute.xlu1 %4645 }
0x172d   : > { %17066 = vmatmul.mubr.msk.f32.gmra.mrb[66].mxu1 %vm4859_vm3, %v4644_v35 }
0x172e   : > { %17068 = vmatprep.mubr.msk.f32.mxu1 %vm4859_vm3, %v4646_v27 }
0x172f   : > { %17775 = vmatpush3.bf16.msra.mxu1 %v21105_v57 }
0x1730   : > { %17778 = vmatprep.subr.msk.bf16.mxu1 %vm21327_vm7, %v21129_v24  ;;  %v4656_v28 = vpop.permute.xlu0 %4655  ;;  %v4650_v15 = vpop.permute.xlu1 %4649 }
0x1731   : > { %17069 = vmatmul.mubr.msk.f32.gmra.mrb[68].mxu1 %vm4859_vm3, %v4648_v32  ;;  %17083 = vmatprep.mubr.msk.f32.mxu0 %vm4859_vm3, %v4650_v15 }
0x1732   : > { %17767 = vmatpush3.bf16.xpose.msk.msra.mxu0 %vm20993_vm4, %v17762_v1 }
0x1733   : > { %17781 = vmatpush3.bf16.msk.msra.mxu1 %vm21327_vm7, %v21129_v24 }
0x1734   : > { %v4660_v52 = vpop.permute.xlu0 %4659  ;;  %v4654_v62 = vpop.permute.xlu1 %4653 }
0x1738   : > { %v18234_v57 = vpop.permute.xlu0 %18233  ;;  %v4658_v7 = vpop.permute.xlu1 %4657 }
0x1739   : > { %v18236_v38 = vunpack.i.h.bf16 %v18234_v57  ;;  %v18235_v0 = vunpack.i.l.bf16 %v18234_v57  ;;  %17084 = vmatmul.mubr.msk.f32.vlgmr.msra.gmra.mrb[64].mxu0 %vm4859_vm3, %v4652_v4 }
0x173a   : > { %17086 = vmatprep.mubr.msk.f32.mxu0 %vm4859_vm3, %v4654_v62 }
0x173b   : > { %v17782_v49 = vpack.c.bf16 %v18236_v38, %v18235_v0 }
0x173c   : > { %v18244_v39 = vpop.permute.xlu0 %18243 }
0x173d   : > { %v18239_v47 = vpop.permute.xlu1 %18238  ;;  %17087 = vmatmul.mubr.msk.f32.gmra.mrb[66].mxu0 %vm4859_vm3, %v4656_v28  ;;  %17783 = vmatprep.subr.bf16.mxu0 %v17782_v49  ;;  %v18246_v35 = vunpack.i.h.bf16 %v18244_v39  ;;  %v18245_v1 = vunpack.i.l.bf16 %v18244_v39 }
0x173e   : > { %v18241_v21 = vunpack.i.h.bf16 %v18239_v47  ;;  %v18240_v5 = vunpack.i.l.bf16 %v18239_v47  ;;  %v21346_v24 = vpop.f32.mrb[40].mxu1  ;;  %17089 = vmatprep.mubr.msk.f32.mxu0 %vm4859_vm3, %v4658_v7  ;;  %17785 = vmatpush3.bf16.msra.mxu0 %v17782_v49 }
0x173f   : > { %v21349_v6 = vpop.f32.mrb[41].mxu1  ;;  %v5816_v33 = vsel %vm5812_vm8, %v21346_v24, -inf  ;;  %v21381_v27 = vpack.c.bf16 %v18246_v35, %v18245_v1 }
0x1740   : > { %5817 = vmax.xlane.f32.xlu0 %v5816_v33  ;;  %v21353_v9 = vpop.permute.xlu0 %18268  ;;  %v5813_v58 = vsel %vm5812_vm8, %v21349_v6, -inf  ;;  %v21357_v13 = vpack.c.bf16 %v18241_v21, %v18240_v5 }
0x1741   : > { %23999 = vst [vmem:[#allocation48_spill] sm:$0xff] %v21353_v9  ;;  %5814 = vmax.xlane.f32.xlu1 %v5813_v58  ;;  %v21359_v16 = vpop.permute.xlu1 %18248  ;;  %17090 = vmatmul.mubr.msk.f32.gmra.mrb[68].mxu0 %vm4859_vm3, %v4660_v52  ;;  %24001 = vst [vmem:[#allocation50_spill] sm:$0xff] %v21381_v27 }
0x1742   : > { %24000 = vst [vmem:[#allocation49_spill] sm:$0xff] %v21359_v16  ;;  %v21362_v61 = vpop.f32.mrb[42].mxu1  ;;  %17797 = vmatprep.subr.bf16.mxu1 %v21357_v13 }
0x1743   : > { %v21365_v53 = vpop.f32.mrb[43].mxu1  ;;  %v5822_v50 = vsel %vm5812_vm8, %v21362_v61, -inf }
0x1744   : > { %v5819_v55 = vsel %vm5812_vm8, %v21365_v53, -inf  ;;  %v18274_v17 = vpop.permute.xlu0 %18273 }
0x1745   : > { %5820 = vmax.xlane.f32.xlu0 %v5819_v55  ;;  %5823 = vmax.xlane.f32.xlu1 %v5822_v50  ;;  %v18254_v22 = vpop.permute.xlu1 %18253  ;;  %v18276_v3 = vunpack.i.h.bf16 %v18274_v17  ;;  %v18275_v10 = vunpack.i.l.bf16 %v18274_v17 }
0x1746   : > { %v18256_v54 = vunpack.i.h.bf16 %v18254_v22  ;;  %v18255_v40 = vunpack.i.l.bf16 %v18254_v22  ;;  %v21371_v20 = vpop.f32.mrb[44].mxu1 }
0x1747   : > { %v21373_v12 = vpop.f32.mrb[45].mxu1  ;;  %v5829_v2 = vsel %vm5828_vm9, %v21371_v20, -inf  ;;  %v17790_v4 = vpack.c.bf16 %v18276_v3, %v18275_v10 }
0x1748   : > { %v5825_v34 = vsel %vm5812_vm8, %v21373_v12, -inf  ;;  %v17786_v32 = vpack.c.bf16 %v18256_v54, %v18255_v40  ;;  %v21430_v40 = vpop.permute.xlu0 %18278 }
0x1749   : > { %5830 = vmax.xlane.f32.xlu1 %v5829_v2  ;;  %5826 = vmax.xlane.f32.xlu0 %v5825_v34  ;;  %v21434_v34 = vpop.permute.xlu1 %18258 }
0x174a   : > { %17787 = vmatprep.subr.bf16.mxu0 %v17786_v32 }
0x174b   : > { %17789 = vmatpush3.bf16.msra.mxu0 %v17786_v32 }
0x174c   : > { %17792 = vmatprep.subr.msk.bf16.mxu0 %vm21327_vm7, %v17790_v4 }
0x174f   : > { %17795 = vmatpush3.bf16.msk.msra.mxu0 %vm21327_vm7, %v17790_v4 }
0x1750   : > { %17811 = vmatprep.subr.bf16.mxu0 %v21381_v27 }
0x17b4   : > { %v21386_v28 = vpop.f32.mrb[46].mxu1 }
0x17b5   : > { %v21388_v15 = vpop.f32.mrb[47].mxu1  ;;  %v5835_v52 = vsel %vm5812_vm8, %v21386_v28, -inf }
0x17b6   : > { %5836 = vmax.xlane.f32.xlu1 %v5835_v52  ;;  %v5832_v62 = vsel %vm5812_vm8, %v21388_v15, -inf  ;;  %v21444_v52 = vpop.permute.xlu0 %18283 }
0x17b7   : > { %5833 = vmax.xlane.f32.xlu0 %v5832_v62  ;;  %24002 = vst [vmem:[#allocation51_spill] sm:$0xff] %v21444_v52 }
0x17b8   : > { %v21394_v57 = vpop.f32.mrb[48].mxu1 }
0x17b9   : > { %v21396_v7 = vpop.f32.mrb[49].mxu1  ;;  %v5841_v10 = vsel %vm5812_vm8, %v21394_v57, -inf }
0x17ba   : > { %v5838_v54 = vsel %vm5812_vm8, %v21396_v7, -inf }
0x17bc   : > { %v21398_v38 = vpop.f32.mrb[50].mxu1 }
0x17bd   : > { %v21400_v0 = vpop.f32.mrb[51].mxu1 }
0x17be   : > { %v5844_v30 = vsel %vm5812_vm8, %v21400_v0, -inf }
0x17cc   : > { %v21402_v49 = vpop.f32.mrb[52].mxu1 }
0x17cd   : > { %v21404_v39 = vpop.f32.mrb[53].mxu1  ;;  %v5853_v31 = vsel %vm5812_vm8, %v21402_v49, -inf }
0x17d0   : > { %v21406_v47 = vpop.f32.mrb[54].mxu1 }
0x17d1   : > { %v21408_v21 = vpop.f32.mrb[55].mxu1 }
0x17d4   : > { %v21410_v5 = vpop.f32.mrb[56].mxu1 }
0x17d5   : > { %v21412_v33 = vpop.f32.mrb[57].mxu1 }
0x17d8   : > { %v21414_v58 = vpop.f32.mrb[52].mxu0 }
0x17d9   : > { %v21416_v50 = vpop.f32.mrb[53].mxu0  ;;  %v5871_v55 = vsel %vm5812_vm8, %v21414_v58, -inf }
0x17da   : > { %5872 = vmax.xlane.f32.xlu1 %v5871_v55  ;;  %v5868_v17 = vsel %vm5812_vm8, %v21416_v50, -inf  ;;  %v5847_v55 = vsel %vm5828_vm9, %v21398_v38, -inf }
0x17db   : > { %5869 = vmax.xlane.f32.xlu0 %v5868_v17 }
0x17dc   : > { %v21422_v22 = vpop.f32.mrb[54].mxu0 }
0x17dd   : > { %v21424_v3 = vpop.f32.mrb[55].mxu0  ;;  %v5877_v35 = vsel %vm5812_vm8, %v21422_v22, -inf }
0x17de   : > { %5842 = vmax.xlane.f32.xlu1 %v5841_v10  ;;  %v5874_v1 = vsel %vm5812_vm8, %v21424_v3, -inf  ;;  %v21452_v10 = vpop.permute.xlu1 %18263 }
0x17df   : > { %5839 = vmax.xlane.f32.xlu0 %v5838_v54  ;;  %24003 = vst [vmem:[#allocation52_spill] sm:$0xff] %v21452_v10 }
0x17e0   : > { %v21432_v2 = vpop.f32.mrb[56].mxu0 }
0x17e1   : > { %v21436_v32 = vpop.f32.mrb[57].mxu0  ;;  %v5883_v17 = vsel %vm5828_vm9, %v21432_v2, -inf }
0x17e2   : > { %5878 = vmax.xlane.f32.xlu1 %v5877_v35  ;;  %v5818_v35 = vpop.xlane.xlu0 %5817  ;;  %v5815_v8 = vpop.xlane.xlu1 %5814  ;;  %v5880_v56 = vsel %vm5812_vm8, %v21436_v32, -inf }
0x17e3   : > { %5875 = vmax.xlane.f32.xlu0 %v5874_v1  ;;  %v5958_v19 = vsub.f32 %v21349_v6, %v5815_v8  ;;  %v5850_v6 = vsel %vm5812_vm8, %v21404_v39, -inf }
0x17e4   : > { %v21442_v4 = vpop.f32.mrb[58].mxu1 }
0x17e5   : > { %v21446_v62 = vpop.f32.mrb[59].mxu1 }
0x17e6   : > { %5848 = vmax.xlane.f32.xlu1 %v5847_v55  ;;  %v5959_v55 = vsub.f32 %v21346_v24, %v5818_v35  ;;  %v6006_v35 = vmul.f32 1.442695, %v5958_v19  ;;  %v5821_v44 = vpop.xlane.xlu0 %5820  ;;  %v5886_v9 = vsel %vm5812_vm8, %v21446_v62, -inf }
0x17e7   : > { %5884 = vmax.xlane.f32.xlu0 %v5883_v17  ;;  %v5859_v17 = vsel %vm5812_vm8, %v21406_v47, -inf }
0x17e8   : > { %v21454_v54 = vpop.f32.mrb[60].mxu1 }
0x17e9   : > { %v21456_v1 = vpop.f32.mrb[61].mxu1 }
0x17ea   : > { %5854 = vmax.xlane.f32.xlu1 %v5853_v31  ;;  %v6008_v31 = vmul.f32 1.442695, %v5959_v55  ;;  %v5960_v55 = vsub.f32 %v21365_v53, %v5821_v44  ;;  %v5865_v44 = vsel %vm5828_vm9, %v21410_v5, -inf }
0x17eb   : > { %5845 = vmax.xlane.f32.xlu0 %v5844_v30  ;;  %v5824_v30 = vpop.xlane.xlu1 %5823 }
0x17ec   : > { %v21463_v23 = vpop.f32.mrb[62].mxu1  ;;  %19762 = vpow2.f32 %v6008_v31 }
0x17ed   : > { %v21465_v18 = vpop.f32.mrb[63].mxu1  ;;  %19764 = vpow2.f32 %v6006_v35 }
0x17ee   : > { %5860 = vmax.xlane.f32.xlu1 %v5859_v17  ;;  %v5961_v17 = vsub.f32 %v21362_v61, %v5824_v30 }
0x17ef   : > { %5881 = vmax.xlane.f32.xlu0 %v5880_v56  ;;  %v5831_v35 = vpop.xlane.xlu1 %5830 }
0x17f0   : > { %v21472_v59 = vpop.f32.mrb[58].mxu0  ;;  %v6012_v31 = vmul.f32 1.442695, %v5961_v17  ;;  %v5856_v17 = vsel %vm5812_vm8, %v21408_v21, -inf }
0x17f1   : > { %v21474_v11 = vpop.f32.mrb[59].mxu0  ;;  %v5907_v24 = vsel %vm5812_vm8, %v21472_v59, -inf }
0x17f2   : > { %19766 = vpow2.f32 %v6012_v31  ;;  %v5827_v31 = vpop.xlane.xlu0 %5826 }
0x17f3   : > { %5908 = vmax.xlane.f32.xlu0 %v5907_v24  ;;  %v5904_v24 = vsel %vm5812_vm8, %v21474_v11, -inf }
0x17f4   : > { %v21479_v46 = vpop.f32.mrb[60].mxu0 }
0x17f5   : > { %v21481_v56 = vpop.f32.mrb[61].mxu0  ;;  %v5913_v8 = vsel %vm5812_vm8, %v21479_v46, -inf }
0x17f6   : > { %5914 = vmax.xlane.f32.xlu1 %v5913_v8  ;;  %v5910_v30 = vsel %vm5812_vm8, %v21481_v56, -inf  ;;  %v6010_v8 = vmul.f32 1.442695, %v5960_v55  ;;  %v21502_v53 = vpop.eup %19762 }
0x17f7   : > { %5851 = vmax.xlane.f32.xlu0 %v5850_v6  ;;  %v6105_v48 = vsel %vm5812_vm8, %v21502_v53, 0.0  ;;  %v21513_v43 = vpop.eup %19764 }
0x17f8   : > { %v21488_v19 = vpop.f32.mrb[62].mxu0  ;;  %19768 = vpow2.f32 %v6010_v8  ;;  %v5962_v8 = vsub.f32 %v21373_v12, %v5827_v31 }
0x17f9   : > { %v21490_v61 = vpop.f32.mrb[63].mxu0 }
0x17fa   : > { %5911 = vmax.xlane.f32.xlu1 %v5910_v30  ;;  %v5963_v30 = vsub.f32 %v21371_v20, %v5831_v35  ;;  %v6102_v35 = vsel %vm5812_vm8, %v21513_v43, 0.0  ;;  %v6014_v26 = vmul.f32 1.442695, %v5962_v8  ;;  %v5916_v31 = vsel %vm5812_vm8, %v21490_v61, -inf }
0x17fb   : > { %5905 = vmax.xlane.f32.xlu0 %v5904_v24 }
0x17fc   : > { %v21496_v45 = vpop.f32.mrb[64].mxu1  ;;  %v6016_v41 = vmul.f32 1.442695, %v5963_v30  ;;  %v21524_v42 = vpop.eup %19766 }
0x17fd   : > { %v21498_v6 = vpop.f32.mrb[65].mxu1  ;;  %v6111_v30 = vsel %vm5812_vm8, %v21524_v42, 0.0 }
0x17fe   : > { %24004 = vst [vmem:[#allocation53_spill] sm:$0xff] %v21498_v6  ;;  %5866 = vmax.xlane.f32.xlu1 %v5865_v44  ;;  %v5919_v44 = vsel %vm5828_vm9, %v21488_v19, -inf  ;;  %19770 = vpow2.f32 %v6016_v41  ;;  %v5889_v41 = vsel %vm5812_vm8, %v21442_v4, -inf }
0x17ff   : > { %5857 = vmax.xlane.f32.xlu0 %v5856_v17  ;;  %19772 = vpow2.f32 %v6014_v26 }
0x1800   : > { %v21507_v55 = vpop.f32.mrb[66].mxu1 }
0x1801   : > { %24005 = vst [vmem:[#allocation54_spill] sm:$0xff] %v21507_v55  ;;  %v21509_v24 = vpop.f32.mrb[67].mxu1 }
0x1802   : > { %24006 = vst [vmem:[#allocation55_spill] sm:$0xff] %v21509_v24  ;;  %6106 = vadd.xlane.f32.xlu1 %v6105_v48  ;;  %v5862_v48 = vsel %vm5812_vm8, %v21412_v33, -inf  ;;  %v21530_v12 = vpop.eup %19768 }
0x1803   : > { %5920 = vmax.xlane.f32.xlu0 %v5919_v44 }
0x1804   : > { %v21518_v17 = vpop.f32.mrb[68].mxu1 }
0x1805   : > { %24007 = vst [vmem:[#allocation56_spill] sm:$0xff] %v21518_v17  ;;  %v21520_v20 = vpop.f32.mrb[69].mxu1 }
0x1806   : > { %24008 = vst [vmem:[#allocation57_spill] sm:$0xff] %v21520_v20  ;;  %6103 = vadd.xlane.f32.xlu1 %v6102_v35 }
0x1807   : > { %5863 = vmax.xlane.f32.xlu0 %v5862_v48  ;;  %v6108_v48 = vsel %vm5812_vm8, %v21530_v12, 0.0 }
0x1808   : > { %v21548_v26 = vpop.eup %19770 }
0x1809   : > { %v21558_v63 = vpop.eup %19772 }
0x180a   : > { %6112 = vadd.xlane.f32.xlu1 %v6111_v30 }
0x180b   : > { %5917 = vmax.xlane.f32.xlu0 %v5916_v31 }
0x180c   : > { %v21534_v44 = vpop.f32.mrb[64].mxu0 }
0x180d   : > { %v21536_v35 = vpop.f32.mrb[65].mxu0  ;;  %v5943_v25 = vsel %vm5812_vm8, %v21534_v44, -inf }
0x180e   : > { %6109 = vadd.xlane.f32.xlu1 %v6108_v48  ;;  %v5940_v31 = vsel %vm5812_vm8, %v21536_v35, -inf }
0x180f   : > { %5890 = vmax.xlane.f32.xlu0 %v5889_v41  ;;  %v6117_v41 = vsel %vm5828_vm9, %v21548_v26, 0.0 }
0x1810   : > { %v21542_v8 = vpop.f32.mrb[66].mxu0 }
0x1811   : > { %v21544_v30 = vpop.f32.mrb[67].mxu0  ;;  %v5949_v27 = vsel %vm5812_vm8, %v21542_v8, -inf }
0x1812   : > { %5941 = vmax.xlane.f32.xlu1 %v5940_v31  ;;  %v6114_v31 = vsel %vm5812_vm8, %v21558_v63, 0.0  ;;  %v5946_v16 = vsel %vm5812_vm8, %v21544_v30, -inf }
0x1813   : > { %5944 = vmax.xlane.f32.xlu0 %v5943_v25  ;;  %v5895_v25 = vsel %vm5812_vm8, %v21454_v54, -inf }
0x1814   : > { %v21552_v37 = vpop.f32.mrb[68].mxu0 }
0x1815   : > { %v21554_v48 = vpop.f32.mrb[69].mxu0 }
0x1816   : > { %24009 = vst [vmem:[#allocation58_spill] sm:$0xff] %v21554_v48  ;;  %6118 = vadd.xlane.f32.xlu1 %v6117_v41  ;;  %v5952_v41 = vsel %vm5812_vm8, %v21554_v48, -inf }
0x1817   : > { %5887 = vmax.xlane.f32.xlu0 %v5886_v9  ;;  %v5892_v9 = vsel %vm5812_vm8, %v21456_v1, -inf }
0x181a   : > { %6115 = vadd.xlane.f32.xlu1 %v6114_v31  ;;  %v5925_v31 = vsel %vm5812_vm8, %v21496_v45, -inf }
0x181b   : > { %5896 = vmax.xlane.f32.xlu0 %v5895_v25  ;;  %v5901_v25 = vsel %vm5828_vm9, %v21463_v23, -inf }
0x181e   : > { %5947 = vmax.xlane.f32.xlu1 %v5946_v16  ;;  %v5937_v16 = vsel %vm5828_vm9, %v21518_v17, -inf }
0x181f   : > { %5950 = vmax.xlane.f32.xlu0 %v5949_v27  ;;  %v5955_v27 = vsel %vm5828_vm9, %v21552_v37, -inf }
0x1822   : > { %5953 = vmax.xlane.f32.xlu1 %v5952_v41  ;;  %v5934_v41 = vsel %vm5812_vm8, %v21520_v20, -inf }
0x1823   : > { %5893 = vmax.xlane.f32.xlu0 %v5892_v9  ;;  %v5898_v9 = vsel %vm5812_vm8, %v21465_v18, -inf }
0x1826   : > { %5926 = vmax.xlane.f32.xlu1 %v5925_v31  ;;  %v5922_v31 = vsel %vm5812_vm8, %v21498_v6, -inf }
0x1827   : > { %5902 = vmax.xlane.f32.xlu0 %v5901_v25  ;;  %v5931_v25 = vsel %vm5812_vm8, %v21507_v55, -inf }
0x182a   : > { %5938 = vmax.xlane.f32.xlu1 %v5937_v16  ;;  %v5928_v16 = vsel %vm5812_vm8, %v21509_v24, -inf }
0x182b   : > { %5956 = vmax.xlane.f32.xlu0 %v5955_v27 }
0x182e   : > { %5935 = vmax.xlane.f32.xlu1 %v5934_v41 }
0x182f   : > { %5899 = vmax.xlane.f32.xlu0 %v5898_v9 }
0x1833   : > { %5923 = vmax.xlane.f32.xlu0 %v5922_v31 }
0x1837   : > { %5932 = vmax.xlane.f32.xlu0 %v5931_v25 }
0x183b   : > { %5929 = vmax.xlane.f32.xlu0 %v5928_v16 }
0x1843   : > { %v5837_v27 = vpop.xlane.xlu1 %5836 }
0x1844   : > { %v5965_v52 = vsub.f32 %v21386_v28, %v5837_v27  ;;  %v5834_v31 = vpop.xlane.xlu0 %5833 }
0x1845   : > { %v5964_v10 = vsub.f32 %v21388_v15, %v5834_v31 }
0x1846   : > { %v6020_v41 = vmul.f32 1.442695, %v5965_v52 }
0x1847   : > { %v6018_v24 = vmul.f32 1.442695, %v5964_v10 }
0x1848   : > { %19774 = vpow2.f32 %v6020_v41 }
0x1852   : > { %v21593_v20 = vpop.eup %19774 }
0x1853   : > { %v6123_v9 = vsel %vm5812_vm8, %v21593_v20, 0.0 }
0x1854   : > { %6124 = vadd.xlane.f32.xlu1 %v6123_v9 }
0x1867   : > { %v5873_v17 = vpop.xlane.xlu1 %5872 }
0x1868   : > { %v5977_v25 = vsub.f32 %v21414_v58, %v5873_v17  ;;  %v5870_v55 = vpop.xlane.xlu0 %5869 }
0x1869   : > { %v5976_v16 = vsub.f32 %v21416_v50, %v5870_v55 }
0x186a   : > { %v6044_v6 = vmul.f32 1.442695, %v5977_v25 }
0x186b   : > { %v6042_v28 = vmul.f32 1.442695, %v5976_v16  ;;  %v5843_v52 = vpop.xlane.xlu1 %5842 }
0x186c   : > { %19776 = vpow2.f32 %v6044_v6  ;;  %v5967_v27 = vsub.f32 %v21394_v57, %v5843_v52  ;;  %v5840_v41 = vpop.xlane.xlu0 %5839 }
0x186d   : > { %19778 = vpow2.f32 %v6042_v28  ;;  %v5966_v58 = vsub.f32 %v21396_v7, %v5840_v41 }
0x186e   : > { %19780 = vpow2.f32 %v6018_v24  ;;  %v6024_v9 = vmul.f32 1.442695, %v5967_v27 }
0x186f   : > { %v5879_v60 = vpop.xlane.xlu1 %5878  ;;  %v6022_v25 = vmul.f32 1.442695, %v5966_v58 }
0x1870   : > { %v5979_v15 = vsub.f32 %v21422_v22, %v5879_v60  ;;  %v5876_v31 = vpop.xlane.xlu0 %5875  ;;  %19782 = vpow2.f32 %v6024_v9 }
0x1871   : > { %v5978_v57 = vsub.f32 %v21424_v3, %v5876_v31 }
0x1872   : > { %v6048_v17 = vmul.f32 1.442695, %v5979_v15 }
0x1873   : > { %v5849_v50 = vpop.xlane.xlu1 %5848  ;;  %v6046_v52 = vmul.f32 1.442695, %v5978_v57 }
0x1874   : > { %v5885_v10 = vpop.xlane.xlu0 %5884  ;;  %19784 = vpow2.f32 %v6048_v17  ;;  %v5969_v3 = vsub.f32 %v21398_v38, %v5849_v50 }
0x1875   : > { %19786 = vpow2.f32 %v6022_v25  ;;  %v5981_v58 = vsub.f32 %v21432_v2, %v5885_v10 }
0x1876   : > { %v21603_v55 = vpop.eup %19776 }
0x1877   : > { %v21606_v6 = vpop.eup %19778  ;;  %v5855_v24 = vpop.xlane.xlu1 %5854  ;;  %v6159_v16 = vsel %vm5812_vm8, %v21603_v55, 0.0 }
0x1878   : > { %v21610_v60 = vpop.eup %19780  ;;  %v5971_v22 = vsub.f32 %v21402_v49, %v5855_v24  ;;  %v5846_v7 = vpop.xlane.xlu0 %5845  ;;  %6160 = vadd.xlane.f32.xlu1 %v6159_v16  ;;  %v6156_v28 = vsel %vm5812_vm8, %v21606_v6, 0.0  ;;  %v6028_v49 = vmul.f32 1.442695, %v5969_v3  ;;  %v6052_v24 = vmul.f32 1.442695, %v5981_v58 }
0x1879   : > { %6157 = vadd.xlane.f32.xlu0 %v6156_v28  ;;  %v6120_v41 = vsel %vm5812_vm8, %v21610_v60, 0.0  ;;  %v5968_v16 = vsub.f32 %v21400_v0, %v5846_v7 }
0x187a   : > { %v6032_v27 = vmul.f32 1.442695, %v5971_v22  ;;  %v21618_v9 = vpop.eup %19782 }
0x187b   : > { %v5861_v15 = vpop.xlane.xlu1 %5860  ;;  %v6129_v25 = vsel %vm5812_vm8, %v21618_v9, 0.0 }
0x187c   : > { %19788 = vpow2.f32 %v6032_v27  ;;  %v5882_v31 = vpop.xlane.xlu0 %5881  ;;  %6121 = vadd.xlane.f32.xlu1 %v6120_v41  ;;  %v5973_v17 = vsub.f32 %v21406_v47, %v5861_v15 }
0x187d   : > { %19790 = vpow2.f32 %v6046_v52  ;;  %v5980_v41 = vsub.f32 %v21436_v32, %v5882_v31 }
0x187e   : > { %v21624_v38 = vpop.eup %19784  ;;  %19792 = vpow2.f32 %v6028_v49  ;;  %v6036_v22 = vmul.f32 1.442695, %v5973_v17 }
0x187f   : > { %v6165_v2 = vsel %vm5812_vm8, %v21624_v38, 0.0  ;;  %v21630_v47 = vpop.eup %19786  ;;  %v6050_v32 = vmul.f32 1.442695, %v5980_v41 }
0x1880   : > { %v5909_v50 = vpop.xlane.xlu0 %5908  ;;  %6130 = vadd.xlane.f32.xlu1 %v6129_v25  ;;  %v6126_v49 = vsel %vm5812_vm8, %v21630_v47, 0.0 }
0x1881   : > { %v5989_v57 = vsub.f32 %v21472_v59, %v5909_v50  ;;  %v6026_v59 = vmul.f32 1.442695, %v5968_v16 }
0x1883   : > { %v6068_v28 = vmul.f32 1.442695, %v5989_v57  ;;  %v5915_v52 = vpop.xlane.xlu1 %5914 }
0x1884   : > { %v5991_v10 = vsub.f32 %v21479_v46, %v5915_v52  ;;  %v5852_v3 = vpop.xlane.xlu0 %5851  ;;  %6166 = vadd.xlane.f32.xlu1 %v6165_v2 }
0x1885   : > { %19794 = vpow2.f32 %v6068_v28  ;;  %v5970_v58 = vsub.f32 %v21404_v39, %v5852_v3 }
0x1886   : > { %v21633_v27 = vpop.eup %19788  ;;  %19796 = vpow2.f32 %v6052_v24  ;;  %v6072_v0 = vmul.f32 1.442695, %v5991_v10 }
0x1887   : > { %19798 = vpow2.f32 %v6036_v22  ;;  %v21636_v7 = vpop.xlane.xlu1 %5911  ;;  %v6141_v15 = vsel %vm5812_vm8, %v21633_v27, 0.0  ;;  %v21642_v46 = vpop.eup %19790  ;;  %v6030_v57 = vmul.f32 1.442695, %v5970_v58 }
0x1888   : > { %v21645_v17 = vpop.xlane.xlu0 %5905  ;;  %6142 = vadd.xlane.f32.xlu0 %v6141_v15  ;;  %6127 = vadd.xlane.f32.xlu1 %v6126_v49  ;;  %19800 = vpow2.f32 %v6026_v59  ;;  %v6162_v25 = vsel %vm5812_vm8, %v21642_v46, 0.0  ;;  %v21649_v50 = vpop.eup %19792 }
0x1889   : > { %19802 = vpow2.f32 %v6072_v0  ;;  %v6135_v10 = vsel %vm5828_vm9, %v21649_v50, 0.0 }
0x188a   : > { %19804 = vpow2.f32 %v6050_v32 }
0x188b   : > { %v5867_v31 = vpop.xlane.xlu1 %5866  ;;  %19806 = vpow2.f32 %v6030_v57 }
0x188c   : > { %v5975_v24 = vsub.f32 %v21410_v5, %v5867_v31  ;;  %v5858_v16 = vpop.xlane.xlu0 %5857  ;;  %6163 = vadd.xlane.f32.xlu1 %v6162_v25 }
0x188d   : > { %v5972_v39 = vsub.f32 %v21408_v21, %v5858_v16 }
0x188e   : > { %v6040_v22 = vmul.f32 1.442695, %v5975_v24 }
0x188f   : > { %v21653_v28 = vpop.eup %19794  ;;  %v6034_v52 = vmul.f32 1.442695, %v5972_v39  ;;  %v6107_v2 = vpop.xlane.xlu1 %6106 }
0x1890   : > { %24010 = vst [vmem:[#allocation59_spill] sm:$0xff] %v21653_v28  ;;  %v21657_v3 = vpop.eup %19796  ;;  %v5921_v59 = vpop.xlane.xlu0 %5920  ;;  %6136 = vadd.xlane.f32.xlu1 %v6135_v10  ;;  %v6195_v5 = vsel %vm5812_vm8, %v21653_v28, 0.0 }
0x1891   : > { %v21661_v41 = vpop.eup %19798  ;;  %19808 = vpow2.f32 %v6034_v52  ;;  %v5993_v21 = vsub.f32 %v21488_v19, %v5921_v59  ;;  %6196 = vadd.xlane.f32.xlu0 %v6195_v5  ;;  %v6171_v49 = vsel %vm5828_vm9, %v21657_v3, 0.0 }
0x1892   : > { %19810 = vpow2.f32 %v6040_v22  ;;  %v21666_v58 = vpop.eup %19800  ;;  %v6147_v31 = vsel %vm5812_vm8, %v21661_v41, 0.0 }
0x1893   : > { %19812 = vrcp.f32 %v6107_v2  ;;  %v6076_v0 = vmul.f32 1.442695, %v5993_v21  ;;  %v6104_v15 = vpop.xlane.xlu1 %6103  ;;  %v21670_v25 = vpop.eup %19802  ;;  %v6132_v16 = vsel %vm5812_vm8, %v21666_v58, 0.0 }
0x1894   : > { %19814 = vrcp.f32 %v6104_v15  ;;  %v5864_v32 = vpop.xlane.xlu0 %5863  ;;  %6172 = vadd.xlane.f32.xlu1 %v6171_v49  ;;  %24011 = vst [vmem:[#allocation60_spill] sm:$0xff] %v21670_v25  ;;  %v21675_v39 = vpop.eup %19804  ;;  %v6201_v52 = vsel %vm5812_vm8, %v21670_v25, 0.0 }
0x1895   : > { %v5974_v19 = vsub.f32 %v21412_v33, %v5864_v32  ;;  %6148 = vadd.xlane.f32.xlu0 %v6147_v31  ;;  %19816 = vpow2.f32 %v6076_v0  ;;  %24012 = vst [vmem:[#allocation61_spill] sm:$0xff] %v21675_v39  ;;  %v21681_v2 = vpop.eup %19806  ;;  %v6168_v59 = vsel %vm5812_vm8, %v21675_v39, 0.0  ;;  %v18261_v32 = vunpack.i.h.bf16 %v21434_v34 }
0x1896   : > { %v18260_v31 = vunpack.i.l.bf16 %v21434_v34 }
0x1897   : > { %v6038_v57 = vmul.f32 1.442695, %v5974_v19  ;;  %v6113_v24 = vpop.xlane.xlu1 %6112 }
0x1898   : > { %v21677_v22 = vpop.xlane.xlu0 %5917  ;;  %6133 = vadd.xlane.f32.xlu1 %v6132_v16  ;;  %19818 = vrcp.f32 %v6113_v24 }
0x1899   : > { %6202 = vadd.xlane.f32.xlu0 %v6201_v52  ;;  %19820 = vpow2.f32 %v6038_v57  ;;  %v6138_v57 = vsel %vm5812_vm8, %v21681_v2, 0.0 }
0x189b   : > { %v21683_v33 = vpop.eup %19808  ;;  %v6110_v10 = vpop.xlane.xlu1 %6109 }
0x189c   : > { %v21687_v5 = vpop.eup %19810  ;;  %19822 = vrcp.f32 %v6110_v10  ;;  %v21689_v21 = vpop.xlane.xlu0 %5890  ;;  %6169 = vadd.xlane.f32.xlu1 %v6168_v59  ;;  %v6144_v0 = vsel %vm5812_vm8, %v21683_v33, 0.0 }
0x189d   : > { %v19813_v15 = vpop.eup %19812  ;;  %6145 = vadd.xlane.f32.xlu0 %v6144_v0  ;;  %v6153_v34 = vsel %vm5828_vm9, %v21687_v5, 0.0 }
0x189e   : > { %v19815_v49 = vpop.eup %19814  ;;  %v21703_v16 = vmul.f32 %v19813_v15, %v21502_v53  ;;  %v18280_v53 = vunpack.i.l.bf16 %v21430_v40  ;;  %v17800_v15 = vpack.c.bf16 %v18261_v32, %v18260_v31 }
0x189f   : > { %v21695_v19 = vpop.xlane.xlu1 %5941  ;;  %v21700_v24 = vmul.f32 %v19815_v49, %v21513_v43  ;;  %v21711_v59 = vpop.eup %19816  ;;  %v18281_v43 = vunpack.i.h.bf16 %v21430_v40 }
0x18a0   : > { %v21707_v10 = vpop.xlane.xlu0 %5944  ;;  %6139 = vadd.xlane.f32.xlu1 %v6138_v57  ;;  %24013 = vst [vmem:[#allocation62_spill] sm:$0xff] %v21711_v59  ;;  %v6207_v0 = vsel %vm5828_vm9, %v21711_v59, 0.0  ;;  %v5992_v59 = vsub.f32 %v21490_v61, %v21677_v22 }
0x18a1   : > { %17104 = vmatprep.mubr.msk.f32.mxu1 %vm5812_vm8, %v21700_v24  ;;  %6154 = vadd.xlane.f32.xlu0 %v6153_v34  ;;  %v17804_v28 = vpack.c.bf16 %v18281_v43, %v18280_v53 }
0x18a2   : > { %17105 = vmatmul.mubr.msk.f32.vlgmr.msra.gmra.mrb[70].mxu1 %vm5812_vm8, %v21703_v16  ;;  %v19819_v57 = vpop.eup %19818 }
0x18a3   : > { %17799 = vmatpush3.bf16.msra.mxu1 %v21357_v13  ;;  %v6119_v49 = vpop.xlane.xlu1 %6118  ;;  %v21724_v25 = vpop.eup %19820  ;;  %v21734_v31 = vmul.f32 %v19819_v57, %v21524_v42 }
0x18a4   : > { %17801 = vmatprep.subr.bf16.mxu1 %v17800_v15  ;;  %v5888_v52 = vpop.xlane.xlu0 %5887  ;;  %19824 = vrcp.f32 %v6119_v49  ;;  %v6150_v32 = vsel %vm5812_vm8, %v21724_v25, 0.0 }
0x18a5   : > { %6208 = vadd.xlane.f32.xlu0 %v6207_v0  ;;  %v5988_v0 = vsub.f32 %v21474_v11, %v21645_v17  ;;  %v6074_v17 = vmul.f32 1.442695, %v5992_v59  ;;  %v5982_v48 = vsub.f32 %v21446_v62, %v5888_v52 }
0x18a6   : > { %v19823_v34 = vpop.eup %19822 }
0x18a7   : > { %17803 = vmatpush3.bf16.msra.mxu1 %v17800_v15  ;;  %v6116_v40 = vpop.xlane.xlu1 %6115  ;;  %v21727_v39 = vmul.f32 %v19823_v34, %v21530_v12 }
0x18a8   : > { %17806 = vmatprep.subr.msk.bf16.mxu1 %vm21327_vm7, %v17804_v28  ;;  %19826 = vrcp.f32 %v6116_v40  ;;  %v5897_v13 = vpop.xlane.xlu0 %5896 }
0x18a9   : > { %17107 = vmatprep.mubr.msk.f32.mxu1 %vm5812_vm8, %v21727_v39  ;;  %6151 = vadd.xlane.f32.xlu0 %v6150_v32 }
0x18aa   : > { %17108 = vmatmul.mubr.msk.f32.gmra.mrb[72].mxu1 %vm5812_vm8, %v21734_v31 }
0x18ab   : > { %17809 = vmatpush3.bf16.msk.msra.mxu1 %vm21327_vm7, %v17804_v28  ;;  %v21742_v12 = vpop.xlane.xlu1 %5947 }
0x18ac   : > { %17825 = vmatprep.subr.bf16.mxu1 %v21090_v29  ;;  %v21747_v43 = vpop.xlane.xlu0 %5950 }
0x18ae   : > { %v19825_v57 = vpop.eup %19824 }
0x18af   : > { %v21751_v53 = vpop.xlane.xlu1 %5953  ;;  %v21761_v32 = vmul.f32 %v19825_v57, %v21548_v26  ;;  %v6066_v26 = vmul.f32 1.442695, %v5988_v0 }
0x18b0   : > { %24014 = vst [vmem:[#allocation63_spill] sm:$0xff] %v21751_v53  ;;  %v5894_v49 = vpop.xlane.xlu0 %5893 }
0x18b1   : > { %18288 = vrot.lane.b32.xlu1 %v21131_v51, %s20076_s12  ;;  %19828 = vpow2.f32 %v6066_v26  ;;  %v5984_v22 = vsub.f32 %v21456_v1, %v5894_v49  ;;  %s24062_s12 = sld [smem:[#allocation17_spill]] }
0x18b2   : > { %v19827_v28 = vpop.eup %19826 }
0x18b3   : > { %v21758_v34 = vmul.f32 %v19827_v28, %v21558_v63  ;;  %v5990_v63 = vsub.f32 %v21481_v56, %v21636_v7  ;;  %v5983_v28 = vsub.f32 %v21442_v4, %v21689_v21  ;;  %v6054_v56 = vmul.f32 1.442695, %v5982_v48  ;;  %v5927_v4 = vpop.xlane.xlu1 %5926 }
0x18b4   : > { %v5903_v40 = vpop.xlane.xlu0 %5902  ;;  %v5985_v7 = vsub.f32 %v21454_v54, %v5897_v13  ;;  %v6058_v48 = vmul.f32 1.442695, %v5984_v22  ;;  %v5995_v1 = vsub.f32 %v21496_v45, %v5927_v4 }
0x18b5   : > { %17110 = vmatprep.mubr.msk.f32.mxu1 %vm5812_vm8, %v21758_v34  ;;  %v6070_v57 = vmul.f32 1.442695, %v5990_v63  ;;  %v6056_v42 = vmul.f32 1.442695, %v5983_v28  ;;  %v5987_v54 = vsub.f32 %v21463_v23, %v5903_v40 }
0x18b6   : > { %17111 = vmatmul.mubr.msk.f32.gmra.mrb[74].mxu1 %vm5812_vm8, %v21761_v32  ;;  %v6060_v61 = vmul.f32 1.442695, %v5985_v7  ;;  %v6080_v63 = vmul.f32 1.442695, %v5995_v1 }
0x18b7   : > { %19830 = vpow2.f32 %v6070_v57  ;;  %v21791_v62 = vpop.xlane.xlu1 %5938 }
0x18b8   : > { %v21767_v15 = vpop.xlane.xlu0 %5956  ;;  %19832 = vpow2.f32 %v6056_v42  ;;  %v6064_v42 = vmul.f32 1.442695, %v5987_v54 }
0x18b9   : > { %24015 = vst [vmem:[#allocation64_spill] sm:$0xff] %v21767_v15  ;;  %19834 = vpow2.f32 %v6074_v17 }
0x18bb   : > { %v21784_v0 = vpop.eup %19828  ;;  %v21805_v49 = vpop.xlane.xlu1 %5935 }
0x18bc   : > { %v5900_v53 = vpop.xlane.xlu0 %5899 }
0x18bd   : > { %v5986_v11 = vsub.f32 %v21465_v18, %v5900_v53  ;;  %v6192_v18 = vsel %vm5812_vm8, %v21784_v0, 0.0 }
0x18bf   : > { %18293 = vrot.lane.b32.xlu0 %v21088_v36, %s20075_s18  ;;  %v6062_v15 = vmul.f32 1.442695, %v5986_v11 }
0x18c1   : > { %19836 = vpow2.f32 %v6062_v15  ;;  %v21789_v21 = vpop.eup %19830 }
0x18c2   : > { %19838 = vpow2.f32 %v6054_v56  ;;  %v6198_v52 = vsel %vm5812_vm8, %v21789_v21, 0.0  ;;  %v21796_v59 = vpop.eup %19832 }
0x18c3   : > { %19840 = vpow2.f32 %v6060_v61  ;;  %v21798_v13 = vpop.eup %19834  ;;  %v6177_v53 = vsel %vm5812_vm8, %v21796_v59, 0.0 }
0x18c4   : > { %19842 = vpow2.f32 %v6058_v48  ;;  %v6204_v23 = vsel %vm5812_vm8, %v21798_v13, 0.0  ;;  %v6357_v48 = vsel %vm5812_vm8, %v21703_v16, 0.0 }
0x18c5   : > { %19844 = vpow2.f32 %v6064_v42  ;;  %v24018_v42 = vld [vmem:[#allocation45_spill] sm:$0xff] }
0x18cb   : > { %v21803_v15 = vpop.eup %19836 }
0x18cc   : > { %v21809_v40 = vpop.eup %19838  ;;  %v6186_v45 = vsel %vm5812_vm8, %v21803_v15, 0.0 }
0x18cd   : > { %v6174_v57 = vsel %vm5812_vm8, %v21809_v40, 0.0  ;;  %v21815_v28 = vpop.eup %19840 }
0x18ce   : > { %v6183_v11 = vsel %vm5812_vm8, %v21815_v28, 0.0  ;;  %v21819_v17 = vpop.eup %19842 }
0x18cf   : > { %v6180_v56 = vsel %vm5812_vm8, %v21819_v17, 0.0  ;;  %v21823_v7 = vpop.eup %19844 }
0x18d0   : > { %24016 = vst [vmem:[#allocation65_spill] sm:$0xff] %v21823_v7  ;;  %v6189_v22 = vsel %vm5828_vm9, %v21823_v7, 0.0  ;;  %v24027_v7 = vld [vmem:[#allocation51_spill] sm:$0xff] }
0x18d5   : > { %6193 = vadd.xlane.f32.xlu1 %v6192_v18 }
0x18d9   : > { %6199 = vadd.xlane.f32.xlu1 %v6198_v52 }
0x18dd   : > { %6178 = vadd.xlane.f32.xlu1 %v6177_v53 }
0x18de   : > { %6205 = vadd.xlane.f32.xlu0 %v6204_v23  ;;  %v24019_v23 = vsub.f32 %v21534_v44, %v21707_v10  ;;  %v24023_v10 = vld [vmem:[#allocation56_spill] sm:$0xff] }
0x18e1   : > { %6187 = vadd.xlane.f32.xlu1 %v6186_v45  ;;  %v6125_v26 = vpop.xlane.xlu1 %6124  ;;  %v24020_v45 = vld [vmem:[#allocation53_spill] sm:$0xff] }
0x18e2   : > { %19846 = vrcp.f32 %v6125_v26  ;;  %6175 = vadd.xlane.f32.xlu0 %v6174_v57 }
0x18e3   : > { %19848 = vpow2.f32 %v6080_v63  ;;  %v6092_v63 = vmul.f32 1.442695, %v24019_v23 }
0x18e5   : > { %19850 = vpow2.f32 %v6092_v63 }
0x18e6   : > { %6184 = vadd.xlane.f32.xlu0 %v6183_v11  ;;  %v24021_v11 = vld [vmem:[#allocation54_spill] sm:$0xff] }
0x18ea   : > { %6181 = vadd.xlane.f32.xlu0 %v6180_v56 }
0x18ec   : > { %v19847_v4 = vpop.eup %19846 }
0x18ed   : > { %v6301_v61 = vmul.f32 %v19847_v4, %v21593_v20  ;;  %v21828_v18 = vpop.eup %19848  ;;  %v5924_v20 = vpop.xlane.xlu0 %5923 }
0x18ee   : > { %24017 = vst [vmem:[#allocation66_spill] sm:$0xff] %v21828_v18  ;;  %6190 = vadd.xlane.f32.xlu0 %v6189_v22  ;;  %v6213_v1 = vsel %vm5812_vm8, %v21828_v18, 0.0  ;;  %v5994_v26 = vsub.f32 %v24020_v45, %v5924_v20  ;;  %v5999_v20 = vsub.f32 %v24023_v10, %v21791_v62  ;;  %v24024_v45 = vld [vmem:[#allocation52_spill] sm:$0xff]  ;;  %v24026_v62 = vsub.f32 %v21536_v35, %v21695_v19 }
0x18ef   : > { %v6358_v54 = vsel %vm5812_vm8, %v6301_v61, 0.0  ;;  %v21851_v63 = vpop.eup %19850 }
0x18f0   : > { %v21833_v52 = vadd.f32 %v6358_v54, %v6357_v48  ;;  %v6078_v57 = vmul.f32 1.442695, %v5994_v26  ;;  %v24022_v48 = vld [vmem:[#allocation55_spill] sm:$0xff]  ;;  %v18266_v26 = vunpack.i.h.bf16 %v24024_v45 }
0x18f1   : > { %v5933_v53 = vpop.xlane.xlu0 %5932 }
0x18f2   : > { %6214 = vadd.xlane.f32.xlu0 %v6213_v1  ;;  %18298 = vrot.lane.b32.xlu1 %v24018_v42, %s20075_s18  ;;  %v5997_v56 = vsub.f32 %v24021_v11, %v5933_v53 }
0x18f4   : > { %v6084_v1 = vmul.f32 1.442695, %v5997_v56  ;;  %v24025_v56 = vld [vmem:[#allocation57_spill] sm:$0xff] }
0x18f5   : > { %v5930_v4 = vpop.xlane.xlu0 %5929 }
0x18f6   : > { %v5996_v54 = vsub.f32 %v24022_v48, %v5930_v4  ;;  %v18265_v4 = vunpack.i.l.bf16 %v24024_v45  ;;  %v18286_v45 = vunpack.i.h.bf16 %v24027_v7 }
0x18f8   : > { %v6082_v44 = vmul.f32 1.442695, %v5996_v54 }
0x1905   : > { %v6161_v16 = vpop.xlane.xlu1 %6160 }
0x1906   : > { %v21849_v23 = vpop.xlane.xlu0 %6157 }
0x1908   : > { %18303 = vrot.lane.b32.xlu0 %v21131_v51, %s20075_s18  ;;  %s18065_s18 = smul.u32 48, %s20341_s28 }
0x1909   : > { %v6122_v22 = vpop.xlane.xlu1 %6121 }
0x190a   : > { %19852 = vrcp.f32 %v6122_v22  ;;  %v6090_v22 = vmul.f32 1.442695, %v24026_v62  ;;  %s22153_s2 = scalar_lea.vmem %s24046_s4, %s18065_s18  ;;  %s24064_s18 = sld [smem:[#allocation20_spill]] }
0x190b   : > { %19854 = vpow2.f32 %v6078_v57  ;;  %v6088_v57 = vmul.f32 1.442695, %v5999_v20  ;;  %s916_s4 = sand.u32 1, %s20034_s10  }
0x190c   : > { %s917_s5 = scalar_lea.vmem [#allocation7], %s916_s4  ;;  %s15245_s13 = scalar_lea.sflag [#allocation8], %s916_s4 }
0x190d   : > { %v6131_v18 = vpop.xlane.xlu1 %6130  ;;  %s15265_s8 = sshll.u32 %s917_s5, 4  ;;  %s15266_s8 = int_to_ptr.vmem [resolvable:$true] %s15265_s8 }
0x190e   : > { %19856 = vrcp.f32 %v6131_v18  ;;  %v5998_v18 = vsub.f32 %v24025_v56, %v21805_v49  ;;  %v18285_v49 = vunpack.i.l.bf16 %v24027_v7  ;;  %v24028_v56 = vld [vmem:[#allocation50_spill] sm:$0xff]  ;;  %s19980_s14 = scalar_lea.vmem %s15266_s8, 16 }
0x190f   : > { %19858 = vpow2.f32 %v6084_v1  ;;  %v6231_v1 = vsel %vm5812_vm8, %v21851_v63, 0.0  ;;  %p19981_p11 = scmp.ne.s32.totalorder %s15266_s8, %s19980_s14 }
0x1910   : > { %19860 = vpow2.f32 %v6082_v44  ;;  %v6086_v20 = vmul.f32 1.442695, %v5998_v18 }
0x1911   : > { %v6167_v53 = vpop.xlane.xlu1 %6166  ;;  %19862 = vrcp.f32 %v6161_v16  ;;  %v6342_v16 = vsel %vm5812_vm8, %v21700_v24, 0.0  ;;  %p19982_p12 = pnand %p19981_p11, %p20273_p5 }
0x1913   : > { %p19983_p13 = pneg %p19982_p12 }
0x1914   : > { %v19853_v11 = vpop.eup %19852 }
0x1915   : > { %v6143_v48 = vpop.xlane.xlu0 %6142  ;;  %v6128_v54 = vpop.xlane.xlu1 %6127  ;;  %v6300_v10 = vmul.f32 %v19853_v11, %v21610_v60  ;;  %v17814_v11 = vpack.c.bf16 %v18266_v26, %v18265_v4  ;;  %v17818_v4 = vpack.c.bf16 %v18286_v45, %v18285_v49 }
0x1916   : > { %v21863_v44 = vpop.eup %19854  ;;  %19864 = vrcp.f32 %v6143_v48  ;;  %6232 = vadd.xlane.f32.xlu1 %v6231_v1 }
0x1917   : > { %19866 = vrcp.f32 %v6128_v54  ;;  %v6343_v35 = vsel %vm5812_vm8, %v6300_v10, 0.0  ;;  %17125 = vmatprep.mubr.msk.f32.mxu0 %vm5812_vm8, %v6300_v10  ;;  %v6210_v24 = vsel %vm5812_vm8, %v21863_v44, 0.0  ;;  %v6387_v54 = vsel %vm5812_vm8, %v21734_v31, 0.0 }
0x1918   : > { %v19857_v19 = vpop.eup %19856  ;;  %19868 = vpow2.f32 %v6088_v57  ;;  %v21871_v60 = vadd.f32 %v6343_v35, %v6342_v16  ;;  %17126 = vmatmul.mubr.msk.f32.vlgmr.msra.gmra.mrb[70].mxu0 %vm5812_vm8, %v6301_v61  ;;  %v24029_v57 = vld [vmem:[#allocation49_spill] sm:$0xff] }
0x1919   : > { %19870 = vpow2.f32 %v6090_v22  ;;  %17813 = vmatpush3.bf16.msra.mxu0 %v24028_v56  ;;  %v6164_v7 = vpop.xlane.xlu1 %6163  ;;  %v6303_v62 = vmul.f32 %v19857_v19, %v21618_v9  ;;  %v21878_v48 = vpop.eup %19858  ;;  %v18251_v18 = vunpack.i.h.bf16 %v24029_v57  ;;  %v18250_v26 = vunpack.i.l.bf16 %v24029_v57 }
0x191a   : > { %17815 = vmatprep.subr.bf16.mxu0 %v17814_v11  ;;  %6211 = vadd.xlane.f32.xlu1 %v6210_v24  ;;  %19872 = vpow2.f32 %v6086_v20  ;;  %v21887_v1 = vpop.eup %19860  ;;  %v6219_v10 = vsel %vm5812_vm8, %v21878_v48, 0.0 }
0x191b   : > { %v6388_v61 = vsel %vm5812_vm8, %v6303_v62, 0.0  ;;  %v19863_v16 = vpop.eup %19862  ;;  %v21895_v45 = vpack.c.bf16 %v18251_v18, %v18250_v26  ;;  %v6216_v56 = vsel %vm5812_vm8, %v21887_v1, 0.0 }
0x191c   : > { %v21885_v22 = vadd.f32 %v6388_v61, %v6387_v54  ;;  %v21898_v19 = vmul.f32 %v19863_v16, %v21603_v55 }
0x191d   : > { %17817 = vmatpush3.bf16.msra.mxu0 %v17814_v11  ;;  %v6137_v9 = vpop.xlane.xlu1 %6136 }
0x191e   : > { %17820 = vmatprep.subr.msk.bf16.mxu0 %vm21327_vm7, %v17818_v4  ;;  %19874 = vrcp.f32 %v6137_v9  ;;  %v21893_v31 = vpop.xlane.xlu0 %6196  ;;  %6220 = vadd.xlane.f32.xlu1 %v6219_v10  ;;  %v6362_v26 = vsel %vm5812_vm8, %v21898_v19, 0.0 }
0x191f   : > { %19876 = vrcp.f32 %v6167_v53  ;;  %v6372_v53 = vsel %vm5812_vm8, %v21727_v39, 0.0 }
0x1920   : > { %v19865_v35 = vpop.eup %19864 }
0x1921   : > { %v19867_v49 = vpop.eup %19866  ;;  %v21901_v20 = vmul.f32 %v19865_v35, %v21633_v27  ;;  %17823 = vmatpush3.bf16.msk.msra.mxu0 %vm21327_vm7, %v17818_v4  ;;  %v6173_v11 = vpop.xlane.xlu1 %6172 }
0x1922   : > { %v21907_v24 = vpop.eup %19868  ;;  %17839 = vmatprep.subr.bf16.mxu0 %v21895_v45  ;;  %v6149_v57 = vpop.xlane.xlu0 %6148  ;;  %6217 = vadd.xlane.f32.xlu1 %v6216_v56  ;;  %v6302_v55 = vmul.f32 %v19867_v49, %v21630_v47 }
0x1923   : > { %v21911_v18 = vpop.eup %19870  ;;  %v6360_v27 = vsel %vm5812_vm8, %v21901_v20, 0.0  ;;  %19878 = vrcp.f32 %v6149_v57  ;;  %v6225_v9 = vsel %vm5828_vm9, %v21907_v24, 0.0 }
0x1924   : > { %v6361_v54 = vadd.f32 %v6360_v27, %v21833_v52  ;;  %v6373_v61 = vsel %vm5812_vm8, %v6302_v55, 0.0  ;;  %17128 = vmatprep.mubr.msk.f32.mxu0 %vm5812_vm8, %v6302_v55  ;;  %19880 = vrcp.f32 %v21849_v23  ;;  %v21928_v39 = vpop.eup %19872  ;;  %v6228_v10 = vsel %vm5812_vm8, %v21911_v18, 0.0 }
0x1925   : > { %v21923_v47 = vadd.f32 %v6373_v61, %v6372_v53  ;;  %17129 = vmatmul.mubr.msk.f32.gmra.mrb[72].mxu0 %vm5812_vm8, %v6303_v62  ;;  %v6134_v4 = vpop.xlane.xlu1 %6133  ;;  %v6222_v62 = vsel %vm5812_vm8, %v21928_v39, 0.0  ;;  %v6417_v55 = vsel %vm5828_vm9, %v21761_v32, 0.0 }
0x1926   : > { %19882 = vrcp.f32 %v6134_v4  ;;  %v21930_v52 = vpop.xlane.xlu0 %6202  ;;  %6226 = vadd.xlane.f32.xlu1 %v6225_v9  ;;  %v21934_v16 = vadd.f32 %v6362_v26, %v6361_v54 }
0x1927   : > { %6229 = vadd.xlane.f32.xlu0 %v6228_v10  ;;  %19884 = vrcp.f32 %v6164_v7 }
0x1928   : > { %v19875_v23 = vpop.eup %19874 }
0x1929   : > { %v6170_v35 = vpop.xlane.xlu1 %6169  ;;  %v6305_v49 = vmul.f32 %v19875_v23, %v21649_v50  ;;  %v19877_v57 = vpop.eup %19876 }
0x192a   : > { %v6146_v56 = vpop.xlane.xlu0 %6145  ;;  %6223 = vadd.xlane.f32.xlu1 %v6222_v62  ;;  %v6315_v26 = vmul.f32 %v19877_v57, %v21624_v38  ;;  %v6402_v38 = vsel %vm5812_vm8, %v21758_v34, 0.0 }
0x192b   : > { %19886 = vrcp.f32 %v6146_v56  ;;  %v6418_v27 = vsel %vm5828_vm9, %v6305_v49, 0.0 }
0x192c   : > { %v21942_v53 = vadd.f32 %v6418_v27, %v6417_v55  ;;  %19888 = vrcp.f32 %v6173_v11  ;;  %v6392_v56 = vsel %vm5812_vm8, %v6315_v26, 0.0  ;;  %v24030_v55 = vld [vmem:[#allocation48_spill] sm:$0xff] }
0x192d   : > { %v19879_v54 = vpop.eup %19878  ;;  %v6140_v7 = vpop.xlane.xlu1 %6139 }
0x192e   : > { %19890 = vrcp.f32 %v6140_v7  ;;  %v6155_v61 = vpop.xlane.xlu0 %6154  ;;  %v21946_v50 = vmul.f32 %v19879_v54, %v21661_v41  ;;  %v19881_v4 = vpop.eup %19880 }
0x192f   : > { %19892 = vrcp.f32 %v6155_v61 }
0x1930   : > { %v19883_v9 = vpop.eup %19882  ;;  %19894 = vrcp.f32 %v6170_v35  ;;  %v6390_v32 = vsel %vm5812_vm8, %v21946_v50, 0.0  ;;  %v6312_v35 = vmul.f32 %v19881_v4, %v21606_v6 }
0x1931   : > { %v6304_v10 = vmul.f32 %v19883_v9, %v21666_v58  ;;  %v6391_v23 = vadd.f32 %v6390_v32, %v21885_v22  ;;  %v19885_v11 = vpop.eup %19884  ;;  %v18271_v58 = vunpack.i.h.bf16 %v24030_v55  ;;  %v18270_v22 = vunpack.i.l.bf16 %v24030_v55  ;;  %v18289_v32 = vpop.permute.xlu1 %18288 }
0x1932   : > { %v21952_v62 = vpop.xlane.xlu0 %6208  ;;  %v6314_v34 = vmul.f32 %v19885_v11, %v21642_v46 }
0x1933   : > { %v6403_v41 = vsel %vm5812_vm8, %v6304_v10, 0.0  ;;  %17131 = vmatprep.mubr.msk.f32.mxu0 %vm5812_vm8, %v6304_v10  ;;  %v21960_v57 = vadd.f32 %v6392_v56, %v6391_v23  ;;  %v17842_v4 = vpack.c.bf16 %v18271_v58, %v18270_v22  ;;  %v18291_v56 = vunpack.i.h.bf16 %v18289_v32 }
0x1934   : > { %v6404_v27 = vadd.f32 %v6403_v41, %v6402_v38  ;;  %17132 = vmatmul.mubr.msk.f32.gmra.mrb[74].mxu0 %vm5812_vm8, %v6305_v49  ;;  %v6377_v49 = vsel %vm5812_vm8, %v6314_v34, 0.0  ;;  %v18290_v38 = vunpack.i.l.bf16 %v18289_v32 }
0x1935   : > { %v19887_v54 = vpop.eup %19886  ;;  %17167 = vmatprep.mubr.msk.f32.mxu0 %vm5812_vm8, %v6312_v35 }
0x1936   : > { %v6152_v7 = vpop.xlane.xlu0 %6151  ;;  %v6308_v61 = vmul.f32 %v19887_v54, %v21683_v33  ;;  %v19889_v9 = vpop.eup %19888  ;;  %v17846_v54 = vpack.c.bf16 %v18291_v56, %v18290_v38 }
0x1937   : > { %19896 = vrcp.f32 %v6152_v7  ;;  %v24033_v7 = vld [vmem:[#allocation47_spill] sm:$0xff] }
0x1938   : > { %v19891_v6 = vpop.eup %19890  ;;  %17168 = vmatmul.mubr.msk.f32.vlgmr.msra.gmra.mrb[76].mxu0 %vm5812_vm8, %v21898_v19  ;;  %v6375_v10 = vsel %vm5812_vm8, %v6308_v61, 0.0  ;;  %v6317_v19 = vmul.f32 %v19889_v9, %v21657_v3 }
0x1939   : > { %v19893_v23 = vpop.eup %19892  ;;  %17841 = vmatpush3.bf16.msra.mxu0 %v21895_v45  ;;  %17170 = vmatprep.mubr.msk.f32.mxu0 %vm5812_vm8, %v6314_v34  ;;  %v6306_v46 = vmul.f32 %v19891_v6, %v21681_v2  ;;  %v6376_v33 = vadd.f32 %v6375_v10, %v21923_v47  ;;  %v24036_v10 = vld [vmem:[#allocation64_spill] sm:$0xff] }
0x193a   : > { %v19895_v11 = vpop.eup %19894  ;;  %17843 = vmatprep.subr.bf16.mxu0 %v17842_v4  ;;  %v6311_v41 = vmul.f32 %v19893_v23, %v21687_v5  ;;  %v6347_v5 = vsel %vm5812_vm8, %v6312_v35, 0.0  ;;  %v18294_v47 = vpop.permute.xlu0 %18293  ;;  %v24037_v23 = vsub.f32 %v21552_v37, %v24036_v10 }
0x193b   : > { %18313 = vrot.lane.b32.xlu1 %v24018_v42, %s20077_s23  ;;  %v6345_v45 = vsel %vm5812_vm8, %v6306_v46, 0.0  ;;  %17146 = vmatprep.mubr.msk.f32.mxu1 %vm5812_vm8, %v6306_v46  ;;  %v21982_v55 = vadd.f32 %v6377_v49, %v6376_v33  ;;  %v24031_v42 = vld [vmem:[#allocation61_spill] sm:$0xff]  ;;  %v18296_v35 = vunpack.i.h.bf16 %v18294_v47  ;;  %v18295_v34 = vunpack.i.l.bf16 %v18294_v47  ;;  %v24038_v46 = vld [vmem:[#allocation58_spill] sm:$0xff]  ;;  %v24039_v33 = vld [vmem:[#allocation63_spill] sm:$0xff] }
0x193c   : > { %v6346_v2 = vadd.f32 %v6345_v45, %v21871_v60  ;;  %17147 = vmatmul.mubr.msk.f32.vlgmr.msra.gmra.mrb[76].mxu1 %vm5812_vm8, %v21901_v20  ;;  %17171 = vmatmul.mubr.msk.f32.gmra.mrb[78].mxu0 %vm5812_vm8, %v6315_v26  ;;  %v6420_v3 = vsel %vm5828_vm9, %v6311_v41, 0.0  ;;  %v6316_v58 = vmul.f32 %v19895_v11, %v24031_v42  ;;  %v6422_v60 = vsel %vm5828_vm9, %v6317_v19, 0.0  ;;  %v24032_v26 = vld [vmem:[#allocation46_spill] sm:$0xff] }
0x193d   : > { %17827 = vmatpush3.bf16.msra.mxu1 %v21090_v29  ;;  %17845 = vmatpush3.bf16.msra.mxu0 %v17842_v4  ;;  %v6421_v22 = vadd.f32 %v6420_v3, %v21942_v53  ;;  %v24035_v4 = vsub.f32 %v21542_v8, %v21747_v43  ;;  %v6100_v49 = vmul.f32 1.442695, %v24037_v23  ;;  %v24040_v11 = vsub.f32 %v24038_v46, %v24039_v33 }
0x193e   : > { %18308 = vrot.lane.b32.xlu0 %v21088_v36, %s20077_s23  ;;  %17149 = vmatprep.mubr.msk.f32.mxu1 %vm5812_vm8, %v6308_v61  ;;  %v21997_v20 = vadd.f32 %v6347_v5, %v6346_v2  ;;  %v22017_v61 = vpack.c.bf16 %v18296_v35, %v18295_v34  ;;  %v6407_v32 = vsel %vm5812_vm8, %v6316_v58, 0.0  ;;  %v24042_v34 = vld [vmem:[#allocation60_spill] sm:$0xff] }
0x193f   : > { %17173 = vmatprep.mubr.msk.f32.mxu0 %vm5812_vm8, %v6316_v58  ;;  %17829 = vmatprep.subr.bf16.mxu1 %v24032_v26  ;;  %v22001_v29 = vadd.f32 %v6422_v60, %v6421_v22  ;;  %v6098_v56 = vmul.f32 1.442695, %v24040_v11  ;;  %v24041_v22 = vld [vmem:[#allocation59_spill] sm:$0xff] }
0x1940   : > { %17848 = vmatprep.subr.msk.bf16.mxu0 %vm21327_vm7, %v17846_v54  ;;  %17150 = vmatmul.mubr.msk.f32.gmra.mrb[78].mxu1 %vm5812_vm8, %v21946_v50 }
0x1941   : > { %v19897_v36 = vpop.eup %19896  ;;  %17174 = vmatmul.mubr.msk.f32.gmra.mrb[80].mxu0 %vm5812_vm8, %v6317_v19  ;;  %17831 = vmatpush3.bf16.msra.mxu1 %v24032_v26 }
0x1942   : > { %17851 = vmatpush3.bf16.msk.msra.mxu0 %vm21327_vm7, %v17846_v54  ;;  %18318 = vrot.lane.b32.xlu0 %v21131_v51, %s20077_s23  ;;  %v6310_v53 = vmul.f32 %v19897_v36, %v21724_v25  ;;  %v24034_v25 = vsub.f32 %v21544_v30, %v21742_v12  ;;  %s24063_s23 = sld [smem:[#allocation18_spill]] }
0x1943   : > { %17834 = vmatprep.subr.msk.bf16.mxu1 %vm21327_vm7, %v24033_v7 }
0x1944   : > { %v6405_v50 = vsel %vm5812_vm8, %v6310_v53, 0.0  ;;  %17152 = vmatprep.mubr.msk.f32.mxu1 %vm5812_vm8, %v6310_v53  ;;  %v6094_v6 = vmul.f32 1.442695, %v24034_v25 }
0x1945   : > { %v6406_v9 = vadd.f32 %v6405_v50, %v6404_v27  ;;  %17837 = vmatpush3.bf16.msk.msra.mxu1 %vm21327_vm7, %v24033_v7  ;;  %v6096_v27 = vmul.f32 1.442695, %v24035_v4 }
0x1946   : > { %17153 = vmatmul.mubr.msk.f32.gmra.mrb[80].mxu1 %vm5812_vm8, %v6311_v41  ;;  %17853 = vmatprep.subr.bf16.mxu1 %v22017_v61  ;;  %19898 = vpow2.f32 %v6094_v6 }
0x1947   : > { %v22027_v51 = vadd.f32 %v6407_v32, %v6406_v9  ;;  %19900 = vpow2.f32 %v6096_v27  ;;  %v24043_v27 = vld [vmem:[#allocation62_spill] sm:$0xff] }
0x1948   : > { %19902 = vpow2.f32 %v6100_v49 }
0x1949   : > { %19904 = vpow2.f32 %v6098_v56 }
0x194a   : > { %19906 = vrcp.f32 %v21893_v31 }
0x1950   : > { %v22041_v38 = vpop.eup %19898 }
0x1951   : > { %v22043_v30 = vpop.eup %19900  ;;  %v6234_v8 = vsel %vm5812_vm8, %v22041_v38, 0.0 }
0x1952   : > { %v22047_v12 = vpop.eup %19902  ;;  %v6237_v37 = vsel %vm5812_vm8, %v22043_v30, 0.0 }
0x1953   : > { %v22051_v43 = vpop.eup %19904  ;;  %v6243_v41 = vsel %vm5828_vm9, %v22047_v12, 0.0 }
0x1954   : > { %v6240_v45 = vsel %vm5812_vm8, %v22051_v43, 0.0  ;;  %v19907_v31 = vpop.eup %19906 }
0x1955   : > { %v6325_v54 = vmul.f32 %v19907_v31, %v24041_v22 }
0x1957   : > { %v6366_v33 = vsel %vm5812_vm8, %v6325_v54, 0.0 }
0x195f   : > { %6235 = vadd.xlane.f32.xlu1 %v6234_v8 }
0x1961   : > { %6238 = vadd.xlane.f32.xlu0 %v6237_v37 }
0x1962   : > { %v6194_v19 = vpop.xlane.xlu1 %6193 }
0x1963   : > { %19908 = vrcp.f32 %v6194_v19  ;;  %6244 = vadd.xlane.f32.xlu1 %v6243_v41 }
0x1964   : > { %19910 = vrcp.f32 %v21930_v52 }
0x1965   : > { %6241 = vadd.xlane.f32.xlu0 %v6240_v45 }
0x1966   : > { %v6200_v2 = vpop.xlane.xlu1 %6199 }
0x1967   : > { %19912 = vrcp.f32 %v6200_v2 }
0x1968   : > { %19914 = vrcp.f32 %v21952_v62 }
0x196a   : > { %v6179_v3 = vpop.xlane.xlu1 %6178 }
0x196b   : > { %19916 = vrcp.f32 %v6179_v3  ;;  %v6206_v5 = vpop.xlane.xlu0 %6205 }
0x196c   : > { %19918 = vrcp.f32 %v6206_v5 }
0x196d   : > { %v19909_v47 = vpop.eup %19908 }
0x196e   : > { %v6188_v42 = vpop.xlane.xlu1 %6187  ;;  %v6324_v58 = vmul.f32 %v19909_v47, %v21784_v0  ;;  %v19911_v26 = vpop.eup %19910 }
0x196f   : > { %19920 = vrcp.f32 %v6188_v42  ;;  %v6176_v60 = vpop.xlane.xlu0 %6175  ;;  %v22068_v36 = vmul.f32 %v19911_v26, %v24042_v34 }
0x1970   : > { %19922 = vrcp.f32 %v6176_v60  ;;  %17209 = vmatprep.mubr.msk.f32.mxu0 %vm5812_vm8, %v6324_v58  ;;  %v6351_v31 = vsel %vm5812_vm8, %v6324_v58, 0.0 }
0x1971   : > { %v19913_v52 = vpop.eup %19912  ;;  %17210 = vmatmul.mubr.msk.f32.vlgmr.msra.gmra.mrb[82].mxu0 %vm5812_vm8, %v6325_v54 }
0x1972   : > { %v22065_v62 = vmul.f32 %v19913_v52, %v21789_v21  ;;  %v19915_v53 = vpop.eup %19914  ;;  %v18299_v32 = vpop.permute.xlu1 %18298  ;;  %v7367_v52 = vld [vmem:[%s20145_s24 + $0x8] sm:$0xff] }
0x1973   : > { %v6185_v35 = vpop.xlane.xlu0 %6184  ;;  %v6329_v10 = vmul.f32 %v19915_v53, %v24043_v27  ;;  %v18300_v11 = vunpack.i.l.bf16 %v18299_v32 }
0x1974   : > { %19924 = vrcp.f32 %v6185_v35  ;;  %17212 = vmatprep.mubr.msk.f32.mxu0 %vm5812_vm8, %v22065_v62 }
0x1975   : > { %v19917_v0 = vpop.eup %19916  ;;  %v22072_v7 = vpop.f32.mrb[70].mxu1  ;;  %17213 = vmatmul.mubr.msk.f32.gmra.mrb[84].mxu0 %vm5812_vm8, %v22068_v36  ;;  %v6426_v27 = vsel %vm5828_vm9, %v6329_v10, 0.0 }
0x1976   : > { %v19919_v50 = vpop.eup %19918  ;;  %v6319_v9 = vmul.f32 %v19917_v0, %v21796_v59  ;;  %v22077_v21 = vpop.f32.mrb[71].mxu1  ;;  %v18301_v59 = vunpack.i.h.bf16 %v18299_v32 }
0x1977   : > { %v6182_v25 = vpop.xlane.xlu0 %6181  ;;  %v6328_v6 = vmul.f32 %v19919_v50, %v21798_v13 }
0x1978   : > { %v6364_v4 = vsel %vm5812_vm8, %v6319_v9, 0.0  ;;  %19926 = vrcp.f32 %v6182_v25  ;;  %v17856_v3 = vpack.c.bf16 %v18301_v59, %v18300_v11  ;;  %v24045_v59 = vld [vmem:[#allocation66_spill] sm:$0xff] }
0x1979   : > { %v19921_v23 = vpop.eup %19920  ;;  %v6365_v49 = vadd.f32 %v6364_v4, %v21934_v16  ;;  %17215 = vmatprep.mubr.msk.f32.mxu0 %vm5812_vm8, %v6328_v6 }
0x197a   : > { %v19923_v46 = vpop.eup %19922  ;;  %17216 = vmatmul.mubr.msk.f32.gmra.mrb[86].mxu0 %vm5812_vm8, %v6329_v10  ;;  %v6322_v56 = vmul.f32 %v19921_v23, %v21803_v15  ;;  %v6411_v15 = vsel %vm5812_vm8, %v6328_v6, 0.0 }
0x197b   : > { %v6191_v13 = vpop.xlane.xlu0 %6190  ;;  %v6318_v8 = vmul.f32 %v19923_v46, %v21809_v40  ;;  %v22088_v37 = vadd.f32 %v6366_v33, %v6365_v49 }
0x197c   : > { %19928 = vrcp.f32 %v6191_v13  ;;  %v6409_v19 = vsel %vm5812_vm8, %v6322_v56, 0.0 }
0x197d   : > { %v22091_v16 = vpop.f32.mrb[72].mxu1  ;;  %v6349_v41 = vsel %vm5812_vm8, %v6318_v8, 0.0  ;;  %17188 = vmatprep.mubr.msk.f32.mxu1 %vm5812_vm8, %v6318_v8  ;;  %v6410_v45 = vadd.f32 %v6409_v19, %v22027_v51 }
0x197e   : > { %v19925_v2 = vpop.eup %19924  ;;  %v6350_v5 = vadd.f32 %v6349_v41, %v21997_v20  ;;  %v22098_v40 = vpop.f32.mrb[73].mxu1  ;;  %17189 = vmatmul.mubr.msk.f32.vlgmr.msra.gmra.mrb[82].mxu1 %vm5812_vm8, %v6319_v9  ;;  %v6381_v9 = vsel %vm5812_vm8, %v22065_v62, 0.0  ;;  %v7366_v41 = vld [vmem:[%s20145_s24] sm:$0xff] }
0x197f   : > { %17855 = vmatpush3.bf16.msra.mxu1 %v22017_v61  ;;  %v6215_v47 = vpop.xlane.xlu0 %6214  ;;  %v6321_v42 = vmul.f32 %v19925_v2, %v21815_v28  ;;  %v22104_v51 = vadd.f32 %v6411_v15, %v6410_v45  ;;  %v7369_v61 = vld [vmem:[%s20145_s24 + $0x18] sm:$0xff]  ;;  %v7368_v45 = vld [vmem:[%s20145_s24 + $0x10] sm:$0xff] }
0x1980   : > { %17857 = vmatprep.subr.bf16.mxu1 %v17856_v3  ;;  %v22106_v22 = vadd.f32 %v6351_v31, %v6350_v5  ;;  %19930 = vrcp.f32 %v6215_v47  ;;  %v7373_v15 = vld [vmem:[%s20145_s24 + $0x38] sm:$0xff]  ;;  %v17882_v47 = vpack.c.bf16 %v7368_v45, %v7366_v41 }
0x1981   : > { %v6394_v20 = vsel %vm5812_vm8, %v6321_v42, 0.0 }
0x1982   : > { %v19927_v54 = vpop.eup %19926  ;;  %v22110_v60 = vadd.f32 %v6394_v20, %v21960_v57  ;;  %v17880_v57 = vpack.c.bf16 %v7369_v61, %v7367_v52  ;;  %v7375_v52 = vld [vmem:[%s20145_s24 + $0x48] sm:$0xff]  ;;  %v7377_v61 = vld [vmem:[%s20145_s24 + $0x58] sm:$0xff] }
0x1983   : > { %17859 = vmatpush3.bf16.msra.mxu1 %v17856_v3  ;;  %v18304_v26 = vpop.permute.xlu0 %18303  ;;  %v6320_v58 = vmul.f32 %v19927_v54, %v21819_v17  ;;  %v24044_v17 = vld [vmem:[#allocation65_spill] sm:$0xff] }
0x1984   : > { %v18306_v35 = vunpack.i.h.bf16 %v18304_v26  ;;  %v18305_v34 = vunpack.i.l.bf16 %v18304_v26  ;;  %v7371_v3 = vld [vmem:[%s20145_s24 + $0x28] sm:$0xff]  ;;  %v7370_v26 = vld [vmem:[%s20145_s24 + $0x20] sm:$0xff] }
0x1985   : > { %v6379_v28 = vsel %vm5812_vm8, %v6320_v58, 0.0  ;;  %17191 = vmatprep.mubr.msk.f32.mxu1 %vm5812_vm8, %v6320_v58  ;;  %v17884_v54 = vpack.c.bf16 %v7373_v15, %v7371_v3  ;;  %v7372_v58 = vld [vmem:[%s20145_s24 + $0x30] sm:$0xff]  ;;  %v7379_v15 = vld [vmem:[%s20145_s24 + $0x68] sm:$0xff] }
0x1986   : > { %v19929_v53 = vpop.eup %19928  ;;  %v17860_v0 = vpack.c.bf16 %v18306_v35, %v18305_v34  ;;  %v6380_v50 = vadd.f32 %v6379_v28, %v21982_v55  ;;  %17192 = vmatmul.mubr.msk.f32.gmra.mrb[84].mxu1 %vm5812_vm8, %v6321_v42  ;;  %v17886_v34 = vpack.c.bf16 %v7372_v58, %v7370_v26  ;;  %v17888_v28 = vpack.c.bf16 %v7377_v61, %v7375_v52  ;;  %v7386_v58 = vld [vmem:[%s20145_s24 + $0xa0] sm:$0xff]  ;;  %v7388_v52 = vld [vmem:[%s20145_s24 + $0xb0] sm:$0xff] }
0x1987   : > { %17194 = vmatprep.mubr.msk.f32.mxu1 %vm5812_vm8, %v6322_v56  ;;  %v6323_v32 = vmul.f32 %v19929_v53, %v24044_v17 }
0x1988   : > { %17862 = vmatprep.subr.msk.bf16.mxu1 %vm21327_vm7, %v17860_v0  ;;  %v22125_v25 = vadd.f32 %v6381_v9, %v6380_v50 }
0x1989   : > { %v22127_v6 = vpop.f32.mrb[74].mxu1  ;;  %17865 = vmatpush3.bf16.msk.msra.mxu1 %vm21327_vm7, %v17860_v0  ;;  %v6424_v55 = vsel %vm5828_vm9, %v6323_v32, 0.0 }
0x198a   : > { %v22132_v4 = vpop.f32.mrb[75].mxu1  ;;  %v6425_v62 = vadd.f32 %v6424_v55, %v22001_v29  ;;  %17195 = vmatmul.mubr.msk.f32.gmra.mrb[86].mxu1 %vm5812_vm8, %v6323_v32  ;;  %17881 = vmatprep.subr.bf16.mxu1 %v17880_v57  ;;  %v19931_v46 = vpop.eup %19930 }
0x198b   : > { %v6331_v11 = vmul.f32 %v19931_v46, %v24045_v59 }
0x198c   : > { %v22137_v23 = vadd.f32 %v6426_v27, %v6425_v62 }
0x198d   : > { %v6368_v56 = vsel %vm5812_vm8, %v6331_v11, 0.0 }
0x198e   : > { %v6369_v19 = vadd.f32 %v6368_v56, %v22088_v37 }
0x19a3   : > { %v6233_v49 = vpop.xlane.xlu1 %6232 }
0x19a4   : > { %19932 = vrcp.f32 %v6233_v49 }
0x19a7   : > { %v6212_v33 = vpop.xlane.xlu1 %6211 }
0x19a8   : > { %19934 = vrcp.f32 %v6212_v33 }
0x19ab   : > { %v6221_v29 = vpop.xlane.xlu1 %6220 }
0x19ac   : > { %19936 = vrcp.f32 %v6221_v29 }
0x19ae   : > { %v19933_v13 = vpop.eup %19932 }
0x19af   : > { %v22143_v10 = vmul.f32 %v19933_v13, %v21851_v63  ;;  %v6218_v8 = vpop.xlane.xlu1 %6217 }
0x19b0   : > { %19938 = vrcp.f32 %v6218_v8 }
0x19b1   : > { %v6370_v2 = vsel %vm5812_vm8, %v22143_v10, 0.0 }
0x19b2   : > { %v19935_v5 = vpop.eup %19934  ;;  %v6371_v31 = vadd.f32 %v6370_v2, %v6369_v19  ;;  %v7376_v2 = vld [vmem:[%s20145_s24 + $0x50] sm:$0xff] }
0x19b3   : > { %v6227_v63 = vpop.xlane.xlu1 %6226  ;;  %v6330_v37 = vmul.f32 %v19935_v5, %v21863_v44  ;;  %v7381_v5 = vld [vmem:[%s20145_s24 + $0x78] sm:$0xff] }
0x19b4   : > { %v6434_v42 = vmul.f32 0.125, %v6371_v31  ;;  %v6230_v20 = vpop.xlane.xlu0 %6229  ;;  %v17892_v31 = vpack.c.bf16 %v7381_v5, %v7379_v15  ;;  %v7390_v15 = vld [vmem:[%s20145_s24 + $0xc0] sm:$0xff]  ;;  %v7392_v5 = vld [vmem:[%s20145_s24 + $0xd0] sm:$0xff] }
0x19b5   : > { %19940 = vrcp.f32 %v6230_v20  ;;  %17230 = vmatprep.mubr.msk.f32.mxu1 %vm5812_vm8, %v6330_v37  ;;  %v6353_v59 = vsel %vm5812_vm8, %v6330_v37, 0.0  ;;  %v7380_v37 = vld [vmem:[%s20145_s24 + $0x70] sm:$0xff] }
0x19b6   : > { %6440 = vst.msk [vmem:[%s22153_s2 + $0x8] sm:$0xff] %vm5812_vm8, %v6434_v42  ;;  %17231 = vmatmul.mubr.msk.f32.vlgmr.msra.gmra.mrb[88].mxu1 %vm5812_vm8, %v6331_v11  ;;  %19942 = vrcp.f32 %v6227_v63  ;;  %v19937_v53 = vpop.eup %19936  ;;  %v6354_v56 = vadd.f32 %v6353_v59, %v22106_v22  ;;  %v7374_v22 = vld [vmem:[%s20145_s24 + $0x40] sm:$0xff]  ;;  %v7385_v42 = vld [vmem:[%s20145_s24 + $0x98] sm:$0xff] }
0x19b7   : > { %v6224_v35 = vpop.xlane.xlu1 %6223  ;;  %17883 = vmatpush1.bf16.msra.mxu1 %v17882_v47  ;;  %v22168_v49 = vmul.f32 %v19937_v53, %v21878_v48  ;;  %v7378_v63 = vld [vmem:[%s20145_s24 + $0x60] sm:$0xff]  ;;  %v7383_v47 = vld [vmem:[%s20145_s24 + $0x88] sm:$0xff] }
0x19b8   : > { %19944 = vrcp.f32 %v6224_v35  ;;  %v18309_v44 = vpop.permute.xlu0 %18308  ;;  %17885 = vmatprep.subr.bf16.mxu1 %v17884_v54  ;;  %v17894_v14 = vpack.c.bf16 %v7380_v37, %v7378_v63  ;;  %v17896_v20 = vpack.c.bf16 %v7385_v42, %v7383_v47  ;;  %v7397_v63 = vld [vmem:[%s20145_s24 + $0xf8] sm:$0xff]  ;;  %v17906_v37 = vpack.c.bf16 %v7392_v5, %v7390_v15 }
0x19b9   : > { %v18311_v0 = vunpack.i.h.bf16 %v18309_v44  ;;  %v18310_v50 = vunpack.i.l.bf16 %v18309_v44 }
0x19ba   : > { %v19939_v57 = vpop.eup %19938 }
0x19bb   : > { %v17866_v9 = vpack.c.bf16 %v18311_v0, %v18310_v50  ;;  %v18314_v17 = vpop.permute.xlu1 %18313  ;;  %v22165_v32 = vmul.f32 %v19939_v57, %v21887_v1  ;;  %17887 = vmatpush1.bf16.msra.mxu1 %v17886_v34  ;;  %v7393_v34 = vld [vmem:[%s20145_s24 + $0xd8] sm:$0xff] }
0x19bc   : > { %v18316_v55 = vunpack.i.h.bf16 %v18314_v17  ;;  %v18315_v62 = vunpack.i.l.bf16 %v18314_v17  ;;  %v18319_v27 = vpop.permute.xlu0 %18318  ;;  %17889 = vmatprep.subr.bf16.mxu1 %v17888_v28  ;;  %v6398_v17 = vsel %vm5812_vm8, %v22168_v49, 0.0 }
0x19bd   : > { %v18321_v46 = vunpack.i.h.bf16 %v18319_v27  ;;  %v18320_v33 = vunpack.i.l.bf16 %v18319_v27  ;;  %17233 = vmatprep.mubr.msk.f32.mxu1 %vm5812_vm8, %v22165_v32  ;;  %17867 = vmatprep.subr.bf16.mxu0 %v17866_v9  ;;  %v6383_v50 = vsel %vm5812_vm8, %v22165_v32, 0.0 }
0x19be   : > { %v17870_v11 = vpack.c.bf16 %v18316_v55, %v18315_v62  ;;  %17234 = vmatmul.mubr.msk.f32.gmra.mrb[90].mxu1 %vm5812_vm8, %v22168_v49  ;;  %17869 = vmatpush3.bf16.msra.mxu0 %v17866_v9  ;;  %v6396_v9 = vsel %vm5812_vm8, %v22068_v36, 0.0 }
0x19bf   : > { %v19941_v1 = vpop.eup %19940  ;;  %v17874_v13 = vpack.c.bf16 %v18321_v46, %v18320_v33  ;;  %v6384_v46 = vadd.f32 %v6383_v50, %v22125_v25  ;;  %v6397_v33 = vadd.f32 %v6396_v9, %v22110_v60  ;;  %v7404_v9 = vld [vmem:[%s20145_s24 + $0x130] sm:$0xff] }
0x19c0   : > { %17871 = vmatprep.subr.bf16.mxu0 %v17870_v11  ;;  %v6336_v48 = vmul.f32 %v19941_v1, %v21911_v18  ;;  %v19943_v29 = vpop.eup %19942 }
0x19c1   : > { %v22185_v45 = vmul.f32 %v19943_v29, %v21907_v24  ;;  %v24047_v24 = vmov 0.0  }
0x19c2   : > { %v19945_v8 = vpop.eup %19944  ;;  %17873 = vmatpush3.bf16.msra.mxu0 %v17870_v11  ;;  %v6355_v19 = vsel %vm5812_vm8, %v6336_v48, 0.0  ;;  %17251 = vmatprep.mubr.msk.f32.mxu0 %vm5812_vm8, %v6336_v48 }
0x19c3   : > { %v6356_v41 = vadd.f32 %v6355_v19, %v6354_v56  ;;  %17876 = vmatprep.subr.msk.bf16.mxu0 %vm21327_vm7, %v17874_v13  ;;  %v22182_v18 = vmul.f32 %v19945_v8, %v21928_v39  ;;  %v17890_v39 = vpack.c.bf16 %v7376_v2, %v7374_v22  ;;  %v6428_v11 = vsel %vm5828_vm9, %v22185_v45, 0.0 }
0x19c4   : > { %v6429_v56 = vadd.f32 %v6428_v11, %v22137_v23 }
0x19c5   : > { %v6433_v3 = vmul.f32 0.125, %v6356_v41  ;;  %17236 = vmatprep.mubr.msk.f32.mxu1 %vm5812_vm8, %v22182_v18  ;;  %v6413_v60 = vsel %vm5812_vm8, %v22182_v18, 0.0 }
0x19c6   : > { %17237 = vmatmul.mubr.msk.f32.gmra.mrb[92].mxu1 %vm5812_vm8, %v22185_v45  ;;  %17879 = vmatpush3.bf16.msk.msra.mxu0 %vm21327_vm7, %v17874_v13  ;;  %v6414_v41 = vadd.f32 %v6413_v60, %v22104_v51  ;;  %v7413_v60 = vld [vmem:[%s20145_s24 + $0x178] sm:$0xff] }
0x19c7   : > { %6439 = vst.msk [vmem:[%s22153_s2] sm:$0xff] %vm5812_vm8, %v6433_v3  ;;  %7512 = vmatprep.mubr.f32.mxu1 %v24047_v24 }
0x19c9   : > { %17252 = vmatmul.mubr.msk.f32.vlgmr.msra.gmra.mrb[88].mxu0 %vm5812_vm8, %v22143_v10  ;;  %v7389_v10 = vld [vmem:[%s20145_s24 + $0xb8] sm:$0xff] }
0x19ca   : > { %15758 = vmatmul.mubr.msk.f32.vlgmr.msra.gmra.mrb[94].mxu1 %vm4859_vm3, %v22077_v21  ;;  %v7384_v21 = vld [vmem:[%s20145_s24 + $0x90] sm:$0xff] }
0x19cb   : > { %7518 = vmatprep.mubr.f32.mxu1 %v24047_v24  ;;  %17891 = vmatpush1.bf16.msra.mxu1 %v17890_v39 }
0x19cc   : > { %17893 = vmatprep.subr.bf16.mxu1 %v17892_v31  ;;  %v7395_v31 = vld [vmem:[%s20145_s24 + $0xe8] sm:$0xff] }
0x19ce   : > { %15759 = vmatmul.mubr.msk.f32.gmra.mrb[96].mxu1 %vm4859_vm3, %v22072_v7  ;;  %v7382_v7 = vld [vmem:[%s20145_s24 + $0x80] sm:$0xff] }
0x19cf   : > { %7524 = vmatprep.mubr.f32.mxu1 %v24047_v24  ;;  %17895 = vmatpush1.bf16.msra.mxu1 %v17894_v14  ;;  %v17898_v54 = vpack.c.bf16 %v7384_v21, %v7382_v7  ;;  %v17908_v14 = vpack.c.bf16 %v7397_v63, %v7395_v31  ;;  %v7396_v7 = vld [vmem:[%s20145_s24 + $0xf0] sm:$0xff]  ;;  %v7423_v63 = vld [vmem:[%s20145_s24 + $0x1c8] sm:$0xff] }
0x19d0   : > { %17897 = vmatprep.subr.bf16.mxu1 %v17896_v20  ;;  %v7394_v20 = vld [vmem:[%s20145_s24 + $0xe0] sm:$0xff]  ;;  %v7420_v31 = vld [vmem:[%s20145_s24 + $0x1b0] sm:$0xff] }
0x19d2   : > { %15760 = vmatmul.mubr.msk.f32.gmra.mrb[98].mxu1 %vm4859_vm3, %v22098_v40  ;;  %v7387_v40 = vld [vmem:[%s20145_s24 + $0xa8] sm:$0xff] }
0x19d3   : > { %7530 = vmatprep.mubr.f32.mxu1 %v24047_v24  ;;  %v17900_v26 = vpack.c.bf16 %v7389_v10, %v7387_v40  ;;  %v7399_v10 = vld [vmem:[%s20145_s24 + $0x108] sm:$0xff] }
0x19d6   : > { %15761 = vmatmul.mubr.msk.f32.gmra.mrb[100].mxu1 %vm4859_vm3, %v22091_v16 }
0x19d7   : > { %7536 = vmatprep.mubr.f32.mxu1 %v24047_v24 }
0x19da   : > { %15762 = vmatmul.mubr.msk.f32.gmra.mrb[102].mxu1 %vm4859_vm3, %v22132_v4  ;;  %v7391_v4 = vld [vmem:[%s20145_s24 + $0xc8] sm:$0xff] }
0x19db   : > { %7542 = vmatprep.mubr.f32.mxu1 %v24047_v24  ;;  %v17904_v28 = vpack.c.bf16 %v7393_v34, %v7391_v4 }
0x19de   : > { %15763 = vmatmul.mubr.msk.f32.gmra.mrb[104].mxu1 %vm4859_vm3, %v22127_v6  ;;  %v17902_v6 = vpack.c.bf16 %v7388_v52, %v7386_v58 }
0x19df   : > { %7631 = vmatprep.mubr.f32.mxu1 %v24047_v24 }
0x19eb   : > { %v17127_v16 = vpop.f32.mrb[70].mxu0 }
0x19ec   : > { %v6647_v61 = vpop.f32.mrb[71].mxu0  ;;  %v6236_v35 = vpop.xlane.xlu1 %6235 }
0x19ed   : > { %19946 = vrcp.f32 %v6236_v35  ;;  %15764 = vmatmul.mubr.msk.f32.vlgmr.msra.gmra.mrb[94].mxu1 %vm4859_vm3, %v6647_v61 }
0x19ee   : > { %v6239_v44 = vpop.xlane.xlu0 %6238  ;;  %7637 = vmatprep.mubr.f32.mxu1 %v24047_v24  ;;  %17899 = vmatpush1.bf16.msra.mxu1 %v17898_v54  ;;  %v7401_v54 = vld [vmem:[%s20145_s24 + $0x118] sm:$0xff] }
0x19ef   : > { %19948 = vrcp.f32 %v6239_v44  ;;  %17901 = vmatprep.subr.bf16.mxu1 %v17900_v26  ;;  %v17912_v58 = vpack.c.bf16 %v7401_v54, %v7399_v10  ;;  %v7398_v44 = vld [vmem:[%s20145_s24 + $0x100] sm:$0xff] }
0x19f0   : > { %v6245_v53 = vpop.xlane.xlu1 %6244 }
0x19f1   : > { %19950 = vrcp.f32 %v6245_v53  ;;  %15765 = vmatmul.mubr.msk.f32.gmra.mrb[96].mxu1 %vm4859_vm3, %v17127_v16  ;;  %v17910_v16 = vpack.c.bf16 %v7396_v7, %v7394_v20  ;;  %v7405_v53 = vld [vmem:[%s20145_s24 + $0x138] sm:$0xff]  ;;  %v7424_v20 = vld [vmem:[%s20145_s24 + $0x1d0] sm:$0xff]  ;;  %v7427_v7 = vld [vmem:[%s20145_s24 + $0x1e8] sm:$0xff] }
0x19f2   : > { %v6242_v0 = vpop.xlane.xlu0 %6241  ;;  %7643 = vmatprep.mubr.f32.mxu1 %v24047_v24  ;;  %17903 = vmatpush1.bf16.msra.mxu1 %v17902_v6  ;;  %v7400_v6 = vld [vmem:[%s20145_s24 + $0x110] sm:$0xff] }
0x19f3   : > { %19952 = vrcp.f32 %v6242_v0  ;;  %17905 = vmatprep.subr.bf16.mxu1 %v17904_v28  ;;  %v7403_v28 = vld [vmem:[%s20145_s24 + $0x128] sm:$0xff]  ;;  %v17914_v0 = vpack.c.bf16 %v7400_v6, %v7398_v44 }
0x19f4   : > { %v17916_v50 = vpack.c.bf16 %v7405_v53, %v7403_v28 }
0x19f7   : > { %v19947_v57 = vpop.eup %19946 }
0x19f8   : > { %v17130_v55 = vpop.f32.mrb[72].mxu0  ;;  %v6338_v62 = vmul.f32 %v19947_v57, %v22041_v38  ;;  %v6399_v38 = vadd.f32 %v6398_v17, %v6397_v33  ;;  %v7402_v57 = vld [vmem:[%s20145_s24 + $0x120] sm:$0xff]  ;;  %v7407_v17 = vld [vmem:[%s20145_s24 + $0x148] sm:$0xff] }
0x19f9   : > { %v19949_v27 = vpop.eup %19948  ;;  %v6657_v59 = vpop.f32.mrb[73].mxu0 }
0x19fa   : > { %15766 = vmatmul.mubr.msk.f32.gmra.mrb[98].mxu1 %vm4859_vm3, %v6657_v59  ;;  %v6385_v32 = vsel %vm5812_vm8, %v6338_v62, 0.0  ;;  %17254 = vmatprep.mubr.msk.f32.mxu0 %vm5812_vm8, %v6338_v62  ;;  %v6339_v36 = vmul.f32 %v19949_v27, %v22043_v30  ;;  %v17918_v62 = vpack.c.bf16 %v7404_v9, %v7402_v57 }
0x19fb   : > { %v19951_v49 = vpop.eup %19950  ;;  %v6386_v1 = vadd.f32 %v6385_v32, %v6384_v46  ;;  %7649 = vmatprep.mubr.f32.mxu1 %v24047_v24 }
0x19fc   : > { %v6400_v25 = vsel %vm5812_vm8, %v6339_v36, 0.0  ;;  %17255 = vmatmul.mubr.msk.f32.gmra.mrb[90].mxu0 %vm5812_vm8, %v6339_v36  ;;  %v6341_v48 = vmul.f32 %v19951_v49, %v22047_v12  ;;  %v7406_v36 = vld [vmem:[%s20145_s24 + $0x140] sm:$0xff]  ;;  %v7408_v49 = vld [vmem:[%s20145_s24 + $0x150] sm:$0xff] }
0x19fd   : > { %v19953_v29 = vpop.eup %19952  ;;  %v6435_v30 = vmul.f32 0.125, %v6386_v1  ;;  %v6401_v13 = vadd.f32 %v6400_v25, %v6399_v38  ;;  %v7411_v1 = vld [vmem:[%s20145_s24 + $0x168] sm:$0xff]  ;;  %v17922_v25 = vpack.c.bf16 %v7408_v49, %v7406_v36 }
0x19fe   : > { %15767 = vmatmul.mubr.msk.f32.gmra.mrb[100].mxu1 %vm4859_vm3, %v17130_v55  ;;  %v6340_v8 = vmul.f32 %v19953_v29, %v22051_v43  ;;  %v6430_v19 = vsel %vm5828_vm9, %v6341_v48, 0.0  ;;  %v7409_v55 = vld [vmem:[%s20145_s24 + $0x158] sm:$0xff]  ;;  %v17924_v29 = vpack.c.bf16 %v7413_v60, %v7411_v1 }
0x19ff   : > { %6441 = vst.msk [vmem:[%s22153_s2 + $0x10] sm:$0xff] %vm5812_vm8, %v6435_v30  ;;  %v6436_v18 = vmul.f32 0.125, %v6401_v13  ;;  %v6431_v45 = vadd.f32 %v6430_v19, %v6429_v56  ;;  %7655 = vmatprep.mubr.f32.mxu1 %v24047_v24  ;;  %v17920_v27 = vpack.c.bf16 %v7409_v55, %v7407_v17  ;;  %v7410_v56 = vld [vmem:[%s20145_s24 + $0x160] sm:$0xff]  ;;  %v7412_v30 = vld [vmem:[%s20145_s24 + $0x170] sm:$0xff]  ;;  %v7417_v19 = vld [vmem:[%s20145_s24 + $0x198] sm:$0xff] }
0x1a00   : > { %v6415_v12 = vsel %vm5812_vm8, %v6340_v8, 0.0  ;;  %17257 = vmatprep.mubr.msk.f32.mxu0 %vm5812_vm8, %v6340_v8  ;;  %v7415_v8 = vld [vmem:[%s20145_s24 + $0x188] sm:$0xff] }
0x1a01   : > { %6442 = vst.msk [vmem:[%s22153_s2 + $0x18] sm:$0xff] %vm5812_vm8, %v6436_v18  ;;  %v6416_v43 = vadd.f32 %v6415_v12, %v6414_v41  ;;  %v6438_v23 = vmul.f32 0.125, %v6431_v45  ;;  %17258 = vmatmul.mubr.msk.f32.gmra.mrb[92].mxu0 %vm5812_vm8, %v6341_v48  ;;  %v17926_v41 = vpack.c.bf16 %v7412_v30, %v7410_v56  ;;  %v17928_v18 = vpack.c.bf16 %v7417_v19, %v7415_v8 }
0x1a03   : > { %v6437_v51 = vmul.f32 0.125, %v6416_v43  ;;  %6444 = vst.msk [vmem:[%s22153_s2 + $0x28] sm:$0x1] %vm5828_vm9, %v6438_v23 }
0x1a05   : > { %6443 = vst.msk [vmem:[%s22153_s2 + $0x20] sm:$0xff] %vm5812_vm8, %v6437_v51  ;;  %v7414_v51 = vld [vmem:[%s20145_s24 + $0x180] sm:$0xff]  ;;  %s24065_s2 = sld [smem:[#allocation19_spill]] }
0x1a07   : > { %v17133_v22 = vpop.f32.mrb[74].mxu0 }
0x1a08   : > { %v6667_v2 = vpop.f32.mrb[75].mxu0 }
0x1a09   : > { %15768 = vmatmul.mubr.msk.f32.gmra.mrb[102].mxu1 %vm4859_vm3, %v6667_v2  ;;  %v7419_v2 = vld [vmem:[%s20145_s24 + $0x1a8] sm:$0xff] }
0x1a0a   : > { %7661 = vmatprep.mubr.f32.mxu1 %v24047_v24 }
0x1a0b   : > { %v17169_v3 = vpop.f32.mrb[76].mxu0 }
0x1a0c   : > { %v6877_v39 = vpop.f32.mrb[77].mxu0 }
0x1a0d   : > { %15769 = vmatmul.mubr.msk.f32.gmra.mrb[106].mxu1 %vm4859_vm3, %v17133_v22  ;;  %v7416_v22 = vld [vmem:[%s20145_s24 + $0x190] sm:$0xff] }
0x1a0e   : > { %7750 = vmatprep.mubr.f32.mxu1 %v24047_v24  ;;  %v17930_v15 = vpack.c.bf16 %v7416_v22, %v7414_v51 }
0x1a0f   : > { %v17148_v47 = vpop.f32.mrb[76].mxu1  ;;  %v17172_v42 = vpop.f32.mrb[78].mxu0 }
0x1a10   : > { %v6762_v21 = vpop.f32.mrb[77].mxu1  ;;  %v6887_v40 = vpop.f32.mrb[79].mxu0 }
0x1a11   : > { %15770 = vmatmul.mubr.msk.f32.vlgmr.msra.gmra.mrb[94].mxu1 %vm4859_vm3, %v6762_v21  ;;  %v7429_v21 = vld [vmem:[%s20145_s24 + $0x1f8] sm:$0xff] }
0x1a12   : > { %7756 = vmatprep.mubr.f32.mxu1 %v24047_v24  ;;  %17907 = vmatpush1.bf16.msra.mxu1 %v17906_v37  ;;  %v7425_v37 = vld [vmem:[%s20145_s24 + $0x1d8] sm:$0xff]  ;;  %v17940_v54 = vpack.c.bf16 %v7429_v21, %v7427_v7 }
0x1a13   : > { %v17151_v26 = vpop.f32.mrb[78].mxu1  ;;  %17909 = vmatprep.subr.bf16.mxu1 %v17908_v14  ;;  %v7422_v14 = vld [vmem:[%s20145_s24 + $0x1c0] sm:$0xff] }
0x1a14   : > { %v17175_v52 = vpop.f32.mrb[80].mxu0  ;;  %v6772_v61 = vpop.f32.mrb[79].mxu1 }
0x1a15   : > { %v6897_v35 = vpop.f32.mrb[81].mxu0  ;;  %15771 = vmatmul.mubr.msk.f32.gmra.mrb[96].mxu1 %vm4859_vm3, %v17148_v47 }
0x1a16   : > { %7762 = vmatprep.mubr.f32.mxu1 %v24047_v24  ;;  %17911 = vmatpush1.bf16.msra.mxu1 %v17910_v16  ;;  %v7426_v16 = vld [vmem:[%s20145_s24 + $0x1e0] sm:$0xff] }
0x1a17   : > { %17913 = vmatprep.subr.bf16.mxu1 %v17912_v58 }
0x1a19   : > { %v17154_v4 = vpop.f32.mrb[80].mxu1  ;;  %15772 = vmatmul.mubr.msk.f32.gmra.mrb[98].mxu1 %vm4859_vm3, %v6772_v61 }
0x1a1a   : > { %v6782_v34 = vpop.f32.mrb[81].mxu1  ;;  %7768 = vmatprep.mubr.f32.mxu1 %v24047_v24 }
0x1a1d   : > { %15773 = vmatmul.mubr.msk.f32.gmra.mrb[100].mxu1 %vm4859_vm3, %v17151_v26  ;;  %v7428_v26 = vld [vmem:[%s20145_s24 + $0x1f0] sm:$0xff] }
0x1a1e   : > { %7774 = vmatprep.mubr.f32.mxu1 %v24047_v24 }
0x1a21   : > { %15774 = vmatmul.mubr.msk.f32.gmra.mrb[102].mxu1 %vm4859_vm3, %v6782_v34 }
0x1a22   : > { %7780 = vmatprep.mubr.f32.mxu1 %v24047_v24 }
0x1a25   : > { %15775 = vmatmul.mubr.msk.f32.gmra.mrb[108].mxu1 %vm4859_vm3, %v17154_v4 }
0x1a26   : > { %7869 = vmatprep.mubr.f32.mxu1 %v24047_v24 }
0x1a29   : > { %15776 = vmatmul.mubr.msk.f32.vlgmr.msra.gmra.mrb[94].mxu1 %vm4859_vm3, %v6877_v39  ;;  %v7418_v39 = vld [vmem:[%s20145_s24 + $0x1a0] sm:$0xff] }
0x1a2a   : > { %7875 = vmatprep.mubr.f32.mxu1 %v24047_v24  ;;  %17915 = vmatpush1.bf16.msra.mxu1 %v17914_v0  ;;  %v17934_v47 = vpack.c.bf16 %v7420_v31, %v7418_v39 }
0x1a2b   : > { %17917 = vmatprep.subr.bf16.mxu1 %v17916_v50 }
0x1a2d   : > { %15777 = vmatmul.mubr.msk.f32.gmra.mrb[96].mxu1 %vm4859_vm3, %v17169_v3  ;;  %v7421_v3 = vld [vmem:[%s20145_s24 + $0x1b8] sm:$0xff] }
0x1a2e   : > { %7881 = vmatprep.mubr.f32.mxu1 %v24047_v24  ;;  %17919 = vmatpush1.bf16.msra.mxu1 %v17918_v62  ;;  %v17932_v5 = vpack.c.bf16 %v7421_v3, %v7419_v2 }
0x1a2f   : > { %17921 = vmatprep.subr.bf16.mxu1 %v17920_v27 }
0x1a31   : > { %15778 = vmatmul.mubr.msk.f32.gmra.mrb[98].mxu1 %vm4859_vm3, %v6887_v40  ;;  %v17938_v40 = vpack.c.bf16 %v7424_v20, %v7422_v14  ;;  %v24049_v14 = vld [vmem:[#allocation32_spill] sm:$0xff] }
0x1a32   : > { %7887 = vmatprep.mubr.f32.mxu1 %v24047_v24 }
0x1a35   : > { %15779 = vmatmul.mubr.msk.f32.gmra.mrb[100].mxu1 %vm4859_vm3, %v17172_v42  ;;  %v17936_v42 = vpack.c.bf16 %v7425_v37, %v7423_v63  ;;  %v24048_v63 = vld [vmem:[#allocation31_spill] sm:$0xff] }
0x1a36   : > { %7893 = vmatprep.mubr.f32.mxu1 %v24047_v24 }
0x1a39   : > { %15780 = vmatmul.mubr.msk.f32.gmra.mrb[102].mxu1 %vm4859_vm3, %v6897_v35 }
0x1a3a   : > { %7899 = vmatprep.mubr.f32.mxu1 %v24047_v24 }
0x1a3d   : > { %15781 = vmatmul.mubr.msk.f32.gmra.mrb[110].mxu1 %vm4859_vm3, %v17175_v52  ;;  %v17942_v52 = vpack.c.bf16 %v7428_v26, %v7426_v16  ;;  %v24050_v16 = vld [vmem:[#allocation34_spill] sm:$0xff] }
0x1a3e   : > { %7988 = vmatprep.mubr.f32.mxu1 %v24047_v24 }
0x1a44   : > { %v17211_v46 = vpop.f32.mrb[82].mxu0 }
0x1a45   : > { %v7107_v33 = vpop.f32.mrb[83].mxu0 }
0x1a48   : > { %v17214_v59 = vpop.f32.mrb[84].mxu0 }
0x1a49   : > { %v7117_v11 = vpop.f32.mrb[85].mxu0 }
0x1a4d   : > { %v17217_v32 = vpop.f32.mrb[86].mxu0 }
0x1a4e   : > { %v7127_v38 = vpop.f32.mrb[87].mxu0 }
0x1a51   : > { %v17190_v48 = vpop.f32.mrb[82].mxu1 }
0x1a52   : > { %v6992_v13 = vpop.f32.mrb[83].mxu1 }
0x1a53   : > { %15782 = vmatmul.mubr.msk.f32.vlgmr.msra.gmra.mrb[94].mxu1 %vm4859_vm3, %v6992_v13 }
0x1a54   : > { %7994 = vmatprep.mubr.f32.mxu1 %v24047_v24  ;;  %17923 = vmatpush1.bf16.msra.mxu1 %v17922_v25 }
0x1a55   : > { %17925 = vmatprep.subr.bf16.mxu1 %v17924_v29 }
0x1a57   : > { %15783 = vmatmul.mubr.msk.f32.gmra.mrb[96].mxu1 %vm4859_vm3, %v17190_v48 }
0x1a58   : > { %8000 = vmatprep.mubr.f32.mxu1 %v24047_v24  ;;  %17927 = vmatpush1.bf16.msra.mxu1 %v17926_v41 }
0x1a59   : > { %v17193_v45 = vpop.f32.mrb[84].mxu1  ;;  %17929 = vmatprep.subr.bf16.mxu1 %v17928_v18 }
0x1a5a   : > { %v7002_v12 = vpop.f32.mrb[85].mxu1 }
0x1a5b   : > { %15784 = vmatmul.mubr.msk.f32.gmra.mrb[98].mxu1 %vm4859_vm3, %v7002_v12 }
0x1a5c   : > { %8006 = vmatprep.mubr.f32.mxu1 %v24047_v24 }
0x1a5d   : > { %v17196_v43 = vpop.f32.mrb[86].mxu1 }
0x1a5e   : > { %v7012_v23 = vpop.f32.mrb[87].mxu1 }
0x1a5f   : > { %15785 = vmatmul.mubr.msk.f32.gmra.mrb[100].mxu1 %vm4859_vm3, %v17193_v45 }
0x1a60   : > { %8012 = vmatprep.mubr.f32.mxu1 %v24047_v24 }
0x1a63   : > { %15786 = vmatmul.mubr.msk.f32.gmra.mrb[102].mxu1 %vm4859_vm3, %v7012_v23 }
0x1a64   : > { %8018 = vmatprep.mubr.f32.mxu1 %v24047_v24 }
0x1a67   : > { %15787 = vmatmul.mubr.msk.f32.gmra.mrb[112].mxu1 %vm4859_vm3, %v17196_v43 }
0x1a68   : > { %8107 = vmatprep.mubr.f32.mxu1 %v24047_v24 }
0x1a6b   : > { %15788 = vmatmul.mubr.msk.f32.vlgmr.msra.gmra.mrb[94].mxu1 %vm4859_vm3, %v7107_v33 }
0x1a6c   : > { %8113 = vmatprep.mubr.f32.mxu1 %v24047_v24  ;;  %17931 = vmatpush1.bf16.msra.mxu1 %v17930_v15  ;;  %v8482_v15 = vld [vmem:[%s20150_s30] sm:$0x3] }
0x1a6d   : > { %17933 = vmatprep.subr.bf16.mxu1 %v17932_v5  ;;  %v8487_v37 = vrot.slane %v8482_v15, %v24048_v63  ;;  %v8491_v20 = vrot.slane %v8482_v15, %v24049_v14 }
0x1a6f   : > { %15789 = vmatmul.mubr.msk.f32.gmra.mrb[96].mxu1 %vm4859_vm3, %v17211_v46 }
0x1a70   : > { %8119 = vmatprep.mubr.f32.mxu1 %v24047_v24  ;;  %17935 = vmatpush1.bf16.msra.mxu1 %v17934_v47 }
0x1a71   : > { %17937 = vmatprep.subr.bf16.mxu1 %v17936_v42 }
0x1a73   : > { %15790 = vmatmul.mubr.msk.f32.gmra.mrb[98].mxu1 %vm4859_vm3, %v7117_v11 }
0x1a74   : > { %8125 = vmatprep.mubr.f32.mxu1 %v24047_v24 }
0x1a77   : > { %15791 = vmatmul.mubr.msk.f32.gmra.mrb[100].mxu1 %vm4859_vm3, %v17214_v59 }
0x1a78   : > { %8131 = vmatprep.mubr.f32.mxu1 %v24047_v24 }
0x1a7b   : > { %15792 = vmatmul.mubr.msk.f32.gmra.mrb[102].mxu1 %vm4859_vm3, %v7127_v38 }
0x1a7c   : > { %8137 = vmatprep.mubr.f32.mxu1 %v24047_v24 }
0x1a7f   : > { %15793 = vmatmul.mubr.msk.f32.gmra.mrb[114].mxu1 %vm4859_vm3, %v17217_v32 }
0x1a80   : > { %8226 = vmatprep.mubr.f32.mxu1 %v24047_v24 }
0x1a89   : > { %v17232_v10 = vpop.f32.mrb[88].mxu1 }
0x1a8a   : > { %v7222_v58 = vpop.f32.mrb[89].mxu1 }
0x1a8b   : > { %15794 = vmatmul.mubr.msk.f32.vlgmr.msra.gmra.mrb[94].mxu1 %vm4859_vm3, %v7222_v58  ;;  %v24051_v58 = vld [vmem:[#allocation40_spill] sm:$0xff] }
0x1a8c   : > { %8232 = vmatprep.mubr.f32.mxu1 %v24047_v24  ;;  %17939 = vmatpush1.bf16.msra.mxu1 %v17938_v40 }
0x1a8d   : > { %17941 = vmatprep.subr.bf16.mxu1 %v17940_v54 }
0x1a8f   : > { %15795 = vmatmul.mubr.msk.f32.gmra.mrb[96].mxu1 %vm4859_vm3, %v17232_v10 }
0x1a90   : > { %8238 = vmatprep.mubr.f32.mxu1 %v24047_v24  ;;  %17943 = vmatpush1.bf16.msra.mxu1 %v17942_v52 }
0x1a91   : > { %v17235_v61 = vpop.f32.mrb[90].mxu1 }
0x1a92   : > { %v7232_v35 = vpop.f32.mrb[91].mxu1 }
0x1a93   : > { %15796 = vmatmul.mubr.msk.f32.gmra.mrb[98].mxu1 %vm4859_vm3, %v7232_v35 }
0x1a94   : > { %8244 = vmatprep.mubr.f32.mxu1 %v24047_v24 }
0x1a97   : > { %15797 = vmatmul.mubr.msk.f32.gmra.mrb[100].mxu1 %vm4859_vm3, %v17235_v61 }
0x1a98   : > { %8250 = vmatprep.mubr.f32.mxu1 %v24047_v24 }
0x1a99   : > { %v17238_v4 = vpop.f32.mrb[92].mxu1 }
0x1a9a   : > { %v7242_v34 = vpop.f32.mrb[93].mxu1 }
0x1a9b   : > { %15798 = vmatmul.mubr.msk.f32.gmra.mrb[102].mxu1 %vm4859_vm3, %v7242_v34 }
0x1a9c   : > { %v17253_v44 = vpop.f32.mrb[88].mxu0  ;;  %8256 = vmatprep.mubr.f32.mxu1 %v24047_v24 }
0x1a9d   : > { %v7337_v6 = vpop.f32.mrb[89].mxu0 }
0x1a9f   : > { %15799 = vmatmul.mubr.msk.f32.gmra.mrb[116].mxu1 %vm4859_vm3, %v17238_v4 }
0x1aa0   : > { %8345 = vmatprep.mubr.f32.mxu1 %v24047_v24 }
0x1aa3   : > { %15800 = vmatmul.mubr.msk.f32.vlgmr.msra.gmra.mrb[94].mxu1 %vm4859_vm3, %v7337_v6  ;;  %v24052_v6 = vld [vmem:[#allocation33_spill] sm:$0xff] }
0x1aa4   : > { %8351 = vmatprep.mubr.f32.mxu1 %v24047_v24 }
0x1aa7   : > { %15801 = vmatmul.mubr.msk.f32.gmra.mrb[96].mxu1 %vm4859_vm3, %v17253_v44 }
0x1aa8   : > { %8357 = vmatprep.mubr.f32.mxu1 %v24047_v24 }
0x1ab1   : > { %v7544_v28 = vpop.f32.mrb[104].mxu1 }
0x1ab2   : > { %v7546_v53 = vpop.f32.mrb[105].mxu1  ;;  %v8452_v55 = vsel %vm6463_vm5, %v7544_v28, 0.0 }
0x1ab3   : > { %v8467_v46 = vsel %vm6463_vm5, %v7546_v53, 0.0  ;;  %v24053_v53 = vld [vmem:[#allocation39_spill] sm:$0xff] }
0x1acf   : > { %v17256_v0 = vpop.f32.mrb[90].mxu0 }
0x1ad0   : > { %v7347_v50 = vpop.f32.mrb[91].mxu0 }
0x1ad1   : > { %15802 = vmatmul.mubr.msk.f32.gmra.mrb[98].mxu1 %vm4859_vm3, %v7347_v50 }
0x1ad2   : > { %8363 = vmatprep.mubr.f32.mxu1 %v24047_v24 }
0x1ad4   : > { %v17259_v57 = vpop.f32.mrb[92].mxu0 }
0x1ad5   : > { %v7357_v9 = vpop.f32.mrb[93].mxu0  ;;  %15803 = vmatmul.mubr.msk.f32.gmra.mrb[100].mxu1 %vm4859_vm3, %v17256_v0 }
0x1ad6   : > { %8369 = vmatprep.mubr.f32.mxu1 %v24047_v24 }
0x1ad9   : > { %15804 = vmatmul.mubr.msk.f32.gmra.mrb[102].mxu1 %vm4859_vm3, %v7357_v9 }
0x1ada   : > { %8375 = vmatprep.mubr.f32.mxu1 %v24047_v24 }
0x1add   : > { %15805 = vmatmul.mubr.msk.f32.gmra.mrb[118].mxu1 %vm4859_vm3, %v17259_v57 }
0x1ae0   : > { %v7663_v17 = vpop.f32.mrb[106].mxu1 }
0x1ae1   : > { %v8453_v62 = vsel %vm6463_vm5, %v7663_v17, 0.0  ;;  %v7665_v27 = vpop.f32.mrb[107].mxu1 }
0x1ae2   : > { %v8454_v33 = vadd.f32 %v8453_v62, %v8452_v55  ;;  %v8468_v59 = vsel %vm6463_vm5, %v7665_v27, 0.0  ;;  %v24054_v62 = vld [vmem:[#allocation36_spill] sm:$0xff] }
0x1ae3   : > { %v8469_v11 = vadd.f32 %v8468_v59, %v8467_v46  ;;  %v24055_v46 = vld [vmem:[#allocation42_spill] sm:$0xff] }
0x1af8   : > { %v7782_v32 = vpop.f32.mrb[108].mxu1 }
0x1af9   : > { %v8455_v36 = vsel %vm6463_vm5, %v7782_v32, 0.0  ;;  %v7784_v49 = vpop.f32.mrb[109].mxu1 }
0x1afa   : > { %v8456_v38 = vadd.f32 %v8455_v36, %v8454_v33  ;;  %v8470_v1 = vsel %vm6463_vm5, %v7784_v49, 0.0 }
0x1afb   : > { %v8471_v60 = vadd.f32 %v8470_v1, %v8469_v11 }
0x1b10   : > { %v7901_v25 = vpop.f32.mrb[110].mxu1 }
0x1b11   : > { %v8457_v48 = vsel %vm6463_vm5, %v7901_v25, 0.0  ;;  %v7903_v29 = vpop.f32.mrb[111].mxu1 }
0x1b12   : > { %v8458_v56 = vadd.f32 %v8457_v48, %v8456_v38  ;;  %v8472_v30 = vsel %vm6463_vm5, %v7903_v29, 0.0  ;;  %v24056_v38 = vld [vmem:[#allocation35_spill] sm:$0xff] }
0x1b13   : > { %v8473_v13 = vadd.f32 %v8472_v30, %v8471_v60  ;;  %v24057_v60 = vld [vmem:[#allocation41_spill] sm:$0xff] }
0x1b3a   : > { %v8020_v8 = vpop.f32.mrb[112].mxu1 }
0x1b3b   : > { %v8459_v19 = vsel %vm6463_vm5, %v8020_v8, 0.0  ;;  %v8022_v41 = vpop.f32.mrb[113].mxu1  ;;  %v24058_v8 = vld [vmem:[#allocation38_spill] sm:$0xff] }
0x1b3c   : > { %v8460_v18 = vadd.f32 %v8459_v19, %v8458_v56  ;;  %v8474_v45 = vsel %vm6463_vm5, %v8022_v41, 0.0  ;;  %v24059_v41 = vld [vmem:[#allocation44_spill] sm:$0xff] }
0x1b3d   : > { %v8475_v12 = vadd.f32 %v8474_v45, %v8473_v13 }
0x1b52   : > { %v8139_v43 = vpop.f32.mrb[114].mxu1 }
0x1b53   : > { %v8461_v23 = vsel %vm6463_vm5, %v8139_v43, 0.0  ;;  %v8141_v51 = vpop.f32.mrb[115].mxu1 }
0x1b54   : > { %v8462_v22 = vadd.f32 %v8461_v23, %v8460_v18  ;;  %v8476_v2 = vsel %vm6463_vm5, %v8141_v51, 0.0 }
0x1b55   : > { %v8477_v3 = vadd.f32 %v8476_v2, %v8475_v12 }
0x1b72   : > { %v8258_v5 = vpop.f32.mrb[116].mxu1 }
0x1b73   : > { %v8463_v39 = vsel %vm6463_vm5, %v8258_v5, 0.0  ;;  %v8260_v31 = vpop.f32.mrb[117].mxu1  ;;  %v24060_v5 = vld [vmem:[#allocation37_spill] sm:$0xff] }
0x1b74   : > { %v8464_v47 = vadd.f32 %v8463_v39, %v8462_v22  ;;  %v8478_v42 = vsel %vm6463_vm5, %v8260_v31, 0.0  ;;  %v24061_v31 = vld [vmem:[#allocation43_spill] sm:$0xff] }
0x1b75   : > { %v8479_v7 = vadd.f32 %v8478_v42, %v8477_v3 }
0x1b76   : > { %v8347_v21 = vpop.f32.mrb[94].mxu1 }
0x1b77   : > { %v8494_v40 = vadd.f32 %v8487_v37, %v8347_v21  ;;  %v8349_v10 = vpop.f32.mrb[95].mxu1 }
0x1b78   : > { %v8495_v54 = vadd.f32 %v8491_v20, %v8349_v10  ;;  %v18501_v10 = vld [vmem:[%s20165_s20 + $0x20] ss:$16 sps:$4 sm:$0xff]  }
0x1b79   : > { %v22405_v26 = vadd.f32 %v8494_v40, %v24050_v16  ;;  %v18503_v40 = vld [vmem:[%s20165_s20 + $0x24] ss:$16 sps:$4 sm:$0xff]   ;;  %v18504_v16 = vld [vmem:[%s20165_s20 + $0x40] ss:$16 sps:$4 sm:$0xff]  }
0x1b7a   : > { %v22408_v52 = vadd.f32 %v8495_v54, %v24051_v58  ;;  %v8353_v61 = vpop.f32.mrb[96].mxu1  ;;  %v18506_v54 = vld [vmem:[%s20165_s20 + $0x44] ss:$16 sps:$4 sm:$0xff]  }
0x1b7b   : > { %v8496_v35 = vadd.f32 %v8487_v37, %v8353_v61  ;;  %v8355_v4 = vpop.f32.mrb[97].mxu1  ;;  %v18509_v58 = vld [vmem:[%s20165_s20 + $0x64] ss:$16 sps:$4 sm:$0xff]   ;;  %v18507_v61 = vld [vmem:[%s20165_s20 + $0x60] ss:$16 sps:$4 sm:$0xff]  }
0x1b7c   : > { %v8497_v34 = vadd.f32 %v8491_v20, %v8355_v4  ;;  %v8520_v44 = vadd.f32 %v22408_v52, %v22405_v26  ;;  %v18510_v4 = vld [vmem:[%s20165_s20 + $0x80] ss:$16 sps:$4 sm:$0xff]  }
0x1b7d   : > { %v22413_v28 = vadd.f32 %v24052_v6, %v8496_v35  ;;  %v18512_v35 = vld [vmem:[%s20165_s20 + $0x84] ss:$16 sps:$4 sm:$0xff]  }
0x1b7e   : > { %v22416_v0 = vadd.f32 %v24053_v53, %v8497_v34  ;;  %8521 = vadd.xlane.f32.xlu0 %v8520_v44  ;;  %v18515_v34 = vld [vmem:[%s20165_s20 + $0xa4] ss:$16 sps:$4 sm:$0xff]   ;;  %v18513_v44 = vld [vmem:[%s20165_s20 + $0xa0] ss:$16 sps:$4 sm:$0xff]  }
0x1b7f   : > { %v18518_v6 = vld [vmem:[%s20165_s20 + $0xc4] ss:$16 sps:$4 sm:$0xff]   ;;  %v18516_v53 = vld [vmem:[%s20165_s20 + $0xc0] ss:$16 sps:$4 sm:$0xff]  }
0x1b80   : > { %v8523_v50 = vadd.f32 %v22416_v0, %v22413_v28 }
0x1b82   : > { %8524 = vadd.xlane.f32.xlu1 %v8523_v50  ;;  %v18521_v50 = vld [vmem:[%s20165_s20 + $0xe4] ss:$16 sps:$4 sm:$0xff]  }
0x1ba4   : > { %v8359_v57 = vpop.f32.mrb[98].mxu1 }
0x1ba5   : > { %v8498_v9 = vadd.f32 %v8487_v37, %v8359_v57  ;;  %v8361_v17 = vpop.f32.mrb[99].mxu1  ;;  %v18519_v57 = vld [vmem:[%s20165_s20 + $0xe0] ss:$16 sps:$4 sm:$0xff]  }
0x1ba6   : > { %v8499_v55 = vadd.f32 %v8491_v20, %v8361_v17  ;;  %v18522_v17 = vld [vmem:[%s20165_s20 + $0x100] ss:$16 sps:$4 sm:$0xff]  }
0x1ba7   : > { %v22421_v27 = vadd.f32 %v8498_v9, %v24054_v62  ;;  %v18524_v9 = vld [vmem:[%s20165_s20 + $0x104] ss:$16 sps:$4 sm:$0xff]  }
0x1ba8   : > { %v22424_v33 = vadd.f32 %v8499_v55, %v24055_v46  ;;  %v8365_v59 = vpop.f32.mrb[100].mxu1 }
0x1ba9   : > { %v8500_v11 = vadd.f32 %v8487_v37, %v8365_v59  ;;  %v8367_v32 = vpop.f32.mrb[101].mxu1 }
0x1baa   : > { %v8501_v36 = vadd.f32 %v8491_v20, %v8367_v32  ;;  %v8526_v49 = vadd.f32 %v22424_v33, %v22421_v27 }
0x1bab   : > { %v22429_v1 = vadd.f32 %v24056_v38, %v8500_v11 }
0x1bac   : > { %v22432_v25 = vadd.f32 %v24057_v60, %v8501_v36  ;;  %8527 = vadd.xlane.f32.xlu0 %v8526_v49  ;;  %v8371_v48 = vpop.f32.mrb[102].mxu1 }
0x1bad   : > { %v8502_v29 = vadd.f32 %v8487_v37, %v8371_v48  ;;  %v8373_v56 = vpop.f32.mrb[103].mxu1 }
0x1bae   : > { %v8503_v30 = vadd.f32 %v8491_v20, %v8373_v56  ;;  %v8529_v13 = vadd.f32 %v22432_v25, %v22429_v1  ;;  %v18525_v56 = vld [vmem:[%s20165_s20 + $0x120] ss:$16 sps:$4 sm:$0xff]  }
0x1baf   : > { %v22437_v19 = vadd.f32 %v8502_v29, %v24058_v8  ;;  %v18531_v8 = vld [vmem:[%s20165_s20 + $0x160] ss:$16 sps:$4 sm:$0xff]  }
0x1bb0   : > { %v22440_v18 = vadd.f32 %v8503_v30, %v24059_v41  ;;  %8530 = vadd.xlane.f32.xlu1 %v8529_v13  ;;  %v8377_v45 = vpop.f32.mrb[118].mxu1  ;;  %v18528_v30 = vld [vmem:[%s20165_s20 + $0x140] ss:$16 sps:$4 sm:$0xff]   ;;  %v18533_v13 = vld [vmem:[%s20165_s20 + $0x164] ss:$16 sps:$4 sm:$0xff]  }
0x1bb1   : > { %v8465_v12 = vsel %vm6463_vm5, %v8377_v45, 0.0  ;;  %v8379_v43 = vpop.f32.mrb[119].mxu1  ;;  %v18536_v41 = vld [vmem:[%s20165_s20 + $0x184] ss:$16 sps:$4 sm:$0xff]   ;;  %v18534_v45 = vld [vmem:[%s20165_s20 + $0x180] ss:$16 sps:$4 sm:$0xff]  }
0x1bb2   : > { %v8466_v23 = vadd.f32 %v8465_v12, %v8464_v47  ;;  %v8480_v51 = vsel %vm6463_vm5, %v8379_v43, 0.0  ;;  %v8532_v22 = vadd.f32 %v22440_v18, %v22437_v19  ;;  %v18539_v12 = vld [vmem:[%s20165_s20 + $0x1a4] ss:$16 sps:$4 sm:$0xff]   ;;  %v18537_v43 = vld [vmem:[%s20165_s20 + $0x1a0] ss:$16 sps:$4 sm:$0xff]  }
0x1bb3   : > { %v8481_v2 = vadd.f32 %v8480_v51, %v8479_v7  ;;  %v18542_v51 = vld [vmem:[%s20165_s20 + $0x1c4] ss:$16 sps:$4 sm:$0xff]  }
0x1bb4   : > { %v8504_v3 = vadd.f32 %v8487_v37, %v8466_v23  ;;  %8533 = vadd.xlane.f32.xlu1 %v8532_v22  ;;  %v18498_v37 = vld [vmem:[%s20165_s20] ss:$16 sps:$4 sm:$0xff]  }
0x1bb5   : > { %v8505_v15 = vadd.f32 %v8491_v20, %v8481_v2  ;;  %v18500_v20 = vld [vmem:[%s20165_s20 + $0x4] ss:$16 sps:$4 sm:$0xff]  }
0x1bb6   : > { %v22447_v39 = vadd.f32 %v24060_v5, %v8504_v3  ;;  %9079 = vmatprep.subr.bf16.mxu0 %v18500_v20  ;;  %v18543_v20 = vld [vmem:[%s20165_s20 + $0x1e0] ss:$16 sps:$4 sm:$0xff]  }
0x1bb7   : > { %v22450_v42 = vadd.f32 %v24061_v31, %v8505_v15  ;;  %9080 = vmatpush1.bf16.msra.mxu0 %v18498_v37  ;;  %v18540_v15 = vld [vmem:[%s20165_s20 + $0x1c0] ss:$16 sps:$4 sm:$0xff]   ;;  %v18545_v31 = vld [vmem:[%s20165_s20 + $0x1e4] ss:$16 sps:$4 sm:$0xff]  }
0x1bb8   : > { %v8535_v47 = vsel %vm6463_vm5, %v22447_v39, 0.0  ;;  %9081 = vmatprep.subr.bf16.mxu0 %v18503_v40 }
0x1bb9   : > { %v8536_v21 = vsel %vm6463_vm5, %v22450_v42, 0.0 }
0x1bba   : > { %v8537_v7 = vadd.f32 %v8536_v21, %v8535_v47 }
0x1bbb   : > { %9082 = vmatpush1.bf16.msra.mxu0 %v18501_v10  ;;  %v18548_v10 = vld [vmem:[%s20165_s20 + $0xc] ss:$16 sps:$4 sm:$0xff]  }
0x1bbc   : > { %8538 = vadd.xlane.f32.xlu0 %v8537_v7  ;;  %9083 = vmatprep.subr.bf16.mxu0 %v18506_v54 }
0x1bbf   : > { %9084 = vmatpush1.bf16.msra.mxu0 %v18504_v16 }
0x1bc0   : > { %9085 = vmatprep.subr.bf16.mxu0 %v18509_v58 }
0x1bc3   : > { %9086 = vmatpush1.bf16.msra.mxu0 %v18507_v61 }
0x1bc4   : > { %9087 = vmatprep.subr.bf16.mxu0 %v18512_v35 }
0x1bc7   : > { %9088 = vmatpush1.bf16.msra.mxu0 %v18510_v4 }
0x1bc8   : > { %9089 = vmatprep.subr.bf16.mxu0 %v18515_v34 }
0x1bcb   : > { %9090 = vmatpush1.bf16.msra.mxu0 %v18513_v44 }
0x1bcc   : > { %9091 = vmatprep.subr.bf16.mxu0 %v18518_v6 }
0x1bcf   : > { %9092 = vmatpush1.bf16.msra.mxu0 %v18516_v53 }
0x1bd0   : > { %9093 = vmatprep.subr.bf16.mxu0 %v18521_v50 }
0x1bd3   : > { %9094 = vmatpush1.bf16.msra.mxu0 %v18519_v57 }
0x1bd4   : > { %9095 = vmatprep.subr.bf16.mxu0 %v18524_v9 }
0x1bd7   : > { %9096 = vmatpush1.bf16.msra.mxu0 %v18522_v17 }
0x1c0b   : > { %v8522_v55 = vpop.xlane.xlu0 %8521 }
0x1c0c   : > { %v8541_v62 = vmul.f32 0.00390625, %v8522_v55 }
0x1c0e   : > { %v22475_v46 = vsub.f32 %v22405_v26, %v8541_v62  ;;  %v22478_v59 = vsub.f32 %v22408_v52, %v8541_v62 }
0x1c0f   : > { %v8525_v11 = vpop.xlane.xlu1 %8524 }
0x1c10   : > { %v8559_v32 = vmul.f32 %v22475_v46, %v22475_v46  ;;  %v8560_v36 = vmul.f32 %v22478_v59, %v22478_v59  ;;  %v8542_v49 = vmul.f32 0.00390625, %v8525_v11 }
0x1c12   : > { %v22485_v38 = vsub.f32 %v22413_v28, %v8542_v49  ;;  %v22488_v26 = vsub.f32 %v22416_v0, %v8542_v49  ;;  %v8571_v52 = vadd.f32 %v8560_v36, %v8559_v32  ;;  %v18527_v28 = vld [vmem:[%s20165_s20 + $0x124] ss:$16 sps:$4 sm:$0xff]   ;;  %v8518_v36 = vld [vmem:[%s24062_s12] sm:$0x3]  ;;  %s24069_s12 = sld [smem:[#allocation21_spill]] }
0x1c13   : > { %9097 = vmatprep.subr.bf16.mxu0 %v18527_v28  ;;  %v18530_v0 = vld [vmem:[%s20165_s20 + $0x144] ss:$16 sps:$4 sm:$0xff]   ;;  %v22559_v28 = vrot.slane %v8518_v36, %v24049_v14 }
0x1c14   : > { %v8561_v60 = vmul.f32 %v22485_v38, %v22485_v38  ;;  %v8562_v48 = vmul.f32 %v22488_v26, %v22488_v26  ;;  %8572 = vadd.xlane.f32.xlu0 %v8571_v52  ;;  %9098 = vmatpush1.bf16.msra.mxu0 %v18525_v56  ;;  %v22553_v52 = vrot.slane %v8518_v36, %v24048_v63 }
0x1c15   : > { %9099 = vmatprep.subr.bf16.mxu0 %v18530_v0 }
0x1c16   : > { %v8574_v29 = vadd.f32 %v8562_v48, %v8561_v60  ;;  %v8519_v48 = vld [vmem:[%s24063_s23] sm:$0x3]  ;;  %s24070_s23 = sld [smem:[#allocation24_spill]] }
0x1c17   : > { %v22562_v0 = vrot.slane %v8519_v48, %v24048_v63 }
0x1c18   : > { %8575 = vadd.xlane.f32.xlu1 %v8574_v29  ;;  %9100 = vmatpush1.bf16.msra.mxu0 %v18528_v30  ;;  %v22565_v30 = vrot.slane %v8519_v48, %v24049_v14 }
0x1c19   : > { %9101 = vmatprep.subr.bf16.mxu0 %v18533_v13 }
0x1c1c   : > { %9102 = vmatpush1.bf16.msra.mxu0 %v18531_v8 }
0x1c1d   : > { %9103 = vmatprep.subr.bf16.mxu0 %v18536_v41 }
0x1c20   : > { %9104 = vmatpush1.bf16.msra.mxu0 %v18534_v45 }
0x1c21   : > { %9105 = vmatprep.subr.bf16.mxu0 %v18539_v12 }
0x1c24   : > { %9106 = vmatpush1.bf16.msra.mxu0 %v18537_v43 }
0x1c25   : > { %9107 = vmatprep.subr.bf16.mxu0 %v18542_v51 }
0x1c28   : > { %9108 = vmatpush1.bf16.msra.mxu0 %v18540_v15  ;;  %v18551_v15 = vld [vmem:[%s20165_s20 + $0x2c] ss:$16 sps:$4 sm:$0xff]  }
0x1c29   : > { %9109 = vmatprep.subr.bf16.mxu0 %v18545_v31  ;;  %v18554_v31 = vld [vmem:[%s20165_s20 + $0x4c] ss:$16 sps:$4 sm:$0xff]  }
0x1c2c   : > { %9110 = vmatpush1.bf16.msra.mxu0 %v18543_v20  ;;  %v18558_v20 = vld [vmem:[%s20165_s20 + $0x88] ss:$16 sps:$4 sm:$0xff]  }
0x1c2d   : > { %9142 = vmatprep.subr.bf16.mxu0 %v18548_v10 }
0x1c39   : > { %v8528_v23 = vpop.xlane.xlu0 %8527 }
0x1c3a   : > { %v8543_v22 = vmul.f32 0.00390625, %v8528_v23 }
0x1c3c   : > { %v22506_v2 = vsub.f32 %v22421_v27, %v8543_v22  ;;  %v22509_v3 = vsub.f32 %v22424_v33, %v8543_v22  ;;  %v18546_v22 = vld [vmem:[%s20165_s20 + $0x8] ss:$16 sps:$4 sm:$0xff]  }
0x1c3d   : > { %v8531_v5 = vpop.xlane.xlu1 %8530 }
0x1c3e   : > { %v8563_v47 = vmul.f32 %v22506_v2, %v22506_v2  ;;  %v8564_v21 = vmul.f32 %v22509_v3, %v22509_v3  ;;  %v8544_v7 = vmul.f32 0.00390625, %v8531_v5  ;;  %v18549_v5 = vld [vmem:[%s20165_s20 + $0x28] ss:$16 sps:$4 sm:$0xff]  }
0x1c40   : > { %v22518_v37 = vsub.f32 %v22429_v1, %v8544_v7  ;;  %v22521_v27 = vsub.f32 %v22432_v25, %v8544_v7  ;;  %v8577_v33 = vadd.f32 %v8564_v21, %v8563_v47  ;;  %v18552_v47 = vld [vmem:[%s20165_s20 + $0x48] ss:$16 sps:$4 sm:$0xff]   ;;  %v18557_v21 = vld [vmem:[%s20165_s20 + $0x6c] ss:$16 sps:$4 sm:$0xff]  }
0x1c41   : > { %v8534_v40 = vpop.xlane.xlu1 %8533  ;;  %v18555_v7 = vld [vmem:[%s20165_s20 + $0x68] ss:$16 sps:$4 sm:$0xff]  }
0x1c42   : > { %v8565_v54 = vmul.f32 %v22518_v37, %v22518_v37  ;;  %v8566_v16 = vmul.f32 %v22521_v27, %v22521_v27  ;;  %v8545_v58 = vmul.f32 0.00390625, %v8534_v40  ;;  %8578 = vadd.xlane.f32.xlu0 %v8577_v33  ;;  %v18560_v33 = vld [vmem:[%s20165_s20 + $0x8c] ss:$16 sps:$4 sm:$0xff]  }
0x1c43   : > { %v18563_v40 = vld [vmem:[%s20165_s20 + $0xac] ss:$16 sps:$4 sm:$0xff]  }
0x1c44   : > { %v22530_v1 = vsub.f32 %v22437_v19, %v8545_v58  ;;  %v22533_v25 = vsub.f32 %v22440_v18, %v8545_v58  ;;  %v8580_v61 = vadd.f32 %v8566_v16, %v8565_v54  ;;  %v18561_v54 = vld [vmem:[%s20165_s20 + $0xa8] ss:$16 sps:$4 sm:$0xff]   ;;  %v18566_v58 = vld [vmem:[%s20165_s20 + $0xcc] ss:$16 sps:$4 sm:$0xff]  }
0x1c46   : > { %v8567_v35 = vmul.f32 %v22530_v1, %v22530_v1  ;;  %v8568_v4 = vmul.f32 %v22533_v25, %v22533_v25  ;;  %8581 = vadd.xlane.f32.xlu1 %v8580_v61 }
0x1c48   : > { %v8583_v34 = vadd.f32 %v8568_v4, %v8567_v35  ;;  %v18564_v4 = vld [vmem:[%s20165_s20 + $0xc8] ss:$16 sps:$4 sm:$0xff]  }
0x1c49   : > { %v8539_v44 = vpop.xlane.xlu0 %8538 }
0x1c4a   : > { %v8546_v6 = vmul.f32 0.00390625, %v8539_v44  ;;  %8584 = vadd.xlane.f32.xlu0 %v8583_v34  ;;  %v18569_v44 = vld [vmem:[%s20165_s20 + $0xec] ss:$16 sps:$4 sm:$0xff]  }
0x1c4c   : > { %v22540_v19 = vsub.f32 %v22447_v39, %v8546_v6  ;;  %v22543_v18 = vsub.f32 %v22450_v42, %v8546_v6 }
0x1c4e   : > { %v8569_v53 = vmul.f32 %v22540_v19, %v22540_v19  ;;  %v8570_v50 = vmul.f32 %v22543_v18, %v22543_v18 }
0x1c50   : > { %v8586_v57 = vsel %vm6463_vm5, %v8569_v53, 0.0  ;;  %v8587_v9 = vsel %vm6463_vm5, %v8570_v50, 0.0  ;;  %v18567_v50 = vld [vmem:[%s20165_s20 + $0xe8] ss:$16 sps:$4 sm:$0xff]  }
0x1c51   : > { %v8588_v17 = vadd.f32 %v8587_v9, %v8586_v57  ;;  %v18572_v9 = vld [vmem:[%s20165_s20 + $0x10c] ss:$16 sps:$4 sm:$0xff]  }
0x1c53   : > { %8589 = vadd.xlane.f32.xlu1 %v8588_v17 }
0x1ca1   : > { %v8573_v55 = vpop.xlane.xlu0 %8572 }
0x1ca2   : > { %v8591_v39 = vmul.f32 0.00390625, %v8573_v55  ;;  %v18570_v55 = vld [vmem:[%s20165_s20 + $0x108] ss:$16 sps:$4 sm:$0xff]  }
0x1ca4   : > { %v8597_v62 = vadd.f32 1e-05, %v8591_v39  ;;  %v18575_v39 = vld [vmem:[%s20165_s20 + $0x12c] ss:$16 sps:$4 sm:$0xff]  }
0x1ca5   : > { %v8576_v11 = vpop.xlane.xlu1 %8575 }
0x1ca6   : > { %19954 = vrsqrt.f32 %v8597_v62  ;;  %v8592_v42 = vmul.f32 0.00390625, %v8576_v11  ;;  %v18573_v11 = vld [vmem:[%s20165_s20 + $0x128] ss:$16 sps:$4 sm:$0xff]  }
0x1ca8   : > { %v8598_v32 = vadd.f32 1e-05, %v8592_v42 }
0x1caa   : > { %19956 = vrsqrt.f32 %v8598_v32 }
0x1cb0   : > { %v19955_v49 = vpop.eup %19954 }
0x1cb1   : > { %v8609_v60 = vmul.f32 %v19955_v49, %v22475_v46  ;;  %v8610_v29 = vmul.f32 %v19955_v49, %v22478_v59  ;;  %v18578_v49 = vld [vmem:[%s20165_s20 + $0x14c] ss:$16 sps:$4 sm:$0xff]  }
0x1cb3   : > { %v8632_v13 = vmul.f32 %v22553_v52, %v8609_v60  ;;  %v8633_v59 = vmul.f32 %v22559_v28, %v8610_v29 }
0x1cb4   : > { %v19957_v56 = vpop.eup %19956 }
0x1cb5   : > { %v8611_v8 = vmul.f32 %v19957_v56, %v22485_v38  ;;  %v8612_v46 = vmul.f32 %v19957_v56, %v22488_v26  ;;  %v22574_v12 = vadd.f32 %v22565_v30, %v8633_v59  ;;  %v22580_v38 = vadd.f32 %v22562_v0, %v8632_v13  ;;  %v18576_v13 = vld [vmem:[%s20165_s20 + $0x148] ss:$16 sps:$4 sm:$0xff]  }
0x1cb7   : > { %v8634_v41 = vmul.f32 %v22553_v52, %v8611_v8  ;;  %v8635_v45 = vmul.f32 %v22559_v28, %v8612_v46 }
0x1cb9   : > { %v22577_v43 = vadd.f32 %v22565_v30, %v8635_v45  ;;  %v22583_v26 = vadd.f32 %v22562_v0, %v8634_v41 }
0x1cbb   : > { %v22587_v23 = vpack.c.bf16 %v22577_v43, %v22574_v12  ;;  %v22591_v51 = vpack.c.bf16 %v22583_v26, %v22580_v38 }
0x1cbd   : > { %9111 = vmatprep.mubr.bf16.mxu0 %v22587_v23 }
0x1cbe   : > { %9112 = vmatmul.mubr.bf16.vlgmr.msra.gmra.mrb[96].mxu0 %v22591_v51 }
0x1cbf   : > { %9143 = vmatpush1.bf16.msra.mxu0 %v18546_v22 }
0x1cc0   : > { %9144 = vmatprep.subr.bf16.mxu0 %v18551_v15  ;;  %v18579_v15 = vld [vmem:[%s20165_s20 + $0x168] ss:$16 sps:$4 sm:$0xff]  }
0x1cc3   : > { %9145 = vmatpush1.bf16.msra.mxu0 %v18549_v5  ;;  %v18584_v5 = vld [vmem:[%s20165_s20 + $0x18c] ss:$16 sps:$4 sm:$0xff]  }
0x1cc4   : > { %9146 = vmatprep.subr.bf16.mxu0 %v18554_v31 }
0x1cc7   : > { %9147 = vmatpush1.bf16.msra.mxu0 %v18552_v47 }
0x1cc8   : > { %9148 = vmatprep.subr.bf16.mxu0 %v18557_v21 }
0x1ccb   : > { %9149 = vmatpush1.bf16.msra.mxu0 %v18555_v7  ;;  %v18582_v7 = vld [vmem:[%s20165_s20 + $0x188] ss:$16 sps:$4 sm:$0xff]  }
0x1ccc   : > { %9150 = vmatprep.subr.bf16.mxu0 %v18560_v33  ;;  %v18587_v33 = vld [vmem:[%s20165_s20 + $0x1ac] ss:$16 sps:$4 sm:$0xff]  }
0x1ccf   : > { %v8579_v10 = vpop.xlane.xlu0 %8578  ;;  %9151 = vmatpush1.bf16.msra.mxu0 %v18558_v20 }
0x1cd0   : > { %v8593_v16 = vmul.f32 0.00390625, %v8579_v10  ;;  %9152 = vmatprep.subr.bf16.mxu0 %v18563_v40 }
0x1cd2   : > { %v8599_v61 = vadd.f32 1e-05, %v8593_v16 }
0x1cd3   : > { %v8582_v35 = vpop.xlane.xlu1 %8581  ;;  %9153 = vmatpush1.bf16.msra.mxu0 %v18561_v54  ;;  %v18585_v54 = vld [vmem:[%s20165_s20 + $0x1a8] ss:$16 sps:$4 sm:$0xff]  }
0x1cd4   : > { %19958 = vrsqrt.f32 %v8599_v61  ;;  %v8594_v34 = vmul.f32 0.00390625, %v8582_v35  ;;  %9154 = vmatprep.subr.bf16.mxu0 %v18566_v58 }
0x1cd6   : > { %v8600_v6 = vadd.f32 1e-05, %v8594_v34 }
0x1cd7   : > { %v8585_v53 = vpop.xlane.xlu0 %8584  ;;  %9155 = vmatpush1.bf16.msra.mxu0 %v18564_v4  ;;  %v18590_v4 = vld [vmem:[%s20165_s20 + $0x1cc] ss:$16 sps:$4 sm:$0xff]  }
0x1cd8   : > { %19960 = vrsqrt.f32 %v8600_v6  ;;  %v8595_v57 = vmul.f32 0.00390625, %v8585_v53  ;;  %9156 = vmatprep.subr.bf16.mxu0 %v18569_v44 }
0x1cda   : > { %v8601_v17 = vadd.f32 1e-05, %v8595_v57  ;;  %v18599_v57 = vld [vmem:[%s24064_s18 + $0x14] ss:$8 sps:$4 sm:$0xff]  }
0x1cdb   : > { %9157 = vmatpush1.bf16.msra.mxu0 %v18567_v50  ;;  %v18596_v50 = vld [vmem:[%s24064_s18 + $0x4] ss:$8 sps:$4 sm:$0xff]  }
0x1cdc   : > { %9158 = vmatprep.subr.bf16.mxu0 %v18572_v9  ;;  %19962 = vrsqrt.f32 %v8601_v17  ;;  %v18597_v9 = vld [vmem:[%s24064_s18 + $0x10] ss:$8 sps:$4 sm:$0xff]   ;;  %v18602_v17 = vld [vmem:[%s24064_s18 + $0x24] ss:$8 sps:$4 sm:$0xff]  }
0x1cde   : > { %v19959_v62 = vpop.eup %19958 }
0x1cdf   : > { %9159 = vmatpush1.bf16.msra.mxu0 %v18570_v55  ;;  %v8614_v42 = vmul.f32 %v19959_v62, %v22509_v3  ;;  %v8613_v32 = vmul.f32 %v19959_v62, %v22506_v2  ;;  %v18581_v2 = vld [vmem:[%s20165_s20 + $0x16c] ss:$16 sps:$4 sm:$0xff]   ;;  %v18600_v55 = vld [vmem:[%s24064_s18 + $0x20] ss:$8 sps:$4 sm:$0xff]  }
0x1ce0   : > { %v8590_v36 = vpop.xlane.xlu1 %8589  ;;  %9160 = vmatprep.subr.bf16.mxu0 %v18575_v39  ;;  %v18603_v39 = vld [vmem:[%s24064_s18 + $0x30] ss:$8 sps:$4 sm:$0xff]   ;;  %v18606_v62 = vld [vmem:[%s24064_s18 + $0x40] ss:$8 sps:$4 sm:$0xff]  }
0x1ce1   : > { %v8596_v60 = vmul.f32 0.00390625, %v8590_v36  ;;  %v8637_v29 = vmul.f32 %v22559_v28, %v8614_v42  ;;  %v8636_v3 = vmul.f32 %v22553_v52, %v8613_v32  ;;  %v18609_v42 = vld [vmem:[%s24064_s18 + $0x50] ss:$8 sps:$4 sm:$0xff]   ;;  %v18614_v32 = vld [vmem:[%s24064_s18 + $0x64] ss:$8 sps:$4 sm:$0xff]  }
0x1ce2   : > { %v19961_v48 = vpop.eup %19960  ;;  %v18612_v36 = vld [vmem:[%s24064_s18 + $0x60] ss:$8 sps:$4 sm:$0xff]  }
0x1ce3   : > { %v8602_v56 = vadd.f32 1e-05, %v8596_v60  ;;  %9161 = vmatpush1.bf16.msra.mxu0 %v18573_v11  ;;  %v8616_v8 = vmul.f32 %v19961_v48, %v22521_v27  ;;  %v8615_v46 = vmul.f32 %v19961_v48, %v22518_v37  ;;  %v22626_v45 = vadd.f32 %v22565_v30, %v8637_v29  ;;  %v18611_v11 = vld [vmem:[%s24064_s18 + $0x54] ss:$8 sps:$4 sm:$0xff]   ;;  %v18615_v60 = vld [vmem:[%s24064_s18 + $0x70] ss:$8 sps:$4 sm:$0xff]  }
0x1ce4   : > { %9162 = vmatprep.subr.bf16.mxu0 %v18578_v49  ;;  %v22632_v37 = vadd.f32 %v22562_v0, %v8636_v3  ;;  %v18617_v49 = vld [vmem:[%s24064_s18 + $0x74] ss:$8 sps:$4 sm:$0xff]   ;;  %v18620_v48 = vld [vmem:[%s24064_s18 + $0x84] ss:$8 sps:$4 sm:$0xff]   ;;  %v18618_v29 = vld [vmem:[%s24064_s18 + $0x80] ss:$8 sps:$4 sm:$0xff]  }
0x1ce5   : > { %19964 = vrsqrt.f32 %v8602_v56  ;;  %v8639_v59 = vmul.f32 %v22559_v28, %v8616_v8  ;;  %v8638_v41 = vmul.f32 %v22553_v52, %v8615_v46  ;;  %v18623_v56 = vld [vmem:[%s24064_s18 + $0x94] ss:$8 sps:$4 sm:$0xff]   ;;  %v18626_v8 = vld [vmem:[%s24064_s18 + $0xa4] ss:$8 sps:$4 sm:$0xff]   ;;  %v18624_v46 = vld [vmem:[%s24064_s18 + $0xa0] ss:$8 sps:$4 sm:$0xff]  }
0x1ce6   : > { %v19963_v31 = vpop.eup %19962  ;;  %v18629_v3 = vld [vmem:[%s24064_s18 + $0xb4] ss:$8 sps:$4 sm:$0xff]  }
0x1ce7   : > { %9163 = vmatpush1.bf16.msra.mxu0 %v18576_v13  ;;  %v22629_v22 = vadd.f32 %v22565_v30, %v8639_v59  ;;  %v22635_v27 = vadd.f32 %v22562_v0, %v8638_v41  ;;  %v8618_v20 = vmul.f32 %v19963_v31, %v22533_v25  ;;  %v8617_v40 = vmul.f32 %v19963_v31, %v22530_v1  ;;  %v18588_v25 = vld [vmem:[%s20165_s20 + $0x1c8] ss:$16 sps:$4 sm:$0xff]   ;;  %v18632_v59 = vld [vmem:[%s24064_s18 + $0xc4] ss:$8 sps:$4 sm:$0xff]  }
0x1ce8   : > { %9164 = vmatprep.subr.bf16.mxu0 %v18581_v2  ;;  %v18621_v13 = vld [vmem:[%s24064_s18 + $0x90] ss:$8 sps:$4 sm:$0xff]   ;;  %v18630_v41 = vld [vmem:[%s24064_s18 + $0xc0] ss:$8 sps:$4 sm:$0xff]   ;;  %v18638_v31 = vld [vmem:[%s24064_s18 + $0xe4] ss:$8 sps:$4 sm:$0xff]  }
0x1ce9   : > { %v8670_v47 = vpack.c.bf16 %v22629_v22, %v22626_v45  ;;  %v8669_v21 = vpack.c.bf16 %v22635_v27, %v22632_v37  ;;  %v8641_v58 = vmul.f32 %v22559_v28, %v8618_v20  ;;  %v8640_v35 = vmul.f32 %v22553_v52, %v8617_v40  ;;  %v18627_v2 = vld [vmem:[%s24064_s18 + $0xb0] ss:$8 sps:$4 sm:$0xff]   ;;  %v22710_v20 = vld [vmem:[%s24065_s2] sm:$0xf]  ;;  %s24071_s2 = sld [smem:[#allocation22_spill]] }
0x1cea   : > { %v22714_v40 = vrot.slane %v22710_v20, %v24048_v63 }
0x1ceb   : > { %9121 = vmatprep.mubr.bf16.mxu0 %v8670_v47  ;;  %9165 = vmatpush1.bf16.msra.mxu0 %v18579_v15  ;;  %v22657_v44 = vadd.f32 %v22565_v30, %v8641_v58  ;;  %v18635_v15 = vld [vmem:[%s24064_s18 + $0xd4] ss:$8 sps:$4 sm:$0xff]  }
0x1cec   : > { %9122 = vmatmul.mubr.bf16.gmra.mrb[100].mxu0 %v8669_v21  ;;  %9166 = vmatprep.subr.bf16.mxu0 %v18584_v5  ;;  %v18633_v5 = vld [vmem:[%s24064_s18 + $0xd0] ss:$8 sps:$4 sm:$0xff]  }
0x1cef   : > { %v19965_v10 = vpop.eup %19964  ;;  %9167 = vmatpush1.bf16.msra.mxu0 %v18582_v7  ;;  %v18639_v7 = vld [vmem:[%s24064_s18 + $0xf0] ss:$8 sps:$4 sm:$0xff]  }
0x1cf0   : > { %9168 = vmatprep.subr.bf16.mxu0 %v18587_v33  ;;  %v8620_v16 = vmul.f32 %v19965_v10, %v22543_v18  ;;  %v8619_v61 = vmul.f32 %v19965_v10, %v22540_v19  ;;  %v22663_v19 = vadd.f32 %v22562_v0, %v8640_v35  ;;  %v18644_v33 = vld [vmem:[%s24064_s18 + $0x104] ss:$8 sps:$4 sm:$0xff]   ;;  %v22718_v10 = vrot.slane %v22710_v20, %v24049_v14 }
0x1cf2   : > { %v8643_v34 = vmul.f32 %v22559_v28, %v8620_v16  ;;  %v8642_v1 = vmul.f32 %v22553_v52, %v8619_v61  ;;  %v18593_v28 = vld [vmem:[%s20165_s20 + $0x1ec] ss:$16 sps:$4 sm:$0xff]  }
0x1cf3   : > { %9169 = vmatpush1.bf16.msra.mxu0 %v18585_v54 }
0x1cf4   : > { %v22660_v18 = vadd.f32 %v22565_v30, %v8643_v34  ;;  %v22666_v6 = vadd.f32 %v22562_v0, %v8642_v1  ;;  %9170 = vmatprep.subr.bf16.mxu0 %v18590_v4  ;;  %v18591_v30 = vld [vmem:[%s20165_s20 + $0x1e8] ss:$16 sps:$4 sm:$0xff]  }
0x1cf5   : > { %v18594_v0 = vld [vmem:[%s24064_s18] ss:$8 sps:$4 sm:$0xff]  }
0x1cf6   : > { %v8672_v52 = vpack.c.bf16 %v22660_v18, %v22657_v44  ;;  %v8671_v53 = vpack.c.bf16 %v22666_v6, %v22663_v19 }
0x1cf7   : > { %9171 = vmatpush1.bf16.msra.mxu0 %v18588_v25 }
0x1cf8   : > { %9131 = vmatprep.mubr.bf16.mxu0 %v8672_v52  ;;  %9172 = vmatprep.subr.bf16.mxu0 %v18593_v28 }
0x1cf9   : > { %9132 = vmatmul.mubr.bf16.gmra.mrb[104].mxu0 %v8671_v53 }
0x1cfa   : > { %9174 = vmatprep.mubr.bf16.mxu0 %v22587_v23  ;;  %v18605_v23 = vld [vmem:[%s24064_s18 + $0x34] ss:$8 sps:$4 sm:$0xff]  }
0x1cfb   : > { %9173 = vmatpush1.bf16.msra.mxu0 %v18591_v30 }
0x1cfc   : > { %9637 = vmatprep.subr.bf16.mxu0 %v18596_v50 }
0x1d01   : > { %9175 = vmatmul.mubr.bf16.vlgmr.msra.gmra.mrb[108].mxu0 %v22591_v51  ;;  %v18608_v51 = vld [vmem:[%s24064_s18 + $0x44] ss:$8 sps:$4 sm:$0xff]  }
0x1d02   : > { %9184 = vmatprep.mubr.bf16.mxu0 %v8670_v47  ;;  %9638 = vmatpush1.bf16.msra.mxu0 %v18594_v0  ;;  %v18636_v47 = vld [vmem:[%s24064_s18 + $0xe0] ss:$8 sps:$4 sm:$0xff]  }
0x1d03   : > { %9639 = vmatprep.subr.bf16.mxu0 %v18599_v57  ;;  %v18642_v0 = vld [vmem:[%s24064_s18 + $0x100] ss:$8 sps:$4 sm:$0xff]   ;;  %v18647_v57 = vld [vmem:[%s24064_s18 + $0x114] ss:$8 sps:$4 sm:$0xff]  }
0x1d06   : > { %9640 = vmatpush1.bf16.msra.mxu0 %v18597_v9  ;;  %v18645_v9 = vld [vmem:[%s24064_s18 + $0x110] ss:$8 sps:$4 sm:$0xff]  }
0x1d07   : > { %9641 = vmatprep.subr.bf16.mxu0 %v18602_v17  ;;  %v18650_v17 = vld [vmem:[%s24064_s18 + $0x124] ss:$8 sps:$4 sm:$0xff]  }
0x1d09   : > { %9185 = vmatmul.mubr.bf16.gmra.mrb[112].mxu0 %v8669_v21  ;;  %v18641_v21 = vld [vmem:[%s24064_s18 + $0xf4] ss:$8 sps:$4 sm:$0xff]  }
0x1d0a   : > { %9194 = vmatprep.mubr.bf16.mxu0 %v8672_v52  ;;  %9642 = vmatpush1.bf16.msra.mxu0 %v18600_v55  ;;  %v18648_v55 = vld [vmem:[%s24064_s18 + $0x120] ss:$8 sps:$4 sm:$0xff]  }
0x1d0b   : > { %9643 = vmatprep.subr.bf16.mxu0 %v18605_v23  ;;  %v18653_v23 = vld [vmem:[%s24064_s18 + $0x134] ss:$8 sps:$4 sm:$0xff]  }
0x1d0e   : > { %9644 = vmatpush1.bf16.msra.mxu0 %v18603_v39  ;;  %v18651_v39 = vld [vmem:[%s24064_s18 + $0x130] ss:$8 sps:$4 sm:$0xff]  }
0x1d0f   : > { %9645 = vmatprep.subr.bf16.mxu0 %v18608_v51  ;;  %v18656_v51 = vld [vmem:[%s24064_s18 + $0x144] ss:$8 sps:$4 sm:$0xff]  }
0x1d11   : > { %9195 = vmatmul.mubr.bf16.gmra.mrb[116].mxu0 %v8671_v53 }
0x1d12   : > { %9646 = vmatpush1.bf16.msra.mxu0 %v18606_v62  ;;  %v18654_v62 = vld [vmem:[%s24064_s18 + $0x140] ss:$8 sps:$4 sm:$0xff]  }
0x1d13   : > { %9647 = vmatprep.subr.bf16.mxu0 %v18611_v11  ;;  %v18659_v11 = vld [vmem:[%s24064_s18 + $0x154] ss:$8 sps:$4 sm:$0xff]  }
0x1d16   : > { %9648 = vmatpush1.bf16.msra.mxu0 %v18609_v42  ;;  %v18657_v42 = vld [vmem:[%s24064_s18 + $0x150] ss:$8 sps:$4 sm:$0xff]  }
0x1d17   : > { %9649 = vmatprep.subr.bf16.mxu0 %v18614_v32  ;;  %v18662_v32 = vld [vmem:[%s24064_s18 + $0x164] ss:$8 sps:$4 sm:$0xff]  }
0x1d1a   : > { %9650 = vmatpush1.bf16.msra.mxu0 %v18612_v36  ;;  %v18660_v36 = vld [vmem:[%s24064_s18 + $0x160] ss:$8 sps:$4 sm:$0xff]  }
0x1d1b   : > { %9651 = vmatprep.subr.bf16.mxu0 %v18617_v49  ;;  %v18665_v49 = vld [vmem:[%s24064_s18 + $0x174] ss:$8 sps:$4 sm:$0xff]  }
0x1d1e   : > { %9652 = vmatpush1.bf16.msra.mxu0 %v18615_v60  ;;  %v18663_v60 = vld [vmem:[%s24064_s18 + $0x170] ss:$8 sps:$4 sm:$0xff]  }
0x1d1f   : > { %9653 = vmatprep.subr.bf16.mxu0 %v18620_v48  ;;  %v18668_v48 = vld [vmem:[%s24064_s18 + $0x184] ss:$8 sps:$4 sm:$0xff]  }
0x1d22   : > { %9654 = vmatpush1.bf16.msra.mxu0 %v18618_v29  ;;  %v18666_v29 = vld [vmem:[%s24064_s18 + $0x180] ss:$8 sps:$4 sm:$0xff]  }
0x1d23   : > { %9655 = vmatprep.subr.bf16.mxu0 %v18623_v56  ;;  %v18671_v56 = vld [vmem:[%s24064_s18 + $0x194] ss:$8 sps:$4 sm:$0xff]  }
0x1d26   : > { %9656 = vmatpush1.bf16.msra.mxu0 %v18621_v13  ;;  %v18669_v13 = vld [vmem:[%s24064_s18 + $0x190] ss:$8 sps:$4 sm:$0xff]  }
0x1d27   : > { %9657 = vmatprep.subr.bf16.mxu0 %v18626_v8  ;;  %v18674_v8 = vld [vmem:[%s24064_s18 + $0x1a4] ss:$8 sps:$4 sm:$0xff]  }
0x1d2a   : > { %9658 = vmatpush1.bf16.msra.mxu0 %v18624_v46 }
0x1d2b   : > { %9659 = vmatprep.subr.bf16.mxu0 %v18629_v3 }
0x1d2e   : > { %9660 = vmatpush1.bf16.msra.mxu0 %v18627_v2 }
0x1d2f   : > { %9661 = vmatprep.subr.bf16.mxu0 %v18632_v59 }
0x1d32   : > { %9662 = vmatpush1.bf16.msra.mxu0 %v18630_v41 }
0x1d33   : > { %9663 = vmatprep.subr.bf16.mxu0 %v18635_v15  ;;  %v18672_v15 = vld [vmem:[%s24064_s18 + $0x1a0] ss:$8 sps:$4 sm:$0xff]  }
0x1d36   : > { %9664 = vmatpush1.bf16.msra.mxu0 %v18633_v5 }
0x1d37   : > { %9665 = vmatprep.subr.bf16.mxu0 %v18638_v31 }
0x1d3a   : > { %9666 = vmatpush1.bf16.msra.mxu0 %v18636_v47  ;;  %v18677_v47 = vld [vmem:[%s24064_s18 + $0x1b4] ss:$8 sps:$4 sm:$0xff]  }
0x1d3b   : > { %9667 = vmatprep.subr.bf16.mxu0 %v18641_v21 }
0x1d3e   : > { %9668 = vmatpush1.bf16.msra.mxu0 %v18639_v7 }
0x1d3f   : > { %9700 = vmatprep.subr.bf16.mxu0 %v18644_v33 }
0x1d91   : > { %v9113_v54 = vpop.f32.mrb[96].mxu0 }
0x1d92   : > { %v9114_v16 = vadd.f32 %v9113_v54, %v22714_v40  ;;  %v9115_v58 = vpop.f32.mrb[97].mxu0 }
0x1d93   : > { %v9116_v61 = vadd.f32 %v9115_v58, %v22718_v10  ;;  %v9117_v35 = vpop.f32.mrb[98].mxu0  ;;  %v18675_v58 = vld [vmem:[%s24064_s18 + $0x1b0] ss:$8 sps:$4 sm:$0xff]  }
0x1d94   : > { %v9118_v4 = vadd.f32 %v9117_v35, %v22714_v40  ;;  %v9119_v34 = vpop.f32.mrb[99].mxu0  ;;  %v9205_v25 = vmax.f32 %v9114_v16, 0.0  ;;  %v18680_v35 = vld [vmem:[%s24064_s18 + $0x1c4] ss:$8 sps:$4 sm:$0xff]  }
0x1d95   : > { %v9120_v1 = vadd.f32 %v9119_v34, %v22718_v10  ;;  %v9206_v52 = vmax.f32 %v9116_v61, 0.0  ;;  %v18678_v34 = vld [vmem:[%s24064_s18 + $0x1c0] ss:$8 sps:$4 sm:$0xff]  }
0x1d96   : > { %v9209_v28 = vmax.f32 %v9118_v4, 0.0 }
0x1d97   : > { %v9210_v53 = vmax.f32 %v9120_v1, 0.0  ;;  %v18683_v1 = vld [vmem:[%s24064_s18 + $0x1d4] ss:$8 sps:$4 sm:$0xff]  }
0x1d98   : > { %v9229_v30 = vpack.c.bf16 %v9209_v28, %v9205_v25 }
0x1d99   : > { %v9230_v50 = vpack.c.bf16 %v9210_v53, %v9206_v52  ;;  %v18681_v53 = vld [vmem:[%s24064_s18 + $0x1d0] ss:$8 sps:$4 sm:$0xff]  }
0x1d9b   : > { %9669 = vmatprep.mubr.bf16.mxu0 %v9230_v50 }
0x1d9c   : > { %9670 = vmatmul.mubr.bf16.vlgmr.msra.gmra.mrb[120].mxu0 %v9229_v30 }
0x1d9d   : > { %9701 = vmatpush1.bf16.msra.mxu0 %v18642_v0  ;;  %v18686_v0 = vld [vmem:[%s24064_s18 + $0x1e4] ss:$8 sps:$4 sm:$0xff]  }
0x1d9e   : > { %9702 = vmatprep.subr.bf16.mxu0 %v18647_v57 }
0x1da1   : > { %9703 = vmatpush1.bf16.msra.mxu0 %v18645_v9 }
0x1da2   : > { %9704 = vmatprep.subr.bf16.mxu0 %v18650_v17 }
0x1da5   : > { %9705 = vmatpush1.bf16.msra.mxu0 %v18648_v55 }
0x1da6   : > { %9706 = vmatprep.subr.bf16.mxu0 %v18653_v23 }
0x1da9   : > { %9707 = vmatpush1.bf16.msra.mxu0 %v18651_v39  ;;  %v24066_v39 = vld [vmem:[#allocation30_spill] sm:$0xff] }
0x1daa   : > { %9708 = vmatprep.subr.bf16.mxu0 %v18656_v51  ;;  %v24067_v51 = vsub.s32 2, %v24066_v39 }
0x1dad   : > { %9709 = vmatpush1.bf16.msra.mxu0 %v18654_v62  ;;  %v8750_v62 = vrot.slane %v22710_v20, %v24067_v51 }
0x1dae   : > { %9710 = vmatprep.subr.bf16.mxu0 %v18659_v11  ;;  %v18684_v11 = vld [vmem:[%s24064_s18 + $0x1e0] ss:$8 sps:$4 sm:$0xff]  }
0x1db1   : > { %9711 = vmatpush1.bf16.msra.mxu0 %v18657_v42 }
0x1db2   : > { %9712 = vmatprep.subr.bf16.mxu0 %v18662_v32 }
0x1db5   : > { %9713 = vmatpush1.bf16.msra.mxu0 %v18660_v36  ;;  %v24068_v36 = vsub.s32 3, %v24066_v39 }
0x1db6   : > { %9714 = vmatprep.subr.bf16.mxu0 %v18665_v49 }
0x1db7   : > { %v8754_v49 = vrot.slane %v22710_v20, %v24068_v36  ;;  %v9305_v36 = vld [vmem:[%s24069_s12] sm:$0x3]  ;;  %s24072_s12 = sld [smem:[#allocation23_spill]] }
0x1db9   : > { %9715 = vmatpush1.bf16.msra.mxu0 %v18663_v60 }
0x1dba   : > { %9716 = vmatprep.subr.bf16.mxu0 %v18668_v48 }
0x1dbd   : > { %9717 = vmatpush1.bf16.msra.mxu0 %v18666_v29 }
0x1dbe   : > { %9718 = vmatprep.subr.bf16.mxu0 %v18671_v56 }
0x1dbf   : > { %v9123_v46 = vpop.f32.mrb[100].mxu0 }
0x1dc0   : > { %v9124_v3 = vadd.f32 %v9123_v46, %v22714_v40  ;;  %v9125_v2 = vpop.f32.mrb[101].mxu0 }
0x1dc1   : > { %v9126_v59 = vadd.f32 %v9125_v2, %v22718_v10  ;;  %v9127_v41 = vpop.f32.mrb[102].mxu0  ;;  %9719 = vmatpush1.bf16.msra.mxu0 %v18669_v13  ;;  %v18687_v13 = vld [vmem:[%s24064_s18 + $0x1f0] ss:$8 sps:$4 sm:$0xff]  }
0x1dc2   : > { %v9128_v5 = vadd.f32 %v9127_v41, %v22714_v40  ;;  %v9129_v31 = vpop.f32.mrb[103].mxu0  ;;  %9720 = vmatprep.subr.bf16.mxu0 %v18674_v8  ;;  %v9213_v7 = vmax.f32 %v9124_v3, 0.0 }
0x1dc3   : > { %v9130_v21 = vadd.f32 %v9129_v31, %v22718_v10  ;;  %v9214_v54 = vmax.f32 %v9126_v59, 0.0 }
0x1dc4   : > { %v9217_v33 = vmax.f32 %v9128_v5, 0.0 }
0x1dc5   : > { %v9218_v16 = vmax.f32 %v9130_v21, 0.0  ;;  %9721 = vmatpush1.bf16.msra.mxu0 %v18672_v15 }
0x1dc6   : > { %v9233_v61 = vpack.c.bf16 %v9217_v33, %v9213_v7  ;;  %9722 = vmatprep.subr.bf16.mxu0 %v18677_v47 }
0x1dc7   : > { %v9234_v4 = vpack.c.bf16 %v9218_v16, %v9214_v54 }
0x1dc9   : > { %9679 = vmatprep.mubr.bf16.mxu0 %v9234_v4  ;;  %9723 = vmatpush1.bf16.msra.mxu0 %v18675_v58 }
0x1dca   : > { %9680 = vmatmul.mubr.bf16.gmra.mrb[124].mxu0 %v9233_v61  ;;  %9724 = vmatprep.subr.bf16.mxu0 %v18680_v35 }
0x1dcc   : > { %v9133_v25 = vpop.f32.mrb[104].mxu0 }
0x1dcd   : > { %v9134_v28 = vadd.f32 %v9133_v25, %v22714_v40  ;;  %v9135_v52 = vpop.f32.mrb[105].mxu0  ;;  %9725 = vmatpush1.bf16.msra.mxu0 %v18678_v34 }
0x1dce   : > { %v9136_v30 = vadd.f32 %v9135_v52, %v22718_v10  ;;  %v9137_v50 = vpop.f32.mrb[106].mxu0  ;;  %9726 = vmatprep.subr.bf16.mxu0 %v18683_v1 }
0x1dcf   : > { %v9138_v57 = vadd.f32 %v9137_v50, %v22714_v40  ;;  %v9139_v9 = vpop.f32.mrb[107].mxu0  ;;  %v9221_v55 = vmax.f32 %v9134_v28, 0.0  ;;  %v18689_v40 = vld [vmem:[%s24064_s18 + $0x1f4] ss:$8 sps:$4 sm:$0xff]  }
0x1dd0   : > { %v9140_v17 = vadd.f32 %v9139_v9, %v22718_v10  ;;  %v9222_v42 = vmax.f32 %v9136_v30, 0.0 }
0x1dd1   : > { %v9225_v23 = vmax.f32 %v9138_v57, 0.0  ;;  %9727 = vmatpush1.bf16.msra.mxu0 %v18681_v53 }
0x1dd2   : > { %v9226_v32 = vmax.f32 %v9140_v17, 0.0  ;;  %9728 = vmatprep.subr.bf16.mxu0 %v18686_v0 }
0x1dd3   : > { %v9237_v60 = vpack.c.bf16 %v9225_v23, %v9221_v55 }
0x1dd4   : > { %v9238_v48 = vpack.c.bf16 %v9226_v32, %v9222_v42  ;;  %v9176_v10 = vpop.f32.mrb[108].mxu0 }
0x1dd5   : > { %v9177_v29 = vadd.f32 %v9176_v10, %v8750_v62  ;;  %v9178_v56 = vpop.f32.mrb[109].mxu0  ;;  %9729 = vmatpush1.bf16.msra.mxu0 %v18684_v11 }
0x1dd6   : > { %v9179_v8 = vadd.f32 %v9178_v56, %v8754_v49  ;;  %v9180_v46 = vpop.f32.mrb[110].mxu0  ;;  %9689 = vmatprep.mubr.bf16.mxu0 %v9238_v48  ;;  %9730 = vmatprep.subr.bf16.mxu0 %v18689_v40  ;;  %v9310_v40 = vrot.slane %v9305_v36, %v24048_v63 }
0x1dd7   : > { %v9181_v3 = vadd.f32 %v9180_v46, %v8750_v62  ;;  %v9182_v2 = vpop.f32.mrb[111].mxu0  ;;  %9690 = vmatmul.mubr.bf16.gmra.mrb[128].mxu0 %v9237_v60  ;;  %v9207_v41 = vmax.f32 %v9177_v29, 0.0  ;;  %v9314_v60 = vrot.slane %v9305_v36, %v24049_v14  ;;  %v18708_v36 = vld [vmem:[%s24070_s23 + $0x3d8] ss:$164 sps:$4 sm:$0xff]  }
0x1dd8   : > { %v9183_v59 = vadd.f32 %v9182_v2, %v8754_v49  ;;  %v9208_v20 = vmax.f32 %v9179_v8, 0.0 }
0x1dd9   : > { %v9211_v15 = vmax.f32 %v9181_v3, 0.0  ;;  %9731 = vmatpush1.bf16.msra.mxu0 %v18687_v13 }
0x1dda   : > { %v9212_v5 = vmax.f32 %v9183_v59, 0.0 }
0x1ddb   : > { %v9231_v31 = vpack.c.bf16 %v9211_v15, %v9207_v41 }
0x1ddc   : > { %v9232_v47 = vpack.c.bf16 %v9212_v5, %v9208_v20  ;;  %v9186_v21 = vpop.f32.mrb[112].mxu0 }
0x1ddd   : > { %v9187_v7 = vadd.f32 %v9186_v21, %v8750_v62  ;;  %v9188_v33 = vpop.f32.mrb[113].mxu0 }
0x1dde   : > { %v9189_v54 = vadd.f32 %v9188_v33, %v8754_v49  ;;  %v9190_v16 = vpop.f32.mrb[114].mxu0  ;;  %9732 = vmatprep.mubr.bf16.mxu0 %v9232_v47 }
0x1ddf   : > { %v9191_v58 = vadd.f32 %v9190_v16, %v8750_v62  ;;  %v9192_v61 = vpop.f32.mrb[115].mxu0  ;;  %9733 = vmatmul.mubr.bf16.vlgmr.msra.gmra.mrb[120].mxu0 %v9231_v31  ;;  %v9215_v4 = vmax.f32 %v9187_v7, 0.0 }
0x1de0   : > { %v9193_v35 = vadd.f32 %v9192_v61, %v8754_v49  ;;  %v9216_v1 = vmax.f32 %v9189_v54, 0.0 }
0x1de1   : > { %v9219_v34 = vmax.f32 %v9191_v58, 0.0 }
0x1de2   : > { %v9220_v25 = vmax.f32 %v9193_v35, 0.0 }
0x1de3   : > { %v9235_v28 = vpack.c.bf16 %v9219_v34, %v9215_v4 }
0x1de4   : > { %v9236_v52 = vpack.c.bf16 %v9220_v25, %v9216_v1  ;;  %v9196_v53 = vpop.f32.mrb[116].mxu0 }
0x1de5   : > { %v9197_v30 = vadd.f32 %v9196_v53, %v8750_v62  ;;  %v9198_v50 = vpop.f32.mrb[117].mxu0 }
0x1de6   : > { %v9199_v0 = vadd.f32 %v9198_v50, %v8754_v49  ;;  %v9200_v57 = vpop.f32.mrb[118].mxu0  ;;  %9742 = vmatprep.mubr.bf16.mxu0 %v9236_v52  ;;  %v18692_v50 = vld [vmem:[%s24070_s23 + $0x4] ss:$164 sps:$4 sm:$0xff]  }
0x1de7   : > { %v9201_v9 = vadd.f32 %v9200_v57, %v8750_v62  ;;  %v9202_v17 = vpop.f32.mrb[119].mxu0  ;;  %9743 = vmatmul.mubr.bf16.gmra.mrb[124].mxu0 %v9235_v28  ;;  %v9223_v23 = vmax.f32 %v9197_v30, 0.0  ;;  %v18698_v57 = vld [vmem:[%s24070_s23 + $0x14c] ss:$164 sps:$4 sm:$0xff]   ;;  %13897 = vmatprep.subr.bf16.mxu1 %v18692_v50 }
0x1de8   : > { %v9203_v55 = vadd.f32 %v9202_v17, %v8754_v49  ;;  %v9224_v51 = vmax.f32 %v9199_v0, 0.0  ;;  %v18695_v0 = vld [vmem:[%s24070_s23 + $0x14] ss:$164 sps:$4 sm:$0xff]   ;;  %v18696_v17 = vld [vmem:[%s24070_s23 + $0x148] ss:$164 sps:$4 sm:$0xff]  }
0x1de9   : > { %v9227_v39 = vmax.f32 %v9201_v9, 0.0  ;;  %v18701_v9 = vld [vmem:[%s24070_s23 + $0x15c] ss:$164 sps:$4 sm:$0xff]   ;;  %14003 = vmatprep.subr.bf16.mxu0 %v18695_v0 }
0x1dea   : > { %v9228_v11 = vmax.f32 %v9203_v55, 0.0  ;;  %v18699_v55 = vld [vmem:[%s24070_s23 + $0x158] ss:$164 sps:$4 sm:$0xff]  }
0x1deb   : > { %v9239_v42 = vpack.c.bf16 %v9227_v39, %v9223_v23  ;;  %v18704_v23 = vld [vmem:[%s24070_s23 + $0x294] ss:$164 sps:$4 sm:$0xff]   ;;  %v18707_v39 = vld [vmem:[%s24070_s23 + $0x2a4] ss:$164 sps:$4 sm:$0xff]  }
0x1dec   : > { %v9240_v32 = vpack.c.bf16 %v9228_v11, %v9224_v51  ;;  %v18702_v51 = vld [vmem:[%s24070_s23 + $0x290] ss:$164 sps:$4 sm:$0xff]   ;;  %v18705_v11 = vld [vmem:[%s24070_s23 + $0x2a0] ss:$164 sps:$4 sm:$0xff]  }
0x1dee   : > { %9752 = vmatprep.mubr.bf16.mxu0 %v9240_v32  ;;  %v18713_v32 = vld [vmem:[%s24070_s23 + $0x3ec] ss:$164 sps:$4 sm:$0xff]  }
0x1def   : > { %9753 = vmatmul.mubr.bf16.gmra.mrb[128].mxu0 %v9239_v42  ;;  %v18710_v42 = vld [vmem:[%s24070_s23 + $0x3dc] ss:$164 sps:$4 sm:$0xff]  }
0x1eb2   : > { %v9734_v48 = vpop.f32.mrb[120].mxu0 }
0x1eb3   : > { %v17971_v10 = vadd.f32 %v9734_v48, %v9310_v40  ;;  %v9736_v29 = vpop.f32.mrb[121].mxu0  ;;  %v18719_v48 = vld [vmem:[%s24070_s23 + $0x534] ss:$164 sps:$4 sm:$0xff]  }
0x1eb4   : > { %v17972_v62 = vadd.f32 %v9736_v29, %v9314_v60  ;;  %v9738_v56 = vpop.f32.mrb[122].mxu0  ;;  %v18717_v29 = vld [vmem:[%s24070_s23 + $0x530] ss:$164 sps:$4 sm:$0xff]  }
0x1eb5   : > { %v22773_v49 = vadd.f32 %v17971_v10, %v22580_v38  ;;  %v17973_v13 = vadd.f32 %v9738_v56, %v9310_v40  ;;  %v9740_v8 = vpop.f32.mrb[123].mxu0  ;;  %v18714_v10 = vld [vmem:[%s24070_s23 + $0x520] ss:$164 sps:$4 sm:$0xff]  }
0x1eb6   : > { %v22776_v46 = vadd.f32 %v17972_v62, %v22574_v12  ;;  %v17974_v3 = vadd.f32 %v9740_v8, %v9314_v60  ;;  %v18722_v62 = vld [vmem:[%s24070_s23 + $0x66c] ss:$164 sps:$4 sm:$0xff]   ;;  %v18725_v56 = vld [vmem:[%s24070_s23 + $0x67c] ss:$164 sps:$4 sm:$0xff]  }
0x1eb7   : > { %v22779_v2 = vadd.f32 %v17973_v13, %v22583_v26  ;;  %v18720_v13 = vld [vmem:[%s24070_s23 + $0x668] ss:$164 sps:$4 sm:$0xff]   ;;  %v18723_v8 = vld [vmem:[%s24070_s23 + $0x678] ss:$164 sps:$4 sm:$0xff]  }
0x1eb8   : > { %v22782_v59 = vadd.f32 %v17974_v3, %v22577_v43  ;;  %v9777_v41 = vadd.f32 %v22776_v46, %v22773_v49  ;;  %v18728_v3 = vld [vmem:[%s24070_s23 + $0x7b4] ss:$164 sps:$4 sm:$0xff]  }
0x1eba   : > { %v9744_v15 = vpop.f32.mrb[124].mxu0  ;;  %9778 = vadd.xlane.f32.xlu0 %v9777_v41  ;;  %v9780_v38 = vadd.f32 %v22782_v59, %v22779_v2  ;;  %v18731_v41 = vld [vmem:[%s24070_s23 + $0x7c4] ss:$164 sps:$4 sm:$0xff]  }
0x1ebb   : > { %v17975_v20 = vadd.f32 %v9744_v15, %v9310_v40  ;;  %v9746_v5 = vpop.f32.mrb[125].mxu0  ;;  %v18726_v15 = vld [vmem:[%s24070_s23 + $0x7b0] ss:$164 sps:$4 sm:$0xff]  }
0x1ebc   : > { %v17976_v31 = vadd.f32 %v9746_v5, %v9314_v60  ;;  %v9748_v12 = vpop.f32.mrb[126].mxu0  ;;  %9781 = vadd.xlane.f32.xlu1 %v9780_v38  ;;  %v18729_v38 = vld [vmem:[%s24070_s23 + $0x7c0] ss:$164 sps:$4 sm:$0xff]   ;;  %v18737_v5 = vld [vmem:[%s24070_s23 + $0x90c] ss:$164 sps:$4 sm:$0xff]  }
0x1ebd   : > { %v22789_v47 = vadd.f32 %v17975_v20, %v22632_v37  ;;  %v17977_v26 = vadd.f32 %v9748_v12, %v9310_v40  ;;  %v9750_v21 = vpop.f32.mrb[127].mxu0  ;;  %v18734_v20 = vld [vmem:[%s24070_s23 + $0x8fc] ss:$164 sps:$4 sm:$0xff]   ;;  %v18735_v12 = vld [vmem:[%s24070_s23 + $0x908] ss:$164 sps:$4 sm:$0xff]  }
0x1ebe   : > { %v22792_v43 = vadd.f32 %v17976_v31, %v22626_v45  ;;  %v17978_v7 = vadd.f32 %v9750_v21, %v9314_v60  ;;  %v18732_v31 = vld [vmem:[%s24070_s23 + $0x8f8] ss:$164 sps:$4 sm:$0xff]  }
0x1ebf   : > { %v22795_v33 = vadd.f32 %v17977_v26, %v22635_v27  ;;  %v18740_v26 = vld [vmem:[%s24070_s23 + $0xa44] ss:$164 sps:$4 sm:$0xff]   ;;  %v18743_v21 = vld [vmem:[%s24070_s23 + $0xa54] ss:$164 sps:$4 sm:$0xff]  }
0x1ec0   : > { %v22798_v54 = vadd.f32 %v17978_v7, %v22629_v22  ;;  %v9783_v16 = vadd.f32 %v22792_v43, %v22789_v47  ;;  %v18738_v7 = vld [vmem:[%s24070_s23 + $0xa40] ss:$164 sps:$4 sm:$0xff]  }
0x1ec2   : > { %v9754_v58 = vpop.f32.mrb[128].mxu0  ;;  %9784 = vadd.xlane.f32.xlu0 %v9783_v16  ;;  %v9786_v37 = vadd.f32 %v22798_v54, %v22795_v33  ;;  %v18741_v16 = vld [vmem:[%s24070_s23 + $0xa50] ss:$164 sps:$4 sm:$0xff]  }
0x1ec3   : > { %v17979_v61 = vadd.f32 %v9754_v58, %v9310_v40  ;;  %v9756_v35 = vpop.f32.mrb[129].mxu0  ;;  %v18746_v58 = vld [vmem:[%s24070_s23 + $0xb8c] ss:$164 sps:$4 sm:$0xff]  }
0x1ec4   : > { %v17980_v4 = vadd.f32 %v9756_v35, %v9314_v60  ;;  %v9758_v45 = vpop.f32.mrb[130].mxu0  ;;  %9787 = vadd.xlane.f32.xlu1 %v9786_v37  ;;  %v18749_v37 = vld [vmem:[%s24070_s23 + $0xb9c] ss:$164 sps:$4 sm:$0xff]  }
0x1ec5   : > { %v22805_v27 = vadd.f32 %v17979_v61, %v22663_v19  ;;  %v17981_v22 = vadd.f32 %v9758_v45, %v9310_v40  ;;  %v9760_v34 = vpop.f32.mrb[131].mxu0  ;;  %v18711_v40 = vld [vmem:[%s24070_s23 + $0x3e8] ss:$164 sps:$4 sm:$0xff]   ;;  %v18747_v35 = vld [vmem:[%s24070_s23 + $0xb98] ss:$164 sps:$4 sm:$0xff]  }
0x1ec6   : > { %v22808_v1 = vadd.f32 %v17980_v4, %v22657_v44  ;;  %v17982_v25 = vadd.f32 %v9760_v34, %v9314_v60  ;;  %v18716_v60 = vld [vmem:[%s24070_s23 + $0x524] ss:$164 sps:$4 sm:$0xff]  }
0x1ec7   : > { %v22811_v28 = vadd.f32 %v17981_v22, %v22666_v6  ;;  %v18690_v6 = vld [vmem:[%s24070_s23] ss:$164 sps:$4 sm:$0xff]   ;;  %v18744_v61 = vld [vmem:[%s24070_s23 + $0xb88] ss:$164 sps:$4 sm:$0xff]  }
0x1ec8   : > { %v22814_v52 = vadd.f32 %v17982_v25, %v22660_v18  ;;  %v9789_v19 = vadd.f32 %v22808_v1, %v22805_v27  ;;  %v18693_v18 = vld [vmem:[%s24070_s23 + $0x10] ss:$164 sps:$4 sm:$0xff]   ;;  %13898 = vmatpush1.bf16.msra.mxu1 %v18690_v6 }
0x1ec9   : > { %v9792_v53 = vsel %vm6463_vm5, %v22811_v28, 0.0  ;;  %14004 = vmatpush1.bf16.msra.mxu0 %v18693_v18  ;;  %13899 = vmatprep.subr.bf16.mxu1 %v18698_v57 }
0x1eca   : > { %v9793_v30 = vsel %vm6463_vm5, %v22814_v52, 0.0  ;;  %9790 = vadd.xlane.f32.xlu1 %v9789_v19  ;;  %14005 = vmatprep.subr.bf16.mxu0 %v18701_v9 }
0x1ecb   : > { %v9794_v44 = vadd.f32 %v9793_v30, %v9792_v53 }
0x1ecc   : > { %13900 = vmatpush1.bf16.msra.mxu1 %v18696_v17 }
0x1ecd   : > { %9795 = vadd.xlane.f32.xlu0 %v9794_v44  ;;  %14006 = vmatpush1.bf16.msra.mxu0 %v18699_v55 }
0x1ece   : > { %13901 = vmatprep.subr.bf16.mxu1 %v18704_v23  ;;  %14007 = vmatprep.subr.bf16.mxu0 %v18707_v39 }
0x1ed0   : > { %13902 = vmatpush1.bf16.msra.mxu1 %v18702_v51 }
0x1ed1   : > { %14008 = vmatpush1.bf16.msra.mxu0 %v18705_v11  ;;  %13903 = vmatprep.subr.bf16.mxu1 %v18710_v42 }
0x1ed2   : > { %14009 = vmatprep.subr.bf16.mxu0 %v18713_v32 }
0x1ed4   : > { %13904 = vmatpush1.bf16.msra.mxu1 %v18708_v36 }
0x1ed5   : > { %14010 = vmatpush1.bf16.msra.mxu0 %v18711_v40  ;;  %13905 = vmatprep.subr.bf16.mxu1 %v18716_v60 }
0x1ed6   : > { %14011 = vmatprep.subr.bf16.mxu0 %v18719_v48 }
0x1ed8   : > { %13906 = vmatpush1.bf16.msra.mxu1 %v18714_v10 }
0x1ed9   : > { %14012 = vmatpush1.bf16.msra.mxu0 %v18717_v29  ;;  %13907 = vmatprep.subr.bf16.mxu1 %v18722_v62 }
0x1eda   : > { %14013 = vmatprep.subr.bf16.mxu0 %v18725_v56 }
0x1edc   : > { %13908 = vmatpush1.bf16.msra.mxu1 %v18720_v13 }
0x1edd   : > { %14014 = vmatpush1.bf16.msra.mxu0 %v18723_v8  ;;  %13909 = vmatprep.subr.bf16.mxu1 %v18728_v3  ;;  %v18755_v3 = vld [vmem:[%s24070_s23 + $0xce4] ss:$164 sps:$4 sm:$0xff]  }
0x1ede   : > { %14015 = vmatprep.subr.bf16.mxu0 %v18731_v41  ;;  %v18750_v41 = vld [vmem:[%s24070_s23 + $0xcd0] ss:$164 sps:$4 sm:$0xff]  }
0x1ee0   : > { %13910 = vmatpush1.bf16.msra.mxu1 %v18726_v15  ;;  %v18753_v15 = vld [vmem:[%s24070_s23 + $0xce0] ss:$164 sps:$4 sm:$0xff]  }
0x1ee1   : > { %14016 = vmatpush1.bf16.msra.mxu0 %v18729_v38  ;;  %13911 = vmatprep.subr.bf16.mxu1 %v18734_v20  ;;  %v18758_v38 = vld [vmem:[%s24070_s23 + $0xe1c] ss:$164 sps:$4 sm:$0xff]   ;;  %v18761_v20 = vld [vmem:[%s24070_s23 + $0xe2c] ss:$164 sps:$4 sm:$0xff]  }
0x1ee2   : > { %14017 = vmatprep.subr.bf16.mxu0 %v18737_v5  ;;  %v18756_v5 = vld [vmem:[%s24070_s23 + $0xe18] ss:$164 sps:$4 sm:$0xff]  }
0x1ee4   : > { %13912 = vmatpush1.bf16.msra.mxu1 %v18732_v31  ;;  %v18759_v31 = vld [vmem:[%s24070_s23 + $0xe28] ss:$164 sps:$4 sm:$0xff]  }
0x1ee5   : > { %14018 = vmatpush1.bf16.msra.mxu0 %v18735_v12  ;;  %13913 = vmatprep.subr.bf16.mxu1 %v18740_v26  ;;  %v18764_v12 = vld [vmem:[%s24070_s23 + $0xf64] ss:$164 sps:$4 sm:$0xff]   ;;  %v18767_v26 = vld [vmem:[%s24070_s23 + $0xf74] ss:$164 sps:$4 sm:$0xff]  }
0x1ee6   : > { %14019 = vmatprep.subr.bf16.mxu0 %v18743_v21  ;;  %v18762_v21 = vld [vmem:[%s24070_s23 + $0xf60] ss:$164 sps:$4 sm:$0xff]  }
0x1ee8   : > { %13914 = vmatpush1.bf16.msra.mxu1 %v18738_v7  ;;  %v18765_v7 = vld [vmem:[%s24070_s23 + $0xf70] ss:$164 sps:$4 sm:$0xff]  }
0x1ee9   : > { %14020 = vmatpush1.bf16.msra.mxu0 %v18741_v16  ;;  %13915 = vmatprep.subr.bf16.mxu1 %v18746_v58  ;;  %v18770_v16 = vld [vmem:[%s24070_s23 + $0x10ac] ss:$164 sps:$4 sm:$0xff]   ;;  %v18773_v58 = vld [vmem:[%s24070_s23 + $0x10bc] ss:$164 sps:$4 sm:$0xff]  }
0x1eea   : > { %14021 = vmatprep.subr.bf16.mxu0 %v18749_v37  ;;  %v18768_v37 = vld [vmem:[%s24070_s23 + $0x10a8] ss:$164 sps:$4 sm:$0xff]  }
0x1eec   : > { %13916 = vmatpush1.bf16.msra.mxu1 %v18744_v61  ;;  %v18771_v61 = vld [vmem:[%s24070_s23 + $0x10b8] ss:$164 sps:$4 sm:$0xff]  }
0x1eed   : > { %14022 = vmatpush1.bf16.msra.mxu0 %v18747_v35  ;;  %v18776_v35 = vld [vmem:[%s24070_s23 + $0x11f4] ss:$164 sps:$4 sm:$0xff]  }
0x1eee   : > { %14023 = vmatprep.subr.bf16.mxu0 %v18755_v3 }
0x1ef1   : > { %14024 = vmatpush1.bf16.msra.mxu0 %v18753_v15 }
0x1ef2   : > { %14025 = vmatprep.subr.bf16.mxu0 %v18761_v20 }
0x1ef5   : > { %14026 = vmatpush1.bf16.msra.mxu0 %v18759_v31 }
0x1ef6   : > { %14027 = vmatprep.subr.bf16.mxu0 %v18767_v26 }
0x1ef9   : > { %14028 = vmatpush1.bf16.msra.mxu0 %v18765_v7 }
0x1efa   : > { %14029 = vmatprep.subr.bf16.mxu0 %v18773_v58 }
0x1efd   : > { %14030 = vmatpush1.bf16.msra.mxu0 %v18771_v61 }
0x1f47   : > { %v9779_v4 = vpop.xlane.xlu0 %9778 }
0x1f48   : > { %v9797_v45 = vmul.f32 0.00390625, %v9779_v4  ;;  %v18779_v4 = vld [vmem:[%s24070_s23 + $0x1204] ss:$164 sps:$4 sm:$0xff]  }
0x1f49   : > { %v9782_v22 = vpop.xlane.xlu1 %9781  ;;  %14031 = vmatprep.subr.bf16.mxu0 %v18779_v4 }
0x1f4a   : > { %v22863_v34 = vsub.f32 %v22773_v49, %v9797_v45  ;;  %v22866_v25 = vsub.f32 %v22776_v46, %v9797_v45  ;;  %v9798_v19 = vmul.f32 0.00390625, %v9782_v22  ;;  %v18774_v45 = vld [vmem:[%s24070_s23 + $0x11f0] ss:$164 sps:$4 sm:$0xff]   ;;  %v18777_v22 = vld [vmem:[%s24070_s23 + $0x1200] ss:$164 sps:$4 sm:$0xff]  }
0x1f4b   : > { %14032 = vmatpush1.bf16.msra.mxu0 %v18777_v22 }
0x1f4c   : > { %v9815_v53 = vmul.f32 %v22863_v34, %v22863_v34  ;;  %v9816_v30 = vmul.f32 %v22866_v25, %v22866_v25  ;;  %v22873_v44 = vsub.f32 %v22779_v2, %v9798_v19  ;;  %v22876_v6 = vsub.f32 %v22782_v59, %v9798_v19  ;;  %v18782_v19 = vld [vmem:[%s24070_s23 + $0x133c] ss:$164 sps:$4 sm:$0xff]  }
0x1f4e   : > { %v9817_v49 = vmul.f32 %v22873_v44, %v22873_v44  ;;  %v9818_v46 = vmul.f32 %v22876_v6, %v22876_v6  ;;  %v9827_v50 = vadd.f32 %v9816_v30, %v9815_v53  ;;  %v18785_v53 = vld [vmem:[%s24070_s23 + $0x134c] ss:$164 sps:$4 sm:$0xff]   ;;  %v18780_v30 = vld [vmem:[%s24070_s23 + $0x1338] ss:$164 sps:$4 sm:$0xff]  }
0x1f4f   : > { %v9785_v18 = vpop.xlane.xlu0 %9784  ;;  %14033 = vmatprep.subr.bf16.mxu0 %v18785_v53  ;;  %v18789_v53 = vld [vmem:[%s24070_s23 + $0x20] ss:$164 sps:$4 sm:$0xff]  }
0x1f50   : > { %v9799_v0 = vmul.f32 0.00390625, %v9785_v18  ;;  %9828 = vadd.xlane.f32.xlu0 %v9827_v50  ;;  %v9830_v57 = vadd.f32 %v9818_v46, %v9817_v49  ;;  %v18783_v49 = vld [vmem:[%s24070_s23 + $0x1348] ss:$164 sps:$4 sm:$0xff]  }
0x1f51   : > { %v9788_v9 = vpop.xlane.xlu1 %9787  ;;  %14034 = vmatpush1.bf16.msra.mxu0 %v18783_v49  ;;  %v18788_v46 = vld [vmem:[%s24070_s23 + $0xc] ss:$164 sps:$4 sm:$0xff]   ;;  %v18791_v50 = vld [vmem:[%s24070_s23 + $0x24] ss:$164 sps:$4 sm:$0xff]  }
0x1f52   : > { %v22883_v17 = vsub.f32 %v22789_v47, %v9799_v0  ;;  %v22886_v2 = vsub.f32 %v22792_v43, %v9799_v0  ;;  %v9800_v59 = vmul.f32 0.00390625, %v9788_v9  ;;  %9831 = vadd.xlane.f32.xlu1 %v9830_v57  ;;  %14109 = vmatprep.subr.bf16.mxu0 %v18791_v50  ;;  %v18792_v49 = vld [vmem:[%s24070_s23 + $0x150] ss:$164 sps:$4 sm:$0xff]  }
0x1f54   : > { %v9819_v55 = vmul.f32 %v22883_v17, %v22883_v17  ;;  %v9820_v23 = vmul.f32 %v22886_v2, %v22886_v2  ;;  %v22893_v39 = vsub.f32 %v22795_v33, %v9800_v59  ;;  %v22896_v51 = vsub.f32 %v22798_v54, %v9800_v59 }
0x1f56   : > { %v9821_v47 = vmul.f32 %v22893_v39, %v22893_v39  ;;  %v9822_v43 = vmul.f32 %v22896_v51, %v22896_v51  ;;  %v9833_v11 = vadd.f32 %v9820_v23, %v9819_v55 }
0x1f57   : > { %v9791_v42 = vpop.xlane.xlu1 %9790 }
0x1f58   : > { %v9801_v32 = vmul.f32 0.00390625, %v9791_v42  ;;  %9834 = vadd.xlane.f32.xlu0 %v9833_v11  ;;  %v9836_v36 = vadd.f32 %v9822_v43, %v9821_v47  ;;  %v9775_v11 = vld [vmem:[%s24071_s2] sm:$0x3]  ;;  %s24073_s2 = sld [smem:[#allocation26_spill]] }
0x1f5a   : > { %v22903_v40 = vsub.f32 %v22805_v27, %v9801_v32  ;;  %v22906_v33 = vsub.f32 %v22808_v1, %v9801_v32  ;;  %9837 = vadd.xlane.f32.xlu1 %v9836_v36  ;;  %v9796_v54 = vpop.xlane.xlu0 %9795 }
0x1f5b   : > { %v9802_v60 = vmul.f32 0.00390625, %v9796_v54  ;;  %v9776_v54 = vld [vmem:[%s24072_s12] sm:$0x3]  ;;  %s24074_s12 = sld [smem:[#allocation28_spill]] }
0x1f5c   : > { %v9823_v48 = vmul.f32 %v22903_v40, %v22903_v40  ;;  %v9824_v10 = vmul.f32 %v22906_v33, %v22906_v33 }
0x1f5d   : > { %v22913_v29 = vsub.f32 %v22811_v28, %v9802_v60  ;;  %v22916_v27 = vsub.f32 %v22814_v52, %v9802_v60  ;;  %v18752_v52 = vld [vmem:[%s24070_s23 + $0xcd4] ss:$164 sps:$4 sm:$0xff]   ;;  %v22953_v60 = vrot.slane %v9775_v11, %v24048_v63 }
0x1f5e   : > { %v9839_v1 = vadd.f32 %v9824_v10, %v9823_v48  ;;  %13917 = vmatprep.subr.bf16.mxu1 %v18752_v52  ;;  %v22956_v48 = vrot.slane %v9775_v11, %v24049_v14  ;;  %v18801_v11 = vld [vmem:[%s24070_s23 + $0x2b0] ss:$164 sps:$4 sm:$0xff]  }
0x1f5f   : > { %v9825_v62 = vmul.f32 %v22913_v29, %v22913_v29  ;;  %v9826_v56 = vmul.f32 %v22916_v27, %v22916_v27  ;;  %13918 = vmatpush1.bf16.msra.mxu1 %v18750_v41 }
0x1f60   : > { %9840 = vadd.xlane.f32.xlu0 %v9839_v1  ;;  %13919 = vmatprep.subr.bf16.mxu1 %v18758_v38 }
0x1f61   : > { %v9842_v13 = vsel %vm6463_vm5, %v9825_v62, 0.0  ;;  %v9843_v28 = vsel %vm6463_vm5, %v9826_v56, 0.0 }
0x1f62   : > { %v9844_v8 = vadd.f32 %v9843_v28, %v9842_v13  ;;  %v22961_v28 = vrot.slane %v9776_v54, %v24048_v63 }
0x1f63   : > { %13920 = vmatpush1.bf16.msra.mxu1 %v18756_v5 }
0x1f64   : > { %9845 = vadd.xlane.f32.xlu1 %v9844_v8  ;;  %13921 = vmatprep.subr.bf16.mxu1 %v18764_v12  ;;  %v22964_v8 = vrot.slane %v9776_v54, %v24049_v14 }
0x1f67   : > { %13922 = vmatpush1.bf16.msra.mxu1 %v18762_v21 }
0x1f68   : > { %13923 = vmatprep.subr.bf16.mxu1 %v18770_v16 }
0x1f6b   : > { %13924 = vmatpush1.bf16.msra.mxu1 %v18768_v37  ;;  %v18786_v37 = vld [vmem:[%s24070_s23 + $0x8] ss:$164 sps:$4 sm:$0xff]  }
0x1f6c   : > { %13925 = vmatprep.subr.bf16.mxu1 %v18776_v35  ;;  %v18794_v35 = vld [vmem:[%s24070_s23 + $0x154] ss:$164 sps:$4 sm:$0xff]  }
0x1f6f   : > { %13926 = vmatpush1.bf16.msra.mxu1 %v18774_v45 }
0x1f70   : > { %13927 = vmatprep.subr.bf16.mxu1 %v18782_v19 }
0x1f73   : > { %13928 = vmatpush1.bf16.msra.mxu1 %v18780_v30 }
0x1f74   : > { %13950 = vmatprep.subr.bf16.mxu1 %v18788_v46 }
0x1fdd   : > { %v9829_v18 = vpop.xlane.xlu0 %9828 }
0x1fde   : > { %v9847_v0 = vmul.f32 0.00390625, %v9829_v18 }
0x1fdf   : > { %v9832_v57 = vpop.xlane.xlu1 %9831 }
0x1fe0   : > { %v9853_v9 = vadd.f32 1e-05, %v9847_v0  ;;  %v9848_v59 = vmul.f32 0.00390625, %v9832_v57  ;;  %v18795_v0 = vld [vmem:[%s24070_s23 + $0x168] ss:$164 sps:$4 sm:$0xff]  }
0x1fe2   : > { %19966 = vrsqrt.f32 %v9853_v9  ;;  %v9854_v55 = vadd.f32 1e-05, %v9848_v59  ;;  %v18803_v9 = vld [vmem:[%s24070_s23 + $0x2b4] ss:$164 sps:$4 sm:$0xff]  }
0x1fe4   : > { %19968 = vrsqrt.f32 %v9854_v55 }
0x1fe5   : > { %v9835_v23 = vpop.xlane.xlu0 %9834 }
0x1fe6   : > { %v9849_v47 = vmul.f32 0.00390625, %v9835_v23 }
0x1fe7   : > { %v9838_v43 = vpop.xlane.xlu1 %9837 }
0x1fe8   : > { %v9855_v42 = vadd.f32 1e-05, %v9849_v47  ;;  %v9850_v32 = vmul.f32 0.00390625, %v9838_v43  ;;  %v18798_v43 = vld [vmem:[%s24070_s23 + $0x298] ss:$164 sps:$4 sm:$0xff]  }
0x1fea   : > { %19970 = vrsqrt.f32 %v9855_v42  ;;  %v9856_v36 = vadd.f32 1e-05, %v9850_v32  ;;  %v18806_v42 = vld [vmem:[%s24070_s23 + $0x3e4] ss:$164 sps:$4 sm:$0xff]  }
0x1fec   : > { %v19967_v10 = vpop.eup %19966  ;;  %19972 = vrsqrt.f32 %v9856_v36  ;;  %v18809_v36 = vld [vmem:[%s24070_s23 + $0x3fc] ss:$164 sps:$4 sm:$0xff]  }
0x1fed   : > { %v9865_v1 = vmul.f32 %v19967_v10, %v22863_v34  ;;  %v9866_v62 = vmul.f32 %v19967_v10, %v22866_v25  ;;  %v9841_v56 = vpop.xlane.xlu0 %9840 }
0x1fee   : > { %v19969_v13 = vpop.eup %19968  ;;  %v9851_v52 = vmul.f32 0.00390625, %v9841_v56 }
0x1fef   : > { %v9888_v3 = vmul.f32 %v22953_v60, %v9865_v1  ;;  %v9889_v41 = vmul.f32 %v22956_v48, %v9866_v62  ;;  %v9867_v15 = vmul.f32 %v19969_v13, %v22873_v44  ;;  %v9868_v38 = vmul.f32 %v19969_v13, %v22876_v6  ;;  %v18804_v1 = vld [vmem:[%s24070_s23 + $0x3e0] ss:$164 sps:$4 sm:$0xff]   ;;  %v18807_v13 = vld [vmem:[%s24070_s23 + $0x3f8] ss:$164 sps:$4 sm:$0xff]  }
0x1ff0   : > { %v9857_v34 = vadd.f32 1e-05, %v9851_v52  ;;  %v18812_v52 = vld [vmem:[%s24070_s23 + $0x52c] ss:$164 sps:$4 sm:$0xff]  }
0x1ff1   : > { %v9890_v25 = vmul.f32 %v22953_v60, %v9867_v15  ;;  %v9891_v20 = vmul.f32 %v22956_v48, %v9868_v38  ;;  %v9846_v63 = vpop.xlane.xlu1 %9845  ;;  %v9911_v5 = vadd.f32 %v22961_v28, %v9888_v3  ;;  %v9912_v31 = vadd.f32 %v22964_v8, %v9889_v41 }
0x1ff2   : > { %19974 = vrsqrt.f32 %v9857_v34  ;;  %v9852_v14 = vmul.f32 0.00390625, %v9846_v63  ;;  %v18813_v34 = vld [vmem:[%s24070_s23 + $0x540] ss:$164 sps:$4 sm:$0xff]  }
0x1ff3   : > { %v9913_v12 = vadd.f32 %v22961_v28, %v9890_v25  ;;  %v9914_v44 = vadd.f32 %v22964_v8, %v9891_v20  ;;  %v18818_v25 = vld [vmem:[%s24070_s23 + $0x674] ss:$164 sps:$4 sm:$0xff]   ;;  %v18819_v20 = vld [vmem:[%s24070_s23 + $0x688] ss:$164 sps:$4 sm:$0xff]   ;;  %v18824_v63 = vld [vmem:[%s24070_s23 + $0x7bc] ss:$164 sps:$4 sm:$0xff]  }
0x1ff4   : > { %v19971_v6 = vpop.eup %19970  ;;  %v9858_v26 = vadd.f32 1e-05, %v9852_v14  ;;  %v18827_v14 = vld [vmem:[%s24070_s23 + $0x7d4] ss:$164 sps:$4 sm:$0xff]  }
0x1ff5   : > { %v22976_v21 = vpack.c.bf16 %v9913_v12, %v9911_v5  ;;  %v22978_v7 = vpack.c.bf16 %v9914_v44, %v9912_v31  ;;  %v9869_v16 = vmul.f32 %v19971_v6, %v22883_v17  ;;  %v9870_v58 = vmul.f32 %v19971_v6, %v22886_v2  ;;  %v18797_v17 = vld [vmem:[%s24070_s23 + $0x16c] ss:$164 sps:$4 sm:$0xff]   ;;  %v18822_v5 = vld [vmem:[%s24070_s23 + $0x7b8] ss:$164 sps:$4 sm:$0xff]   ;;  %v18830_v12 = vld [vmem:[%s24070_s23 + $0x904] ss:$164 sps:$4 sm:$0xff]  }
0x1ff6   : > { %v19973_v61 = vpop.eup %19972  ;;  %19976 = vrsqrt.f32 %v9858_v26  ;;  %v18825_v31 = vld [vmem:[%s24070_s23 + $0x7d0] ss:$164 sps:$4 sm:$0xff]   ;;  %v18833_v44 = vld [vmem:[%s24070_s23 + $0x91c] ss:$164 sps:$4 sm:$0xff]  }
0x1ff7   : > { %v9892_v4 = vmul.f32 %v22953_v60, %v9869_v16  ;;  %v9893_v45 = vmul.f32 %v22956_v48, %v9870_v58  ;;  %v9871_v22 = vmul.f32 %v19973_v61, %v22893_v39  ;;  %v9872_v19 = vmul.f32 %v19973_v61, %v22896_v51  ;;  %13929 = vmatprep.mubr.bf16.mxu1 %v22978_v7  ;;  %v18800_v39 = vld [vmem:[%s24070_s23 + $0x29c] ss:$164 sps:$4 sm:$0xff]   ;;  %v18836_v16 = vld [vmem:[%s24070_s23 + $0xa4c] ss:$164 sps:$4 sm:$0xff]   ;;  %v18839_v58 = vld [vmem:[%s24070_s23 + $0xa64] ss:$164 sps:$4 sm:$0xff]  }
0x1ff8   : > { %14035 = vmatprep.mubr.bf16.mxu0 %v22978_v7  ;;  %13930 = vmatmul.mubr.bf16.vlgmr.msra.gmra.mrb[120].mxu1 %v22976_v21  ;;  %v18828_v6 = vld [vmem:[%s24070_s23 + $0x900] ss:$164 sps:$4 sm:$0xff]   ;;  %v18831_v26 = vld [vmem:[%s24070_s23 + $0x918] ss:$164 sps:$4 sm:$0xff]  }
0x1ff9   : > { %v9894_v2 = vmul.f32 %v22953_v60, %v9871_v22  ;;  %v9895_v30 = vmul.f32 %v22956_v48, %v9872_v19  ;;  %13951 = vmatpush1.bf16.msra.mxu1 %v18786_v37  ;;  %14036 = vmatmul.mubr.bf16.vlgmr.msra.gmra.mrb[132].mxu0 %v22976_v21  ;;  %v9915_v51 = vadd.f32 %v22961_v28, %v9892_v4  ;;  %v18834_v37 = vld [vmem:[%s24070_s23 + $0xa48] ss:$164 sps:$4 sm:$0xff]   ;;  %v18837_v61 = vld [vmem:[%s24070_s23 + $0xa60] ss:$164 sps:$4 sm:$0xff]  }
0x1ffa   : > { %13952 = vmatprep.subr.bf16.mxu1 %v18794_v35  ;;  %v9916_v46 = vadd.f32 %v22964_v8, %v9893_v45  ;;  %14110 = vmatpush1.bf16.msra.mxu0 %v18789_v53  ;;  %v18842_v35 = vld [vmem:[%s24070_s23 + $0xb94] ss:$164 sps:$4 sm:$0xff]   ;;  %v18845_v4 = vld [vmem:[%s24070_s23 + $0xbac] ss:$164 sps:$4 sm:$0xff]   ;;  %v18848_v19 = vld [vmem:[%s24070_s23 + $0xcdc] ss:$164 sps:$4 sm:$0xff]  }
0x1ffb   : > { %v9917_v50 = vadd.f32 %v22961_v28, %v9894_v2  ;;  %v9918_v18 = vadd.f32 %v22964_v8, %v9895_v30  ;;  %14111 = vmatprep.subr.bf16.mxu0 %v18797_v17  ;;  %v18840_v45 = vld [vmem:[%s24070_s23 + $0xb90] ss:$164 sps:$4 sm:$0xff]   ;;  %v18843_v22 = vld [vmem:[%s24070_s23 + $0xba8] ss:$164 sps:$4 sm:$0xff]   ;;  %v18846_v17 = vld [vmem:[%s24070_s23 + $0xcd8] ss:$164 sps:$4 sm:$0xff]  }
0x1ffc   : > { %v19975_v57 = vpop.eup %19974  ;;  %v18851_v53 = vld [vmem:[%s24070_s23 + $0xcf4] ss:$164 sps:$4 sm:$0xff]   ;;  %v18854_v30 = vld [vmem:[%s24070_s23 + $0xe24] ss:$164 sps:$4 sm:$0xff]  }
0x1ffd   : > { %v23004_v59 = vpack.c.bf16 %v9917_v50, %v9915_v51  ;;  %v23006_v55 = vpack.c.bf16 %v9918_v18, %v9916_v46  ;;  %v9873_v23 = vmul.f32 %v19975_v57, %v22903_v40  ;;  %v9874_v47 = vmul.f32 %v19975_v57, %v22906_v33  ;;  %13953 = vmatpush1.bf16.msra.mxu1 %v18792_v49  ;;  %v18849_v2 = vld [vmem:[%s24070_s23 + $0xcf0] ss:$164 sps:$4 sm:$0xff]   ;;  %v18857_v49 = vld [vmem:[%s24070_s23 + $0xe3c] ss:$164 sps:$4 sm:$0xff]   ;;  %v18863_v50 = vld [vmem:[%s24070_s23 + $0xf84] ss:$164 sps:$4 sm:$0xff]  }
0x1ffe   : > { %13954 = vmatprep.subr.bf16.mxu1 %v18800_v39  ;;  %14112 = vmatpush1.bf16.msra.mxu0 %v18795_v0  ;;  %v18852_v39 = vld [vmem:[%s24070_s23 + $0xe20] ss:$164 sps:$4 sm:$0xff]   ;;  %v18855_v51 = vld [vmem:[%s24070_s23 + $0xe38] ss:$164 sps:$4 sm:$0xff]   ;;  %v18860_v46 = vld [vmem:[%s24070_s23 + $0xf6c] ss:$164 sps:$4 sm:$0xff]  }
0x1fff   : > { %13937 = vmatprep.mubr.bf16.mxu1 %v23006_v55  ;;  %14043 = vmatprep.mubr.bf16.mxu0 %v23006_v55  ;;  %v9896_v40 = vmul.f32 %v22953_v60, %v9873_v23  ;;  %v9897_v33 = vmul.f32 %v22956_v48, %v9874_v47  ;;  %v18858_v18 = vld [vmem:[%s24070_s23 + $0xf68] ss:$164 sps:$4 sm:$0xff]   ;;  %v18861_v0 = vld [vmem:[%s24070_s23 + $0xf80] ss:$164 sps:$4 sm:$0xff]   ;;  %v18866_v57 = vld [vmem:[%s24070_s23 + $0x10b4] ss:$164 sps:$4 sm:$0xff]  }
0x2000   : > { %v19977_v32 = vpop.eup %19976  ;;  %14113 = vmatprep.subr.bf16.mxu0 %v18803_v9  ;;  %13938 = vmatmul.mubr.bf16.gmra.mrb[124].mxu1 %v23004_v59  ;;  %v18869_v9 = vld [vmem:[%s24070_s23 + $0x10cc] ss:$164 sps:$4 sm:$0xff]  }
0x2001   : > { %v9875_v54 = vmul.f32 %v19977_v32, %v22913_v29  ;;  %v9876_v10 = vmul.f32 %v19977_v32, %v22916_v27  ;;  %13955 = vmatpush1.bf16.msra.mxu1 %v18798_v43  ;;  %14044 = vmatmul.mubr.bf16.gmra.mrb[136].mxu0 %v23004_v59  ;;  %v18815_v29 = vld [vmem:[%s24070_s23 + $0x544] ss:$164 sps:$4 sm:$0xff]   ;;  %v9919_v27 = vadd.f32 %v22961_v28, %v9896_v40  ;;  %v18864_v23 = vld [vmem:[%s24070_s23 + $0x10b0] ss:$164 sps:$4 sm:$0xff]   ;;  %v18872_v43 = vld [vmem:[%s24070_s23 + $0x11fc] ss:$164 sps:$4 sm:$0xff]  }
0x2002   : > { %14114 = vmatpush1.bf16.msra.mxu0 %v18801_v11  ;;  %13956 = vmatprep.subr.bf16.mxu1 %v18806_v42  ;;  %v9920_v3 = vadd.f32 %v22964_v8, %v9897_v33  ;;  %v18867_v47 = vld [vmem:[%s24070_s23 + $0x10c8] ss:$164 sps:$4 sm:$0xff]   ;;  %v18875_v11 = vld [vmem:[%s24070_s23 + $0x1214] ss:$164 sps:$4 sm:$0xff]   ;;  %v18881_v40 = vld [vmem:[%s24070_s23 + $0x135c] ss:$164 sps:$4 sm:$0xff]  }
0x2003   : > { %v9898_v62 = vmul.f32 %v22953_v60, %v9875_v54  ;;  %v9899_v56 = vmul.f32 %v22956_v48, %v9876_v10  ;;  %14115 = vmatprep.subr.bf16.mxu0 %v18809_v36  ;;  %v18810_v48 = vld [vmem:[%s24070_s23 + $0x528] ss:$164 sps:$4 sm:$0xff]   ;;  %v18870_v42 = vld [vmem:[%s24070_s23 + $0x11f8] ss:$164 sps:$4 sm:$0xff]   ;;  %v18873_v32 = vld [vmem:[%s24070_s23 + $0x1210] ss:$164 sps:$4 sm:$0xff]  }
0x2004   : > { %v18878_v36 = vld [vmem:[%s24070_s23 + $0x1344] ss:$164 sps:$4 sm:$0xff]   ;;  %v18879_v54 = vld [vmem:[%s24070_s23 + $0x1358] ss:$164 sps:$4 sm:$0xff]  }
0x2005   : > { %v9921_v41 = vadd.f32 %v22961_v28, %v9898_v62  ;;  %v9922_v60 = vadd.f32 %v22964_v8, %v9899_v56  ;;  %13957 = vmatpush1.bf16.msra.mxu1 %v18804_v1  ;;  %v18821_v28 = vld [vmem:[%s24070_s23 + $0x68c] ss:$164 sps:$4 sm:$0xff]   ;;  %v18876_v33 = vld [vmem:[%s24070_s23 + $0x1340] ss:$164 sps:$4 sm:$0xff]   ;;  %v18887_v1 = vld [vmem:[%s24070_s23 + $0x34] ss:$164 sps:$4 sm:$0xff]  }
0x2006   : > { %14116 = vmatpush1.bf16.msra.mxu0 %v18807_v13  ;;  %13958 = vmatprep.subr.bf16.mxu1 %v18812_v52  ;;  %v18816_v8 = vld [vmem:[%s24070_s23 + $0x670] ss:$164 sps:$4 sm:$0xff]   ;;  %v18884_v10 = vld [vmem:[%s24070_s23 + $0x1c] ss:$164 sps:$4 sm:$0xff]   ;;  %v18890_v13 = vld [vmem:[%s24070_s23 + $0x164] ss:$164 sps:$4 sm:$0xff]  }
0x2007   : > { %v23033_v15 = vpack.c.bf16 %v9921_v41, %v9919_v27  ;;  %v23035_v38 = vpack.c.bf16 %v9922_v60, %v9920_v3  ;;  %14117 = vmatprep.subr.bf16.mxu0 %v18815_v29  ;;  %v18882_v62 = vld [vmem:[%s24070_s23 + $0x18] ss:$164 sps:$4 sm:$0xff]   ;;  %v18885_v56 = vld [vmem:[%s24070_s23 + $0x30] ss:$164 sps:$4 sm:$0xff]   ;;  %v18888_v29 = vld [vmem:[%s24070_s23 + $0x160] ss:$164 sps:$4 sm:$0xff]  }
0x2008   : > { %v18893_v52 = vld [vmem:[%s24070_s23 + $0x17c] ss:$164 sps:$4 sm:$0xff]   ;;  %v18896_v3 = vld [vmem:[%s24070_s23 + $0x2ac] ss:$164 sps:$4 sm:$0xff]   ;;  %v18899_v41 = vld [vmem:[%s24070_s23 + $0x2c4] ss:$164 sps:$4 sm:$0xff]  }
0x2009   : > { %13943 = vmatprep.mubr.bf16.mxu1 %v23035_v38  ;;  %14049 = vmatprep.mubr.bf16.mxu0 %v23035_v38  ;;  %v18891_v27 = vld [vmem:[%s24070_s23 + $0x178] ss:$164 sps:$4 sm:$0xff]   ;;  %v18894_v60 = vld [vmem:[%s24070_s23 + $0x2a8] ss:$164 sps:$4 sm:$0xff]  }
0x200a   : > { %13959 = vmatpush1.bf16.msra.mxu1 %v18810_v48  ;;  %14050 = vmatmul.mubr.bf16.gmra.mrb[140].mxu0 %v23033_v15  ;;  %v18897_v48 = vld [vmem:[%s24070_s23 + $0x2c0] ss:$164 sps:$4 sm:$0xff]  }
0x200b   : > { %14118 = vmatpush1.bf16.msra.mxu0 %v18813_v34  ;;  %13944 = vmatmul.mubr.bf16.gmra.mrb[128].mxu1 %v23033_v15  ;;  %v18902_v34 = vld [vmem:[%s24070_s23 + $0x3f4] ss:$164 sps:$4 sm:$0xff]  }
0x200c   : > { %13960 = vmatprep.subr.bf16.mxu1 %v18818_v25  ;;  %13982 = vmatprep.mubr.bf16.mxu1 %v22978_v7  ;;  %v18905_v25 = vld [vmem:[%s24070_s23 + $0x40c] ss:$164 sps:$4 sm:$0xff]  }
0x200d   : > { %14119 = vmatprep.subr.bf16.mxu0 %v18821_v28  ;;  %14141 = vmatprep.mubr.bf16.mxu0 %v22978_v7  ;;  %v18900_v28 = vld [vmem:[%s24070_s23 + $0x3f0] ss:$164 sps:$4 sm:$0xff]  }
0x200e   : > { %13961 = vmatpush1.bf16.msra.mxu1 %v18816_v8  ;;  %v18903_v8 = vld [vmem:[%s24070_s23 + $0x408] ss:$164 sps:$4 sm:$0xff]  }
0x200f   : > { %14120 = vmatpush1.bf16.msra.mxu0 %v18819_v20  ;;  %13962 = vmatprep.subr.bf16.mxu1 %v18824_v63  ;;  %v18908_v20 = vld [vmem:[%s24070_s23 + $0x53c] ss:$164 sps:$4 sm:$0xff]   ;;  %v18911_v63 = vld [vmem:[%s24070_s23 + $0x554] ss:$164 sps:$4 sm:$0xff]  }
0x2010   : > { %14121 = vmatprep.subr.bf16.mxu0 %v18827_v14  ;;  %v18906_v14 = vld [vmem:[%s24070_s23 + $0x538] ss:$164 sps:$4 sm:$0xff]  }
0x2012   : > { %13963 = vmatpush1.bf16.msra.mxu1 %v18822_v5  ;;  %v18909_v5 = vld [vmem:[%s24070_s23 + $0x550] ss:$164 sps:$4 sm:$0xff]  }
0x2013   : > { %14122 = vmatpush1.bf16.msra.mxu0 %v18825_v31  ;;  %13964 = vmatprep.subr.bf16.mxu1 %v18830_v12  ;;  %v18914_v31 = vld [vmem:[%s24070_s23 + $0x684] ss:$164 sps:$4 sm:$0xff]   ;;  %v18917_v12 = vld [vmem:[%s24070_s23 + $0x69c] ss:$164 sps:$4 sm:$0xff]  }
0x2014   : > { %14123 = vmatprep.subr.bf16.mxu0 %v18833_v44  ;;  %v18912_v44 = vld [vmem:[%s24070_s23 + $0x680] ss:$164 sps:$4 sm:$0xff]  }
0x2016   : > { %13965 = vmatpush1.bf16.msra.mxu1 %v18828_v6  ;;  %v18915_v6 = vld [vmem:[%s24070_s23 + $0x698] ss:$164 sps:$4 sm:$0xff]  }
0x2017   : > { %14124 = vmatpush1.bf16.msra.mxu0 %v18831_v26  ;;  %13966 = vmatprep.subr.bf16.mxu1 %v18836_v16  ;;  %v18920_v26 = vld [vmem:[%s24070_s23 + $0x7cc] ss:$164 sps:$4 sm:$0xff]   ;;  %v18923_v16 = vld [vmem:[%s24070_s23 + $0x7e4] ss:$164 sps:$4 sm:$0xff]  }
0x2018   : > { %14125 = vmatprep.subr.bf16.mxu0 %v18839_v58  ;;  %v18918_v58 = vld [vmem:[%s24070_s23 + $0x7c8] ss:$164 sps:$4 sm:$0xff]  }
0x201a   : > { %13967 = vmatpush1.bf16.msra.mxu1 %v18834_v37  ;;  %v18921_v37 = vld [vmem:[%s24070_s23 + $0x7e0] ss:$164 sps:$4 sm:$0xff]  }
0x201b   : > { %14126 = vmatpush1.bf16.msra.mxu0 %v18837_v61  ;;  %13968 = vmatprep.subr.bf16.mxu1 %v18842_v35  ;;  %v18926_v61 = vld [vmem:[%s24070_s23 + $0x914] ss:$164 sps:$4 sm:$0xff]   ;;  %v18929_v35 = vld [vmem:[%s24070_s23 + $0x92c] ss:$164 sps:$4 sm:$0xff]  }
0x201c   : > { %14127 = vmatprep.subr.bf16.mxu0 %v18845_v4  ;;  %v18924_v4 = vld [vmem:[%s24070_s23 + $0x910] ss:$164 sps:$4 sm:$0xff]  }
0x201e   : > { %13969 = vmatpush1.bf16.msra.mxu1 %v18840_v45  ;;  %v18927_v45 = vld [vmem:[%s24070_s23 + $0x928] ss:$164 sps:$4 sm:$0xff]  }
0x201f   : > { %14128 = vmatpush1.bf16.msra.mxu0 %v18843_v22  ;;  %13970 = vmatprep.subr.bf16.mxu1 %v18848_v19  ;;  %v18932_v22 = vld [vmem:[%s24070_s23 + $0xa5c] ss:$164 sps:$4 sm:$0xff]   ;;  %v18935_v19 = vld [vmem:[%s24070_s23 + $0xa74] ss:$164 sps:$4 sm:$0xff]  }
0x2020   : > { %14129 = vmatprep.subr.bf16.mxu0 %v18851_v53  ;;  %v18930_v53 = vld [vmem:[%s24070_s23 + $0xa58] ss:$164 sps:$4 sm:$0xff]  }
0x2022   : > { %13971 = vmatpush1.bf16.msra.mxu1 %v18846_v17  ;;  %v18933_v17 = vld [vmem:[%s24070_s23 + $0xa70] ss:$164 sps:$4 sm:$0xff]  }
0x2023   : > { %14130 = vmatpush1.bf16.msra.mxu0 %v18849_v2  ;;  %13972 = vmatprep.subr.bf16.mxu1 %v18854_v30  ;;  %v18938_v2 = vld [vmem:[%s24070_s23 + $0xba4] ss:$164 sps:$4 sm:$0xff]   ;;  %v18941_v30 = vld [vmem:[%s24070_s23 + $0xbbc] ss:$164 sps:$4 sm:$0xff]  }
0x2024   : > { %14131 = vmatprep.subr.bf16.mxu0 %v18857_v49  ;;  %v18936_v49 = vld [vmem:[%s24070_s23 + $0xba0] ss:$164 sps:$4 sm:$0xff]  }
0x2026   : > { %13973 = vmatpush1.bf16.msra.mxu1 %v18852_v39  ;;  %v18939_v39 = vld [vmem:[%s24070_s23 + $0xbb8] ss:$164 sps:$4 sm:$0xff]  }
0x2027   : > { %14132 = vmatpush1.bf16.msra.mxu0 %v18855_v51  ;;  %13974 = vmatprep.subr.bf16.mxu1 %v18860_v46  ;;  %v18944_v51 = vld [vmem:[%s24070_s23 + $0xcec] ss:$164 sps:$4 sm:$0xff]   ;;  %v18947_v46 = vld [vmem:[%s24070_s23 + $0xd04] ss:$164 sps:$4 sm:$0xff]  }
0x2028   : > { %14133 = vmatprep.subr.bf16.mxu0 %v18863_v50  ;;  %v18942_v50 = vld [vmem:[%s24070_s23 + $0xce8] ss:$164 sps:$4 sm:$0xff]  }
0x202a   : > { %13975 = vmatpush1.bf16.msra.mxu1 %v18858_v18  ;;  %v18945_v18 = vld [vmem:[%s24070_s23 + $0xd00] ss:$164 sps:$4 sm:$0xff]  }
0x202b   : > { %14134 = vmatpush1.bf16.msra.mxu0 %v18861_v0  ;;  %13976 = vmatprep.subr.bf16.mxu1 %v18866_v57  ;;  %v18950_v0 = vld [vmem:[%s24070_s23 + $0xe34] ss:$164 sps:$4 sm:$0xff]   ;;  %v18953_v57 = vld [vmem:[%s24070_s23 + $0xe4c] ss:$164 sps:$4 sm:$0xff]  }
0x202c   : > { %14135 = vmatprep.subr.bf16.mxu0 %v18869_v9  ;;  %v18948_v9 = vld [vmem:[%s24070_s23 + $0xe30] ss:$164 sps:$4 sm:$0xff]  }
0x202e   : > { %13977 = vmatpush1.bf16.msra.mxu1 %v18864_v23  ;;  %v18951_v23 = vld [vmem:[%s24070_s23 + $0xe48] ss:$164 sps:$4 sm:$0xff]  }
0x202f   : > { %14136 = vmatpush1.bf16.msra.mxu0 %v18867_v47  ;;  %13978 = vmatprep.subr.bf16.mxu1 %v18872_v43  ;;  %v18956_v47 = vld [vmem:[%s24070_s23 + $0xf7c] ss:$164 sps:$4 sm:$0xff]   ;;  %v18959_v43 = vld [vmem:[%s24070_s23 + $0xf94] ss:$164 sps:$4 sm:$0xff]  }
0x2030   : > { %14137 = vmatprep.subr.bf16.mxu0 %v18875_v11  ;;  %v18954_v11 = vld [vmem:[%s24070_s23 + $0xf78] ss:$164 sps:$4 sm:$0xff]  }
0x2032   : > { %13979 = vmatpush1.bf16.msra.mxu1 %v18870_v42  ;;  %v18957_v42 = vld [vmem:[%s24070_s23 + $0xf90] ss:$164 sps:$4 sm:$0xff]  }
0x2033   : > { %14138 = vmatpush1.bf16.msra.mxu0 %v18873_v32  ;;  %13980 = vmatprep.subr.bf16.mxu1 %v18878_v36  ;;  %v18962_v32 = vld [vmem:[%s24070_s23 + $0x10c4] ss:$164 sps:$4 sm:$0xff]   ;;  %v18965_v36 = vld [vmem:[%s24070_s23 + $0x10dc] ss:$164 sps:$4 sm:$0xff]  }
0x2034   : > { %14139 = vmatprep.subr.bf16.mxu0 %v18881_v40  ;;  %v18960_v40 = vld [vmem:[%s24070_s23 + $0x10c0] ss:$164 sps:$4 sm:$0xff]  }
0x2036   : > { %13981 = vmatpush1.bf16.msra.mxu1 %v18876_v33  ;;  %v18963_v33 = vld [vmem:[%s24070_s23 + $0x10d8] ss:$164 sps:$4 sm:$0xff]  }
0x2037   : > { %14140 = vmatpush1.bf16.msra.mxu0 %v18879_v54  ;;  %14056 = vmatprep.subr.bf16.mxu1 %v18884_v10  ;;  %v18968_v54 = vld [vmem:[%s24070_s23 + $0x120c] ss:$164 sps:$4 sm:$0xff]   ;;  %v18971_v10 = vld [vmem:[%s24070_s23 + $0x1224] ss:$164 sps:$4 sm:$0xff]  }
0x2038   : > { %14215 = vmatprep.subr.bf16.mxu0 %v18887_v1  ;;  %v18966_v1 = vld [vmem:[%s24070_s23 + $0x1208] ss:$164 sps:$4 sm:$0xff]  }
0x2039   : > { %13983 = vmatmul.mubr.bf16.vlgmr.msra.gmra.mrb[132].mxu1 %v22976_v21 }
0x203a   : > { %14142 = vmatmul.mubr.bf16.vlgmr.msra.gmra.mrb[144].mxu0 %v22976_v21  ;;  %13990 = vmatprep.mubr.bf16.mxu1 %v23006_v55 }
0x203b   : > { %14057 = vmatpush1.bf16.msra.mxu1 %v18882_v62  ;;  %14149 = vmatprep.mubr.bf16.mxu0 %v23006_v55  ;;  %v18969_v62 = vld [vmem:[%s24070_s23 + $0x1220] ss:$164 sps:$4 sm:$0xff]  }
0x203c   : > { %14216 = vmatpush1.bf16.msra.mxu0 %v18885_v56  ;;  %14058 = vmatprep.subr.bf16.mxu1 %v18890_v13  ;;  %v18974_v56 = vld [vmem:[%s24070_s23 + $0x1354] ss:$164 sps:$4 sm:$0xff]   ;;  %v18977_v13 = vld [vmem:[%s24070_s23 + $0x136c] ss:$164 sps:$4 sm:$0xff]  }
0x203d   : > { %14217 = vmatprep.subr.bf16.mxu0 %v18893_v52  ;;  %v18972_v52 = vld [vmem:[%s24070_s23 + $0x1350] ss:$164 sps:$4 sm:$0xff]  }
0x203f   : > { %14059 = vmatpush1.bf16.msra.mxu1 %v18888_v29  ;;  %v18975_v29 = vld [vmem:[%s24070_s23 + $0x1368] ss:$164 sps:$4 sm:$0xff]  }
0x2040   : > { %14218 = vmatpush1.bf16.msra.mxu0 %v18891_v27  ;;  %14060 = vmatprep.subr.bf16.mxu1 %v18896_v3  ;;  %v18980_v27 = vld [vmem:[%s24070_s23 + $0x2c] ss:$164 sps:$4 sm:$0xff]   ;;  %v18983_v3 = vld [vmem:[%s24070_s23 + $0x44] ss:$164 sps:$4 sm:$0xff]  }
0x2041   : > { %13991 = vmatmul.mubr.bf16.gmra.mrb[136].mxu1 %v23004_v59  ;;  %14219 = vmatprep.subr.bf16.mxu0 %v18899_v41  ;;  %v18978_v41 = vld [vmem:[%s24070_s23 + $0x28] ss:$164 sps:$4 sm:$0xff]  }
0x2042   : > { %14150 = vmatmul.mubr.bf16.gmra.mrb[148].mxu0 %v23004_v59  ;;  %13996 = vmatprep.mubr.bf16.mxu1 %v23035_v38 }
0x2043   : > { %14061 = vmatpush1.bf16.msra.mxu1 %v18894_v60  ;;  %14155 = vmatprep.mubr.bf16.mxu0 %v23035_v38  ;;  %v18981_v60 = vld [vmem:[%s24070_s23 + $0x40] ss:$164 sps:$4 sm:$0xff]  }
0x2044   : > { %14220 = vmatpush1.bf16.msra.mxu0 %v18897_v48  ;;  %14062 = vmatprep.subr.bf16.mxu1 %v18902_v34  ;;  %v18986_v48 = vld [vmem:[%s24070_s23 + $0x174] ss:$164 sps:$4 sm:$0xff]   ;;  %v18989_v34 = vld [vmem:[%s24070_s23 + $0x18c] ss:$164 sps:$4 sm:$0xff]  }
0x2045   : > { %14221 = vmatprep.subr.bf16.mxu0 %v18905_v25  ;;  %v18984_v25 = vld [vmem:[%s24070_s23 + $0x170] ss:$164 sps:$4 sm:$0xff]  }
0x2047   : > { %14063 = vmatpush1.bf16.msra.mxu1 %v18900_v28  ;;  %v18987_v28 = vld [vmem:[%s24070_s23 + $0x188] ss:$164 sps:$4 sm:$0xff]  }
0x2048   : > { %14222 = vmatpush1.bf16.msra.mxu0 %v18903_v8  ;;  %14064 = vmatprep.subr.bf16.mxu1 %v18908_v20  ;;  %v18992_v8 = vld [vmem:[%s24070_s23 + $0x2bc] ss:$164 sps:$4 sm:$0xff]   ;;  %v18995_v20 = vld [vmem:[%s24070_s23 + $0x2d4] ss:$164 sps:$4 sm:$0xff]  }
0x2049   : > { %13997 = vmatmul.mubr.bf16.gmra.mrb[140].mxu1 %v23033_v15  ;;  %14223 = vmatprep.subr.bf16.mxu0 %v18911_v63  ;;  %v18990_v63 = vld [vmem:[%s24070_s23 + $0x2b8] ss:$164 sps:$4 sm:$0xff]  }
0x204a   : > { %14156 = vmatmul.mubr.bf16.gmra.mrb[152].mxu0 %v23033_v15  ;;  %14088 = vmatprep.mubr.bf16.mxu1 %v22978_v7 }
0x204b   : > { %14065 = vmatpush1.bf16.msra.mxu1 %v18906_v14  ;;  %14247 = vmatprep.mubr.bf16.mxu0 %v22978_v7  ;;  %v18993_v14 = vld [vmem:[%s24070_s23 + $0x2d0] ss:$164 sps:$4 sm:$0xff]  }
0x204c   : > { %14224 = vmatpush1.bf16.msra.mxu0 %v18909_v5  ;;  %14066 = vmatprep.subr.bf16.mxu1 %v18914_v31  ;;  %v18998_v5 = vld [vmem:[%s24070_s23 + $0x404] ss:$164 sps:$4 sm:$0xff]   ;;  %v19001_v31 = vld [vmem:[%s24070_s23 + $0x41c] ss:$164 sps:$4 sm:$0xff]  }
0x204d   : > { %14225 = vmatprep.subr.bf16.mxu0 %v18917_v12  ;;  %v18996_v12 = vld [vmem:[%s24070_s23 + $0x400] ss:$164 sps:$4 sm:$0xff]  }
0x204f   : > { %14067 = vmatpush1.bf16.msra.mxu1 %v18912_v44  ;;  %v18999_v44 = vld [vmem:[%s24070_s23 + $0x418] ss:$164 sps:$4 sm:$0xff]  }
0x2050   : > { %14226 = vmatpush1.bf16.msra.mxu0 %v18915_v6  ;;  %14068 = vmatprep.subr.bf16.mxu1 %v18920_v26  ;;  %v19004_v6 = vld [vmem:[%s24070_s23 + $0x54c] ss:$164 sps:$4 sm:$0xff]   ;;  %v19007_v26 = vld [vmem:[%s24070_s23 + $0x564] ss:$164 sps:$4 sm:$0xff]  }
0x2051   : > { %14227 = vmatprep.subr.bf16.mxu0 %v18923_v16  ;;  %v19002_v16 = vld [vmem:[%s24070_s23 + $0x548] ss:$164 sps:$4 sm:$0xff]  }
0x2053   : > { %14069 = vmatpush1.bf16.msra.mxu1 %v18918_v58  ;;  %v19005_v58 = vld [vmem:[%s24070_s23 + $0x560] ss:$164 sps:$4 sm:$0xff]  }
0x2054   : > { %14228 = vmatpush1.bf16.msra.mxu0 %v18921_v37  ;;  %14070 = vmatprep.subr.bf16.mxu1 %v18926_v61  ;;  %v19010_v37 = vld [vmem:[%s24070_s23 + $0x694] ss:$164 sps:$4 sm:$0xff]   ;;  %v19013_v61 = vld [vmem:[%s24070_s23 + $0x6ac] ss:$164 sps:$4 sm:$0xff]  }
0x2055   : > { %14229 = vmatprep.subr.bf16.mxu0 %v18929_v35  ;;  %v19008_v35 = vld [vmem:[%s24070_s23 + $0x690] ss:$164 sps:$4 sm:$0xff]  }
0x2057   : > { %14071 = vmatpush1.bf16.msra.mxu1 %v18924_v4  ;;  %v19011_v4 = vld [vmem:[%s24070_s23 + $0x6a8] ss:$164 sps:$4 sm:$0xff]  }
0x2058   : > { %14230 = vmatpush1.bf16.msra.mxu0 %v18927_v45  ;;  %14072 = vmatprep.subr.bf16.mxu1 %v18932_v22  ;;  %v19016_v45 = vld [vmem:[%s24070_s23 + $0x7dc] ss:$164 sps:$4 sm:$0xff]   ;;  %v19019_v22 = vld [vmem:[%s24070_s23 + $0x7f4] ss:$164 sps:$4 sm:$0xff]  }
0x2059   : > { %14231 = vmatprep.subr.bf16.mxu0 %v18935_v19  ;;  %v19014_v19 = vld [vmem:[%s24070_s23 + $0x7d8] ss:$164 sps:$4 sm:$0xff]  }
0x205b   : > { %14073 = vmatpush1.bf16.msra.mxu1 %v18930_v53  ;;  %v19017_v53 = vld [vmem:[%s24070_s23 + $0x7f0] ss:$164 sps:$4 sm:$0xff]  }
0x205c   : > { %14232 = vmatpush1.bf16.msra.mxu0 %v18933_v17  ;;  %14074 = vmatprep.subr.bf16.mxu1 %v18938_v2  ;;  %v19022_v17 = vld [vmem:[%s24070_s23 + $0x924] ss:$164 sps:$4 sm:$0xff]   ;;  %v19025_v2 = vld [vmem:[%s24070_s23 + $0x93c] ss:$164 sps:$4 sm:$0xff]  }
0x205d   : > { %14233 = vmatprep.subr.bf16.mxu0 %v18941_v30  ;;  %v19020_v30 = vld [vmem:[%s24070_s23 + $0x920] ss:$164 sps:$4 sm:$0xff]  }
0x205f   : > { %14075 = vmatpush1.bf16.msra.mxu1 %v18936_v49  ;;  %v19023_v49 = vld [vmem:[%s24070_s23 + $0x938] ss:$164 sps:$4 sm:$0xff]  }
0x2060   : > { %14234 = vmatpush1.bf16.msra.mxu0 %v18939_v39  ;;  %14076 = vmatprep.subr.bf16.mxu1 %v18944_v51  ;;  %v19028_v39 = vld [vmem:[%s24070_s23 + $0xa6c] ss:$164 sps:$4 sm:$0xff]   ;;  %v19031_v51 = vld [vmem:[%s24070_s23 + $0xa84] ss:$164 sps:$4 sm:$0xff]  }
0x2061   : > { %14235 = vmatprep.subr.bf16.mxu0 %v18947_v46  ;;  %v19026_v46 = vld [vmem:[%s24070_s23 + $0xa68] ss:$164 sps:$4 sm:$0xff]  }
0x2063   : > { %14077 = vmatpush1.bf16.msra.mxu1 %v18942_v50  ;;  %v19029_v50 = vld [vmem:[%s24070_s23 + $0xa80] ss:$164 sps:$4 sm:$0xff]  }
0x2064   : > { %14236 = vmatpush1.bf16.msra.mxu0 %v18945_v18  ;;  %14078 = vmatprep.subr.bf16.mxu1 %v18950_v0  ;;  %v19034_v18 = vld [vmem:[%s24070_s23 + $0xbb4] ss:$164 sps:$4 sm:$0xff]   ;;  %v19037_v0 = vld [vmem:[%s24070_s23 + $0xbcc] ss:$164 sps:$4 sm:$0xff]  }
0x2065   : > { %14237 = vmatprep.subr.bf16.mxu0 %v18953_v57  ;;  %v19032_v57 = vld [vmem:[%s24070_s23 + $0xbb0] ss:$164 sps:$4 sm:$0xff]  }
0x2067   : > { %14079 = vmatpush1.bf16.msra.mxu1 %v18948_v9  ;;  %v19035_v9 = vld [vmem:[%s24070_s23 + $0xbc8] ss:$164 sps:$4 sm:$0xff]  }
0x2068   : > { %14238 = vmatpush1.bf16.msra.mxu0 %v18951_v23  ;;  %14080 = vmatprep.subr.bf16.mxu1 %v18956_v47  ;;  %v19040_v23 = vld [vmem:[%s24070_s23 + $0xcfc] ss:$164 sps:$4 sm:$0xff]   ;;  %v19043_v47 = vld [vmem:[%s24070_s23 + $0xd14] ss:$164 sps:$4 sm:$0xff]  }
0x2069   : > { %14239 = vmatprep.subr.bf16.mxu0 %v18959_v43  ;;  %v19038_v43 = vld [vmem:[%s24070_s23 + $0xcf8] ss:$164 sps:$4 sm:$0xff]  }
0x206b   : > { %14081 = vmatpush1.bf16.msra.mxu1 %v18954_v11  ;;  %v19041_v11 = vld [vmem:[%s24070_s23 + $0xd10] ss:$164 sps:$4 sm:$0xff]  }
0x206c   : > { %14240 = vmatpush1.bf16.msra.mxu0 %v18957_v42  ;;  %14082 = vmatprep.subr.bf16.mxu1 %v18962_v32  ;;  %v19046_v42 = vld [vmem:[%s24070_s23 + $0xe44] ss:$164 sps:$4 sm:$0xff]   ;;  %v19049_v32 = vld [vmem:[%s24070_s23 + $0xe5c] ss:$164 sps:$4 sm:$0xff]  }
0x206d   : > { %14241 = vmatprep.subr.bf16.mxu0 %v18965_v36  ;;  %v19044_v36 = vld [vmem:[%s24070_s23 + $0xe40] ss:$164 sps:$4 sm:$0xff]  }
0x206f   : > { %14083 = vmatpush1.bf16.msra.mxu1 %v18960_v40  ;;  %v19047_v40 = vld [vmem:[%s24070_s23 + $0xe58] ss:$164 sps:$4 sm:$0xff]  }
0x2070   : > { %14242 = vmatpush1.bf16.msra.mxu0 %v18963_v33  ;;  %14084 = vmatprep.subr.bf16.mxu1 %v18968_v54  ;;  %v19052_v33 = vld [vmem:[%s24070_s23 + $0xf8c] ss:$164 sps:$4 sm:$0xff]   ;;  %v19055_v54 = vld [vmem:[%s24070_s23 + $0xfa4] ss:$164 sps:$4 sm:$0xff]  }
0x2071   : > { %14243 = vmatprep.subr.bf16.mxu0 %v18971_v10  ;;  %v19050_v10 = vld [vmem:[%s24070_s23 + $0xf88] ss:$164 sps:$4 sm:$0xff]  }
0x2073   : > { %14085 = vmatpush1.bf16.msra.mxu1 %v18966_v1  ;;  %v19053_v1 = vld [vmem:[%s24070_s23 + $0xfa0] ss:$164 sps:$4 sm:$0xff]  }
0x2074   : > { %14244 = vmatpush1.bf16.msra.mxu0 %v18969_v62  ;;  %14086 = vmatprep.subr.bf16.mxu1 %v18974_v56  ;;  %v19058_v62 = vld [vmem:[%s24070_s23 + $0x10d4] ss:$164 sps:$4 sm:$0xff]   ;;  %v19061_v56 = vld [vmem:[%s24070_s23 + $0x10ec] ss:$164 sps:$4 sm:$0xff]  }
0x2075   : > { %14245 = vmatprep.subr.bf16.mxu0 %v18977_v13  ;;  %v19056_v13 = vld [vmem:[%s24070_s23 + $0x10d0] ss:$164 sps:$4 sm:$0xff]  }
0x2077   : > { %14087 = vmatpush1.bf16.msra.mxu1 %v18972_v52  ;;  %v19059_v52 = vld [vmem:[%s24070_s23 + $0x10e8] ss:$164 sps:$4 sm:$0xff]  }
0x2078   : > { %14246 = vmatpush1.bf16.msra.mxu0 %v18975_v29  ;;  %14162 = vmatprep.subr.bf16.mxu1 %v18980_v27  ;;  %v19064_v29 = vld [vmem:[%s24070_s23 + $0x121c] ss:$164 sps:$4 sm:$0xff]   ;;  %v19067_v27 = vld [vmem:[%s24070_s23 + $0x1234] ss:$164 sps:$4 sm:$0xff]  }
0x2079   : > { %14321 = vmatprep.subr.bf16.mxu0 %v18983_v3  ;;  %v19062_v3 = vld [vmem:[%s24070_s23 + $0x1218] ss:$164 sps:$4 sm:$0xff]  }
0x207a   : > { %14089 = vmatmul.mubr.bf16.vlgmr.msra.gmra.mrb[144].mxu1 %v22976_v21 }
0x207b   : > { %14248 = vmatmul.mubr.bf16.vlgmr.msra.gmra.mrb[156].mxu0 %v22976_v21  ;;  %14096 = vmatprep.mubr.bf16.mxu1 %v23006_v55 }
0x207c   : > { %14163 = vmatpush1.bf16.msra.mxu1 %v18978_v41  ;;  %14255 = vmatprep.mubr.bf16.mxu0 %v23006_v55  ;;  %v19065_v41 = vld [vmem:[%s24070_s23 + $0x1230] ss:$164 sps:$4 sm:$0xff]  }
0x207d   : > { %14322 = vmatpush1.bf16.msra.mxu0 %v18981_v60  ;;  %14164 = vmatprep.subr.bf16.mxu1 %v18986_v48  ;;  %v19070_v60 = vld [vmem:[%s24070_s23 + $0x1364] ss:$164 sps:$4 sm:$0xff]   ;;  %v19073_v48 = vld [vmem:[%s24070_s23 + $0x137c] ss:$164 sps:$4 sm:$0xff]  }
0x207e   : > { %14323 = vmatprep.subr.bf16.mxu0 %v18989_v34  ;;  %v19068_v34 = vld [vmem:[%s24070_s23 + $0x1360] ss:$164 sps:$4 sm:$0xff]  }
0x2080   : > { %14165 = vmatpush1.bf16.msra.mxu1 %v18984_v25  ;;  %v19071_v25 = vld [vmem:[%s24070_s23 + $0x1378] ss:$164 sps:$4 sm:$0xff]  }
0x2081   : > { %14324 = vmatpush1.bf16.msra.mxu0 %v18987_v28  ;;  %14166 = vmatprep.subr.bf16.mxu1 %v18992_v8  ;;  %v19076_v28 = vld [vmem:[%s24070_s23 + $0x3c] ss:$164 sps:$4 sm:$0xff]   ;;  %v19079_v8 = vld [vmem:[%s24070_s23 + $0x54] ss:$164 sps:$4 sm:$0xff]  }
0x2082   : > { %14097 = vmatmul.mubr.bf16.gmra.mrb[148].mxu1 %v23004_v59  ;;  %14325 = vmatprep.subr.bf16.mxu0 %v18995_v20  ;;  %v19074_v20 = vld [vmem:[%s24070_s23 + $0x38] ss:$164 sps:$4 sm:$0xff]  }
0x2083   : > { %14256 = vmatmul.mubr.bf16.gmra.mrb[160].mxu0 %v23004_v59  ;;  %14102 = vmatprep.mubr.bf16.mxu1 %v23035_v38 }
0x2084   : > { %14167 = vmatpush1.bf16.msra.mxu1 %v18990_v63  ;;  %14261 = vmatprep.mubr.bf16.mxu0 %v23035_v38  ;;  %v19077_v63 = vld [vmem:[%s24070_s23 + $0x50] ss:$164 sps:$4 sm:$0xff]  }
0x2085   : > { %14326 = vmatpush1.bf16.msra.mxu0 %v18993_v14  ;;  %14168 = vmatprep.subr.bf16.mxu1 %v18998_v5  ;;  %v19082_v14 = vld [vmem:[%s24070_s23 + $0x184] ss:$164 sps:$4 sm:$0xff]   ;;  %v19085_v5 = vld [vmem:[%s24070_s23 + $0x19c] ss:$164 sps:$4 sm:$0xff]  }
0x2086   : > { %14327 = vmatprep.subr.bf16.mxu0 %v19001_v31  ;;  %v19080_v31 = vld [vmem:[%s24070_s23 + $0x180] ss:$164 sps:$4 sm:$0xff]  }
0x2088   : > { %14169 = vmatpush1.bf16.msra.mxu1 %v18996_v12  ;;  %v19083_v12 = vld [vmem:[%s24070_s23 + $0x198] ss:$164 sps:$4 sm:$0xff]  }
0x2089   : > { %14328 = vmatpush1.bf16.msra.mxu0 %v18999_v44  ;;  %14170 = vmatprep.subr.bf16.mxu1 %v19004_v6  ;;  %v19088_v44 = vld [vmem:[%s24070_s23 + $0x2cc] ss:$164 sps:$4 sm:$0xff]   ;;  %v19091_v6 = vld [vmem:[%s24070_s23 + $0x2e4] ss:$164 sps:$4 sm:$0xff]  }
0x208a   : > { %14103 = vmatmul.mubr.bf16.gmra.mrb[152].mxu1 %v23033_v15  ;;  %14329 = vmatprep.subr.bf16.mxu0 %v19007_v26  ;;  %v19086_v26 = vld [vmem:[%s24070_s23 + $0x2c8] ss:$164 sps:$4 sm:$0xff]  }
0x208b   : > { %14262 = vmatmul.mubr.bf16.gmra.mrb[164].mxu0 %v23033_v15  ;;  %14194 = vmatprep.mubr.bf16.mxu1 %v22978_v7 }
0x208c   : > { %14171 = vmatpush1.bf16.msra.mxu1 %v19002_v16  ;;  %14353 = vmatprep.mubr.bf16.mxu0 %v22978_v7  ;;  %v19089_v16 = vld [vmem:[%s24070_s23 + $0x2e0] ss:$164 sps:$4 sm:$0xff]  }
0x208d   : > { %14330 = vmatpush1.bf16.msra.mxu0 %v19005_v58  ;;  %14172 = vmatprep.subr.bf16.mxu1 %v19010_v37  ;;  %v19094_v58 = vld [vmem:[%s24070_s23 + $0x414] ss:$164 sps:$4 sm:$0xff]   ;;  %v19097_v37 = vld [vmem:[%s24070_s23 + $0x42c] ss:$164 sps:$4 sm:$0xff]  }
0x208e   : > { %14331 = vmatprep.subr.bf16.mxu0 %v19013_v61  ;;  %v19092_v61 = vld [vmem:[%s24070_s23 + $0x410] ss:$164 sps:$4 sm:$0xff]  }
0x2090   : > { %14173 = vmatpush1.bf16.msra.mxu1 %v19008_v35  ;;  %v19095_v35 = vld [vmem:[%s24070_s23 + $0x428] ss:$164 sps:$4 sm:$0xff]  }
0x2091   : > { %14332 = vmatpush1.bf16.msra.mxu0 %v19011_v4  ;;  %14174 = vmatprep.subr.bf16.mxu1 %v19016_v45  ;;  %v19100_v4 = vld [vmem:[%s24070_s23 + $0x55c] ss:$164 sps:$4 sm:$0xff]   ;;  %v19103_v45 = vld [vmem:[%s24070_s23 + $0x574] ss:$164 sps:$4 sm:$0xff]  }
0x2092   : > { %14333 = vmatprep.subr.bf16.mxu0 %v19019_v22  ;;  %v19098_v22 = vld [vmem:[%s24070_s23 + $0x558] ss:$164 sps:$4 sm:$0xff]  }
0x2094   : > { %14175 = vmatpush1.bf16.msra.mxu1 %v19014_v19  ;;  %v19101_v19 = vld [vmem:[%s24070_s23 + $0x570] ss:$164 sps:$4 sm:$0xff]  }
0x2095   : > { %14334 = vmatpush1.bf16.msra.mxu0 %v19017_v53  ;;  %14176 = vmatprep.subr.bf16.mxu1 %v19022_v17  ;;  %v19106_v53 = vld [vmem:[%s24070_s23 + $0x6a4] ss:$164 sps:$4 sm:$0xff]  }
0x2096   : > { %14335 = vmatprep.subr.bf16.mxu0 %v19025_v2  ;;  %v19109_v2 = vld [vmem:[%s24070_s23 + $0x6bc] ss:$164 sps:$4 sm:$0xff]  }
0x2098   : > { %14177 = vmatpush1.bf16.msra.mxu1 %v19020_v30 }
0x2099   : > { %14336 = vmatpush1.bf16.msra.mxu0 %v19023_v49  ;;  %14178 = vmatprep.subr.bf16.mxu1 %v19028_v39  ;;  %v19104_v39 = vld [vmem:[%s24070_s23 + $0x6a0] ss:$164 sps:$4 sm:$0xff]  }
0x209a   : > { %14337 = vmatprep.subr.bf16.mxu0 %v19031_v51 }
0x209c   : > { %14179 = vmatpush1.bf16.msra.mxu1 %v19026_v46 }
0x209d   : > { %14338 = vmatpush1.bf16.msra.mxu0 %v19029_v50  ;;  %14180 = vmatprep.subr.bf16.mxu1 %v19034_v18  ;;  %v19107_v50 = vld [vmem:[%s24070_s23 + $0x6b8] ss:$164 sps:$4 sm:$0xff]  }
0x209e   : > { %14339 = vmatprep.subr.bf16.mxu0 %v19037_v0 }
0x20a0   : > { %14181 = vmatpush1.bf16.msra.mxu1 %v19032_v57  ;;  %v19112_v57 = vld [vmem:[%s24070_s23 + $0x7ec] ss:$164 sps:$4 sm:$0xff]  }
0x20a1   : > { %14340 = vmatpush1.bf16.msra.mxu0 %v19035_v9  ;;  %14182 = vmatprep.subr.bf16.mxu1 %v19040_v23  ;;  %v19115_v23 = vld [vmem:[%s24070_s23 + $0x804] ss:$164 sps:$4 sm:$0xff]  }
0x20a2   : > { %14341 = vmatprep.subr.bf16.mxu0 %v19043_v47 }
0x20a4   : > { %14183 = vmatpush1.bf16.msra.mxu1 %v19038_v43  ;;  %v19110_v43 = vld [vmem:[%s24070_s23 + $0x7e8] ss:$164 sps:$4 sm:$0xff]  }
0x20a5   : > { %14342 = vmatpush1.bf16.msra.mxu0 %v19041_v11  ;;  %14184 = vmatprep.subr.bf16.mxu1 %v19046_v42  ;;  %v19113_v11 = vld [vmem:[%s24070_s23 + $0x800] ss:$164 sps:$4 sm:$0xff]   ;;  %v19118_v42 = vld [vmem:[%s24070_s23 + $0x934] ss:$164 sps:$4 sm:$0xff]  }
0x20a6   : > { %14343 = vmatprep.subr.bf16.mxu0 %v19049_v32  ;;  %v19121_v32 = vld [vmem:[%s24070_s23 + $0x94c] ss:$164 sps:$4 sm:$0xff]  }
0x20a8   : > { %14185 = vmatpush1.bf16.msra.mxu1 %v19044_v36 }
0x20a9   : > { %14344 = vmatpush1.bf16.msra.mxu0 %v19047_v40  ;;  %14186 = vmatprep.subr.bf16.mxu1 %v19052_v33  ;;  %v19116_v33 = vld [vmem:[%s24070_s23 + $0x930] ss:$164 sps:$4 sm:$0xff]  }
0x20aa   : > { %14345 = vmatprep.subr.bf16.mxu0 %v19055_v54 }
0x20ac   : > { %14187 = vmatpush1.bf16.msra.mxu1 %v19050_v10  ;;  %v19119_v10 = vld [vmem:[%s24070_s23 + $0x948] ss:$164 sps:$4 sm:$0xff]  }
0x20ad   : > { %14346 = vmatpush1.bf16.msra.mxu0 %v19053_v1  ;;  %14188 = vmatprep.subr.bf16.mxu1 %v19058_v62 }
0x20ae   : > { %14347 = vmatprep.subr.bf16.mxu0 %v19061_v56  ;;  %v19124_v56 = vld [vmem:[%s24070_s23 + $0xa7c] ss:$164 sps:$4 sm:$0xff]  }
0x20b0   : > { %14189 = vmatpush1.bf16.msra.mxu1 %v19056_v13 }
0x20b1   : > { %14348 = vmatpush1.bf16.msra.mxu0 %v19059_v52  ;;  %14190 = vmatprep.subr.bf16.mxu1 %v19064_v29  ;;  %v19127_v29 = vld [vmem:[%s24070_s23 + $0xa94] ss:$164 sps:$4 sm:$0xff]  }
0x20b2   : > { %14349 = vmatprep.subr.bf16.mxu0 %v19067_v27 }
0x20b4   : > { %14191 = vmatpush1.bf16.msra.mxu1 %v19062_v3  ;;  %v19122_v3 = vld [vmem:[%s24070_s23 + $0xa78] ss:$164 sps:$4 sm:$0xff]  }
0x20b5   : > { %14350 = vmatpush1.bf16.msra.mxu0 %v19065_v41  ;;  %14192 = vmatprep.subr.bf16.mxu1 %v19070_v60  ;;  %v19125_v41 = vld [vmem:[%s24070_s23 + $0xa90] ss:$164 sps:$4 sm:$0xff]   ;;  %v19130_v60 = vld [vmem:[%s24070_s23 + $0xbc4] ss:$164 sps:$4 sm:$0xff]  }
0x20b6   : > { %14351 = vmatprep.subr.bf16.mxu0 %v19073_v48  ;;  %v19133_v48 = vld [vmem:[%s24070_s23 + $0xbdc] ss:$164 sps:$4 sm:$0xff]  }
0x20b8   : > { %14193 = vmatpush1.bf16.msra.mxu1 %v19068_v34  ;;  %v19128_v34 = vld [vmem:[%s24070_s23 + $0xbc0] ss:$164 sps:$4 sm:$0xff]  }
0x20b9   : > { %14352 = vmatpush1.bf16.msra.mxu0 %v19071_v25  ;;  %14268 = vmatprep.subr.bf16.mxu1 %v19076_v28  ;;  %v19131_v28 = vld [vmem:[%s24070_s23 + $0xbd8] ss:$164 sps:$4 sm:$0xff]  }
0x20ba   : > { %14427 = vmatprep.subr.bf16.mxu0 %v19079_v8 }
0x20bb   : > { %14195 = vmatmul.mubr.bf16.vlgmr.msra.gmra.mrb[156].mxu1 %v22976_v21 }
0x20bc   : > { %14354 = vmatmul.mubr.bf16.vlgmr.msra.gmra.mrb[168].mxu0 %v22976_v21  ;;  %14202 = vmatprep.mubr.bf16.mxu1 %v23006_v55 }
0x20bd   : > { %14269 = vmatpush1.bf16.msra.mxu1 %v19074_v20  ;;  %14359 = vmatprep.mubr.bf16.mxu0 %v23006_v55 }
0x20be   : > { %14428 = vmatpush1.bf16.msra.mxu0 %v19077_v63  ;;  %14270 = vmatprep.subr.bf16.mxu1 %v19082_v14  ;;  %v19136_v63 = vld [vmem:[%s24070_s23 + $0xd0c] ss:$164 sps:$4 sm:$0xff]  }
0x20bf   : > { %14429 = vmatprep.subr.bf16.mxu0 %v19085_v5 }
0x20c1   : > { %14271 = vmatpush1.bf16.msra.mxu1 %v19080_v31  ;;  %v19139_v31 = vld [vmem:[%s24070_s23 + $0xd24] ss:$164 sps:$4 sm:$0xff]  }
0x20c2   : > { %14430 = vmatpush1.bf16.msra.mxu0 %v19083_v12  ;;  %14272 = vmatprep.subr.bf16.mxu1 %v19088_v44 }
0x20c3   : > { %14203 = vmatmul.mubr.bf16.gmra.mrb[160].mxu1 %v23004_v59  ;;  %14431 = vmatprep.subr.bf16.mxu0 %v19091_v6  ;;  %v19134_v6 = vld [vmem:[%s24070_s23 + $0xd08] ss:$164 sps:$4 sm:$0xff]  }
0x20c4   : > { %14360 = vmatmul.mubr.bf16.gmra.mrb[172].mxu0 %v23004_v59  ;;  %14208 = vmatprep.mubr.bf16.mxu1 %v23035_v38 }
0x20c5   : > { %14273 = vmatpush1.bf16.msra.mxu1 %v19086_v26  ;;  %14367 = vmatprep.mubr.bf16.mxu0 %v23035_v38 }
0x20c6   : > { %14432 = vmatpush1.bf16.msra.mxu0 %v19089_v16  ;;  %14274 = vmatprep.subr.bf16.mxu1 %v19094_v58  ;;  %v19137_v16 = vld [vmem:[%s24070_s23 + $0xd20] ss:$164 sps:$4 sm:$0xff]   ;;  %v19142_v58 = vld [vmem:[%s24070_s23 + $0xe54] ss:$164 sps:$4 sm:$0xff]  }
0x20c7   : > { %14433 = vmatprep.subr.bf16.mxu0 %v19097_v37  ;;  %v19145_v37 = vld [vmem:[%s24070_s23 + $0xe6c] ss:$164 sps:$4 sm:$0xff]  }
0x20c9   : > { %14275 = vmatpush1.bf16.msra.mxu1 %v19092_v61  ;;  %v19140_v61 = vld [vmem:[%s24070_s23 + $0xe50] ss:$164 sps:$4 sm:$0xff]  }
0x20ca   : > { %14434 = vmatpush1.bf16.msra.mxu0 %v19095_v35  ;;  %14276 = vmatprep.subr.bf16.mxu1 %v19100_v4  ;;  %v19143_v35 = vld [vmem:[%s24070_s23 + $0xe68] ss:$164 sps:$4 sm:$0xff]   ;;  %v19148_v4 = vld [vmem:[%s24070_s23 + $0xf9c] ss:$164 sps:$4 sm:$0xff]  }
0x20cb   : > { %14209 = vmatmul.mubr.bf16.gmra.mrb[164].mxu1 %v23033_v15  ;;  %14435 = vmatprep.subr.bf16.mxu0 %v19103_v45  ;;  %v13931_v17 = vpop.f32.mrb[120].mxu1  ;;  %v19151_v45 = vld [vmem:[%s24070_s23 + $0xfb4] ss:$164 sps:$4 sm:$0xff]  }
0x20cc   : > { %14368 = vmatmul.mubr.bf16.gmra.mrb[176].mxu0 %v23033_v15  ;;  %14300 = vmatprep.mubr.bf16.mxu1 %v22978_v7  ;;  %v13933_v30 = vpop.f32.mrb[121].mxu1  ;;  %v23274_v49 = vpop.f32.mrb[132].mxu0 }
0x20cd   : > { %14277 = vmatpush1.bf16.msra.mxu1 %v19098_v22  ;;  %14459 = vmatprep.mubr.bf16.mxu0 %v22978_v7  ;;  %v23278_v51 = vsel %vm6463_vm5, %v13931_v17, %v13933_v30  ;;  %v13935_v46 = vpop.f32.mrb[122].mxu1  ;;  %v23281_v18 = vpop.f32.mrb[133].mxu0  ;;  %v19146_v22 = vld [vmem:[%s24070_s23 + $0xf98] ss:$164 sps:$4 sm:$0xff]  }
0x20ce   : > { %14436 = vmatpush1.bf16.msra.mxu0 %v19101_v19  ;;  %14278 = vmatprep.subr.bf16.mxu1 %v19106_v53  ;;  %v13936_v0 = vpop.f32.mrb[123].mxu1  ;;  %v14041_v9 = vpop.f32.mrb[134].mxu0  ;;  %v19149_v19 = vld [vmem:[%s24070_s23 + $0xfb0] ss:$164 sps:$4 sm:$0xff]   ;;  %v19154_v53 = vld [vmem:[%s24070_s23 + $0x10e4] ss:$164 sps:$4 sm:$0xff]  }
0x20cf   : > { %14437 = vmatprep.subr.bf16.mxu0 %v19109_v2  ;;  %v14042_v47 = vpop.f32.mrb[135].mxu0  ;;  %v19157_v17 = vld [vmem:[%s24070_s23 + $0x10fc] ss:$164 sps:$4 sm:$0xff]   ;;  %v19163_v46 = vld [vmem:[%s24070_s23 + $0x1244] ss:$164 sps:$4 sm:$0xff]  }
0x20d0   : > { %v19152_v2 = vld [vmem:[%s24070_s23 + $0x10e0] ss:$164 sps:$4 sm:$0xff]   ;;  %v19155_v30 = vld [vmem:[%s24070_s23 + $0x10f8] ss:$164 sps:$4 sm:$0xff]   ;;  %v19169_v9 = vld [vmem:[%s24070_s23 + $0x138c] ss:$164 sps:$4 sm:$0xff]  }
0x20d1   : > { %14279 = vmatpush1.bf16.msra.mxu1 %v19104_v39  ;;  %v19160_v39 = vld [vmem:[%s24070_s23 + $0x122c] ss:$164 sps:$4 sm:$0xff]   ;;  %v19161_v0 = vld [vmem:[%s24070_s23 + $0x1240] ss:$164 sps:$4 sm:$0xff]  }
0x20d2   : > { %14438 = vmatpush1.bf16.msra.mxu0 %v19107_v50  ;;  %14280 = vmatprep.subr.bf16.mxu1 %v19112_v57  ;;  %v19158_v50 = vld [vmem:[%s24070_s23 + $0x1228] ss:$164 sps:$4 sm:$0xff]   ;;  %v19166_v57 = vld [vmem:[%s24070_s23 + $0x1374] ss:$164 sps:$4 sm:$0xff]  }
0x20d3   : > { %14439 = vmatprep.subr.bf16.mxu0 %v19115_v23  ;;  %v13939_v36 = vpop.f32.mrb[124].mxu1  ;;  %v19164_v23 = vld [vmem:[%s24070_s23 + $0x1370] ss:$164 sps:$4 sm:$0xff]   ;;  %v19167_v47 = vld [vmem:[%s24070_s23 + $0x1388] ss:$164 sps:$4 sm:$0xff]  }
0x20d4   : > { %v14045_v40 = vpop.f32.mrb[136].mxu0  ;;  %v13940_v54 = vpop.f32.mrb[125].mxu1  ;;  %v19178_v36 = vld [vmem:[%s24070_s23 + $0x194] ss:$164 sps:$4 sm:$0xff]  }
0x20d5   : > { %14281 = vmatpush1.bf16.msra.mxu1 %v19110_v43  ;;  %v14046_v1 = vpop.f32.mrb[137].mxu0  ;;  %v13941_v62 = vpop.f32.mrb[126].mxu1  ;;  %v19172_v43 = vld [vmem:[%s24070_s23 + $0x4c] ss:$164 sps:$4 sm:$0xff]  }
0x20d6   : > { %14440 = vmatpush1.bf16.msra.mxu0 %v19113_v11  ;;  %14282 = vmatprep.subr.bf16.mxu1 %v19118_v42  ;;  %v14047_v13 = vpop.f32.mrb[138].mxu0  ;;  %v13942_v52 = vpop.f32.mrb[127].mxu1  ;;  %v19175_v11 = vld [vmem:[%s24070_s23 + $0x64] ss:$164 sps:$4 sm:$0xff]   ;;  %v19181_v40 = vld [vmem:[%s24070_s23 + $0x1ac] ss:$164 sps:$4 sm:$0xff]  }
0x20d7   : > { %14441 = vmatprep.subr.bf16.mxu0 %v19121_v32  ;;  %v14048_v27 = vpop.f32.mrb[139].mxu0  ;;  %v19170_v42 = vld [vmem:[%s24070_s23 + $0x48] ss:$164 sps:$4 sm:$0xff]   ;;  %v19173_v32 = vld [vmem:[%s24070_s23 + $0x60] ss:$164 sps:$4 sm:$0xff]  }
0x20d8   : > { %v19179_v54 = vld [vmem:[%s24070_s23 + $0x1a8] ss:$164 sps:$4 sm:$0xff]   ;;  %v19187_v1 = vld [vmem:[%s24070_s23 + $0x2f4] ss:$164 sps:$4 sm:$0xff]   ;;  %v19193_v52 = vld [vmem:[%s24070_s23 + $0x43c] ss:$164 sps:$4 sm:$0xff]  }
0x20d9   : > { %14283 = vmatpush1.bf16.msra.mxu1 %v19116_v33  ;;  %v19176_v33 = vld [vmem:[%s24070_s23 + $0x190] ss:$164 sps:$4 sm:$0xff]   ;;  %v19182_v62 = vld [vmem:[%s24070_s23 + $0x2d8] ss:$164 sps:$4 sm:$0xff]   ;;  %v19190_v13 = vld [vmem:[%s24070_s23 + $0x424] ss:$164 sps:$4 sm:$0xff]  }
0x20da   : > { %14442 = vmatpush1.bf16.msra.mxu0 %v19119_v10  ;;  %14284 = vmatprep.subr.bf16.mxu1 %v19124_v56  ;;  %v19184_v10 = vld [vmem:[%s24070_s23 + $0x2dc] ss:$164 sps:$4 sm:$0xff]   ;;  %v19185_v56 = vld [vmem:[%s24070_s23 + $0x2f0] ss:$164 sps:$4 sm:$0xff]  }
0x20db   : > { %14443 = vmatprep.subr.bf16.mxu0 %v19127_v29  ;;  %v19188_v29 = vld [vmem:[%s24070_s23 + $0x420] ss:$164 sps:$4 sm:$0xff]   ;;  %v19191_v27 = vld [vmem:[%s24070_s23 + $0x438] ss:$164 sps:$4 sm:$0xff]  }
0x20dd   : > { %14285 = vmatpush1.bf16.msra.mxu1 %v19122_v3  ;;  %v14051_v25 = vpop.f32.mrb[140].mxu0  ;;  %v19196_v3 = vld [vmem:[%s24070_s23 + $0x56c] ss:$164 sps:$4 sm:$0xff]  }
0x20de   : > { %14444 = vmatpush1.bf16.msra.mxu0 %v19125_v41  ;;  %14286 = vmatprep.subr.bf16.mxu1 %v19130_v60  ;;  %v13945_v8 = vpop.f32.mrb[128].mxu1  ;;  %v14052_v20 = vpop.f32.mrb[141].mxu0  ;;  %v19199_v41 = vld [vmem:[%s24070_s23 + $0x584] ss:$164 sps:$4 sm:$0xff]  }
0x20df   : > { %14445 = vmatprep.subr.bf16.mxu0 %v19133_v48  ;;  %v13946_v14 = vpop.f32.mrb[129].mxu1  ;;  %v14053_v5 = vpop.f32.mrb[142].mxu0  ;;  %v19194_v60 = vld [vmem:[%s24070_s23 + $0x568] ss:$164 sps:$4 sm:$0xff]   ;;  %v19197_v48 = vld [vmem:[%s24070_s23 + $0x580] ss:$164 sps:$4 sm:$0xff]  }
0x20e0   : > { %v13947_v12 = vpop.f32.mrb[130].mxu1  ;;  %v14054_v44 = vpop.f32.mrb[143].mxu0 }
0x20e1   : > { %14287 = vmatpush1.bf16.msra.mxu1 %v19128_v34  ;;  %v13948_v26 = vpop.f32.mrb[131].mxu1  ;;  %v19202_v34 = vld [vmem:[%s24070_s23 + $0x6b4] ss:$164 sps:$4 sm:$0xff]  }
0x20e2   : > { %14446 = vmatpush1.bf16.msra.mxu0 %v19131_v28  ;;  %14288 = vmatprep.subr.bf16.mxu1 %v19136_v63  ;;  %v19205_v28 = vld [vmem:[%s24070_s23 + $0x6cc] ss:$164 sps:$4 sm:$0xff]  }
0x20e3   : > { %14447 = vmatprep.subr.bf16.mxu0 %v19139_v31  ;;  %v19200_v31 = vld [vmem:[%s24070_s23 + $0x6b0] ss:$164 sps:$4 sm:$0xff]  }
0x20e5   : > { %14289 = vmatpush1.bf16.msra.mxu1 %v19134_v6 }
0x20e6   : > { %14448 = vmatpush1.bf16.msra.mxu0 %v19137_v16  ;;  %14290 = vmatprep.subr.bf16.mxu1 %v19142_v58  ;;  %v19208_v16 = vld [vmem:[%s24070_s23 + $0x7fc] ss:$164 sps:$4 sm:$0xff]  }
0x20e7   : > { %14449 = vmatprep.subr.bf16.mxu0 %v19145_v37  ;;  %v19211_v37 = vld [vmem:[%s24070_s23 + $0x814] ss:$164 sps:$4 sm:$0xff]  }
0x20e9   : > { %14291 = vmatpush1.bf16.msra.mxu1 %v19140_v61 }
0x20ea   : > { %14450 = vmatpush1.bf16.msra.mxu0 %v19143_v35  ;;  %14292 = vmatprep.subr.bf16.mxu1 %v19148_v4  ;;  %v19209_v4 = vld [vmem:[%s24070_s23 + $0x810] ss:$164 sps:$4 sm:$0xff]  }
0x20eb   : > { %14451 = vmatprep.subr.bf16.mxu0 %v19151_v45  ;;  %v19214_v45 = vld [vmem:[%s24070_s23 + $0x944] ss:$164 sps:$4 sm:$0xff]  }
0x20ed   : > { %14293 = vmatpush1.bf16.msra.mxu1 %v19146_v22 }
0x20ee   : > { %14452 = vmatpush1.bf16.msra.mxu0 %v19149_v19  ;;  %14294 = vmatprep.subr.bf16.mxu1 %v19154_v53  ;;  %v19217_v19 = vld [vmem:[%s24070_s23 + $0x95c] ss:$164 sps:$4 sm:$0xff]  }
0x20ef   : > { %14453 = vmatprep.subr.bf16.mxu0 %v19157_v17 }
0x20f1   : > { %14295 = vmatpush1.bf16.msra.mxu1 %v19152_v2  ;;  %v19212_v2 = vld [vmem:[%s24070_s23 + $0x940] ss:$164 sps:$4 sm:$0xff]  }
0x20f2   : > { %14454 = vmatpush1.bf16.msra.mxu0 %v19155_v30  ;;  %14296 = vmatprep.subr.bf16.mxu1 %v19160_v39  ;;  %v19215_v39 = vld [vmem:[%s24070_s23 + $0x958] ss:$164 sps:$4 sm:$0xff]  }
0x20f3   : > { %14455 = vmatprep.subr.bf16.mxu0 %v19163_v46 }
0x20f5   : > { %14297 = vmatpush1.bf16.msra.mxu1 %v19158_v50 }
0x20f6   : > { %14456 = vmatpush1.bf16.msra.mxu0 %v19161_v0  ;;  %14298 = vmatprep.subr.bf16.mxu1 %v19166_v57  ;;  %v19220_v0 = vld [vmem:[%s24070_s23 + $0xa8c] ss:$164 sps:$4 sm:$0xff]  }
0x20f7   : > { %14457 = vmatprep.subr.bf16.mxu0 %v19169_v9  ;;  %v19223_v9 = vld [vmem:[%s24070_s23 + $0xaa4] ss:$164 sps:$4 sm:$0xff]  }
0x20f9   : > { %14299 = vmatpush1.bf16.msra.mxu1 %v19164_v23  ;;  %v19218_v23 = vld [vmem:[%s24070_s23 + $0xa88] ss:$164 sps:$4 sm:$0xff]  }
0x20fa   : > { %14458 = vmatpush1.bf16.msra.mxu0 %v19167_v47  ;;  %14374 = vmatprep.subr.bf16.mxu1 %v19172_v43  ;;  %v19221_v47 = vld [vmem:[%s24070_s23 + $0xaa0] ss:$164 sps:$4 sm:$0xff]   ;;  %v19226_v43 = vld [vmem:[%s24070_s23 + $0xbd4] ss:$164 sps:$4 sm:$0xff]  }
0x20fb   : > { %14533 = vmatprep.subr.bf16.mxu0 %v19175_v11 }
0x20fc   : > { %14301 = vmatmul.mubr.bf16.vlgmr.msra.gmra.mrb[168].mxu1 %v22976_v21 }
0x20fd   : > { %14460 = vmatmul.mubr.bf16.vlgmr.msra.gmra.mrb[180].mxu0 %v22976_v21  ;;  %14308 = vmatprep.mubr.bf16.mxu1 %v23006_v55 }
0x20fe   : > { %14375 = vmatpush1.bf16.msra.mxu1 %v19170_v42  ;;  %14465 = vmatprep.mubr.bf16.mxu0 %v23006_v55  ;;  %v19229_v42 = vld [vmem:[%s24070_s23 + $0xbec] ss:$164 sps:$4 sm:$0xff]  }
0x20ff   : > { %14534 = vmatpush1.bf16.msra.mxu0 %v19173_v32  ;;  %14376 = vmatprep.subr.bf16.mxu1 %v19178_v36 }
0x2100   : > { %14535 = vmatprep.subr.bf16.mxu0 %v19181_v40 }
0x2102   : > { %14377 = vmatpush1.bf16.msra.mxu1 %v19176_v33  ;;  %v19224_v33 = vld [vmem:[%s24070_s23 + $0xbd0] ss:$164 sps:$4 sm:$0xff]  }
0x2103   : > { %14536 = vmatpush1.bf16.msra.mxu0 %v19179_v54  ;;  %14378 = vmatprep.subr.bf16.mxu1 %v19184_v10  ;;  %v19227_v10 = vld [vmem:[%s24070_s23 + $0xbe8] ss:$164 sps:$4 sm:$0xff]  }
0x2104   : > { %14309 = vmatmul.mubr.bf16.gmra.mrb[172].mxu1 %v23004_v59  ;;  %14537 = vmatprep.subr.bf16.mxu0 %v19187_v1 }
0x2105   : > { %14466 = vmatmul.mubr.bf16.gmra.mrb[184].mxu0 %v23004_v59  ;;  %14314 = vmatprep.mubr.bf16.mxu1 %v23035_v38 }
0x2106   : > { %14379 = vmatpush1.bf16.msra.mxu1 %v19182_v62  ;;  %14473 = vmatprep.mubr.bf16.mxu0 %v23035_v38 }
0x2107   : > { %14538 = vmatpush1.bf16.msra.mxu0 %v19185_v56  ;;  %14380 = vmatprep.subr.bf16.mxu1 %v19190_v13  ;;  %v19232_v56 = vld [vmem:[%s24070_s23 + $0xd1c] ss:$164 sps:$4 sm:$0xff]  }
0x2108   : > { %14539 = vmatprep.subr.bf16.mxu0 %v19193_v52  ;;  %v19235_v52 = vld [vmem:[%s24070_s23 + $0xd34] ss:$164 sps:$4 sm:$0xff]  }
0x210a   : > { %14381 = vmatpush1.bf16.msra.mxu1 %v19188_v29  ;;  %v19230_v29 = vld [vmem:[%s24070_s23 + $0xd18] ss:$164 sps:$4 sm:$0xff]  }
0x210b   : > { %14540 = vmatpush1.bf16.msra.mxu0 %v19191_v27  ;;  %14382 = vmatprep.subr.bf16.mxu1 %v19196_v3  ;;  %v19233_v27 = vld [vmem:[%s24070_s23 + $0xd30] ss:$164 sps:$4 sm:$0xff]   ;;  %v19238_v3 = vld [vmem:[%s24070_s23 + $0xe64] ss:$164 sps:$4 sm:$0xff]  }
0x210c   : > { %14315 = vmatmul.mubr.bf16.gmra.mrb[176].mxu1 %v23033_v15  ;;  %14541 = vmatprep.subr.bf16.mxu0 %v19199_v41  ;;  %v13984_v25 = vpop.f32.mrb[132].mxu1  ;;  %v19241_v41 = vld [vmem:[%s24070_s23 + $0xe7c] ss:$164 sps:$4 sm:$0xff]  }
0x210d   : > { %14474 = vmatmul.mubr.bf16.gmra.mrb[188].mxu0 %v23033_v15  ;;  %14406 = vmatprep.mubr.bf16.mxu1 %v22978_v7  ;;  %v15011_v8 = vsel %vm15010_vm10, %v23278_v51, %v13984_v25  ;;  %v14143_v20 = vpop.f32.mrb[144].mxu0  ;;  %v13986_v63 = vpop.f32.mrb[133].mxu1  ;;  %v19203_v51 = vld [vmem:[%s24070_s23 + $0x6c8] ss:$164 sps:$4 sm:$0xff]  }
0x210e   : > { %14383 = vmatpush1.bf16.msra.mxu1 %v19194_v60  ;;  %14565 = vmatprep.mubr.bf16.mxu0 %v22978_v7  ;;  %v15013_v14 = vsel %vm15012_vm11, %v15011_v8, %v13986_v63  ;;  %v14144_v5 = vpop.f32.mrb[145].mxu0  ;;  %v13988_v12 = vpop.f32.mrb[134].mxu1  ;;  %v19236_v60 = vld [vmem:[%s24070_s23 + $0xe60] ss:$164 sps:$4 sm:$0xff]   ;;  %v19250_v20 = vld [vmem:[%s24070_s23 + $0x10f4] ss:$164 sps:$4 sm:$0xff]  }
0x210f   : > { %14542 = vmatpush1.bf16.msra.mxu0 %v19197_v48  ;;  %v15015_v44 = vsel %vm15014_vm12, %v15013_v14, %v23274_v49  ;;  %14384 = vmatprep.subr.bf16.mxu1 %v19202_v34  ;;  %v14145_v6 = vpop.f32.mrb[146].mxu0  ;;  %v13989_v26 = vpop.f32.mrb[135].mxu1  ;;  %v19206_v49 = vld [vmem:[%s24070_s23 + $0x7f8] ss:$164 sps:$4 sm:$0xff]   ;;  %v19244_v34 = vld [vmem:[%s24070_s23 + $0xfac] ss:$164 sps:$4 sm:$0xff]  }
0x2110   : > { %14543 = vmatprep.subr.bf16.mxu0 %v19205_v28  ;;  %v14147_v58 = vpop.f32.mrb[147].mxu0  ;;  %v23368_v61 = vsel %vm15016_vm13, %v15015_v44, %v23281_v18  ;;  %v19239_v48 = vld [vmem:[%s24070_s23 + $0xe78] ss:$164 sps:$4 sm:$0xff]   ;;  %v19247_v25 = vld [vmem:[%s24070_s23 + $0xfc4] ss:$164 sps:$4 sm:$0xff]  }
0x2111   : > { %v23371_v35 = vsel %vm6463_vm5, %v14145_v6, %v14147_v58  ;;  %v19242_v28 = vld [vmem:[%s24070_s23 + $0xfa8] ss:$164 sps:$4 sm:$0xff]   ;;  %v19245_v8 = vld [vmem:[%s24070_s23 + $0xfc0] ss:$164 sps:$4 sm:$0xff]   ;;  %v19248_v14 = vld [vmem:[%s24070_s23 + $0x10f0] ss:$164 sps:$4 sm:$0xff]  }
0x2112   : > { %14385 = vmatpush1.bf16.msra.mxu1 %v19200_v31  ;;  %v19253_v63 = vld [vmem:[%s24070_s23 + $0x110c] ss:$164 sps:$4 sm:$0xff]   ;;  %v19256_v31 = vld [vmem:[%s24070_s23 + $0x123c] ss:$164 sps:$4 sm:$0xff]   ;;  %v19259_v12 = vld [vmem:[%s24070_s23 + $0x1254] ss:$164 sps:$4 sm:$0xff]  }
0x2113   : > { %14544 = vmatpush1.bf16.msra.mxu0 %v19203_v51  ;;  %14386 = vmatprep.subr.bf16.mxu1 %v19208_v16  ;;  %v19251_v5 = vld [vmem:[%s24070_s23 + $0x1108] ss:$164 sps:$4 sm:$0xff]   ;;  %v19254_v44 = vld [vmem:[%s24070_s23 + $0x1238] ss:$164 sps:$4 sm:$0xff]   ;;  %v19257_v51 = vld [vmem:[%s24070_s23 + $0x1250] ss:$164 sps:$4 sm:$0xff]  }
0x2114   : > { %14545 = vmatprep.subr.bf16.mxu0 %v19211_v37  ;;  %v13992_v22 = vpop.f32.mrb[136].mxu1  ;;  %v19262_v6 = vld [vmem:[%s24070_s23 + $0x1384] ss:$164 sps:$4 sm:$0xff]   ;;  %v19265_v26 = vld [vmem:[%s24070_s23 + $0x139c] ss:$164 sps:$4 sm:$0xff]  }
0x2115   : > { %v14151_v53 = vpop.f32.mrb[148].mxu0  ;;  %v13993_v17 = vpop.f32.mrb[137].mxu1  ;;  %v19260_v16 = vld [vmem:[%s24070_s23 + $0x1380] ss:$164 sps:$4 sm:$0xff]   ;;  %v19263_v58 = vld [vmem:[%s24070_s23 + $0x1398] ss:$164 sps:$4 sm:$0xff]  }
0x2116   : > { %14387 = vmatpush1.bf16.msra.mxu1 %v19206_v49  ;;  %v14152_v18 = vpop.f32.mrb[149].mxu0  ;;  %v13994_v30 = vpop.f32.mrb[138].mxu1  ;;  %v19268_v37 = vld [vmem:[%s24070_s23 + $0x5c] ss:$164 sps:$4 sm:$0xff]   ;;  %v19271_v49 = vld [vmem:[%s24070_s23 + $0x74] ss:$164 sps:$4 sm:$0xff]  }
0x2117   : > { %14546 = vmatpush1.bf16.msra.mxu0 %v19209_v4  ;;  %14388 = vmatprep.subr.bf16.mxu1 %v19214_v45  ;;  %v14153_v46 = vpop.f32.mrb[150].mxu0  ;;  %v13995_v50 = vpop.f32.mrb[139].mxu1  ;;  %v19266_v4 = vld [vmem:[%s24070_s23 + $0x58] ss:$164 sps:$4 sm:$0xff]   ;;  %v19269_v45 = vld [vmem:[%s24070_s23 + $0x70] ss:$164 sps:$4 sm:$0xff]  }
0x2118   : > { %14547 = vmatprep.subr.bf16.mxu0 %v19217_v19  ;;  %v14154_v57 = vpop.f32.mrb[151].mxu0  ;;  %v19274_v22 = vld [vmem:[%s24070_s23 + $0x1a4] ss:$164 sps:$4 sm:$0xff]   ;;  %v19277_v19 = vld [vmem:[%s24070_s23 + $0x1bc] ss:$164 sps:$4 sm:$0xff]  }
0x2119   : > { %v19272_v53 = vld [vmem:[%s24070_s23 + $0x1a0] ss:$164 sps:$4 sm:$0xff]   ;;  %v19275_v17 = vld [vmem:[%s24070_s23 + $0x1b8] ss:$164 sps:$4 sm:$0xff]   ;;  %v19280_v18 = vld [vmem:[%s24070_s23 + $0x2ec] ss:$164 sps:$4 sm:$0xff]  }
0x211a   : > { %14389 = vmatpush1.bf16.msra.mxu1 %v19212_v2  ;;  %v19283_v2 = vld [vmem:[%s24070_s23 + $0x304] ss:$164 sps:$4 sm:$0xff]   ;;  %v19286_v46 = vld [vmem:[%s24070_s23 + $0x434] ss:$164 sps:$4 sm:$0xff]   ;;  %v19289_v50 = vld [vmem:[%s24070_s23 + $0x44c] ss:$164 sps:$4 sm:$0xff]  }
0x211b   : > { %14548 = vmatpush1.bf16.msra.mxu0 %v19215_v39  ;;  %14390 = vmatprep.subr.bf16.mxu1 %v19220_v0  ;;  %v19278_v30 = vld [vmem:[%s24070_s23 + $0x2e8] ss:$164 sps:$4 sm:$0xff]   ;;  %v19281_v39 = vld [vmem:[%s24070_s23 + $0x300] ss:$164 sps:$4 sm:$0xff]   ;;  %v19284_v0 = vld [vmem:[%s24070_s23 + $0x430] ss:$164 sps:$4 sm:$0xff]  }
0x211c   : > { %14549 = vmatprep.subr.bf16.mxu0 %v19223_v9  ;;  %v13998_v11 = vpop.f32.mrb[140].mxu1  ;;  %v19287_v57 = vld [vmem:[%s24070_s23 + $0x448] ss:$164 sps:$4 sm:$0xff]   ;;  %v19292_v9 = vld [vmem:[%s24070_s23 + $0x57c] ss:$164 sps:$4 sm:$0xff]  }
0x211d   : > { %v14157_v32 = vpop.f32.mrb[152].mxu0  ;;  %v13999_v36 = vpop.f32.mrb[141].mxu1  ;;  %v19298_v11 = vld [vmem:[%s24070_s23 + $0x6c4] ss:$164 sps:$4 sm:$0xff]  }
0x211e   : > { %14391 = vmatpush1.bf16.msra.mxu1 %v19218_v23  ;;  %v14158_v40 = vpop.f32.mrb[153].mxu0  ;;  %v14000_v54 = vpop.f32.mrb[142].mxu1  ;;  %v19295_v23 = vld [vmem:[%s24070_s23 + $0x594] ss:$164 sps:$4 sm:$0xff]   ;;  %v19301_v32 = vld [vmem:[%s24070_s23 + $0x6dc] ss:$164 sps:$4 sm:$0xff]  }
0x211f   : > { %14550 = vmatpush1.bf16.msra.mxu0 %v19221_v47  ;;  %14392 = vmatprep.subr.bf16.mxu1 %v19226_v43  ;;  %v14159_v1 = vpop.f32.mrb[154].mxu0  ;;  %v14001_v62 = vpop.f32.mrb[143].mxu1  ;;  %v19290_v47 = vld [vmem:[%s24070_s23 + $0x578] ss:$164 sps:$4 sm:$0xff]   ;;  %v19293_v43 = vld [vmem:[%s24070_s23 + $0x590] ss:$164 sps:$4 sm:$0xff]  }
0x2120   : > { %14551 = vmatprep.subr.bf16.mxu0 %v19229_v42  ;;  %v14160_v13 = vpop.f32.mrb[155].mxu0  ;;  %v19296_v1 = vld [vmem:[%s24070_s23 + $0x6c0] ss:$164 sps:$4 sm:$0xff]  }
0x2122   : > { %14393 = vmatpush1.bf16.msra.mxu1 %v19224_v33 }
0x2123   : > { %14552 = vmatpush1.bf16.msra.mxu0 %v19227_v10  ;;  %14394 = vmatprep.subr.bf16.mxu1 %v19232_v56  ;;  %v19299_v56 = vld [vmem:[%s24070_s23 + $0x6d8] ss:$164 sps:$4 sm:$0xff]  }
0x2124   : > { %14553 = vmatprep.subr.bf16.mxu0 %v19235_v52  ;;  %v19304_v52 = vld [vmem:[%s24070_s23 + $0x80c] ss:$164 sps:$4 sm:$0xff]  }
0x2126   : > { %14395 = vmatpush1.bf16.msra.mxu1 %v19230_v29 }
0x2127   : > { %14554 = vmatpush1.bf16.msra.mxu0 %v19233_v27  ;;  %14396 = vmatprep.subr.bf16.mxu1 %v19238_v3  ;;  %v19307_v27 = vld [vmem:[%s24070_s23 + $0x824] ss:$164 sps:$4 sm:$0xff]  }
0x2128   : > { %14555 = vmatprep.subr.bf16.mxu0 %v19241_v41  ;;  %v19302_v3 = vld [vmem:[%s24070_s23 + $0x808] ss:$164 sps:$4 sm:$0xff]   ;;  %v19305_v41 = vld [vmem:[%s24070_s23 + $0x820] ss:$164 sps:$4 sm:$0xff]  }
0x212a   : > { %14397 = vmatpush1.bf16.msra.mxu1 %v19236_v60  ;;  %v19310_v60 = vld [vmem:[%s24070_s23 + $0x954] ss:$164 sps:$4 sm:$0xff]  }
0x212b   : > { %14556 = vmatpush1.bf16.msra.mxu0 %v19239_v48  ;;  %14398 = vmatprep.subr.bf16.mxu1 %v19244_v34  ;;  %v19313_v34 = vld [vmem:[%s24070_s23 + $0x96c] ss:$164 sps:$4 sm:$0xff]  }
0x212c   : > { %14557 = vmatprep.subr.bf16.mxu0 %v19247_v25 }
0x212e   : > { %14399 = vmatpush1.bf16.msra.mxu1 %v19242_v28 }
0x212f   : > { %14558 = vmatpush1.bf16.msra.mxu0 %v19245_v8  ;;  %14400 = vmatprep.subr.bf16.mxu1 %v19250_v20  ;;  %v19308_v20 = vld [vmem:[%s24070_s23 + $0x950] ss:$164 sps:$4 sm:$0xff]  }
0x2130   : > { %14559 = vmatprep.subr.bf16.mxu0 %v19253_v63 }
0x2132   : > { %14401 = vmatpush1.bf16.msra.mxu1 %v19248_v14  ;;  %v19311_v14 = vld [vmem:[%s24070_s23 + $0x968] ss:$164 sps:$4 sm:$0xff]  }
0x2133   : > { %14560 = vmatpush1.bf16.msra.mxu0 %v19251_v5  ;;  %14402 = vmatprep.subr.bf16.mxu1 %v19256_v31 }
0x2134   : > { %14561 = vmatprep.subr.bf16.mxu0 %v19259_v12  ;;  %v19316_v12 = vld [vmem:[%s24070_s23 + $0xa9c] ss:$164 sps:$4 sm:$0xff]  }
0x2136   : > { %14403 = vmatpush1.bf16.msra.mxu1 %v19254_v44 }
0x2137   : > { %14562 = vmatpush1.bf16.msra.mxu0 %v19257_v51  ;;  %14404 = vmatprep.subr.bf16.mxu1 %v19262_v6  ;;  %v19319_v51 = vld [vmem:[%s24070_s23 + $0xab4] ss:$164 sps:$4 sm:$0xff]  }
0x2138   : > { %14563 = vmatprep.subr.bf16.mxu0 %v19265_v26  ;;  %v19314_v6 = vld [vmem:[%s24070_s23 + $0xa98] ss:$164 sps:$4 sm:$0xff]   ;;  %v19317_v26 = vld [vmem:[%s24070_s23 + $0xab0] ss:$164 sps:$4 sm:$0xff]  }
0x213a   : > { %14405 = vmatpush1.bf16.msra.mxu1 %v19260_v16  ;;  %v19322_v16 = vld [vmem:[%s24070_s23 + $0xbe4] ss:$164 sps:$4 sm:$0xff]  }
0x213b   : > { %14564 = vmatpush1.bf16.msra.mxu0 %v19263_v58  ;;  %14480 = vmatprep.subr.bf16.mxu1 %v19268_v37  ;;  %v19325_v37 = vld [vmem:[%s24070_s23 + $0xbfc] ss:$164 sps:$4 sm:$0xff]  }
0x213c   : > { %14639 = vmatprep.subr.bf16.mxu0 %v19271_v49 }
0x213d   : > { %14407 = vmatmul.mubr.bf16.vlgmr.msra.gmra.mrb[180].mxu1 %v22976_v21 }
0x213e   : > { %14566 = vmatmul.mubr.bf16.vlgmr.msra.gmra.mrb[192].mxu0 %v22976_v21  ;;  %14412 = vmatprep.mubr.bf16.mxu1 %v23006_v55 }
0x213f   : > { %14481 = vmatpush1.bf16.msra.mxu1 %v19266_v4  ;;  %14571 = vmatprep.mubr.bf16.mxu0 %v23006_v55 }
0x2140   : > { %14640 = vmatpush1.bf16.msra.mxu0 %v19269_v45  ;;  %14482 = vmatprep.subr.bf16.mxu1 %v19274_v22  ;;  %v19320_v22 = vld [vmem:[%s24070_s23 + $0xbe0] ss:$164 sps:$4 sm:$0xff]  }
0x2141   : > { %14641 = vmatprep.subr.bf16.mxu0 %v19277_v19 }
0x2143   : > { %14483 = vmatpush1.bf16.msra.mxu1 %v19272_v53  ;;  %v19323_v53 = vld [vmem:[%s24070_s23 + $0xbf8] ss:$164 sps:$4 sm:$0xff]  }
0x2144   : > { %14642 = vmatpush1.bf16.msra.mxu0 %v19275_v17  ;;  %14484 = vmatprep.subr.bf16.mxu1 %v19280_v18 }
0x2145   : > { %14413 = vmatmul.mubr.bf16.gmra.mrb[184].mxu1 %v23004_v59  ;;  %14643 = vmatprep.subr.bf16.mxu0 %v19283_v2  ;;  %v19328_v2 = vld [vmem:[%s24070_s23 + $0xd2c] ss:$164 sps:$4 sm:$0xff]  }
0x2146   : > { %14572 = vmatmul.mubr.bf16.gmra.mrb[196].mxu0 %v23004_v59  ;;  %14420 = vmatprep.mubr.bf16.mxu1 %v23035_v38 }
0x2147   : > { %14485 = vmatpush1.bf16.msra.mxu1 %v19278_v30  ;;  %14579 = vmatprep.mubr.bf16.mxu0 %v23035_v38 }
0x2148   : > { %14644 = vmatpush1.bf16.msra.mxu0 %v19281_v39  ;;  %14486 = vmatprep.subr.bf16.mxu1 %v19286_v46  ;;  %v19331_v39 = vld [vmem:[%s24070_s23 + $0xd44] ss:$164 sps:$4 sm:$0xff]  }
0x2149   : > { %14645 = vmatprep.subr.bf16.mxu0 %v19289_v50  ;;  %v19326_v46 = vld [vmem:[%s24070_s23 + $0xd28] ss:$164 sps:$4 sm:$0xff]   ;;  %v19329_v50 = vld [vmem:[%s24070_s23 + $0xd40] ss:$164 sps:$4 sm:$0xff]  }
0x214b   : > { %14487 = vmatpush1.bf16.msra.mxu1 %v19284_v0  ;;  %v19334_v0 = vld [vmem:[%s24070_s23 + $0xe74] ss:$164 sps:$4 sm:$0xff]  }
0x214c   : > { %14646 = vmatpush1.bf16.msra.mxu0 %v19287_v57  ;;  %14488 = vmatprep.subr.bf16.mxu1 %v19292_v9  ;;  %v19337_v57 = vld [vmem:[%s24070_s23 + $0xe8c] ss:$164 sps:$4 sm:$0xff]  }
0x214d   : > { %14421 = vmatmul.mubr.bf16.gmra.mrb[188].mxu1 %v23033_v15  ;;  %14647 = vmatprep.subr.bf16.mxu0 %v19295_v23  ;;  %v14090_v42 = vpop.f32.mrb[144].mxu1  ;;  %v19332_v9 = vld [vmem:[%s24070_s23 + $0xe70] ss:$164 sps:$4 sm:$0xff]   ;;  %v19335_v23 = vld [vmem:[%s24070_s23 + $0xe88] ss:$164 sps:$4 sm:$0xff]  }
0x214e   : > { %14580 = vmatmul.mubr.bf16.gmra.mrb[200].mxu0 %v23033_v15  ;;  %14512 = vmatprep.mubr.bf16.mxu1 %v22978_v7  ;;  %v15019_v36 = vsel %vm15018_vm14, %v23368_v61, %v14090_v42  ;;  %v14249_v40 = vpop.f32.mrb[156].mxu0  ;;  %v14092_v33 = vpop.f32.mrb[145].mxu1  ;;  %v19341_v42 = vld [vmem:[%s24070_s23 + $0xfd0] ss:$164 sps:$4 sm:$0xff]  }
0x214f   : > { %14489 = vmatpush1.bf16.msra.mxu1 %v19290_v47  ;;  %14671 = vmatprep.mubr.bf16.mxu0 %v22978_v7  ;;  %v23448_v54 = vsel %vm15020_vm15, %v15019_v36, %v14092_v33  ;;  %v14250_v10 = vpop.f32.mrb[157].mxu0  ;;  %v14094_v62 = vpop.f32.mrb[146].mxu1  ;;  %v19340_v47 = vld [vmem:[%s24070_s23 + $0xfbc] ss:$164 sps:$4 sm:$0xff]  }
0x2150   : > { %14648 = vmatpush1.bf16.msra.mxu0 %v19293_v43  ;;  %14490 = vmatprep.subr.bf16.mxu1 %v19298_v11  ;;  %v23452_v61 = vpop.f32.mrb[158].mxu0  ;;  %v14095_v13 = vpop.f32.mrb[147].mxu1  ;;  %v19343_v43 = vld [vmem:[%s24070_s23 + $0xfd4] ss:$164 sps:$4 sm:$0xff]   ;;  %v19349_v36 = vld [vmem:[%s24070_s23 + $0x111c] ss:$164 sps:$4 sm:$0xff]  }
0x2151   : > { %14649 = vmatprep.subr.bf16.mxu0 %v19301_v32  ;;  %v23455_v29 = vpop.f32.mrb[159].mxu0  ;;  %v19338_v11 = vld [vmem:[%s24070_s23 + $0xfb8] ss:$164 sps:$4 sm:$0xff]   ;;  %v19346_v32 = vld [vmem:[%s24070_s23 + $0x1104] ss:$164 sps:$4 sm:$0xff]  }
0x2152   : > { %v19344_v40 = vld [vmem:[%s24070_s23 + $0x1100] ss:$164 sps:$4 sm:$0xff]   ;;  %v19347_v33 = vld [vmem:[%s24070_s23 + $0x1118] ss:$164 sps:$4 sm:$0xff]   ;;  %v19352_v10 = vld [vmem:[%s24070_s23 + $0x124c] ss:$164 sps:$4 sm:$0xff]  }
0x2153   : > { %14491 = vmatpush1.bf16.msra.mxu1 %v19296_v1  ;;  %v19355_v1 = vld [vmem:[%s24070_s23 + $0x1264] ss:$164 sps:$4 sm:$0xff]   ;;  %v19358_v13 = vld [vmem:[%s24070_s23 + $0x1394] ss:$164 sps:$4 sm:$0xff]  }
0x2154   : > { %14650 = vmatpush1.bf16.msra.mxu0 %v19299_v56  ;;  %14492 = vmatprep.subr.bf16.mxu1 %v19304_v52  ;;  %v19350_v62 = vld [vmem:[%s24070_s23 + $0x1248] ss:$164 sps:$4 sm:$0xff]   ;;  %v19353_v56 = vld [vmem:[%s24070_s23 + $0x1260] ss:$164 sps:$4 sm:$0xff]  }
0x2155   : > { %14651 = vmatprep.subr.bf16.mxu0 %v19307_v27  ;;  %v14098_v48 = vpop.f32.mrb[148].mxu1  ;;  %v19361_v52 = vld [vmem:[%s24070_s23 + $0x13ac] ss:$164 sps:$4 sm:$0xff]  }
0x2156   : > { %v14257_v25 = vpop.f32.mrb[160].mxu0  ;;  %v14099_v28 = vpop.f32.mrb[149].mxu1  ;;  %v19356_v27 = vld [vmem:[%s24070_s23 + $0x1390] ss:$164 sps:$4 sm:$0xff]   ;;  %v19362_v48 = vld [vmem:[%s24070_s23 + $0x68] ss:$164 sps:$4 sm:$0xff]  }
0x2157   : > { %14493 = vmatpush1.bf16.msra.mxu1 %v19302_v3  ;;  %v14258_v8 = vpop.f32.mrb[161].mxu0  ;;  %v14100_v63 = vpop.f32.mrb[150].mxu1  ;;  %v19359_v3 = vld [vmem:[%s24070_s23 + $0x13a8] ss:$164 sps:$4 sm:$0xff]   ;;  %v19370_v25 = vld [vmem:[%s24070_s23 + $0x1b4] ss:$164 sps:$4 sm:$0xff]  }
0x2158   : > { %14652 = vmatpush1.bf16.msra.mxu0 %v19305_v41  ;;  %14494 = vmatprep.subr.bf16.mxu1 %v19310_v60  ;;  %v14259_v5 = vpop.f32.mrb[162].mxu0  ;;  %v14101_v31 = vpop.f32.mrb[151].mxu1  ;;  %v19364_v41 = vld [vmem:[%s24070_s23 + $0x6c] ss:$164 sps:$4 sm:$0xff]   ;;  %v19367_v60 = vld [vmem:[%s24070_s23 + $0x84] ss:$164 sps:$4 sm:$0xff]  }
0x2159   : > { %14653 = vmatprep.subr.bf16.mxu0 %v19313_v34  ;;  %v14260_v44 = vpop.f32.mrb[163].mxu0  ;;  %v19365_v34 = vld [vmem:[%s24070_s23 + $0x80] ss:$164 sps:$4 sm:$0xff]   ;;  %v19373_v28 = vld [vmem:[%s24070_s23 + $0x1cc] ss:$164 sps:$4 sm:$0xff]  }
0x215a   : > { %v19368_v8 = vld [vmem:[%s24070_s23 + $0x1b0] ss:$164 sps:$4 sm:$0xff]   ;;  %v19376_v63 = vld [vmem:[%s24070_s23 + $0x2fc] ss:$164 sps:$4 sm:$0xff]  }
0x215b   : > { %14495 = vmatpush1.bf16.msra.mxu1 %v19308_v20  ;;  %v19371_v20 = vld [vmem:[%s24070_s23 + $0x1c8] ss:$164 sps:$4 sm:$0xff]   ;;  %v19374_v5 = vld [vmem:[%s24070_s23 + $0x2f8] ss:$164 sps:$4 sm:$0xff]   ;;  %v19377_v31 = vld [vmem:[%s24070_s23 + $0x310] ss:$164 sps:$4 sm:$0xff]  }
0x215c   : > { %14654 = vmatpush1.bf16.msra.mxu0 %v19311_v14  ;;  %14496 = vmatprep.subr.bf16.mxu1 %v19316_v12  ;;  %v19379_v14 = vld [vmem:[%s24070_s23 + $0x314] ss:$164 sps:$4 sm:$0xff]   ;;  %v19382_v12 = vld [vmem:[%s24070_s23 + $0x444] ss:$164 sps:$4 sm:$0xff]   ;;  %v19385_v44 = vld [vmem:[%s24070_s23 + $0x45c] ss:$164 sps:$4 sm:$0xff]  }
0x215d   : > { %14655 = vmatprep.subr.bf16.mxu0 %v19319_v51  ;;  %v14104_v58 = vpop.f32.mrb[152].mxu1  ;;  %v19380_v51 = vld [vmem:[%s24070_s23 + $0x440] ss:$164 sps:$4 sm:$0xff]  }
0x215e   : > { %v14263_v49 = vpop.f32.mrb[164].mxu0  ;;  %v14105_v4 = vpop.f32.mrb[153].mxu1  ;;  %v19386_v58 = vld [vmem:[%s24070_s23 + $0x588] ss:$164 sps:$4 sm:$0xff]  }
0x215f   : > { %14497 = vmatpush1.bf16.msra.mxu1 %v19314_v6  ;;  %v14264_v45 = vpop.f32.mrb[165].mxu0  ;;  %v14106_v19 = vpop.f32.mrb[154].mxu1  ;;  %v19383_v6 = vld [vmem:[%s24070_s23 + $0x458] ss:$164 sps:$4 sm:$0xff]  }
0x2160   : > { %14656 = vmatpush1.bf16.msra.mxu0 %v19317_v26  ;;  %14498 = vmatprep.subr.bf16.mxu1 %v19322_v16  ;;  %v14265_v17 = vpop.f32.mrb[166].mxu0  ;;  %v14107_v18 = vpop.f32.mrb[155].mxu1  ;;  %v19388_v26 = vld [vmem:[%s24070_s23 + $0x58c] ss:$164 sps:$4 sm:$0xff]   ;;  %v19391_v16 = vld [vmem:[%s24070_s23 + $0x5a4] ss:$164 sps:$4 sm:$0xff]  }
0x2161   : > { %14657 = vmatprep.subr.bf16.mxu0 %v19325_v37  ;;  %v14266_v30 = vpop.f32.mrb[167].mxu0  ;;  %v19389_v37 = vld [vmem:[%s24070_s23 + $0x5a0] ss:$164 sps:$4 sm:$0xff]   ;;  %v19394_v49 = vld [vmem:[%s24070_s23 + $0x6d4] ss:$164 sps:$4 sm:$0xff]  }
0x2162   : > { %v19397_v45 = vld [vmem:[%s24070_s23 + $0x6ec] ss:$164 sps:$4 sm:$0xff]  }
0x2163   : > { %14499 = vmatpush1.bf16.msra.mxu1 %v19320_v22  ;;  %v19392_v17 = vld [vmem:[%s24070_s23 + $0x6d0] ss:$164 sps:$4 sm:$0xff]  }
0x2164   : > { %14658 = vmatpush1.bf16.msra.mxu0 %v19323_v53  ;;  %14500 = vmatprep.subr.bf16.mxu1 %v19328_v2  ;;  %v19395_v2 = vld [vmem:[%s24070_s23 + $0x6e8] ss:$164 sps:$4 sm:$0xff]  }
0x2165   : > { %14659 = vmatprep.subr.bf16.mxu0 %v19331_v39 }
0x2167   : > { %14501 = vmatpush1.bf16.msra.mxu1 %v19326_v46 }
0x2168   : > { %14660 = vmatpush1.bf16.msra.mxu0 %v19329_v50  ;;  %14502 = vmatprep.subr.bf16.mxu1 %v19334_v0  ;;  %v19400_v50 = vld [vmem:[%s24070_s23 + $0x81c] ss:$164 sps:$4 sm:$0xff]  }
0x2169   : > { %14661 = vmatprep.subr.bf16.mxu0 %v19337_v57 }
0x216b   : > { %14503 = vmatpush1.bf16.msra.mxu1 %v19332_v9  ;;  %v19403_v9 = vld [vmem:[%s24070_s23 + $0x834] ss:$164 sps:$4 sm:$0xff]  }
0x216c   : > { %14662 = vmatpush1.bf16.msra.mxu0 %v19335_v23  ;;  %14504 = vmatprep.subr.bf16.mxu1 %v19340_v47  ;;  %v19398_v47 = vld [vmem:[%s24070_s23 + $0x818] ss:$164 sps:$4 sm:$0xff]  }
0x216d   : > { %14663 = vmatprep.subr.bf16.mxu0 %v19343_v43 }
0x216f   : > { %14505 = vmatpush1.bf16.msra.mxu1 %v19338_v11  ;;  %v19406_v11 = vld [vmem:[%s24070_s23 + $0x964] ss:$164 sps:$4 sm:$0xff]  }
0x2170   : > { %14664 = vmatpush1.bf16.msra.mxu0 %v19341_v42  ;;  %14506 = vmatprep.subr.bf16.mxu1 %v19346_v32  ;;  %v19409_v32 = vld [vmem:[%s24070_s23 + $0x97c] ss:$164 sps:$4 sm:$0xff]  }
0x2171   : > { %14665 = vmatprep.subr.bf16.mxu0 %v19349_v36 }
0x2173   : > { %14507 = vmatpush1.bf16.msra.mxu1 %v19344_v40 }
0x2174   : > { %14666 = vmatpush1.bf16.msra.mxu0 %v19347_v33  ;;  %14508 = vmatprep.subr.bf16.mxu1 %v19352_v10  ;;  %v19404_v33 = vld [vmem:[%s24070_s23 + $0x960] ss:$164 sps:$4 sm:$0xff]  }
0x2175   : > { %14667 = vmatprep.subr.bf16.mxu0 %v19355_v1  ;;  %v19407_v1 = vld [vmem:[%s24070_s23 + $0x978] ss:$164 sps:$4 sm:$0xff]  }
0x2177   : > { %14509 = vmatpush1.bf16.msra.mxu1 %v19350_v62 }
0x2178   : > { %14668 = vmatpush1.bf16.msra.mxu0 %v19353_v56  ;;  %14510 = vmatprep.subr.bf16.mxu1 %v19358_v13  ;;  %v19412_v13 = vld [vmem:[%s24070_s23 + $0xaac] ss:$164 sps:$4 sm:$0xff]  }
0x2179   : > { %14669 = vmatprep.subr.bf16.mxu0 %v19361_v52 }
0x217b   : > { %14511 = vmatpush1.bf16.msra.mxu1 %v19356_v27  ;;  %v19415_v27 = vld [vmem:[%s24070_s23 + $0xac4] ss:$164 sps:$4 sm:$0xff]  }
0x217c   : > { %14670 = vmatpush1.bf16.msra.mxu0 %v19359_v3  ;;  %14586 = vmatprep.subr.bf16.mxu1 %v19364_v41  ;;  %v19410_v3 = vld [vmem:[%s24070_s23 + $0xaa8] ss:$164 sps:$4 sm:$0xff]   ;;  %v19413_v41 = vld [vmem:[%s24070_s23 + $0xac0] ss:$164 sps:$4 sm:$0xff]  }
0x217d   : > { %14745 = vmatprep.subr.bf16.mxu0 %v19367_v60  ;;  %v19418_v60 = vld [vmem:[%s24070_s23 + $0xbf4] ss:$164 sps:$4 sm:$0xff]  }
0x217e   : > { %14513 = vmatmul.mubr.bf16.vlgmr.msra.gmra.mrb[192].mxu1 %v22976_v21 }
0x217f   : > { %14672 = vmatmul.mubr.bf16.vlgmr.msra.gmra.mrb[204].mxu0 %v22976_v21  ;;  %14518 = vmatprep.mubr.bf16.mxu1 %v23006_v55 }
0x2180   : > { %14587 = vmatpush1.bf16.msra.mxu1 %v19362_v48  ;;  %14677 = vmatprep.mubr.bf16.mxu0 %v23006_v55 }
0x2181   : > { %14746 = vmatpush1.bf16.msra.mxu0 %v19365_v34  ;;  %14588 = vmatprep.subr.bf16.mxu1 %v19370_v25  ;;  %v19421_v34 = vld [vmem:[%s24070_s23 + $0xc0c] ss:$164 sps:$4 sm:$0xff]  }
0x2182   : > { %14747 = vmatprep.subr.bf16.mxu0 %v19373_v28 }
0x2184   : > { %14589 = vmatpush1.bf16.msra.mxu1 %v19368_v8 }
0x2185   : > { %14748 = vmatpush1.bf16.msra.mxu0 %v19371_v20  ;;  %14590 = vmatprep.subr.bf16.mxu1 %v19376_v63  ;;  %v19416_v20 = vld [vmem:[%s24070_s23 + $0xbf0] ss:$164 sps:$4 sm:$0xff]  }
0x2186   : > { %14519 = vmatmul.mubr.bf16.gmra.mrb[196].mxu1 %v23004_v59  ;;  %14749 = vmatprep.subr.bf16.mxu0 %v19379_v14  ;;  %v19419_v14 = vld [vmem:[%s24070_s23 + $0xc08] ss:$164 sps:$4 sm:$0xff]  }
0x2187   : > { %14678 = vmatmul.mubr.bf16.gmra.mrb[208].mxu0 %v23004_v59  ;;  %14526 = vmatprep.mubr.bf16.mxu1 %v23035_v38 }
0x2188   : > { %14591 = vmatpush1.bf16.msra.mxu1 %v19374_v5  ;;  %14685 = vmatprep.mubr.bf16.mxu0 %v23035_v38 }
0x2189   : > { %14750 = vmatpush1.bf16.msra.mxu0 %v19377_v31  ;;  %14592 = vmatprep.subr.bf16.mxu1 %v19382_v12  ;;  %v19424_v12 = vld [vmem:[%s24070_s23 + $0xd3c] ss:$164 sps:$4 sm:$0xff]  }
0x218a   : > { %14751 = vmatprep.subr.bf16.mxu0 %v19385_v44 }
0x218c   : > { %14593 = vmatpush1.bf16.msra.mxu1 %v19380_v51  ;;  %v19427_v51 = vld [vmem:[%s24070_s23 + $0xd54] ss:$164 sps:$4 sm:$0xff]  }
0x218d   : > { %14752 = vmatpush1.bf16.msra.mxu0 %v19383_v6  ;;  %14594 = vmatprep.subr.bf16.mxu1 %v19388_v26  ;;  %v19422_v6 = vld [vmem:[%s24070_s23 + $0xd38] ss:$164 sps:$4 sm:$0xff]   ;;  %v19425_v26 = vld [vmem:[%s24070_s23 + $0xd50] ss:$164 sps:$4 sm:$0xff]  }
0x218e   : > { %14527 = vmatmul.mubr.bf16.gmra.mrb[200].mxu1 %v23033_v15  ;;  %14753 = vmatprep.subr.bf16.mxu0 %v19391_v16  ;;  %v14196_v4 = vpop.f32.mrb[156].mxu1  ;;  %v19430_v16 = vld [vmem:[%s24070_s23 + $0xe84] ss:$164 sps:$4 sm:$0xff]  }
0x218f   : > { %14686 = vmatmul.mubr.bf16.gmra.mrb[212].mxu0 %v23033_v15  ;;  %14618 = vmatprep.mubr.bf16.mxu1 %v22978_v7  ;;  %v14355_v22 = vpop.f32.mrb[168].mxu0  ;;  %v14197_v19 = vpop.f32.mrb[157].mxu1  ;;  %v19436_v4 = vld [vmem:[%s24070_s23 + $0xfcc] ss:$164 sps:$4 sm:$0xff]  }
0x2190   : > { %14595 = vmatpush1.bf16.msra.mxu1 %v19386_v58  ;;  %14777 = vmatprep.mubr.bf16.mxu0 %v22978_v7  ;;  %v14356_v53 = vpop.f32.mrb[169].mxu0  ;;  %v14198_v18 = vpop.f32.mrb[158].mxu1  ;;  %v19433_v58 = vld [vmem:[%s24070_s23 + $0xe9c] ss:$164 sps:$4 sm:$0xff]   ;;  %v19434_v22 = vld [vmem:[%s24070_s23 + $0xfc8] ss:$164 sps:$4 sm:$0xff]  }
0x2191   : > { %14754 = vmatpush1.bf16.msra.mxu0 %v19389_v37  ;;  %14596 = vmatprep.subr.bf16.mxu1 %v19394_v49  ;;  %v15023_v30 = vsel %vm15010_vm10, %v23371_v35, %v14198_v18  ;;  %v14357_v39 = vpop.f32.mrb[170].mxu0  ;;  %v14200_v46 = vpop.f32.mrb[159].mxu1  ;;  %v19401_v35 = vld [vmem:[%s24070_s23 + $0x830] ss:$164 sps:$4 sm:$0xff]   ;;  %v19428_v37 = vld [vmem:[%s24070_s23 + $0xe80] ss:$164 sps:$4 sm:$0xff]  }
0x2192   : > { %14755 = vmatprep.subr.bf16.mxu0 %v19397_v45  ;;  %v15024_v0 = vsel %vm15012_vm11, %v15023_v30, %v14200_v46  ;;  %v14358_v57 = vpop.f32.mrb[171].mxu0  ;;  %v19431_v49 = vld [vmem:[%s24070_s23 + $0xe98] ss:$164 sps:$4 sm:$0xff]   ;;  %v19439_v45 = vld [vmem:[%s24070_s23 + $0xfe4] ss:$164 sps:$4 sm:$0xff]  }
0x2193   : > { %v15025_v23 = vsel %vm15014_vm12, %v15024_v0, %v23452_v61  ;;  %v19437_v19 = vld [vmem:[%s24070_s23 + $0xfe0] ss:$164 sps:$4 sm:$0xff]   ;;  %v19442_v53 = vld [vmem:[%s24070_s23 + $0x1114] ss:$164 sps:$4 sm:$0xff]  }
0x2194   : > { %14597 = vmatpush1.bf16.msra.mxu1 %v19392_v17  ;;  %v23542_v43 = vsel %vm15016_vm13, %v15025_v23, %v23455_v29  ;;  %v19445_v17 = vld [vmem:[%s24070_s23 + $0x112c] ss:$164 sps:$4 sm:$0xff]   ;;  %v19448_v30 = vld [vmem:[%s24070_s23 + $0x125c] ss:$164 sps:$4 sm:$0xff]   ;;  %v19451_v39 = vld [vmem:[%s24070_s23 + $0x1274] ss:$164 sps:$4 sm:$0xff]  }
0x2195   : > { %14756 = vmatpush1.bf16.msra.mxu0 %v19395_v2  ;;  %14598 = vmatprep.subr.bf16.mxu1 %v19400_v50  ;;  %v19440_v18 = vld [vmem:[%s24070_s23 + $0x1110] ss:$164 sps:$4 sm:$0xff]   ;;  %v19443_v2 = vld [vmem:[%s24070_s23 + $0x1128] ss:$164 sps:$4 sm:$0xff]   ;;  %v19446_v46 = vld [vmem:[%s24070_s23 + $0x1258] ss:$164 sps:$4 sm:$0xff]  }
0x2196   : > { %14757 = vmatprep.subr.bf16.mxu0 %v19403_v9  ;;  %v14204_v42 = vpop.f32.mrb[160].mxu1  ;;  %v19449_v50 = vld [vmem:[%s24070_s23 + $0x1270] ss:$164 sps:$4 sm:$0xff]   ;;  %v19454_v0 = vld [vmem:[%s24070_s23 + $0x13a4] ss:$164 sps:$4 sm:$0xff]  }
0x2197   : > { %v14361_v36 = vpop.f32.mrb[172].mxu0  ;;  %v14205_v40 = vpop.f32.mrb[161].mxu1  ;;  %v19457_v57 = vld [vmem:[%s24070_s23 + $0x13bc] ss:$164 sps:$4 sm:$0xff]   ;;  %v19461_v42 = vld [vmem:[%s24070_s23 + $0x90] ss:$164 sps:$4 sm:$0xff]  }
0x2198   : > { %14599 = vmatpush1.bf16.msra.mxu1 %v19398_v47  ;;  %v14363_v61 = vpop.f32.mrb[173].mxu0  ;;  %v14206_v10 = vpop.f32.mrb[162].mxu1  ;;  %v19452_v9 = vld [vmem:[%s24070_s23 + $0x13a0] ss:$164 sps:$4 sm:$0xff]   ;;  %v19455_v23 = vld [vmem:[%s24070_s23 + $0x13b8] ss:$164 sps:$4 sm:$0xff]  }
0x2199   : > { %14758 = vmatpush1.bf16.msra.mxu0 %v19401_v35  ;;  %v23549_v29 = vsel %vm6463_vm5, %v14361_v36, %v14363_v61  ;;  %14600 = vmatprep.subr.bf16.mxu1 %v19406_v11  ;;  %v14365_v62 = vpop.f32.mrb[174].mxu0  ;;  %v14207_v56 = vpop.f32.mrb[163].mxu1  ;;  %v19460_v47 = vld [vmem:[%s24070_s23 + $0x7c] ss:$164 sps:$4 sm:$0xff]   ;;  %v19463_v35 = vld [vmem:[%s24070_s23 + $0x94] ss:$164 sps:$4 sm:$0xff]  }
0x219a   : > { %14759 = vmatprep.subr.bf16.mxu0 %v19409_v32  ;;  %v14366_v52 = vpop.f32.mrb[175].mxu0  ;;  %v19458_v11 = vld [vmem:[%s24070_s23 + $0x78] ss:$164 sps:$4 sm:$0xff]   ;;  %v19466_v32 = vld [vmem:[%s24070_s23 + $0x1c4] ss:$164 sps:$4 sm:$0xff]  }
0x219b   : > { %v19469_v36 = vld [vmem:[%s24070_s23 + $0x1dc] ss:$164 sps:$4 sm:$0xff]   ;;  %v19475_v10 = vld [vmem:[%s24070_s23 + $0x324] ss:$164 sps:$4 sm:$0xff]   ;;  %v19478_v56 = vld [vmem:[%s24070_s23 + $0x454] ss:$164 sps:$4 sm:$0xff]  }
0x219c   : > { %14601 = vmatpush1.bf16.msra.mxu1 %v19404_v33  ;;  %v19464_v40 = vld [vmem:[%s24070_s23 + $0x1c0] ss:$164 sps:$4 sm:$0xff]   ;;  %v19467_v61 = vld [vmem:[%s24070_s23 + $0x1d8] ss:$164 sps:$4 sm:$0xff]   ;;  %v19472_v33 = vld [vmem:[%s24070_s23 + $0x30c] ss:$164 sps:$4 sm:$0xff]  }
0x219d   : > { %14760 = vmatpush1.bf16.msra.mxu0 %v19407_v1  ;;  %14602 = vmatprep.subr.bf16.mxu1 %v19412_v13  ;;  %v19470_v1 = vld [vmem:[%s24070_s23 + $0x308] ss:$164 sps:$4 sm:$0xff]   ;;  %v19473_v62 = vld [vmem:[%s24070_s23 + $0x320] ss:$164 sps:$4 sm:$0xff]   ;;  %v19476_v52 = vld [vmem:[%s24070_s23 + $0x450] ss:$164 sps:$4 sm:$0xff]  }
0x219e   : > { %14761 = vmatprep.subr.bf16.mxu0 %v19415_v27  ;;  %v14210_v48 = vpop.f32.mrb[164].mxu1  ;;  %v19481_v13 = vld [vmem:[%s24070_s23 + $0x46c] ss:$164 sps:$4 sm:$0xff]  }
0x219f   : > { %v14369_v25 = vpop.f32.mrb[176].mxu0  ;;  %v14211_v28 = vpop.f32.mrb[165].mxu1  ;;  %v19479_v27 = vld [vmem:[%s24070_s23 + $0x468] ss:$164 sps:$4 sm:$0xff]   ;;  %v19485_v48 = vld [vmem:[%s24070_s23 + $0x5b0] ss:$164 sps:$4 sm:$0xff]  }
0x21a0   : > { %14603 = vmatpush1.bf16.msra.mxu1 %v19410_v3  ;;  %v14370_v8 = vpop.f32.mrb[177].mxu0  ;;  %v14212_v63 = vpop.f32.mrb[166].mxu1  ;;  %v19484_v3 = vld [vmem:[%s24070_s23 + $0x59c] ss:$164 sps:$4 sm:$0xff]  }
0x21a1   : > { %14762 = vmatpush1.bf16.msra.mxu0 %v19413_v41  ;;  %14604 = vmatprep.subr.bf16.mxu1 %v19418_v60  ;;  %v14371_v5 = vpop.f32.mrb[178].mxu0  ;;  %v14213_v31 = vpop.f32.mrb[167].mxu1  ;;  %v19487_v41 = vld [vmem:[%s24070_s23 + $0x5b4] ss:$164 sps:$4 sm:$0xff]   ;;  %v19493_v28 = vld [vmem:[%s24070_s23 + $0x6fc] ss:$164 sps:$4 sm:$0xff]  }
0x21a2   : > { %14763 = vmatprep.subr.bf16.mxu0 %v19421_v34  ;;  %v14372_v44 = vpop.f32.mrb[179].mxu0  ;;  %v19482_v60 = vld [vmem:[%s24070_s23 + $0x598] ss:$164 sps:$4 sm:$0xff]   ;;  %v19490_v34 = vld [vmem:[%s24070_s23 + $0x6e4] ss:$164 sps:$4 sm:$0xff]  }
0x21a3   : > { %v19491_v31 = vld [vmem:[%s24070_s23 + $0x6f8] ss:$164 sps:$4 sm:$0xff]  }
0x21a4   : > { %14605 = vmatpush1.bf16.msra.mxu1 %v19416_v20 }
0x21a5   : > { %14764 = vmatpush1.bf16.msra.mxu0 %v19419_v14  ;;  %14606 = vmatprep.subr.bf16.mxu1 %v19424_v12  ;;  %v19488_v14 = vld [vmem:[%s24070_s23 + $0x6e0] ss:$164 sps:$4 sm:$0xff]  }
0x21a6   : > { %14765 = vmatprep.subr.bf16.mxu0 %v19427_v51 }
0x21a8   : > { %14607 = vmatpush1.bf16.msra.mxu1 %v19422_v6  ;;  %v19496_v6 = vld [vmem:[%s24070_s23 + $0x82c] ss:$164 sps:$4 sm:$0xff]  }
0x21a9   : > { %14766 = vmatpush1.bf16.msra.mxu0 %v19425_v26  ;;  %14608 = vmatprep.subr.bf16.mxu1 %v19430_v16 }
0x21aa   : > { %14767 = vmatprep.subr.bf16.mxu0 %v19433_v58  ;;  %v19499_v58 = vld [vmem:[%s24070_s23 + $0x844] ss:$164 sps:$4 sm:$0xff]  }
0x21ac   : > { %14609 = vmatpush1.bf16.msra.mxu1 %v19428_v37 }
0x21ad   : > { %14768 = vmatpush1.bf16.msra.mxu0 %v19431_v49  ;;  %14610 = vmatprep.subr.bf16.mxu1 %v19436_v4  ;;  %v19494_v49 = vld [vmem:[%s24070_s23 + $0x828] ss:$164 sps:$4 sm:$0xff]   ;;  %v19497_v4 = vld [vmem:[%s24070_s23 + $0x840] ss:$164 sps:$4 sm:$0xff]  }
0x21ae   : > { %14769 = vmatprep.subr.bf16.mxu0 %v19439_v45 }
0x21b0   : > { %14611 = vmatpush1.bf16.msra.mxu1 %v19434_v22  ;;  %v19505_v22 = vld [vmem:[%s24070_s23 + $0x98c] ss:$164 sps:$4 sm:$0xff]  }
0x21b1   : > { %14770 = vmatpush1.bf16.msra.mxu0 %v19437_v19  ;;  %14612 = vmatprep.subr.bf16.mxu1 %v19442_v53 }
0x21b2   : > { %14771 = vmatprep.subr.bf16.mxu0 %v19445_v17 }
0x21b4   : > { %14613 = vmatpush1.bf16.msra.mxu1 %v19440_v18 }
0x21b5   : > { %14772 = vmatpush1.bf16.msra.mxu0 %v19443_v2  ;;  %14614 = vmatprep.subr.bf16.mxu1 %v19448_v30  ;;  %v19503_v2 = vld [vmem:[%s24070_s23 + $0x988] ss:$164 sps:$4 sm:$0xff]  }
0x21b6   : > { %14773 = vmatprep.subr.bf16.mxu0 %v19451_v39 }
0x21b8   : > { %14615 = vmatpush1.bf16.msra.mxu1 %v19446_v46  ;;  %v19508_v46 = vld [vmem:[%s24070_s23 + $0xabc] ss:$164 sps:$4 sm:$0xff]  }
0x21b9   : > { %14774 = vmatpush1.bf16.msra.mxu0 %v19449_v50  ;;  %14616 = vmatprep.subr.bf16.mxu1 %v19454_v0  ;;  %v19511_v0 = vld [vmem:[%s24070_s23 + $0xad4] ss:$164 sps:$4 sm:$0xff]  }
0x21ba   : > { %14775 = vmatprep.subr.bf16.mxu0 %v19457_v57  ;;  %v19506_v57 = vld [vmem:[%s24070_s23 + $0xab8] ss:$164 sps:$4 sm:$0xff]  }
0x21bc   : > { %14617 = vmatpush1.bf16.msra.mxu1 %v19452_v9  ;;  %v19509_v9 = vld [vmem:[%s24070_s23 + $0xad0] ss:$164 sps:$4 sm:$0xff]  }
0x21bd   : > { %14776 = vmatpush1.bf16.msra.mxu0 %v19455_v23  ;;  %14692 = vmatprep.subr.bf16.mxu1 %v19460_v47  ;;  %v19514_v23 = vld [vmem:[%s24070_s23 + $0xc04] ss:$164 sps:$4 sm:$0xff]  }
0x21be   : > { %14851 = vmatprep.subr.bf16.mxu0 %v19463_v35  ;;  %v19517_v35 = vld [vmem:[%s24070_s23 + $0xc1c] ss:$164 sps:$4 sm:$0xff]  }
0x21bf   : > { %14619 = vmatmul.mubr.bf16.vlgmr.msra.gmra.mrb[204].mxu1 %v22976_v21 }
0x21c0   : > { %14778 = vmatmul.mubr.bf16.vlgmr.msra.gmra.mrb[216].mxu0 %v22976_v21  ;;  %14624 = vmatprep.mubr.bf16.mxu1 %v23006_v55 }
0x21c1   : > { %14693 = vmatpush1.bf16.msra.mxu1 %v19458_v11  ;;  %14783 = vmatprep.mubr.bf16.mxu0 %v23006_v55 }
0x21c2   : > { %14852 = vmatpush1.bf16.msra.mxu0 %v19461_v42  ;;  %14694 = vmatprep.subr.bf16.mxu1 %v19466_v32 }
0x21c3   : > { %14853 = vmatprep.subr.bf16.mxu0 %v19469_v36  ;;  %v19512_v36 = vld [vmem:[%s24070_s23 + $0xc00] ss:$164 sps:$4 sm:$0xff]  }
0x21c5   : > { %14695 = vmatpush1.bf16.msra.mxu1 %v19464_v40 }
0x21c6   : > { %14854 = vmatpush1.bf16.msra.mxu0 %v19467_v61  ;;  %14696 = vmatprep.subr.bf16.mxu1 %v19472_v33  ;;  %v19515_v61 = vld [vmem:[%s24070_s23 + $0xc18] ss:$164 sps:$4 sm:$0xff]  }
0x21c7   : > { %14625 = vmatmul.mubr.bf16.gmra.mrb[208].mxu1 %v23004_v59  ;;  %14855 = vmatprep.subr.bf16.mxu0 %v19475_v10 }
0x21c8   : > { %14784 = vmatmul.mubr.bf16.gmra.mrb[220].mxu0 %v23004_v59  ;;  %14632 = vmatprep.mubr.bf16.mxu1 %v23035_v38 }
0x21c9   : > { %14697 = vmatpush1.bf16.msra.mxu1 %v19470_v1  ;;  %14789 = vmatprep.mubr.bf16.mxu0 %v23035_v38  ;;  %v19520_v1 = vld [vmem:[%s24070_s23 + $0xd4c] ss:$164 sps:$4 sm:$0xff]  }
0x21ca   : > { %14856 = vmatpush1.bf16.msra.mxu0 %v19473_v62  ;;  %14698 = vmatprep.subr.bf16.mxu1 %v19478_v56  ;;  %v19523_v56 = vld [vmem:[%s24070_s23 + $0xd64] ss:$164 sps:$4 sm:$0xff]  }
0x21cb   : > { %14857 = vmatprep.subr.bf16.mxu0 %v19481_v13  ;;  %v19518_v13 = vld [vmem:[%s24070_s23 + $0xd48] ss:$164 sps:$4 sm:$0xff]  }
0x21cd   : > { %14699 = vmatpush1.bf16.msra.mxu1 %v19476_v52  ;;  %v19521_v52 = vld [vmem:[%s24070_s23 + $0xd60] ss:$164 sps:$4 sm:$0xff]  }
0x21ce   : > { %14858 = vmatpush1.bf16.msra.mxu0 %v19479_v27  ;;  %14700 = vmatprep.subr.bf16.mxu1 %v19484_v3  ;;  %v19526_v27 = vld [vmem:[%s24070_s23 + $0xe94] ss:$164 sps:$4 sm:$0xff]   ;;  %v19529_v3 = vld [vmem:[%s24070_s23 + $0xeac] ss:$164 sps:$4 sm:$0xff]  }
0x21cf   : > { %14633 = vmatmul.mubr.bf16.gmra.mrb[212].mxu1 %v23033_v15  ;;  %14859 = vmatprep.subr.bf16.mxu0 %v19487_v41  ;;  %v14302_v25 = vpop.f32.mrb[168].mxu1  ;;  %v19524_v41 = vld [vmem:[%s24070_s23 + $0xe90] ss:$164 sps:$4 sm:$0xff]  }
0x21d0   : > { %14790 = vmatmul.mubr.bf16.gmra.mrb[224].mxu0 %v23033_v15  ;;  %14724 = vmatprep.mubr.bf16.mxu1 %v22978_v7  ;;  %v14461_v8 = vpop.f32.mrb[180].mxu0  ;;  %v14303_v20 = vpop.f32.mrb[169].mxu1  ;;  %v19530_v25 = vld [vmem:[%s24070_s23 + $0xfd8] ss:$164 sps:$4 sm:$0xff]  }
0x21d1   : > { %14701 = vmatpush1.bf16.msra.mxu1 %v19482_v60  ;;  %14883 = vmatprep.mubr.bf16.mxu0 %v22978_v7  ;;  %v14462_v63 = vpop.f32.mrb[181].mxu0  ;;  %v14304_v5 = vpop.f32.mrb[170].mxu1  ;;  %v19527_v60 = vld [vmem:[%s24070_s23 + $0xea8] ss:$164 sps:$4 sm:$0xff]   ;;  %v19541_v20 = vld [vmem:[%s24070_s23 + $0x113c] ss:$164 sps:$4 sm:$0xff]  }
0x21d2   : > { %14860 = vmatpush1.bf16.msra.mxu0 %v19485_v48  ;;  %14702 = vmatprep.subr.bf16.mxu1 %v19490_v34  ;;  %v15027_v12 = vsel %vm15018_vm14, %v23542_v43, %v14304_v5  ;;  %v14463_v44 = vpop.f32.mrb[182].mxu0  ;;  %v14306_v51 = vpop.f32.mrb[171].mxu1  ;;  %v19502_v43 = vld [vmem:[%s24070_s23 + $0x974] ss:$164 sps:$4 sm:$0xff]   ;;  %v19532_v48 = vld [vmem:[%s24070_s23 + $0xfdc] ss:$164 sps:$4 sm:$0xff]  }
0x21d3   : > { %14861 = vmatprep.subr.bf16.mxu0 %v19493_v28  ;;  %v15028_v26 = vsel %vm15020_vm15, %v15027_v12, %v14306_v51  ;;  %v14464_v16 = vpop.f32.mrb[183].mxu0  ;;  %v19535_v34 = vld [vmem:[%s24070_s23 + $0xff4] ss:$164 sps:$4 sm:$0xff]   ;;  %v19538_v8 = vld [vmem:[%s24070_s23 + $0x1124] ss:$164 sps:$4 sm:$0xff]  }
0x21d4   : > { %v23626_v37 = vadd.f32 %v15028_v26, %v23448_v54  ;;  %v19500_v54 = vld [vmem:[%s24070_s23 + $0x970] ss:$164 sps:$4 sm:$0xff]   ;;  %v19536_v63 = vld [vmem:[%s24070_s23 + $0x1120] ss:$164 sps:$4 sm:$0xff]   ;;  %v19542_v12 = vld [vmem:[%s24070_s23 + $0x1268] ss:$164 sps:$4 sm:$0xff]  }
0x21d5   : > { %14703 = vmatpush1.bf16.msra.mxu1 %v19488_v14  ;;  %v19533_v28 = vld [vmem:[%s24070_s23 + $0xff0] ss:$164 sps:$4 sm:$0xff]   ;;  %v19539_v14 = vld [vmem:[%s24070_s23 + $0x1138] ss:$164 sps:$4 sm:$0xff]   ;;  %v19545_v44 = vld [vmem:[%s24070_s23 + $0x1280] ss:$164 sps:$4 sm:$0xff]  }
0x21d6   : > { %14862 = vmatpush1.bf16.msra.mxu0 %v19491_v31  ;;  %14704 = vmatprep.subr.bf16.mxu1 %v19496_v6  ;;  %v19544_v5 = vld [vmem:[%s24070_s23 + $0x126c] ss:$164 sps:$4 sm:$0xff]   ;;  %v19547_v31 = vld [vmem:[%s24070_s23 + $0x1284] ss:$164 sps:$4 sm:$0xff]   ;;  %v19550_v51 = vld [vmem:[%s24070_s23 + $0x13b4] ss:$164 sps:$4 sm:$0xff]  }
0x21d7   : > { %14863 = vmatprep.subr.bf16.mxu0 %v19499_v58  ;;  %v14310_v45 = vpop.f32.mrb[172].mxu1  ;;  %v19553_v6 = vld [vmem:[%s24070_s23 + $0x13cc] ss:$164 sps:$4 sm:$0xff]  }
0x21d8   : > { %v23632_v19 = vpop.f32.mrb[184].mxu0  ;;  %v14311_v53 = vpop.f32.mrb[173].mxu1  ;;  %v19548_v26 = vld [vmem:[%s24070_s23 + $0x13b0] ss:$164 sps:$4 sm:$0xff]   ;;  %v19551_v16 = vld [vmem:[%s24070_s23 + $0x13c8] ss:$164 sps:$4 sm:$0xff]  }
0x21d9   : > { %14705 = vmatpush1.bf16.msra.mxu1 %v19494_v49  ;;  %v23634_v17 = vpop.f32.mrb[185].mxu0  ;;  %v14312_v18 = vpop.f32.mrb[174].mxu1  ;;  %v19556_v58 = vld [vmem:[%s24070_s23 + $0x8c] ss:$164 sps:$4 sm:$0xff]   ;;  %v19557_v49 = vld [vmem:[%s24070_s23 + $0xae0] ss:$164 sps:$4 sm:$0xff]  }
0x21da   : > { %14864 = vmatpush1.bf16.msra.mxu0 %v19497_v4  ;;  %14706 = vmatprep.subr.bf16.mxu1 %v19502_v43  ;;  %v14471_v30 = vpop.f32.mrb[186].mxu0  ;;  %v14313_v39 = vpop.f32.mrb[175].mxu1  ;;  %v19554_v4 = vld [vmem:[%s24070_s23 + $0x88] ss:$164 sps:$4 sm:$0xff]   ;;  %v19558_v43 = vld [vmem:[%s24070_s23 + $0xa0] ss:$164 sps:$4 sm:$0xff]  }
0x21db   : > { %14865 = vmatprep.subr.bf16.mxu0 %v19505_v22  ;;  %v14472_v50 = vpop.f32.mrb[187].mxu0  ;;  %v19561_v45 = vld [vmem:[%s24070_s23 + $0x1d4] ss:$164 sps:$4 sm:$0xff]   ;;  %v19562_v22 = vld [vmem:[%s24070_s23 + $0xc28] ss:$164 sps:$4 sm:$0xff]  }
0x21dc   : > { %v19559_v53 = vld [vmem:[%s24070_s23 + $0x1d0] ss:$164 sps:$4 sm:$0xff]   ;;  %v19566_v18 = vld [vmem:[%s24070_s23 + $0x31c] ss:$164 sps:$4 sm:$0xff]  }
0x21dd   : > { %14707 = vmatpush1.bf16.msra.mxu1 %v19500_v54  ;;  %v19563_v54 = vld [vmem:[%s24070_s23 + $0x1e8] ss:$164 sps:$4 sm:$0xff]   ;;  %v19564_v30 = vld [vmem:[%s24070_s23 + $0x318] ss:$164 sps:$4 sm:$0xff]   ;;  %v19568_v39 = vld [vmem:[%s24070_s23 + $0x330] ss:$164 sps:$4 sm:$0xff]  }
0x21de   : > { %14866 = vmatpush1.bf16.msra.mxu0 %v19503_v2  ;;  %14708 = vmatprep.subr.bf16.mxu1 %v19508_v46  ;;  %v19567_v2 = vld [vmem:[%s24070_s23 + $0xd70] ss:$164 sps:$4 sm:$0xff]   ;;  %v19571_v46 = vld [vmem:[%s24070_s23 + $0x464] ss:$164 sps:$4 sm:$0xff]   ;;  %v19572_v50 = vld [vmem:[%s24070_s23 + $0xeb8] ss:$164 sps:$4 sm:$0xff]  }
0x21df   : > { %14867 = vmatprep.subr.bf16.mxu0 %v19511_v0  ;;  %v14316_v47 = vpop.f32.mrb[176].mxu1  ;;  %v19569_v0 = vld [vmem:[%s24070_s23 + $0x460] ss:$164 sps:$4 sm:$0xff]  }
0x21e0   : > { %v14475_v11 = vpop.f32.mrb[188].mxu0  ;;  %v14317_v42 = vpop.f32.mrb[177].mxu1  ;;  %v19574_v47 = vld [vmem:[%s24070_s23 + $0x5a8] ss:$164 sps:$4 sm:$0xff]  }
0x21e1   : > { %14709 = vmatpush1.bf16.msra.mxu1 %v19506_v57  ;;  %v14476_v32 = vpop.f32.mrb[189].mxu0  ;;  %v14318_v40 = vpop.f32.mrb[178].mxu1  ;;  %v19573_v57 = vld [vmem:[%s24070_s23 + $0x478] ss:$164 sps:$4 sm:$0xff]  }
0x21e2   : > { %14868 = vmatpush1.bf16.msra.mxu0 %v19509_v9  ;;  %14710 = vmatprep.subr.bf16.mxu1 %v19514_v23  ;;  %v14477_v33 = vpop.f32.mrb[190].mxu0  ;;  %v14319_v10 = vpop.f32.mrb[179].mxu1  ;;  %v19576_v9 = vld [vmem:[%s24070_s23 + $0x5ac] ss:$164 sps:$4 sm:$0xff]   ;;  %v19577_v23 = vld [vmem:[%s24070_s23 + $0x1000] ss:$164 sps:$4 sm:$0xff]  }
0x21e3   : > { %14869 = vmatprep.subr.bf16.mxu0 %v19517_v35  ;;  %v14478_v62 = vpop.f32.mrb[191].mxu0  ;;  %v19578_v35 = vld [vmem:[%s24070_s23 + $0x5c0] ss:$164 sps:$4 sm:$0xff]   ;;  %v19581_v11 = vld [vmem:[%s24070_s23 + $0x6f4] ss:$164 sps:$4 sm:$0xff]  }
0x21e4   : > { %v19582_v32 = vld [vmem:[%s24070_s23 + $0x1148] ss:$164 sps:$4 sm:$0xff]   ;;  %v19579_v33 = vld [vmem:[%s24070_s23 + $0x6f0] ss:$164 sps:$4 sm:$0xff]  }
0x21e5   : > { %14711 = vmatpush1.bf16.msra.mxu1 %v19512_v36  ;;  %v19583_v62 = vld [vmem:[%s24070_s23 + $0x708] ss:$164 sps:$4 sm:$0xff]  }
0x21e6   : > { %14870 = vmatpush1.bf16.msra.mxu0 %v19515_v61  ;;  %14712 = vmatprep.subr.bf16.mxu1 %v19520_v1 }
0x21e7   : > { %14871 = vmatprep.subr.bf16.mxu0 %v19523_v56 }
0x21e9   : > { %14713 = vmatpush1.bf16.msra.mxu1 %v19518_v13  ;;  %v19586_v13 = vld [vmem:[%s24070_s23 + $0x83c] ss:$164 sps:$4 sm:$0xff]  }
0x21ea   : > { %14872 = vmatpush1.bf16.msra.mxu0 %v19521_v52  ;;  %14714 = vmatprep.subr.bf16.mxu1 %v19526_v27  ;;  %v19587_v27 = vld [vmem:[%s24070_s23 + $0x1290] ss:$164 sps:$4 sm:$0xff]  }
0x21eb   : > { %14873 = vmatprep.subr.bf16.mxu0 %v19529_v3  ;;  %v19584_v3 = vld [vmem:[%s24070_s23 + $0x838] ss:$164 sps:$4 sm:$0xff]  }
0x21ed   : > { %14715 = vmatpush1.bf16.msra.mxu1 %v19524_v41  ;;  %v19588_v41 = vld [vmem:[%s24070_s23 + $0x850] ss:$164 sps:$4 sm:$0xff]  }
0x21ee   : > { %14874 = vmatpush1.bf16.msra.mxu0 %v19527_v60  ;;  %14716 = vmatprep.subr.bf16.mxu1 %v19532_v48  ;;  %v19591_v60 = vld [vmem:[%s24070_s23 + $0x984] ss:$164 sps:$4 sm:$0xff]  }
0x21ef   : > { %14875 = vmatprep.subr.bf16.mxu0 %v19535_v34  ;;  %v19592_v34 = vld [vmem:[%s24070_s23 + $0x13d8] ss:$164 sps:$4 sm:$0xff]  }
0x21f1   : > { %14717 = vmatpush1.bf16.msra.mxu1 %v19530_v25 }
0x21f2   : > { %14876 = vmatpush1.bf16.msra.mxu0 %v19533_v28  ;;  %14718 = vmatprep.subr.bf16.mxu1 %v19538_v8 }
0x21f3   : > { %14877 = vmatprep.subr.bf16.mxu0 %v19541_v20 }
0x21f5   : > { %14719 = vmatpush1.bf16.msra.mxu1 %v19536_v63 }
0x21f6   : > { %14878 = vmatpush1.bf16.msra.mxu0 %v19539_v14  ;;  %14720 = vmatprep.subr.bf16.mxu1 %v19544_v5  ;;  %v19589_v14 = vld [vmem:[%s24070_s23 + $0x980] ss:$164 sps:$4 sm:$0xff]  }
0x21f7   : > { %14879 = vmatprep.subr.bf16.mxu0 %v19547_v31 }
0x21f9   : > { %14721 = vmatpush1.bf16.msra.mxu1 %v19542_v12 }
0x21fa   : > { %14880 = vmatpush1.bf16.msra.mxu0 %v19545_v44  ;;  %14722 = vmatprep.subr.bf16.mxu1 %v19550_v51  ;;  %v19593_v44 = vld [vmem:[%s24070_s23 + $0x998] ss:$164 sps:$4 sm:$0xff]  }
0x21fb   : > { %14881 = vmatprep.subr.bf16.mxu0 %v19553_v6  ;;  %v19596_v6 = vld [vmem:[%s24070_s23 + $0xacc] ss:$164 sps:$4 sm:$0xff]  }
0x21fd   : > { %14723 = vmatpush1.bf16.msra.mxu1 %v19548_v26 }
0x21fe   : > { %14882 = vmatpush1.bf16.msra.mxu0 %v19551_v16  ;;  %14798 = vmatprep.subr.bf16.mxu1 %v19556_v58  ;;  %v19594_v58 = vld [vmem:[%s24070_s23 + $0xac8] ss:$164 sps:$4 sm:$0xff]  }
0x21ff   : > { %16847 = vmatprep.subr.bf16.mxu0 %v19557_v49 }
0x2200   : > { %14725 = vmatmul.mubr.bf16.vlgmr.msra.gmra.mrb[216].mxu1 %v22976_v21 }
0x2201   : > { %14884 = vmatmul.mubr.bf16.vlgmr.msra.gmra.mrb[228].mxu0 %v22976_v21  ;;  %14730 = vmatprep.mubr.bf16.mxu1 %v23006_v55 }
0x2202   : > { %14799 = vmatpush1.bf16.msra.mxu1 %v19554_v4  ;;  %14889 = vmatprep.mubr.bf16.mxu0 %v23006_v55 }
0x2203   : > { %16848 = vmatpush3.bf16.msra.mxu0 %v19558_v43  ;;  %14800 = vmatprep.subr.bf16.mxu1 %v19561_v45  ;;  %v19597_v45 = vld [vmem:[%s24070_s23 + $0xc10] ss:$164 sps:$4 sm:$0xff]  }
0x2204   : > { %16849 = vmatprep.subr.bf16.mxu0 %v19562_v22 }
0x2206   : > { %14801 = vmatpush1.bf16.msra.mxu1 %v19559_v53 }
0x2207   : > { %16850 = vmatpush3.bf16.msra.mxu0 %v19563_v54  ;;  %14802 = vmatprep.subr.bf16.mxu1 %v19566_v18  ;;  %v19602_v18 = vld [vmem:[%s24070_s23 + $0xd5c] ss:$164 sps:$4 sm:$0xff]  }
0x2208   : > { %14731 = vmatmul.mubr.bf16.gmra.mrb[220].mxu1 %v23004_v59  ;;  %16851 = vmatprep.subr.bf16.mxu0 %v19567_v2 }
0x2209   : > { %14890 = vmatmul.mubr.bf16.gmra.mrb[232].mxu0 %v23004_v59  ;;  %14738 = vmatprep.mubr.bf16.mxu1 %v23035_v38 }
0x220a   : > { %14803 = vmatpush1.bf16.msra.mxu1 %v19564_v30  ;;  %14895 = vmatprep.mubr.bf16.mxu0 %v23035_v38  ;;  %v19600_v30 = vld [vmem:[%s24070_s23 + $0xd58] ss:$164 sps:$4 sm:$0xff]  }
0x220b   : > { %16852 = vmatpush3.bf16.msra.mxu0 %v19568_v39  ;;  %14804 = vmatprep.subr.bf16.mxu1 %v19571_v46  ;;  %v19605_v39 = vld [vmem:[%s24070_s23 + $0xea4] ss:$164 sps:$4 sm:$0xff]  }
0x220c   : > { %16853 = vmatprep.subr.bf16.mxu0 %v19572_v50  ;;  %v19603_v46 = vld [vmem:[%s24070_s23 + $0xea0] ss:$164 sps:$4 sm:$0xff]   ;;  %v19608_v50 = vld [vmem:[%s24070_s23 + $0xfec] ss:$164 sps:$4 sm:$0xff]  }
0x220e   : > { %14805 = vmatpush1.bf16.msra.mxu1 %v19569_v0  ;;  %v19606_v0 = vld [vmem:[%s24070_s23 + $0xfe8] ss:$164 sps:$4 sm:$0xff]  }
0x220f   : > { %16854 = vmatpush3.bf16.msra.mxu0 %v19573_v57  ;;  %14806 = vmatprep.subr.bf16.mxu1 %v19576_v9  ;;  %v19611_v57 = vld [vmem:[%s24070_s23 + $0x1134] ss:$164 sps:$4 sm:$0xff]  }
0x2210   : > { %14739 = vmatmul.mubr.bf16.gmra.mrb[224].mxu1 %v23033_v15  ;;  %16855 = vmatprep.subr.bf16.mxu0 %v19577_v23  ;;  %v14408_v42 = vpop.f32.mrb[180].mxu1  ;;  %v19609_v9 = vld [vmem:[%s24070_s23 + $0x1130] ss:$164 sps:$4 sm:$0xff]   ;;  %v19614_v23 = vld [vmem:[%s24070_s23 + $0x127c] ss:$164 sps:$4 sm:$0xff]  }
0x2211   : > { %14896 = vmatmul.mubr.bf16.gmra.mrb[236].mxu0 %v23033_v15  ;;  %14830 = vmatprep.mubr.bf16.mxu1 %v22978_v7  ;;  %v14567_v36 = vpop.f32.mrb[192].mxu0  ;;  %v14409_v40 = vpop.f32.mrb[181].mxu1  ;;  %v19620_v42 = vld [vmem:[%s24070_s23 + $0x9c] ss:$164 sps:$4 sm:$0xff]  }
0x2212   : > { %14807 = vmatpush1.bf16.msra.mxu1 %v19574_v47  ;;  %14989 = vmatprep.mubr.bf16.mxu0 %v22978_v7  ;;  %v14568_v61 = vpop.f32.mrb[193].mxu0  ;;  %v14410_v10 = vpop.f32.mrb[182].mxu1  ;;  %v19612_v47 = vld [vmem:[%s24070_s23 + $0x1278] ss:$164 sps:$4 sm:$0xff]   ;;  %v19623_v36 = vld [vmem:[%s24070_s23 + $0x1e4] ss:$164 sps:$4 sm:$0xff]  }
0x2213   : > { %16856 = vmatpush3.bf16.msra.mxu0 %v19578_v35  ;;  %14808 = vmatprep.subr.bf16.mxu1 %v19581_v11  ;;  %v14569_v1 = vpop.f32.mrb[194].mxu0  ;;  %v14411_v56 = vpop.f32.mrb[183].mxu1  ;;  %v19617_v35 = vld [vmem:[%s24070_s23 + $0x13c4] ss:$164 sps:$4 sm:$0xff]   ;;  %v19626_v61 = vld [vmem:[%s24070_s23 + $0x32c] ss:$164 sps:$4 sm:$0xff]  }
0x2214   : > { %16857 = vmatprep.subr.bf16.mxu0 %v19582_v32  ;;  %v14570_v52 = vpop.f32.mrb[195].mxu0  ;;  %v19615_v11 = vld [vmem:[%s24070_s23 + $0x13c0] ss:$164 sps:$4 sm:$0xff]   ;;  %v19618_v32 = vld [vmem:[%s24070_s23 + $0x98] ss:$164 sps:$4 sm:$0xff]  }
0x2215   : > { %v19621_v40 = vld [vmem:[%s24070_s23 + $0x1e0] ss:$164 sps:$4 sm:$0xff]   ;;  %v19629_v10 = vld [vmem:[%s24070_s23 + $0x474] ss:$164 sps:$4 sm:$0xff]  }
0x2216   : > { %14809 = vmatpush1.bf16.msra.mxu1 %v19579_v33  ;;  %v19624_v33 = vld [vmem:[%s24070_s23 + $0x328] ss:$164 sps:$4 sm:$0xff]   ;;  %v19627_v1 = vld [vmem:[%s24070_s23 + $0x470] ss:$164 sps:$4 sm:$0xff]   ;;  %v19630_v56 = vld [vmem:[%s24070_s23 + $0x5b8] ss:$164 sps:$4 sm:$0xff]  }
0x2217   : > { %16858 = vmatpush3.bf16.msra.mxu0 %v19583_v62  ;;  %14810 = vmatprep.subr.bf16.mxu1 %v19586_v13  ;;  %v19632_v62 = vld [vmem:[%s24070_s23 + $0x5bc] ss:$164 sps:$4 sm:$0xff]   ;;  %v19635_v13 = vld [vmem:[%s24070_s23 + $0x704] ss:$164 sps:$4 sm:$0xff]  }
0x2218   : > { %16859 = vmatprep.subr.bf16.mxu0 %v19587_v27  ;;  %v14414_v48 = vpop.f32.mrb[184].mxu1 }
0x2219   : > { %v15030_v25 = vsel %vm15010_vm10, %v23549_v29, %v14414_v48  ;;  %v14573_v28 = vpop.f32.mrb[196].mxu0  ;;  %v14416_v8 = vpop.f32.mrb[185].mxu1 }
0x221a   : > { %14811 = vmatpush1.bf16.msra.mxu1 %v19584_v3  ;;  %v15031_v20 = vsel %vm15012_vm11, %v15030_v25, %v14416_v8  ;;  %v14574_v63 = vpop.f32.mrb[197].mxu0  ;;  %v14418_v5 = vpop.f32.mrb[186].mxu1 }
0x221b   : > { %16860 = vmatpush3.bf16.msra.mxu0 %v19588_v41  ;;  %v15032_v31 = vsel %vm15014_vm12, %v15031_v20, %v23632_v19  ;;  %14812 = vmatprep.subr.bf16.mxu1 %v19591_v60  ;;  %v14575_v12 = vpop.f32.mrb[198].mxu0  ;;  %v14419_v51 = vpop.f32.mrb[187].mxu1  ;;  %v19599_v19 = vld [vmem:[%s24070_s23 + $0xc14] ss:$164 sps:$4 sm:$0xff]   ;;  %v19633_v41 = vld [vmem:[%s24070_s23 + $0x700] ss:$164 sps:$4 sm:$0xff]  }
0x221c   : > { %16861 = vmatprep.subr.bf16.mxu0 %v19592_v34  ;;  %v14577_v29 = vpop.f32.mrb[199].mxu0  ;;  %v23722_v26 = vsel %vm15016_vm13, %v15032_v31, %v23634_v17  ;;  %v19638_v34 = vld [vmem:[%s24070_s23 + $0x84c] ss:$164 sps:$4 sm:$0xff]   ;;  %v19641_v63 = vld [vmem:[%s24070_s23 + $0x994] ss:$164 sps:$4 sm:$0xff]  }
0x221d   : > { %v23725_v16 = vsel %vm6463_vm5, %v14575_v12, %v14577_v29  ;;  %v19636_v20 = vld [vmem:[%s24070_s23 + $0x848] ss:$164 sps:$4 sm:$0xff]   ;;  %v19639_v12 = vld [vmem:[%s24070_s23 + $0x990] ss:$164 sps:$4 sm:$0xff]   ;;  %v19644_v29 = vld [vmem:[%s24070_s23 + $0xadc] ss:$164 sps:$4 sm:$0xff]  }
0x221e   : > { %14813 = vmatpush1.bf16.msra.mxu1 %v19589_v14 }
0x221f   : > { %16862 = vmatpush3.bf16.msra.mxu0 %v19593_v44  ;;  %14814 = vmatprep.subr.bf16.mxu1 %v19596_v6 }
0x2220   : > { %v14422_v49 = vpop.f32.mrb[188].mxu1 }
0x2221   : > { %v14581_v4 = vpop.f32.mrb[200].mxu0  ;;  %v14423_v43 = vpop.f32.mrb[189].mxu1 }
0x2222   : > { %14990 = vmatmul.mubr.bf16.vlgmr.msra.gmra.mrb[240].mxu0 %v22976_v21  ;;  %14815 = vmatpush1.bf16.msra.mxu1 %v19594_v58  ;;  %v14582_v17 = vpop.f32.mrb[201].mxu0  ;;  %v14424_v22 = vpop.f32.mrb[190].mxu1  ;;  %v19647_v43 = vld [vmem:[%s24070_s23 + $0xc24] ss:$164 sps:$4 sm:$0xff]  }
0x2223   : > { %14995 = vmatprep.mubr.bf16.mxu0 %v23006_v55  ;;  %14816 = vmatprep.subr.bf16.mxu1 %v19599_v19  ;;  %v14583_v53 = vpop.f32.mrb[202].mxu0  ;;  %v14425_v54 = vpop.f32.mrb[191].mxu1 }
0x2224   : > { %v14584_v2 = vpop.f32.mrb[203].mxu0 }
0x2226   : > { %14817 = vmatpush1.bf16.msra.mxu1 %v19597_v45 }
0x2227   : > { %14818 = vmatprep.subr.bf16.mxu1 %v19602_v18  ;;  %v19650_v18 = vld [vmem:[%s24070_s23 + $0xd6c] ss:$164 sps:$4 sm:$0xff]  }
0x222a   : > { %14996 = vmatmul.mubr.bf16.gmra.mrb[244].mxu0 %v23004_v59  ;;  %14819 = vmatpush1.bf16.msra.mxu1 %v19600_v30 }
0x222b   : > { %15001 = vmatprep.mubr.bf16.mxu0 %v23035_v38  ;;  %14820 = vmatprep.subr.bf16.mxu1 %v19605_v39 }
0x222e   : > { %14821 = vmatpush1.bf16.msra.mxu1 %v19603_v46  ;;  %v19648_v46 = vld [vmem:[%s24070_s23 + $0xd68] ss:$164 sps:$4 sm:$0xff]  }
0x222f   : > { %14822 = vmatprep.subr.bf16.mxu1 %v19608_v50  ;;  %v19653_v50 = vld [vmem:[%s24070_s23 + $0xeb4] ss:$164 sps:$4 sm:$0xff]  }
0x2232   : > { %15002 = vmatmul.mubr.bf16.gmra.mrb[248].mxu0 %v23033_v15  ;;  %14823 = vmatpush1.bf16.msra.mxu1 %v19606_v0  ;;  %v19651_v0 = vld [vmem:[%s24070_s23 + $0xeb0] ss:$164 sps:$4 sm:$0xff]  }
0x2233   : > { %14824 = vmatprep.subr.bf16.mxu1 %v19611_v57  ;;  %v19656_v57 = vld [vmem:[%s24070_s23 + $0xffc] ss:$164 sps:$4 sm:$0xff]   ;;  %17292 = vmatprep.mubr.msk.f32.mxu0 %vm20080_vm0, %v24047_v24 }
0x2236   : > { %14825 = vmatpush1.bf16.msra.mxu1 %v19609_v9  ;;  %v19654_v9 = vld [vmem:[%s24070_s23 + $0xff8] ss:$164 sps:$4 sm:$0xff]  }
0x2237   : > { %14826 = vmatprep.subr.bf16.mxu1 %v19614_v23  ;;  %v19659_v23 = vld [vmem:[%s24070_s23 + $0x1144] ss:$164 sps:$4 sm:$0xff]  }
0x223a   : > { %14827 = vmatpush1.bf16.msra.mxu1 %v19612_v47  ;;  %v19657_v47 = vld [vmem:[%s24070_s23 + $0x1140] ss:$164 sps:$4 sm:$0xff]  }
0x223b   : > { %14828 = vmatprep.subr.bf16.mxu1 %v19617_v35  ;;  %v19662_v35 = vld [vmem:[%s24070_s23 + $0x128c] ss:$164 sps:$4 sm:$0xff]  }
0x223e   : > { %14829 = vmatpush1.bf16.msra.mxu1 %v19615_v11  ;;  %v19660_v11 = vld [vmem:[%s24070_s23 + $0x1288] ss:$164 sps:$4 sm:$0xff]  }
0x223f   : > { %14904 = vmatprep.subr.bf16.mxu1 %v19620_v42  ;;  %v19665_v42 = vld [vmem:[%s24070_s23 + $0x13d4] ss:$164 sps:$4 sm:$0xff]  }
0x2241   : > { %14831 = vmatmul.mubr.bf16.vlgmr.msra.gmra.mrb[228].mxu1 %v22976_v21 }
0x2242   : > { %14836 = vmatprep.mubr.bf16.mxu1 %v23006_v55  ;;  %14905 = vmatpush1.bf16.msra.mxu1 %v19618_v32  ;;  %v19663_v32 = vld [vmem:[%s24070_s23 + $0x13d0] ss:$164 sps:$4 sm:$0xff]  }
0x2243   : > { %14906 = vmatprep.subr.bf16.mxu1 %v19623_v36 }
0x2246   : > { %14907 = vmatpush1.bf16.msra.mxu1 %v19621_v40 }
0x2247   : > { %14908 = vmatprep.subr.bf16.mxu1 %v19626_v61 }
0x2249   : > { %14837 = vmatmul.mubr.bf16.gmra.mrb[232].mxu1 %v23004_v59 }
0x224a   : > { %14842 = vmatprep.mubr.bf16.mxu1 %v23035_v38  ;;  %14909 = vmatpush1.bf16.msra.mxu1 %v19624_v33 }
0x224b   : > { %14910 = vmatprep.subr.bf16.mxu1 %v19629_v10 }
0x224e   : > { %14911 = vmatpush1.bf16.msra.mxu1 %v19627_v1 }
0x224f   : > { %14912 = vmatprep.subr.bf16.mxu1 %v19632_v62 }
0x2251   : > { %14843 = vmatmul.mubr.bf16.gmra.mrb[236].mxu1 %v23033_v15  ;;  %v14514_v52 = vpop.f32.mrb[192].mxu1 }
0x2252   : > { %14913 = vmatpush1.bf16.msra.mxu1 %v19630_v56  ;;  %14936 = vmatprep.mubr.bf16.mxu1 %v22978_v7  ;;  %v14673_v27 = vpop.f32.mrb[204].mxu0  ;;  %v14515_v3 = vpop.f32.mrb[193].mxu1 }
0x2253   : > { %v14674_v60 = vpop.f32.mrb[205].mxu0  ;;  %14914 = vmatprep.subr.bf16.mxu1 %v19635_v13  ;;  %v14516_v48 = vpop.f32.mrb[194].mxu1 }
0x2254   : > { %v14675_v25 = vpop.f32.mrb[206].mxu0  ;;  %v14517_v28 = vpop.f32.mrb[195].mxu1 }
0x2255   : > { %v14676_v8 = vpop.f32.mrb[207].mxu0 }
0x2256   : > { %14915 = vmatpush1.bf16.msra.mxu1 %v19633_v41 }
0x2257   : > { %14916 = vmatprep.subr.bf16.mxu1 %v19638_v34 }
0x2259   : > { %v14520_v14 = vpop.f32.mrb[196].mxu1 }
0x225a   : > { %14917 = vmatpush1.bf16.msra.mxu1 %v19636_v20  ;;  %v15034_v7 = vsel %vm15018_vm14, %v23722_v26, %v14520_v14  ;;  %v14679_v5 = vpop.f32.mrb[208].mxu0  ;;  %v14522_v31 = vpop.f32.mrb[197].mxu1  ;;  %v19642_v26 = vld [vmem:[%s24070_s23 + $0xad8] ss:$164 sps:$4 sm:$0xff]  }
0x225b   : > { %v15035_v44 = vsel %vm15020_vm15, %v15034_v7, %v14522_v31  ;;  %v14680_v51 = vpop.f32.mrb[209].mxu0  ;;  %14918 = vmatprep.subr.bf16.mxu1 %v19641_v63  ;;  %v14524_v6 = vpop.f32.mrb[198].mxu1 }
0x225c   : > { %v23774_v58 = vadd.f32 %v23626_v37, %v15035_v44  ;;  %v23776_v19 = vpop.f32.mrb[210].mxu0  ;;  %v14525_v49 = vpop.f32.mrb[199].mxu1  ;;  %v19645_v37 = vld [vmem:[%s24070_s23 + $0xc20] ss:$164 sps:$4 sm:$0xff]  }
0x225d   : > { %v23778_v4 = vpop.f32.mrb[211].mxu0  ;;  %v20079_v49 = vmov 0.0|0.0  }
0x225e   : > { %14919 = vmatpush1.bf16.msra.mxu1 %v19639_v12  ;;  %17944 = vmatprep.subr.bf16.mxu0 %v20079_v49 }
0x225f   : > { %14920 = vmatprep.subr.bf16.mxu1 %v19644_v29 }
0x2261   : > { %v14528_v17 = vpop.f32.mrb[200].mxu1 }
0x2262   : > { %14921 = vmatpush1.bf16.msra.mxu1 %v19642_v26  ;;  %v14687_v45 = vpop.f32.mrb[212].mxu0  ;;  %v14529_v22 = vpop.f32.mrb[201].mxu1  ;;  %v15067_v26 = vld [vmem:[%s24073_s2 + $0x8] sm:$0xff] }
0x2263   : > { %v14688_v53 = vpop.f32.mrb[213].mxu0  ;;  %14922 = vmatprep.subr.bf16.mxu1 %v19647_v43  ;;  %v14530_v54 = vpop.f32.mrb[202].mxu1 }
0x2264   : > { %v14689_v2 = vpop.f32.mrb[214].mxu0  ;;  %v14531_v30 = vpop.f32.mrb[203].mxu1 }
0x2265   : > { %v14690_v39 = vpop.f32.mrb[215].mxu0  ;;  %v15068_v30 = vld [vmem:[%s24073_s2 + $0x10] sm:$0xff] }
0x2266   : > { %14923 = vmatpush1.bf16.msra.mxu1 %v19645_v37  ;;  %v15069_v39 = vld [vmem:[%s24073_s2 + $0x18] sm:$0xff] }
0x2267   : > { %14924 = vmatprep.subr.bf16.mxu1 %v19650_v18 }
0x226a   : > { %14925 = vmatpush1.bf16.msra.mxu1 %v19648_v46 }
0x226b   : > { %14926 = vmatprep.subr.bf16.mxu1 %v19653_v50 }
0x226e   : > { %14927 = vmatpush1.bf16.msra.mxu1 %v19651_v0  ;;  %v17948_v0 = vpack.c.bf16 %v15069_v39, %v15068_v30 }
0x226f   : > { %14928 = vmatprep.subr.bf16.mxu1 %v19656_v57 }
0x2272   : > { %14929 = vmatpush1.bf16.msra.mxu1 %v19654_v9  ;;  %v15070_v9 = vld [vmem:[%s24073_s2 + $0x20] sm:$0xff] }
0x2273   : > { %14930 = vmatprep.subr.bf16.mxu1 %v19659_v23  ;;  %v15071_v23 = vld [vmem:[%s24073_s2 + $0x28] sm:$0xff] }
0x2276   : > { %14931 = vmatpush1.bf16.msra.mxu1 %v19657_v47 }
0x2277   : > { %14932 = vmatprep.subr.bf16.mxu1 %v19662_v35  ;;  %v17951_v35 = vpack.c.bf16 %v15071_v23, %v15070_v9 }
0x227a   : > { %14933 = vmatpush1.bf16.msra.mxu1 %v19660_v11 }
0x227b   : > { %14934 = vmatprep.subr.bf16.mxu1 %v19665_v42 }
0x227e   : > { %14935 = vmatpush1.bf16.msra.mxu1 %v19663_v32 }
0x227f   : > { %17968 = vmatprep.subr.bf16.mxu1 %v20079_v49 }
0x2281   : > { %14937 = vmatmul.mubr.bf16.vlgmr.msra.gmra.mrb[240].mxu1 %v22976_v21 }
0x2282   : > { %14942 = vmatprep.mubr.bf16.mxu1 %v23006_v55 }
0x2289   : > { %14943 = vmatmul.mubr.bf16.gmra.mrb[244].mxu1 %v23004_v59 }
0x228a   : > { %14948 = vmatprep.mubr.bf16.mxu1 %v23035_v38 }
0x2291   : > { %14949 = vmatmul.mubr.bf16.gmra.mrb[248].mxu1 %v23033_v15 }
0x2292   : > { %v14620_v36 = vpop.f32.mrb[204].mxu1  ;;  %17301 = vmatprep.mubr.msk.f32.mxu1 %vm20080_vm0, %v24047_v24 }
0x2293   : > { %v14779_v40 = vpop.f32.mrb[216].mxu0  ;;  %v14621_v61 = vpop.f32.mrb[205].mxu1 }
0x2294   : > { %v14780_v33 = vpop.f32.mrb[217].mxu0  ;;  %v14622_v10 = vpop.f32.mrb[206].mxu1  ;;  %v15072_v61 = vld [vmem:[%s24073_s2 + $0x30] sm:$0xff] }
0x2295   : > { %v14781_v1 = vpop.f32.mrb[218].mxu0  ;;  %v14623_v62 = vpop.f32.mrb[207].mxu1  ;;  %v15073_v33 = vld [vmem:[%s24073_s2 + $0x38] sm:$0xff] }
0x2296   : > { %v14782_v56 = vpop.f32.mrb[219].mxu0  ;;  %v17954_v1 = vpack.c.bf16 %v15073_v33, %v15072_v61  ;;  %v15074_v62 = vld [vmem:[%s24073_s2 + $0x40] sm:$0xff] }
0x2297   : > { %v15075_v56 = vld [vmem:[%s24073_s2 + $0x48] sm:$0xff] }
0x229a   : > { %v14626_v13 = vpop.f32.mrb[208].mxu1 }
0x229b   : > { %v14785_v52 = vpop.f32.mrb[220].mxu0  ;;  %v14627_v27 = vpop.f32.mrb[209].mxu1  ;;  %v17957_v13 = vpack.c.bf16 %v15075_v56, %v15074_v62 }
0x229c   : > { %v14786_v21 = vpop.f32.mrb[221].mxu0  ;;  %v14628_v3 = vpop.f32.mrb[210].mxu1  ;;  %v15076_v52 = vld [vmem:[%s24073_s2 + $0x50] sm:$0xff]  ;;  %v15077_v27 = vld [vmem:[%s24073_s2 + $0x58] sm:$0xff] }
0x229d   : > { %v15037_v59 = vsel %vm15010_vm10, %v23725_v16, %v14628_v3  ;;  %v14787_v55 = vpop.f32.mrb[222].mxu0  ;;  %v14630_v38 = vpop.f32.mrb[211].mxu1  ;;  %v17960_v21 = vpack.c.bf16 %v15077_v27, %v15076_v52  ;;  %v15078_v3 = vld [vmem:[%s24073_s2 + $0x60] sm:$0xff] }
0x229e   : > { %v15038_v15 = vsel %vm15012_vm11, %v15037_v59, %v14630_v38  ;;  %v14788_v41 = vpop.f32.mrb[223].mxu0  ;;  %v15079_v59 = vld [vmem:[%s24073_s2 + $0x68] sm:$0xff] }
0x229f   : > { %v15039_v60 = vsel %vm15014_vm12, %v15038_v15, %v23776_v19  ;;  %v17963_v55 = vpack.c.bf16 %v15079_v59, %v15078_v3  ;;  %v15080_v15 = vld [vmem:[%s24073_s2 + $0x70] sm:$0xff]  ;;  %v15081_v41 = vld [vmem:[%s24073_s2 + $0x78] sm:$0xff]  ;;  %v15082_v59 = vld [vmem:[%s24076_s3] sm:$0x1] }
0x22a0   : > { %v15040_v48 = vsel %vm15016_vm13, %v15039_v60, %v23778_v4  ;;  %v15066_v4 = vld [vmem:[%s24073_s2] sm:$0xff]  ;;  %s24075_s2 = sld [smem:[#allocation25_spill]] }
0x22a1   : > { %v17945_v17 = vpack.c.bf16 %v15067_v26, %v15066_v4 }
0x22a2   : > { %v14634_v34 = vpop.f32.mrb[212].mxu1 }
0x22a3   : > { %v14791_v25 = vpop.f32.mrb[224].mxu0  ;;  %v14635_v28 = vpop.f32.mrb[213].mxu1  ;;  %17946 = vmatpush3.bf16.msra.mxu0 %v17945_v17 }
0x22a4   : > { %v14793_v8 = vpop.f32.mrb[225].mxu0  ;;  %v14636_v20 = vpop.f32.mrb[214].mxu1  ;;  %17947 = vmatprep.subr.bf16.mxu0 %v20079_v49  ;;  %v15154_v28 = vld [vmem:[%s24074_s12] sm:$0xff] }
0x22a5   : > { %v23808_v63 = vsel %vm6463_vm5, %v14791_v25, %v14793_v8  ;;  %v14795_v16 = vpop.f32.mrb[226].mxu0  ;;  %v14637_v14 = vpop.f32.mrb[215].mxu1  ;;  %v15155_v8 = vld [vmem:[%s24074_s12 + $0x8] sm:$0xff] }
0x22a6   : > { %v14796_v7 = vpop.f32.mrb[227].mxu0  ;;  %v17969_v20 = vpack.c.bf16 %v15155_v8, %v15154_v28  ;;  %v15062_v52 = vld [vmem:[%s24075_s2] sm:$0x1]  ;;  %s16592_s2 = sshll.u32 %s20256_s0, 4 }
0x22a7   : > { %17949 = vmatpush3.bf16.msra.mxu0 %v17948_v0  ;;  %s23858_s9 = scalar_lea.hbm %s20228_s27, %s16592_s2 }
0x22a8   : > { %17950 = vmatprep.subr.bf16.mxu0 %v20079_v49  ;;  %17970 = vmatpush3.bf16.msra.mxu1 %v17969_v20 }
0x22a9   : > { %17299 = vmatprep.subr.mxu1 %v24047_v24 }
0x22ab   : > { %17952 = vmatpush3.bf16.msra.mxu0 %v17951_v35 }
0x22ac   : > { %17953 = vmatprep.subr.bf16.mxu0 %v20079_v49 }
0x22af   : > { %17955 = vmatpush3.bf16.msra.mxu0 %v17954_v1 }
0x22b0   : > { %17956 = vmatprep.subr.bf16.mxu0 %v20079_v49 }
0x22b3   : > { %17958 = vmatpush3.bf16.msra.mxu0 %v17957_v13 }
0x22b4   : > { %17959 = vmatprep.subr.bf16.mxu0 %v20079_v49 }
0x22b7   : > { %17961 = vmatpush3.bf16.msra.mxu0 %v17960_v21 }
0x22b8   : > { %17962 = vmatprep.subr.bf16.mxu0 %v20079_v49 }
0x22bb   : > { %17964 = vmatpush3.bf16.msra.mxu0 %v17963_v55 }
0x22bc   : > { %17965 = vmatprep.subr.bf16.mxu0 %v20079_v49 }
0x22d3   : > { %v14726_v5 = vpop.f32.mrb[216].mxu1 }
0x22d4   : > { %v14885_v31 = vpop.f32.mrb[228].mxu0  ;;  %v14727_v12 = vpop.f32.mrb[217].mxu1 }
0x22d5   : > { %v14886_v44 = vpop.f32.mrb[229].mxu0  ;;  %v14728_v51 = vpop.f32.mrb[218].mxu1 }
0x22d6   : > { %v14887_v6 = vpop.f32.mrb[230].mxu0  ;;  %v14729_v29 = vpop.f32.mrb[219].mxu1 }
0x22d7   : > { %v14888_v19 = vpop.f32.mrb[231].mxu0 }
0x22db   : > { %v14732_v43 = vpop.f32.mrb[220].mxu1 }
0x22dc   : > { %v14891_v45 = vpop.f32.mrb[232].mxu0  ;;  %v14733_v22 = vpop.f32.mrb[221].mxu1 }
0x22dd   : > { %v14892_v37 = vpop.f32.mrb[233].mxu0  ;;  %v14734_v53 = vpop.f32.mrb[222].mxu1 }
0x22de   : > { %v15041_v54 = vsel %vm15018_vm14, %v15040_v48, %v14734_v53  ;;  %v14893_v18 = vpop.f32.mrb[234].mxu0  ;;  %v14736_v2 = vpop.f32.mrb[223].mxu1  ;;  %v17966_v48 = vpack.c.bf16 %v15081_v41, %v15080_v15 }
0x22df   : > { %v15042_v46 = vsel %vm15020_vm15, %v15041_v54, %v14736_v2  ;;  %v14894_v50 = vpop.f32.mrb[235].mxu0 }
0x22e0   : > { %v23817_v57 = vadd.f32 %v23774_v58, %v15042_v46  ;;  %17967 = vmatpush3.bf16.msra.mxu0 %v17966_v48 }
0x22e3   : > { %v14740_v47 = vpop.f32.mrb[224].mxu1 }
0x22e4   : > { %v23821_v11 = vpop.f32.mrb[236].mxu0  ;;  %v14741_v42 = vpop.f32.mrb[225].mxu1 }
0x22e5   : > { %v23823_v32 = vpop.f32.mrb[237].mxu0  ;;  %v14742_v36 = vpop.f32.mrb[226].mxu1 }
0x22e6   : > { %v14901_v58 = vpop.f32.mrb[238].mxu0  ;;  %v14743_v40 = vpop.f32.mrb[227].mxu1 }
0x22e7   : > { %v14902_v10 = vpop.f32.mrb[239].mxu0 }
0x22f5   : > { %v16863_v38 = vpop.f32.mrb[240].mxu0 }
0x22f6   : > { %v16864_v60 = vpop.f32.mrb[241].mxu0 }
0x22f7   : > { %v16866_v34 = vpop.f32.mrb[242].mxu0 }
0x22f8   : > { %v16867_v25 = vpop.f32.mrb[243].mxu0 }
0x22fd   : > { %v16869_v16 = vpop.f32.mrb[244].mxu0 }
0x22fe   : > { %v16870_v14 = vpop.f32.mrb[245].mxu0 }
0x22ff   : > { %v16872_v7 = vpop.f32.mrb[246].mxu0 }
0x2300   : > { %v16873_v5 = vpop.f32.mrb[247].mxu0 }
0x2305   : > { %v16875_v31 = vpop.f32.mrb[248].mxu0 }
0x2306   : > { %v16876_v12 = vpop.f32.mrb[249].mxu0 }
0x2307   : > { %v16878_v44 = vpop.f32.mrb[250].mxu0 }
0x2308   : > { %v16879_v51 = vpop.f32.mrb[251].mxu0 }
0x2309   : > { %v16880_v6 = vadd.f32 %v16879_v51, %v16878_v44 }
0x230b   : > { %v15054_v61 = vsel %vm6463_vm5, %v16880_v6, 0.0 }
0x2314   : > { %v14832_v29 = vpop.f32.mrb[228].mxu1 }
0x2315   : > { %v14833_v19 = vpop.f32.mrb[229].mxu1 }
0x2316   : > { %v14834_v49 = vpop.f32.mrb[230].mxu1 }
0x2317   : > { %v14835_v4 = vpop.f32.mrb[231].mxu1 }
0x231c   : > { %v14838_v26 = vpop.f32.mrb[232].mxu1 }
0x231d   : > { %v14839_v43 = vpop.f32.mrb[233].mxu1 }
0x231e   : > { %v14840_v17 = vpop.f32.mrb[234].mxu1 }
0x231f   : > { %v14841_v45 = vpop.f32.mrb[235].mxu1 }
0x2324   : > { %v14844_v22 = vpop.f32.mrb[236].mxu1 }
0x2325   : > { %v15044_v37 = vsel %vm15010_vm10, %v23808_v63, %v14844_v22  ;;  %v14846_v53 = vpop.f32.mrb[237].mxu1 }
0x2326   : > { %v15045_v24 = vsel %vm15012_vm11, %v15044_v37, %v14846_v53  ;;  %v14848_v54 = vpop.f32.mrb[238].mxu1 }
0x2327   : > { %v15046_v18 = vsel %vm15014_vm12, %v15045_v24, %v23821_v11  ;;  %v14849_v2 = vpop.f32.mrb[239].mxu1 }
0x2328   : > { %v15047_v30 = vsel %vm15016_vm13, %v15046_v18, %v23823_v32 }
0x2354   : > { %v14938_v39 = vpop.f32.mrb[240].mxu1 }
0x2355   : > { %v14939_v46 = vpop.f32.mrb[241].mxu1 }
0x2356   : > { %v14940_v50 = vpop.f32.mrb[242].mxu1 }
0x2357   : > { %v14941_v0 = vpop.f32.mrb[243].mxu1 }
0x235c   : > { %v14944_v9 = vpop.f32.mrb[244].mxu1 }
0x235d   : > { %v14945_v23 = vpop.f32.mrb[245].mxu1 }
0x235e   : > { %v14946_v47 = vpop.f32.mrb[246].mxu1 }
0x235f   : > { %v14947_v63 = vpop.f32.mrb[247].mxu1 }
0x2364   : > { %v14950_v35 = vpop.f32.mrb[248].mxu1 }
0x2365   : > { %v15048_v42 = vsel %vm15018_vm14, %v15047_v30, %v14950_v35  ;;  %v14952_v36 = vpop.f32.mrb[249].mxu1 }
0x2366   : > { %v15049_v11 = vsel %vm15020_vm15, %v15048_v42, %v14952_v36  ;;  %v14954_v58 = vpop.f32.mrb[250].mxu1 }
0x2367   : > { %v15053_v40 = vadd.f32 %v23817_v57, %v15049_v11  ;;  %v14955_v32 = vpop.f32.mrb[251].mxu1  ;;  %v15156_v57 = vld [vmem:[%s24074_s12 + $0x10] sm:$0xf]  ;;  %s20081_s12 = smov [#allocation7]  }
0x2368   : > { %17300 = vmatpush3.msk.msra.mxu1 %vm15014_vm12, %v15156_v57  ;;  %s19984_s17 = sshll.u32 %s20081_s12, 4  ;;  %s19985_s17 = int_to_ptr.vmem [resolvable:$false] %s19984_s17 }
0x2369   : > { %v15055_v33 = vadd.f32 %v15054_v61, %v15053_v40  ;;  %s19986_s3 = scalar_lea.vmem %s19985_s17, 32  ;;  %p19987_p0 = scmp.lt.s32.totalorder %s15266_s8, %s19985_s17 }
0x236a   : > { %p19988_p1 = scmp.lt.s32.totalorder %s19986_s3, %s19980_s14 }
0x236b   : > { %v15056_v10 = vrot.slane %v15055_v33, 4 }
0x236c   : > { %p19989_p2 = por %p19988_p1, %p19987_p0 }
0x236d   : > { %v15057_v1 = vadd.f32 %v15056_v10, %v15055_v33 }
0x236e   : > { %p19990_p3 = pnand %p19989_p2, %p19983_p13 }
0x236f   : > { %v15058_v62 = vrot.slane %v15057_v1, 2 }
0x2371   : > { %v15059_v56 = vadd.f32 %v15058_v62, %v15057_v1 }
0x2373   : > { %v15060_v13 = vrot.slane %v15059_v56, 1 }
0x2375   : > { %v15061_v27 = vadd.f32 %v15060_v13, %v15059_v56 }
0x2377   : > { %v15063_v21 = vadd.f32 %v15062_v52, %v15061_v27 }
0x2379   : > { %v15064_v3 = vmax.f32 %v15063_v21, 0.0 }
0x237b   : > { %17293 = vmatmul.mubr.f32.vlgmr.msra.gmra.mrb[94].mxu0 %v15064_v3  ;;  %15065 = vst [vmem:[%s917_s5] sm:$0x1] %v15064_v3 }
0x244e   : > { %v15149_v55 = vpop.f32.mrb[94].mxu0 }
0x244f   : > { %v15150_v38 = vadd.f32 %v15149_v55, %v15082_v59  ;;  %v17294_v15 = vpop.f32.mrb[95].mxu0 }
0x2451   : > { %v15153_v41 = vmax.f32 %v15150_v38, 0.0 }
0x2453   : > { %17302 = vmatmul.mubr.msk.f32.vlgmr.msra.gmra.mrb[252].mxu1 %vm15158_vm1, %v15153_v41 }
0x2454   : > { %19993 = shalt.err (!%p19990_p3)
}
0x2455   : > { %s19994_s5 = scalar_lea.hbm %s23858_s9, 16  ;;  %s19998_s4 = scalar_lea.hbm %s20228_s27, 32 }
0x2456   : > { %p19995_p4 = scmp.ne.s32.totalorder %s23858_s9, %s19994_s5  ;;  %p19999_p9 = scmp.lt.u32.totalorder %s23858_s9, %s20228_s27 }
0x2457   : > { %p20000_p10 = scmp.lt.u32.totalorder %s19998_s4, %s19994_s5  ;;  %p20002_p12 = scmp.lt.u32.totalorder %s19994_s5, %s23858_s9 }
0x2458   : > { %p19996_p7 = pnand %p19995_p4, %p20273_p5 }
0x2459   : > { %p20001_p11 = por %p20000_p10, %p19999_p9 }
0x245a   : > { %p19997_p8 = pneg %p19996_p7 }
0x245b   : > { %p20003_p0 = por %p20002_p12, %p20001_p11 }
0x245d   : > { %p20004_p13 = pnand %p20003_p0, %p19997_p8 }
0x245f   : > { %20007 = shalt.err (!%p20004_p13)
}
0x2460   : > { %18066 = dma.vmem_to_hbm [thread:$0]  (%p20273_p5), %s15266_s8, 16, %s23858_s9, %s15245_s13   ;;  %v15157_v60 = vld [vmem:[#allocation6] sm:$0x1]  ;;  %vm15239_vm2 = vcmask 0  }
0x2461   : > { %s937_s17 = scalar_lea.vmem %s20223_s6, %s20341_s28 }
0x2526   : > { %v15231_v48 = vpop.f32.mrb[252].mxu1 }
0x2527   : > { %v15232_v34 = vadd.f32 %v15231_v48, %v15157_v60  ;;  %v17303_v25 = vpop.f32.mrb[253].mxu1 }
0x2529   : > { %v15235_v28 = vmul.f32 0.5, %v15232_v34 }
0x252b   : > { %19978 = vtanh.f32 %v15235_v28 }
0x2535   : > { %v19979_v8 = vpop.eup %19978 }
0x2536   : > { %v15237_v20 = vadd.f32 1.0, %v19979_v8 }
0x2538   : > { %v15238_v16 = vmul.f32 0.5, %v15237_v20 }
0x253a   : > { %15240 = vst.msk [vmem:[%s937_s17] sm:$0x1] %vm15239_vm2, %v15238_v16 }
0x253b PF: > { %p18072_p1 = scmp.ge.s32.totalorder %s20042_s16, 2  ;;  %s15286_s14 = sand.u32 1, %s20030_s7  }
0x253c   : > { %s15287_s9 = scalar_lea.sflag [#allocation8], %s15286_s14 }
0x253d   : > { %p18069_p5 = pnand %p18072_p1, %p20277_p6 }
0x253f   : > { %20025 = dma.done.wait (!%p18069_p5), %s15287_s9, 16  }
0x2540   : > { %20027 = vsyncadd (!%p18069_p5), %s15287_s9, 4294967280  ;;  %p72_p2 = scmp.ge.s32.totalorder %s20260_s15, 4   ;;  %s24077_s7 = smov %s20034_s10 }
0x2541   : > { %s24078_s10 = smov %s20038_s11  ;;  %s24079_s11 = smov %s20271_s22 }
0x2542   : > { %s24080_s16 = smov %s20260_s15  ;;  %74 = sbr.rel (!%p72_p2) target bundleno = 62 (0x3e), region = 236 }
0x2549   :  { %15299 = vsyncpa [#allocation8], 1 }
0x254a   :  { %15301 = vsyncpa [#allocation8 + $0x1], 1 }

</bundles_post_ra>
